<compile_context>
chip_gen: v6e
topology: v6e:2x2x1
jax: 0.10.0
libtpu: 0.0.40
codegen_flags: <defaults>
</compile_context>

<pallas_src>
import functools
from collections import OrderedDict

import jax
import jax.numpy as jnp
from jax.experimental import pallas as pl
from jax.experimental.pallas import tpu as pltpu

# ---------------------------------------------------------------------------
# Model hyper-parameters (small, consistent with the module's forward)
# ---------------------------------------------------------------------------
IN_CH = 3            # RGB input channels
C_FEAT = 32          # backbone / voxel feature channels
D_BINS = 8           # depth bins of the voxel grid
FV_NUM_CLASSES = 8   # fv_classes['total']
BEV_NUM_CLASSES = 6  # bev_classes['total']


# ---------------------------------------------------------------------------
# Fused per-frame kernel
# ---------------------------------------------------------------------------
def _fused_kernel(img_ref, mask_ref, body_w_ref, body_b_ref, depth_w_ref,
                  depth_b_ref, fv_wt_ref, fv_bt_ref, bev_wt_ref, bev_bt_ref,
                  fv_logits_ref, fv_pred_ref, bev_logits_ref, bev_pred_ref,
                  bev_acc_ref, *, tile_h, W, D, FVC, BEVC, CIN):
    h = pl.program_id(1)
    n_h = pl.num_programs(1)
    h0 = pl.multiple_of(h * tile_h, tile_h)
    P = tile_h * W

    # ---- body: 3x3 "same" conv as ONE K = 9*CIN matmul + bias + ReLU --------
    win = img_ref[0, pl.ds(h0, tile_h + 2)]                # (tile_h+2, W+2, CIN) bf16
    cols = [win[dy:dy + tile_h, dx:dx + W, :]
            for dy in range(3) for dx in range(3)]          # 9 x (tile_h, W, CIN)
    patch = jnp.concatenate(cols, axis=-1).reshape(P, 9 * CIN)
    feat = jnp.dot(patch, body_w_ref[...], preferred_element_type=jnp.float32)
    feat = jnp.maximum(feat + body_b_ref[...], 0.0)         # (P, C) f32
    feat_bf = feat.astype(jnp.bfloat16)                     # (P, C)
    feat_t = feat.T.astype(jnp.bfloat16)                    # (C, P) lane-dense

    # ---- depth-distribution head + exact softmax over the D bins ------------
    dlog = jnp.dot(feat_bf, depth_w_ref[...], preferred_element_type=jnp.float32)
    dlog = dlog + depth_b_ref[...]                          # (P, D)
    m = jnp.max(dlog, axis=-1, keepdims=True)
    e = jnp.exp(dlog - m)
    prob = e / jnp.sum(e, axis=-1, keepdims=True)           # (P, D) f32

    # ---- fv head, computed directly in lane-dense (FVC, P) layout -----------
    # lift + fv depth collapse is the identity (softmax over depth sums to 1),
    # so fv logits are just the semantic head applied to the 2D features.
    fvl = jnp.dot(fv_wt_ref[...], feat_t, preferred_element_type=jnp.float32)
    fvl = fvl + fv_bt_ref[...]                              # (FVC, P)
    fv_logits_ref[0] = fvl
    best = fvl[0:1, :]                                      # unrolled lanewise argmax
    best_idx = jnp.zeros((1, P), jnp.int32)
    for k in range(1, FVC):
        cand = fvl[k:k + 1, :]
        upd = cand > best
        best = jnp.where(upd, cand, best)
        best_idx = jnp.where(upd, jnp.int32(k), best_idx)
    fv_pred_ref[0] = best_idx

    # ---- BEV: lift-splat height collapse as ONE MXU matmul ------------------
    #   acc[c, w*D + d] += sum_p feat[p, c] * prob[p, d] * [p % W == w]
    # mask_ref is the constant (P, W*D) block-diagonal selector; the lifted voxel
    # never exists, only the lane-dense (C, W*D) accumulator does.
    # TODO(synk): for very large W use a batched dot_general ('whd,whc->wdc')
    # instead, to avoid the W-fold masked-matmul flop redundancy.
    @pl.when(h == 0)
    def _init():
        bev_acc_ref[...] = jnp.zeros_like(bev_acc_ref)

    prob_bf = prob.astype(jnp.bfloat16)
    prob_rep = jnp.concatenate([prob_bf] * W, axis=-1)       # (P, W*D)
    prob_m = prob_rep * mask_ref[...]                        # block-diagonal over w
    bev_acc_ref[...] += jnp.dot(feat_t, prob_m,
                                preferred_element_type=jnp.float32)   # (C, W*D)

    @pl.when(h == n_h - 1)
    def _finalize():
        acc_bf = bev_acc_ref[...].astype(jnp.bfloat16)       # (C, W*D)
        blog = jnp.dot(bev_wt_ref[...], acc_bf, preferred_element_type=jnp.float32)
        blog = blog + bev_bt_ref[...]                        # (BEVC, W*D)
        bev_logits_ref[0] = blog
        bbest = blog[0:1, :]
        bidx = jnp.zeros((1, W * D), jnp.int32)
        for k in range(1, BEVC):
            cand = blog[k:k + 1, :]
            upd = cand > bbest
            bbest = jnp.where(upd, cand, bbest)
            bidx = jnp.where(upd, jnp.int32(k), bidx)
        bev_pred_ref[0] = bidx


def _pick_tile_h(H, W):
    # Largest row tile whose MXU M dim (tile_h*W) stays in <= 2048 and whose
    # flattened lane-dense output blocks stay 128-aligned.
    for t in range(H, 0, -1):
        if H % t == 0 and t * W <= 2048 and (t * W) % 128 == 0:
            return t
    return H  # single tile: blocks equal the full array dims, trivially legal


@jax.jit
def fused_frame_forward(params, img_nchw):
    """body -> depth/fv heads -> lift-splat BEV collapse -> bev head, one fused kernel."""
    B, Cin, H, W = img_nchw.shape
    tile_h = _pick_tile_h(H, W)
    n_h = H // tile_h
    P = tile_h * W

    # NCHW -> NHWC, zero-pad H/W by 1 for the 3x3 "same" conv.  The image goes to
    # the kernel at 1x (no channel packing); the 9 shift slices happen in VMEM.
    x = jnp.transpose(img_nchw, (0, 2, 3, 1))
    xp = jnp.pad(x, ((0, 0), (1, 1), (1, 1), (0, 0))).astype(jnp.bfloat16)

    # Constant block-diagonal selector for the in-kernel BEV collapse matmul.
    p_w = jnp.arange(P, dtype=jnp.int32) % W
    q_w = jnp.arange(W * D_BINS, dtype=jnp.int32) // D_BINS
    bev_mask = (p_w[:, None] == q_w[None, :]).astype(jnp.bfloat16)   # (P, W*D)

    body_w = params["body_w"].astype(jnp.bfloat16)                   # (27, C)
    body_b = params["body_b"].reshape(1, C_FEAT)
    depth_w = params["depth_w"].astype(jnp.bfloat16)                 # (C, D)
    depth_b = params["depth_b"].reshape(1, D_BINS)
    fv_wt = params["fv_w"].T.astype(jnp.bfloat16)                    # (FVC, C)
    fv_bt = params["fv_b"].reshape(FV_NUM_CLASSES, 1)
    bev_wt = params["bev_w"].T.astype(jnp.bfloat16)                  # (BEVC, C)
    bev_bt = params["bev_b"].reshape(BEV_NUM_CLASSES, 1)

    kernel = functools.partial(_fused_kernel, tile_h=tile_h, W=W, D=D_BINS,
                               FVC=FV_NUM_CLASSES, BEVC=BEV_NUM_CLASSES, CIN=Cin)

    fv_logits, fv_pred, bev_logits, bev_pred = pl.pallas_call(
        kernel,
        out_shape=(
            jax.ShapeDtypeStruct((B, FV_NUM_CLASSES, H * W), jnp.float32),
            jax.ShapeDtypeStruct((B, 1, H * W), jnp.int32),
            jax.ShapeDtypeStruct((B, BEV_NUM_CLASSES, W * D_BINS), jnp.float32),
            jax.ShapeDtypeStruct((B, 1, W * D_BINS), jnp.int32),
        ),
        grid=(B, n_h),
        in_specs=[
            pl.BlockSpec((1, H + 2, W + 2, Cin), lambda b, h: (b, 0, 0, 0)),
            pl.BlockSpec((P, W * D_BINS), lambda b, h: (0, 0)),
            pl.BlockSpec((9 * Cin, C_FEAT), lambda b, h: (0, 0)),
            pl.BlockSpec((1, C_FEAT), lambda b, h: (0, 0)),
            pl.BlockSpec((C_FEAT, D_BINS), lambda b, h: (0, 0)),
            pl.BlockSpec((1, D_BINS), lambda b, h: (0, 0)),
            pl.BlockSpec((FV_NUM_CLASSES, C_FEAT), lambda b, h: (0, 0)),
            pl.BlockSpec((FV_NUM_CLASSES, 1), lambda b, h: (0, 0)),
            pl.BlockSpec((BEV_NUM_CLASSES, C_FEAT), lambda b, h: (0, 0)),
            pl.BlockSpec((BEV_NUM_CLASSES, 1), lambda b, h: (0, 0)),
        ],
        out_specs=(
            pl.BlockSpec((1, FV_NUM_CLASSES, P), lambda b, h: (b, 0, h)),
            pl.BlockSpec((1, 1, P), lambda b, h: (b, 0, h)),
            pl.BlockSpec((1, BEV_NUM_CLASSES, W * D_BINS), lambda b, h: (b, 0, 0)),
            pl.BlockSpec((1, 1, W * D_BINS), lambda b, h: (b, 0, 0)),
        ),
        scratch_shapes=[pltpu.VMEM((C_FEAT, W * D_BINS), jnp.float32)],
        compiler_params=pltpu.CompilerParams(
            dimension_semantics=("parallel", "arbitrary"),
            vmem_limit_bytes=32 * 1024 * 1024),
    )(xp, bev_mask, body_w, body_b, depth_w, depth_b, fv_wt, fv_bt, bev_wt, bev_bt)

    # Outputs are already lane-dense and NCHW-ordered; only cheap reshapes remain
    # (plus a tiny (BEVC, W, D) -> (BEVC, D, W) flip on the small bev maps).
    fv_logits = fv_logits.reshape(B, FV_NUM_CLASSES, H, W)
    fv_pred = fv_pred.reshape(B, H, W)
    bev_logits = bev_logits.reshape(B, BEV_NUM_CLASSES, W, D_BINS).transpose(0, 1, 3, 2)
    bev_pred = bev_pred.reshape(B, W, D_BINS).transpose(0, 2, 1)
    return fv_pred, fv_logits, bev_pred, bev_logits


# ---------------------------------------------------------------------------
# Pure-JAX reference (same bf16 matmul precision) for a value sanity check
# ---------------------------------------------------------------------------
def _reference_frame_forward(params, img_nchw):
    B, Cin, H, W = img_nchw.shape
    x = jnp.transpose(img_nchw, (0, 2, 3, 1))
    xp = jnp.pad(x, ((0, 0), (1, 1), (1, 1), (0, 0))).astype(jnp.bfloat16)
    cols = [xp[:, dy:dy + H, dx:dx + W, :] for dy in range(3) for dx in range(3)]
    patch = jnp.concatenate(cols, axis=-1)                                   # (B,H,W,27)
    feat = jnp.einsum("bhwk,kc->bhwc", patch, params["body_w"].astype(jnp.bfloat16),
                      preferred_element_type=jnp.float32) + params["body_b"]
    feat = jnp.maximum(feat, 0.0)
    feat_bf = feat.astype(jnp.bfloat16)
    dlog = jnp.einsum("bhwc,cd->bhwd", feat_bf, params["depth_w"].astype(jnp.bfloat16),
                      preferred_element_type=jnp.float32) + params["depth_b"]
    prob = jax.nn.softmax(dlog, axis=-1)
    fvl = jnp.einsum("bhwc,ck->bhwk", feat_bf, params["fv_w"].astype(jnp.bfloat16),
                     preferred_element_type=jnp.float32) + params["fv_b"]
    fv_logits = jnp.transpose(fvl, (0, 3, 1, 2))
    fv_pred = jnp.argmax(fvl, axis=-1)
    vox = jnp.einsum("bhwd,bhwc->bwdc", prob.astype(jnp.bfloat16), feat_bf,
                     preferred_element_type=jnp.float32)
    blog = jnp.einsum("bwdc,ck->bwdk", vox.astype(jnp.bfloat16),
                      params["bev_w"].astype(jnp.bfloat16),
                      preferred_element_type=jnp.float32) + params["bev_b"]
    bev_logits = jnp.transpose(blog, (0, 3, 2, 1))
    bev_pred = jnp.transpose(jnp.argmax(blog, axis=-1), (0, 2, 1))
    return fv_pred, fv_logits, bev_pred, bev_logits


# ---------------------------------------------------------------------------
# Parameters (synthetic deterministic submodule weights)
# ---------------------------------------------------------------------------
def init_params(key):
    ks = jax.random.split(key, 4)
    return {
        # body conv weight stored as (9*Cin, C_FEAT) with k = (dy*3 + dx)*Cin + cin
        "body_w": 0.1 * jax.random.normal(ks[0], (9 * IN_CH, C_FEAT), jnp.float32),
        "body_b": jnp.zeros((C_FEAT,), jnp.float32),
        "depth_w": 0.1 * jax.random.normal(ks[1], (C_FEAT, D_BINS), jnp.float32),
        "depth_b": jnp.zeros((D_BINS,), jnp.float32),
        "fv_w": 0.1 * jax.random.normal(ks[2], (C_FEAT, FV_NUM_CLASSES), jnp.float32),
        "fv_b": jnp.zeros((FV_NUM_CLASSES,), jnp.float32),
        "bev_w": 0.1 * jax.random.normal(ks[3], (C_FEAT, BEV_NUM_CLASSES), jnp.float32),
        "bev_b": jnp.zeros((BEV_NUM_CLASSES,), jnp.float32),
    }


# ---------------------------------------------------------------------------
# UnsupervisedBevNet.forward (inference path: do_loss=False)
# ---------------------------------------------------------------------------
def unsupervised_bev_net_forward(params, img_list, *, fvsem_window_size=1,
                                 fvsem_step_size=1, use_fv=True, use_bev=True):
    result, loss, stats = OrderedDict(), OrderedDict(), OrderedDict()
    idx_curr = len(img_list) // 2

    # do_loss=False path: fv always consumes feat_voxel_curr (ego warping only
    # happens when computing losses) and bev only runs at i == idx_curr, so only
    # the current frame's backbone / voxel lift is live work.
    # TODO(synk): pad_packed_images bookkeeping and the camera/pose dependent
    # apply_perspective_distortion / ego_gt_warper resampling (external modules)
    # are identity here; inputs are dense.
    if use_fv or use_bev:
        fv_pred_c, fv_logits_c, bev_pred_c, bev_logits_c = fused_frame_forward(
            params, img_list[idx_curr])

    fv_sem_pred, fv_sem_logits = [], []
    bev_sem_pred, bev_sem_logits = [], []
    for i in range(idx_curr, min(len(img_list), idx_curr + fvsem_window_size + 1),
                   fvsem_step_size):
        if use_fv:
            # Non-current frames reuse the current frame's fv inference
            # (warped voxel == current voxel in the do_loss=False branch).
            fv_sem_pred.append(fv_pred_c)
            fv_sem_logits.append(fv_logits_c)
        if use_bev and i == idx_curr:
            bev_sem_pred.append(bev_pred_c)
            bev_sem_logits.append(bev_logits_c)

    if use_fv:
        loss["fv_sem_loss"] = jnp.asarray(0.0, jnp.float32)
        result["fv_sem_pred"] = fv_sem_pred
        result["fv_sem_logits"] = fv_sem_logits
    if use_bev:
        loss["bev_sem_loss"] = jnp.asarray(0.0, jnp.float32)
        result["bev_sem_pred"] = bev_sem_pred
        result["bev_sem_logits"] = bev_sem_logits

    return loss, result, stats


# ---------------------------------------------------------------------------
if __name__ == "__main__":
    params = init_params(jax.random.PRNGKey(0))

    # 3 temporal frames of (B=2, 3, H=16, W=32) images (NCHW, like PyTorch)
    B, H, W, T = 2, 16, 32, 3
    img_keys = jax.random.split(jax.random.PRNGKey(1), T)
    img_list = [jax.random.normal(img_keys[t], (B, IN_CH, H, W), jnp.float32)
                for t in range(T)]

    loss, result, stats = unsupervised_bev_net_forward(
        params, img_list, fvsem_window_size=1, fvsem_step_size=1,
        use_fv=True, use_bev=True)
    jax.block_until_ready((loss, result, stats))

    # shape sanity (matches the original module's inference outputs)
    assert len(result["fv_sem_pred"]) == 2            # frames idx_curr, idx_curr+1
    assert result["fv_sem_pred"][0].shape == (B, H, W)
    assert result["fv_sem_logits"][0].shape == (B, FV_NUM_CLASSES, H, W)
    assert len(result["bev_sem_pred"]) == 1           # only idx_curr
    assert result["bev_sem_pred"][0].shape == (B, D_BINS, W)
    assert result["bev_sem_logits"][0].shape == (B, BEV_NUM_CLASSES, D_BINS, W)

    # value sanity
    assert bool(jnp.all(jnp.isfinite(result["fv_sem_logits"][0])))
    assert bool(jnp.all(jnp.isfinite(result["bev_sem_logits"][0])))
    assert bool(jnp.all((result["fv_sem_pred"][0] >= 0)
                        & (result["fv_sem_pred"][0] < FV_NUM_CLASSES)))
    assert bool(jnp.all((result["bev_sem_pred"][0] >= 0)
                        & (result["bev_sem_pred"][0] < BEV_NUM_CLASSES)))

    # numeric check against a pure-JAX reference with matching bf16 precision
    idx_curr = len(img_list) // 2
    _, ref_fv_logits, _, ref_bev_logits = _reference_frame_forward(
        params, img_list[idx_curr])
    fv_err = float(jnp.max(jnp.abs(result["fv_sem_logits"][0] - ref_fv_logits)))
    bev_err = float(jnp.max(jnp.abs(result["bev_sem_logits"][0] - ref_bev_logits)))
    assert fv_err < 5e-2, f"fv logits mismatch: {fv_err}"
    assert bev_err < 5e-2, f"bev logits mismatch: {bev_err}"

    print("KERNEL_OK")
</pallas_src>

<mosaic_0001>
module attributes {stable_mosaic.version = 11 : i64} {
  func.func @_fused_kernel(%arg0: i32, %arg1: i32, %arg2: memref<1x18x34x3xbf16, #tpu.memory_space<vmem>>, %arg3: memref<512x256xbf16, #tpu.memory_space<vmem>>, %arg4: memref<27x32xbf16, #tpu.memory_space<vmem>>, %arg5: memref<1x32xf32, #tpu.memory_space<vmem>>, %arg6: memref<32x8xbf16, #tpu.memory_space<vmem>>, %arg7: memref<1x8xf32, #tpu.memory_space<vmem>>, %arg8: memref<8x32xbf16, #tpu.memory_space<vmem>>, %arg9: memref<8x1xf32, #tpu.memory_space<vmem>>, %arg10: memref<6x32xbf16, #tpu.memory_space<vmem>>, %arg11: memref<6x1xf32, #tpu.memory_space<vmem>>, %arg12: memref<1x8x512xf32, #tpu.memory_space<vmem>>, %arg13: memref<1x1x512xi32, #tpu.memory_space<vmem>>, %arg14: memref<1x6x256xf32, #tpu.memory_space<vmem>>, %arg15: memref<1x1x256xi32, #tpu.memory_space<vmem>>, %arg16: memref<32x256xf32, #tpu.memory_space<vmem>>) attributes {dimension_semantics = [#tpu.dimension_semantics<parallel>, #tpu.dimension_semantics<arbitrary>], iteration_bounds = array<i64: 2, 1>, scalar_prefetch = 0 : i64, scratch_operands = 1 : i64, tpu.core_type = #tpu.core_type<tc>, window_params = [{transform_indices = @transform_0, window_bounds = array<i64: 1, 18, 34, 3>}, {pipeline_mode = #tpu.pipeline_mode<synchronous>, transform_indices = @transform_1, window_bounds = array<i64: 512, 256>}, {pipeline_mode = #tpu.pipeline_mode<synchronous>, transform_indices = @transform_2, window_bounds = array<i64: 27, 32>}, {pipeline_mode = #tpu.pipeline_mode<synchronous>, transform_indices = @transform_3, window_bounds = array<i64: 1, 32>}, {pipeline_mode = #tpu.pipeline_mode<synchronous>, transform_indices = @transform_4, window_bounds = array<i64: 32, 8>}, {pipeline_mode = #tpu.pipeline_mode<synchronous>, transform_indices = @transform_5, window_bounds = array<i64: 1, 8>}, {pipeline_mode = #tpu.pipeline_mode<synchronous>, transform_indices = @transform_6, window_bounds = array<i64: 8, 32>}, {pipeline_mode = #tpu.pipeline_mode<synchronous>, transform_indices = @transform_7, window_bounds = array<i64: 8, 1>}, {pipeline_mode = #tpu.pipeline_mode<synchronous>, transform_indices = @transform_8, window_bounds = array<i64: 6, 32>}, {pipeline_mode = #tpu.pipeline_mode<synchronous>, transform_indices = @transform_9, window_bounds = array<i64: 6, 1>}, {transform_indices = @transform_10, window_bounds = array<i64: 1, 8, 512>}, {transform_indices = @transform_11, window_bounds = array<i64: 1, 1, 512>}, {transform_indices = @transform_12, window_bounds = array<i64: 1, 6, 256>}, {transform_indices = @transform_13, window_bounds = array<i64: 1, 1, 256>}]} {
    %c16_i32 = arith.constant 16 : i32
    %0 = arith.muli %arg1, %c16_i32 : i32
    %1 = tpu.assume_multiple %0, 16 : i32
    %c0 = arith.constant 0 : index
    %2 = arith.index_cast %1 : i32 to index
    %c0_0 = arith.constant 0 : index
    %c0_1 = arith.constant 0 : index
    %3 = vector.load %arg2[%c0, %2, %c0_0, %c0_1] : memref<1x18x34x3xbf16, #tpu.memory_space<vmem>>, vector<1x18x34x3xbf16>
    %4 = vector.shape_cast %3 : vector<1x18x34x3xbf16> to vector<18x34x3xbf16>
    %5 = vector.extract_strided_slice %4 {offsets = [0, 0, 0], sizes = [16, 32, 3], strides = [1, 1, 1]} : vector<18x34x3xbf16> to vector<16x32x3xbf16>
    %6 = vector.extract_strided_slice %4 {offsets = [0, 1, 0], sizes = [16, 32, 3], strides = [1, 1, 1]} : vector<18x34x3xbf16> to vector<16x32x3xbf16>
    %7 = vector.extract_strided_slice %4 {offsets = [0, 2, 0], sizes = [16, 32, 3], strides = [1, 1, 1]} : vector<18x34x3xbf16> to vector<16x32x3xbf16>
    %8 = vector.extract_strided_slice %4 {offsets = [1, 0, 0], sizes = [16, 32, 3], strides = [1, 1, 1]} : vector<18x34x3xbf16> to vector<16x32x3xbf16>
    %9 = vector.extract_strided_slice %4 {offsets = [1, 1, 0], sizes = [16, 32, 3], strides = [1, 1, 1]} : vector<18x34x3xbf16> to vector<16x32x3xbf16>
    %10 = vector.extract_strided_slice %4 {offsets = [1, 2, 0], sizes = [16, 32, 3], strides = [1, 1, 1]} : vector<18x34x3xbf16> to vector<16x32x3xbf16>
    %11 = vector.extract_strided_slice %4 {offsets = [2, 0, 0], sizes = [16, 32, 3], strides = [1, 1, 1]} : vector<18x34x3xbf16> to vector<16x32x3xbf16>
    %12 = vector.extract_strided_slice %4 {offsets = [2, 1, 0], sizes = [16, 32, 3], strides = [1, 1, 1]} : vector<18x34x3xbf16> to vector<16x32x3xbf16>
    %13 = vector.extract_strided_slice %4 {offsets = [2, 2, 0], sizes = [16, 32, 3], strides = [1, 1, 1]} : vector<18x34x3xbf16> to vector<16x32x3xbf16>
    %14 = tpu.concatenate %5, %6, %7, %8, %9, %10, %11, %12, %13 in 2 : vector<16x32x3xbf16>, vector<16x32x3xbf16>, vector<16x32x3xbf16>, vector<16x32x3xbf16>, vector<16x32x3xbf16>, vector<16x32x3xbf16>, vector<16x32x3xbf16>, vector<16x32x3xbf16>, vector<16x32x3xbf16> -> vector<16x32x27xbf16>
    %15 = vector.shape_cast %14 : vector<16x32x27xbf16> to vector<512x27xbf16>
    %c0_2 = arith.constant 0 : index
    %c0_3 = arith.constant 0 : index
    %16 = vector.load %arg4[%c0_2, %c0_3] : memref<27x32xbf16, #tpu.memory_space<vmem>>, vector<27x32xbf16>
    %cst = arith.constant dense<0.000000e+00> : vector<512x32xf32>
    %17 = tpu.matmul %15, %16, %cst {dimension_numbers = #tpu.dot_dimension_numbers<[1], [0], [0], [1], [0, 0, 1, 1], [], []>} : vector<512x27xbf16>, vector<27x32xbf16>, vector<512x32xf32> -> vector<512x32xf32>
    %c0_4 = arith.constant 0 : index
    %c0_5 = arith.constant 0 : index
    %18 = vector.load %arg5[%c0_4, %c0_5] : memref<1x32xf32, #tpu.memory_space<vmem>>, vector<1x32xf32>
    %19 = vector.broadcast %18 : vector<1x32xf32> to vector<512x32xf32>
    %20 = arith.addf %17, %19 : vector<512x32xf32>
    %cst_6 = arith.constant 0.000000e+00 : f32
    %21 = vector.broadcast %cst_6 : f32 to vector<512x32xf32>
    %22 = arith.maximumf %20, %21 : vector<512x32xf32>
    %23 = arith.truncf %22 : vector<512x32xf32> to vector<512x32xbf16>
    %24 = tpu.transpose %22, [1, 0] : vector<512x32xf32> -> vector<32x512xf32>
    %25 = arith.truncf %24 : vector<32x512xf32> to vector<32x512xbf16>
    %c0_7 = arith.constant 0 : index
    %c0_8 = arith.constant 0 : index
    %26 = vector.load %arg6[%c0_7, %c0_8] : memref<32x8xbf16, #tpu.memory_space<vmem>>, vector<32x8xbf16>
    %cst_9 = arith.constant dense<0.000000e+00> : vector<512x8xf32>
    %27 = tpu.matmul %23, %26, %cst_9 {dimension_numbers = #tpu.dot_dimension_numbers<[1], [0], [0], [1], [0, 0, 1, 1], [], []>} : vector<512x32xbf16>, vector<32x8xbf16>, vector<512x8xf32> -> vector<512x8xf32>
    %c0_10 = arith.constant 0 : index
    %c0_11 = arith.constant 0 : index
    %28 = vector.load %arg7[%c0_10, %c0_11] : memref<1x8xf32, #tpu.memory_space<vmem>>, vector<1x8xf32>
    %29 = vector.broadcast %28 : vector<1x8xf32> to vector<512x8xf32>
    %30 = arith.addf %27, %29 : vector<512x8xf32>
    %cst_12 = arith.constant dense<0xFF800000> : vector<512xf32>
    %31 = vector.multi_reduction <maximumf>, %30, %cst_12 [1] : vector<512x8xf32> to vector<512xf32>
    %32 = vector.shape_cast %31 : vector<512xf32> to vector<512x1xf32>
    %33 = vector.broadcast %32 : vector<512x1xf32> to vector<512x8xf32>
    %34 = arith.subf %30, %33 : vector<512x8xf32>
    %35 = math.exp %34 : vector<512x8xf32>
    %cst_13 = arith.constant dense<0.000000e+00> : vector<512xf32>
    %36 = vector.multi_reduction <add>, %35, %cst_13 [1] : vector<512x8xf32> to vector<512xf32>
    %37 = vector.shape_cast %36 : vector<512xf32> to vector<512x1xf32>
    %38 = vector.broadcast %37 : vector<512x1xf32> to vector<512x8xf32>
    %39 = arith.divf %35, %38 : vector<512x8xf32>
    %c0_14 = arith.constant 0 : index
    %c0_15 = arith.constant 0 : index
    %40 = vector.load %arg8[%c0_14, %c0_15] : memref<8x32xbf16, #tpu.memory_space<vmem>>, vector<8x32xbf16>
    %cst_16 = arith.constant dense<0.000000e+00> : vector<8x512xf32>
    %41 = tpu.matmul %40, %25, %cst_16 {dimension_numbers = #tpu.dot_dimension_numbers<[1], [0], [0], [1], [0, 0, 1, 1], [], []>} : vector<8x32xbf16>, vector<32x512xbf16>, vector<8x512xf32> -> vector<8x512xf32>
    %c0_17 = arith.constant 0 : index
    %c0_18 = arith.constant 0 : index
    %42 = vector.load %arg9[%c0_17, %c0_18] : memref<8x1xf32, #tpu.memory_space<vmem>>, vector<8x1xf32>
    %43 = vector.broadcast %42 : vector<8x1xf32> to vector<8x512xf32>
    %44 = arith.addf %41, %43 : vector<8x512xf32>
    %c0_19 = arith.constant 0 : index
    %c0_20 = arith.constant 0 : index
    %c0_21 = arith.constant 0 : index
    %45 = vector.load %arg12[%c0_19, %c0_20, %c0_21] : memref<1x8x512xf32, #tpu.memory_space<vmem>>, vector<1x8x512xf32>
    %46 = vector.shape_cast %45 : vector<1x8x512xf32> to vector<8x512xf32>
    %47 = vector.shape_cast %44 : vector<8x512xf32> to vector<1x8x512xf32>
    tpu.vector_store %arg12[%c0_19, %c0_20, %c0_21], %47 {strides = array<i32>} : memref<1x8x512xf32, #tpu.memory_space<vmem>>, vector<1x8x512xf32>,
    %48 = vector.extract_strided_slice %44 {offsets = [0, 0], sizes = [1, 512], strides = [1, 1]} : vector<8x512xf32> to vector<1x512xf32>
    %c0_i32 = arith.constant 0 : i32
    %49 = vector.broadcast %c0_i32 : i32 to vector<1x512xi32>
    %50 = vector.extract_strided_slice %44 {offsets = [1, 0], sizes = [1, 512], strides = [1, 1]} : vector<8x512xf32> to vector<1x512xf32>
    %51 = arith.cmpf ogt, %50, %48 : vector<1x512xf32>
    %52 = arith.select %51, %50, %48 : vector<1x512xi1>, vector<1x512xf32>
    %c1_i32 = arith.constant 1 : i32
    %53 = vector.broadcast %c1_i32 : i32 to vector<1x512xi32>
    %54 = arith.select %51, %53, %49 : vector<1x512xi1>, vector<1x512xi32>
    %55 = vector.extract_strided_slice %44 {offsets = [2, 0], sizes = [1, 512], strides = [1, 1]} : vector<8x512xf32> to vector<1x512xf32>
    %56 = arith.cmpf ogt, %55, %52 : vector<1x512xf32>
    %57 = arith.select %56, %55, %52 : vector<1x512xi1>, vector<1x512xf32>
    %c2_i32 = arith.constant 2 : i32
    %58 = vector.broadcast %c2_i32 : i32 to vector<1x512xi32>
    %59 = arith.select %56, %58, %54 : vector<1x512xi1>, vector<1x512xi32>
    %60 = vector.extract_strided_slice %44 {offsets = [3, 0], sizes = [1, 512], strides = [1, 1]} : vector<8x512xf32> to vector<1x512xf32>
    %61 = arith.cmpf ogt, %60, %57 : vector<1x512xf32>
    %62 = arith.select %61, %60, %57 : vector<1x512xi1>, vector<1x512xf32>
    %c3_i32 = arith.constant 3 : i32
    %63 = vector.broadcast %c3_i32 : i32 to vector<1x512xi32>
    %64 = arith.select %61, %63, %59 : vector<1x512xi1>, vector<1x512xi32>
    %65 = vector.extract_strided_slice %44 {offsets = [4, 0], sizes = [1, 512], strides = [1, 1]} : vector<8x512xf32> to vector<1x512xf32>
    %66 = arith.cmpf ogt, %65, %62 : vector<1x512xf32>
    %67 = arith.select %66, %65, %62 : vector<1x512xi1>, vector<1x512xf32>
    %c4_i32 = arith.constant 4 : i32
    %68 = vector.broadcast %c4_i32 : i32 to vector<1x512xi32>
    %69 = arith.select %66, %68, %64 : vector<1x512xi1>, vector<1x512xi32>
    %70 = vector.extract_strided_slice %44 {offsets = [5, 0], sizes = [1, 512], strides = [1, 1]} : vector<8x512xf32> to vector<1x512xf32>
    %71 = arith.cmpf ogt, %70, %67 : vector<1x512xf32>
    %72 = arith.select %71, %70, %67 : vector<1x512xi1>, vector<1x512xf32>
    %c5_i32 = arith.constant 5 : i32
    %73 = vector.broadcast %c5_i32 : i32 to vector<1x512xi32>
    %74 = arith.select %71, %73, %69 : vector<1x512xi1>, vector<1x512xi32>
    %75 = vector.extract_strided_slice %44 {offsets = [6, 0], sizes = [1, 512], strides = [1, 1]} : vector<8x512xf32> to vector<1x512xf32>
    %76 = arith.cmpf ogt, %75, %72 : vector<1x512xf32>
    %77 = arith.select %76, %75, %72 : vector<1x512xi1>, vector<1x512xf32>
    %c6_i32 = arith.constant 6 : i32
    %78 = vector.broadcast %c6_i32 : i32 to vector<1x512xi32>
    %79 = arith.select %76, %78, %74 : vector<1x512xi1>, vector<1x512xi32>
    %80 = vector.extract_strided_slice %44 {offsets = [7, 0], sizes = [1, 512], strides = [1, 1]} : vector<8x512xf32> to vector<1x512xf32>
    %81 = arith.cmpf ogt, %80, %77 : vector<1x512xf32>
    %c7_i32 = arith.constant 7 : i32
    %82 = vector.broadcast %c7_i32 : i32 to vector<1x512xi32>
    %83 = arith.select %81, %82, %79 : vector<1x512xi1>, vector<1x512xi32>
    %c0_22 = arith.constant 0 : index
    %c0_23 = arith.constant 0 : index
    %c0_24 = arith.constant 0 : index
    %84 = vector.load %arg13[%c0_22, %c0_23, %c0_24] : memref<1x1x512xi32, #tpu.memory_space<vmem>>, vector<1x1x512xi32>
    %85 = vector.shape_cast %84 : vector<1x1x512xi32> to vector<1x512xi32>
    %86 = vector.shape_cast %83 : vector<1x512xi32> to vector<1x1x512xi32>
    tpu.vector_store %arg13[%c0_22, %c0_23, %c0_24], %86 {strides = array<i32>} : memref<1x1x512xi32, #tpu.memory_space<vmem>>, vector<1x1x512xi32>,
    %c0_i32_25 = arith.constant 0 : i32
    %87 = arith.cmpi eq, %arg1, %c0_i32_25 : i32
    %88 = arith.extui %87 : i1 to i32
    %c0_i32_26 = arith.constant 0 : i32
    %89 = arith.cmpi ne, %88, %c0_i32_26 : i32
    scf.if %89 {
      %cst_36 = arith.constant 0.000000e+00 : f32
      %103 = vector.broadcast %cst_36 : f32 to vector<32x256xf32>
      %c0_37 = arith.constant 0 : index
      %c0_38 = arith.constant 0 : index
      %104 = vector.load %arg16[%c0_37, %c0_38] : memref<32x256xf32, #tpu.memory_space<vmem>>, vector<32x256xf32>
      tpu.vector_store %arg16[%c0_37, %c0_38], %103 {strides = array<i32>} : memref<32x256xf32, #tpu.memory_space<vmem>>, vector<32x256xf32>,
    } else {
    }
    %90 = arith.truncf %39 : vector<512x8xf32> to vector<512x8xbf16>
    %91 = tpu.concatenate %90, %90, %90, %90, %90, %90, %90, %90, %90, %90, %90, %90, %90, %90, %90, %90 in 1 : vector<512x8xbf16>, vector<512x8xbf16>, vector<512x8xbf16>, vector<512x8xbf16>, vector<512x8xbf16>, vector<512x8xbf16>, vector<512x8xbf16>, vector<512x8xbf16>, vector<512x8xbf16>, vector<512x8xbf16>, vector<512x8xbf16>, vector<512x8xbf16>, vector<512x8xbf16>, vector<512x8xbf16>, vector<512x8xbf16>, vector<512x8xbf16> -> vector<512x128xbf16>
    %92 = tpu.concatenate %90, %90, %90, %90, %90, %90, %90, %90, %90, %90, %90, %90, %90, %90, %90, %90 in 1 : vector<512x8xbf16>, vector<512x8xbf16>, vector<512x8xbf16>, vector<512x8xbf16>, vector<512x8xbf16>, vector<512x8xbf16>, vector<512x8xbf16>, vector<512x8xbf16>, vector<512x8xbf16>, vector<512x8xbf16>, vector<512x8xbf16>, vector<512x8xbf16>, vector<512x8xbf16>, vector<512x8xbf16>, vector<512x8xbf16>, vector<512x8xbf16> -> vector<512x128xbf16>
    %93 = tpu.concatenate %91, %92 in 1 : vector<512x128xbf16>, vector<512x128xbf16> -> vector<512x256xbf16>
    %c0_27 = arith.constant 0 : index
    %c0_28 = arith.constant 0 : index
    %94 = vector.load %arg3[%c0_27, %c0_28] : memref<512x256xbf16, #tpu.memory_space<vmem>>, vector<512x256xbf16>
    %95 = arith.mulf %93, %94 : vector<512x256xbf16>
    %c0_29 = arith.constant 0 : index
    %c0_30 = arith.constant 0 : index
    %96 = vector.load %arg16[%c0_29, %c0_30] : memref<32x256xf32, #tpu.memory_space<vmem>>, vector<32x256xf32>
    %cst_31 = arith.constant dense<0.000000e+00> : vector<32x256xf32>
    %97 = tpu.matmul %25, %95, %cst_31 {dimension_numbers = #tpu.dot_dimension_numbers<[1], [0], [0], [1], [0, 0, 1, 1], [], []>} : vector<32x512xbf16>, vector<512x256xbf16>, vector<32x256xf32> -> vector<32x256xf32>
    %98 = arith.addf %96, %97 : vector<32x256xf32>
    %c0_32 = arith.constant 0 : index
    %c0_33 = arith.constant 0 : index
    %99 = vector.load %arg16[%c0_32, %c0_33] : memref<32x256xf32, #tpu.memory_space<vmem>>, vector<32x256xf32>
    tpu.vector_store %arg16[%c0_32, %c0_33], %98 {strides = array<i32>} : memref<32x256xf32, #tpu.memory_space<vmem>>, vector<32x256xf32>,
    %c0_i32_34 = arith.constant 0 : i32
    %100 = arith.cmpi eq, %arg1, %c0_i32_34 : i32
    %101 = arith.extui %100 : i1 to i32
    %c0_i32_35 = arith.constant 0 : i32
    %102 = arith.cmpi ne, %101, %c0_i32_35 : i32
    scf.if %102 {
      %c0_36 = arith.constant 0 : index
      %c0_37 = arith.constant 0 : index
      %103 = vector.load %arg16[%c0_36, %c0_37] : memref<32x256xf32, #tpu.memory_space<vmem>>, vector<32x256xf32>
      %104 = arith.truncf %103 : vector<32x256xf32> to vector<32x256xbf16>
      %c0_38 = arith.constant 0 : index
      %c0_39 = arith.constant 0 : index
      %105 = vector.load %arg10[%c0_38, %c0_39] : memref<6x32xbf16, #tpu.memory_space<vmem>>, vector<6x32xbf16>
      %cst_40 = arith.constant dense<0.000000e+00> : vector<6x256xf32>
      %106 = tpu.matmul %105, %104, %cst_40 {dimension_numbers = #tpu.dot_dimension_numbers<[1], [0], [0], [1], [0, 0, 1, 1], [], []>} : vector<6x32xbf16>, vector<32x256xbf16>, vector<6x256xf32> -> vector<6x256xf32>
      %c0_41 = arith.constant 0 : index
      %c0_42 = arith.constant 0 : index
      %107 = vector.load %arg11[%c0_41, %c0_42] : memref<6x1xf32, #tpu.memory_space<vmem>>, vector<6x1xf32>
      %108 = vector.broadcast %107 : vector<6x1xf32> to vector<6x256xf32>
      %109 = arith.addf %106, %108 : vector<6x256xf32>
      %c0_43 = arith.constant 0 : index
      %c0_44 = arith.constant 0 : index
      %c0_45 = arith.constant 0 : index
      %110 = vector.load %arg14[%c0_43, %c0_44, %c0_45] : memref<1x6x256xf32, #tpu.memory_space<vmem>>, vector<1x6x256xf32>
      %111 = vector.shape_cast %110 : vector<1x6x256xf32> to vector<6x256xf32>
      %112 = vector.shape_cast %109 : vector<6x256xf32> to vector<1x6x256xf32>
      tpu.vector_store %arg14[%c0_43, %c0_44, %c0_45], %112 {strides = array<i32>} : memref<1x6x256xf32, #tpu.memory_space<vmem>>, vector<1x6x256xf32>,
      %113 = vector.extract_strided_slice %109 {offsets = [0, 0], sizes = [1, 256], strides = [1, 1]} : vector<6x256xf32> to vector<1x256xf32>
      %c0_i32_46 = arith.constant 0 : i32
      %114 = vector.broadcast %c0_i32_46 : i32 to vector<1x256xi32>
      %115 = vector.extract_strided_slice %109 {offsets = [1, 0], sizes = [1, 256], strides = [1, 1]} : vector<6x256xf32> to vector<1x256xf32>
      %116 = arith.cmpf ogt, %115, %113 : vector<1x256xf32>
      %117 = arith.select %116, %115, %113 : vector<1x256xi1>, vector<1x256xf32>
      %c1_i32_47 = arith.constant 1 : i32
      %118 = vector.broadcast %c1_i32_47 : i32 to vector<1x256xi32>
      %119 = arith.select %116, %118, %114 : vector<1x256xi1>, vector<1x256xi32>
      %120 = vector.extract_strided_slice %109 {offsets = [2, 0], sizes = [1, 256], strides = [1, 1]} : vector<6x256xf32> to vector<1x256xf32>
      %121 = arith.cmpf ogt, %120, %117 : vector<1x256xf32>
      %122 = arith.select %121, %120, %117 : vector<1x256xi1>, vector<1x256xf32>
      %c2_i32_48 = arith.constant 2 : i32
      %123 = vector.broadcast %c2_i32_48 : i32 to vector<1x256xi32>
      %124 = arith.select %121, %123, %119 : vector<1x256xi1>, vector<1x256xi32>
      %125 = vector.extract_strided_slice %109 {offsets = [3, 0], sizes = [1, 256], strides = [1, 1]} : vector<6x256xf32> to vector<1x256xf32>
      %126 = arith.cmpf ogt, %125, %122 : vector<1x256xf32>
      %127 = arith.select %126, %125, %122 : vector<1x256xi1>, vector<1x256xf32>
      %c3_i32_49 = arith.constant 3 : i32
      %128 = vector.broadcast %c3_i32_49 : i32 to vector<1x256xi32>
      %129 = arith.select %126, %128, %124 : vector<1x256xi1>, vector<1x256xi32>
      %130 = vector.extract_strided_slice %109 {offsets = [4, 0], sizes = [1, 256], strides = [1, 1]} : vector<6x256xf32> to vector<1x256xf32>
      %131 = arith.cmpf ogt, %130, %127 : vector<1x256xf32>
      %132 = arith.select %131, %130, %127 : vector<1x256xi1>, vector<1x256xf32>
      %c4_i32_50 = arith.constant 4 : i32
      %133 = vector.broadcast %c4_i32_50 : i32 to vector<1x256xi32>
      %134 = arith.select %131, %133, %129 : vector<1x256xi1>, vector<1x256xi32>
      %135 = vector.extract_strided_slice %109 {offsets = [5, 0], sizes = [1, 256], strides = [1, 1]} : vector<6x256xf32> to vector<1x256xf32>
      %136 = arith.cmpf ogt, %135, %132 : vector<1x256xf32>
      %c5_i32_51 = arith.constant 5 : i32
      %137 = vector.broadcast %c5_i32_51 : i32 to vector<1x256xi32>
      %138 = arith.select %136, %137, %134 : vector<1x256xi1>, vector<1x256xi32>
      %c0_52 = arith.constant 0 : index
      %c0_53 = arith.constant 0 : index
      %c0_54 = arith.constant 0 : index
      %139 = vector.load %arg15[%c0_52, %c0_53, %c0_54] : memref<1x1x256xi32, #tpu.memory_space<vmem>>, vector<1x1x256xi32>
      %140 = vector.shape_cast %139 : vector<1x1x256xi32> to vector<1x256xi32>
      %141 = vector.shape_cast %138 : vector<1x256xi32> to vector<1x1x256xi32>
      tpu.vector_store %arg15[%c0_52, %c0_53, %c0_54], %141 {strides = array<i32>} : memref<1x1x256xi32, #tpu.memory_space<vmem>>, vector<1x1x256xi32>,
    } else {
    }
    return
  }
  func.func @transform_0(%arg0: i32, %arg1: i32) -> (i32, i32, i32, i32) {
    %c0_i32 = arith.constant 0 : i32
    %c0_i32_0 = arith.constant 0 : i32
    %c0_i32_1 = arith.constant 0 : i32
    %c0_i32_2 = arith.constant 0 : i32
    return %arg0, %c0_i32, %c0_i32_0, %c0_i32_1 : i32, i32, i32, i32
  }
  func.func @transform_1(%arg0: i32, %arg1: i32) -> (i32, i32) {
    %c0_i32 = arith.constant 0 : i32
    %c0_i32_0 = arith.constant 0 : i32
    %c0_i32_1 = arith.constant 0 : i32
    return %c0_i32, %c0_i32_0 : i32, i32
  }
  func.func @transform_2(%arg0: i32, %arg1: i32) -> (i32, i32) {
    %c0_i32 = arith.constant 0 : i32
    %c0_i32_0 = arith.constant 0 : i32
    %c0_i32_1 = arith.constant 0 : i32
    return %c0_i32, %c0_i32_0 : i32, i32
  }
  func.func @transform_3(%arg0: i32, %arg1: i32) -> (i32, i32) {
    %c0_i32 = arith.constant 0 : i32
    %c0_i32_0 = arith.constant 0 : i32
    %c0_i32_1 = arith.constant 0 : i32
    return %c0_i32, %c0_i32_0 : i32, i32
  }
  func.func @transform_4(%arg0: i32, %arg1: i32) -> (i32, i32) {
    %c0_i32 = arith.constant 0 : i32
    %c0_i32_0 = arith.constant 0 : i32
    %c0_i32_1 = arith.constant 0 : i32
    return %c0_i32, %c0_i32_0 : i32, i32
  }
  func.func @transform_5(%arg0: i32, %arg1: i32) -> (i32, i32) {
    %c0_i32 = arith.constant 0 : i32
    %c0_i32_0 = arith.constant 0 : i32
    %c0_i32_1 = arith.constant 0 : i32
    return %c0_i32, %c0_i32_0 : i32, i32
  }
  func.func @transform_6(%arg0: i32, %arg1: i32) -> (i32, i32) {
    %c0_i32 = arith.constant 0 : i32
    %c0_i32_0 = arith.constant 0 : i32
    %c0_i32_1 = arith.constant 0 : i32
    return %c0_i32, %c0_i32_0 : i32, i32
  }
  func.func @transform_7(%arg0: i32, %arg1: i32) -> (i32, i32) {
    %c0_i32 = arith.constant 0 : i32
    %c0_i32_0 = arith.constant 0 : i32
    %c0_i32_1 = arith.constant 0 : i32
    return %c0_i32, %c0_i32_0 : i32, i32
  }
  func.func @transform_8(%arg0: i32, %arg1: i32) -> (i32, i32) {
    %c0_i32 = arith.constant 0 : i32
    %c0_i32_0 = arith.constant 0 : i32
    %c0_i32_1 = arith.constant 0 : i32
    return %c0_i32, %c0_i32_0 : i32, i32
  }
  func.func @transform_9(%arg0: i32, %arg1: i32) -> (i32, i32) {
    %c0_i32 = arith.constant 0 : i32
    %c0_i32_0 = arith.constant 0 : i32
    %c0_i32_1 = arith.constant 0 : i32
    return %c0_i32, %c0_i32_0 : i32, i32
  }
  func.func @transform_10(%arg0: i32, %arg1: i32) -> (i32, i32, i32) {
    %c0_i32 = arith.constant 0 : i32
    %c0_i32_0 = arith.constant 0 : i32
    return %arg0, %c0_i32, %arg1 : i32, i32, i32
  }
  func.func @transform_11(%arg0: i32, %arg1: i32) -> (i32, i32, i32) {
    %c0_i32 = arith.constant 0 : i32
    %c0_i32_0 = arith.constant 0 : i32
    return %arg0, %c0_i32, %arg1 : i32, i32, i32
  }
  func.func @transform_12(%arg0: i32, %arg1: i32) -> (i32, i32, i32) {
    %c0_i32 = arith.constant 0 : i32
    %c0_i32_0 = arith.constant 0 : i32
    %c0_i32_1 = arith.constant 0 : i32
    return %arg0, %c0_i32, %c0_i32_0 : i32, i32, i32
  }
  func.func @transform_13(%arg0: i32, %arg1: i32) -> (i32, i32, i32) {
    %c0_i32 = arith.constant 0 : i32
    %c0_i32_0 = arith.constant 0 : i32
    %c0_i32_1 = arith.constant 0 : i32
    return %arg0, %c0_i32, %c0_i32_0 : i32, i32, i32
  }
}

</mosaic_0001>

<bundles_post_ra>
// kernel: fused_frame_forward.1
= control target key start
LH: loop header
LB: loop body
LE: loop exit
PB: predicated region body
PF: predicated region fallthrough
CT: control target
= control target key end

     0   :  { %s8489_s25 = smov 0   ;;  %s8491_s26 = smov 0   ;;  %s14645_s0 = inlined_call_operand.vmem [shape: bf16[2,18,34,3], index: 0, kind: input, shape index: {}]   ;;  %s14646_s1 = inlined_call_operand.vmem [shape: bf16[512,256], index: 1, kind: input, shape index: {}]   ;;  %s14647_s2 = inlined_call_operand.vmem [shape: bf16[27,32], index: 2, kind: input, shape index: {}]   ;;  %s14648_s3 = inlined_call_operand.vmem [shape: f32[1,32], index: 3, kind: input, shape index: {}]   ;;  %s14649_s4 = inlined_call_operand.vmem [shape: bf16[32,8], index: 4, kind: input, shape index: {}]   ;;  %s14650_s5 = inlined_call_operand.vmem [shape: f32[1,8], index: 5, kind: input, shape index: {}]   ;;  %s14651_s6 = inlined_call_operand.vmem [shape: bf16[8,32], index: 6, kind: input, shape index: {}]   ;;  %s14652_s7 = inlined_call_operand.vmem [shape: f32[8,1], index: 7, kind: input, shape index: {}]   ;;  %s14653_s8 = inlined_call_operand.vmem [shape: bf16[6,32], index: 8, kind: input, shape index: {}]   ;;  %s14654_s9 = inlined_call_operand.vmem [shape: f32[6,1], index: 9, kind: input, shape index: {}]   ;;  %s14655_s10 = inlined_call_operand.vmem [shape: f32[2,8,512], index: 10, kind: output, shape index: {0}]   ;;  %s14656_s11 = inlined_call_operand.vmem [shape: s32[2,1,512], index: 11, kind: output, shape index: {1}]   ;;  %s14657_s12 = inlined_call_operand.vmem [shape: f32[2,6,256], index: 12, kind: output, shape index: {2}]   ;;  %s14658_s13 = inlined_call_operand.vmem [shape: s32[2,1,256], index: 13, kind: output, shape index: {3}]  }
   0x1   :  { %s8493_s27 = smov 0  }
   0x2 LB: > { %s36_s28 = sadd.s32 1, %s8388_s26  ;;  %p7362_p0 = scmp.ge.s32.totalorder %s8392_s27, 1  ;;  %s8392_s27 = sphi %s8493_s27, %s24_s27   ;;  %s8388_s26 = sphi %s8491_s26, %s15651_s26   ;;  %s8384_s25 = sphi %s8489_s25, %s15650_s25  }
   0x3   : > { %p38_p1 = scmp.ge.s32.totalorder %s36_s28, 2  ;;  %p410_p2 = scmp.lt.s32.totalorder %s8392_s27, 3 }
   0x5   : > { %s15653_s28 = smov (%p38_p1, %s36_s28), 0  ;;  %p411_p3 = pnand %p7362_p0, %p410_p2 }
   0x7   : > { %414 = sbr.rel (%p411_p3) target bundleno = 3287 (0xcd7), region = 60 }
   0xc   : > { %p475_p4 = scmp.lt.s32.totalorder %s8384_s25, 1  ;;  %vm811_vm0 = vsmask.f32 7424  ;;  %s8394_s16 = smov 3   ;;  %vm1196_vm1 = vcmask 1046528   ;;  %vm1801_vm2 = vcmask 23552  }
   0xd   : > { %s8395_s17 = smov 6   ;;  %s8396_s18 = smov 9   ;;  %vm1866_vm3 = vcmask 48128   ;;  %vm1931_vm4 = vcmask 72704   ;;  %vm1996_vm5 = vcmask 97280   ;;  %vm2061_vm6 = vcmask 121856  }
   0xe   : > { %s15655_s25 = smov (!%p475_p4, %s8384_s25), 1  ;;  %s8397_s19 = smov 12   ;;  %vm2408_vm7 = vcmask 1044480   ;;  %vm2409_vm8 = vcmask 1045504   ;;  %vm2126_vm9 = vcmask 146432   ;;  %vm2191_vm10 = vcmask 171008  }
   0xf   : > { %s7769_s29 = smul.u32 360, %s15655_s25  ;;  %s8398_s20 = smov 15   ;;  %vm2256_vm11 = vcmask 195584   ;;  %vm2343_vm12 = vcmask 220160   ;;  %vm2959_vm13 = vcmask 261120   ;;  %vm3345_vm14 = vcmask 64512  }
  0x10   : > { %s8399_s21 = smov 18   ;;  %s8400_s22 = smov 21  }
  0x11   : > { %s8513_s15 = scalar_lea.vmem %s14645_s0, %s7769_s29  ;;  %s8402_s14 = smov 24  }
  0x12   : > { %v8516_v0 = vld [vmem:[%s8513_s15 + $0x14] sm:$0xff]   ;;  %v8519_v1 = vld [vmem:[%s8513_s15 + $0x1c] sm:$0xff]   ;;  %v8528_v6 = vld [vmem:[%s8513_s15 + $0x8] sm:$0xff]   ;;  %s8407_s29 = smov 32   ;;  %s8409_s30 = smov 48  }
  0x13   : > { %v833_v2 = vshrl.u32 %v8516_v0, 16  ;;  %v835_v3 = vshll.u32 %v8516_v0, 16  ;;  %v840_v4 = vshll.u32 %v8519_v1, 16  ;;  %v8525_v5 = vld [vmem:[%s8513_s15] sm:$0xff]   ;;  %v820_v12 = vshll.u32 %v8528_v6, 16  ;;  %v8544_v23 = vld [vmem:[%s8513_s15 + $0x30] sm:$0xff]  }
  0x14   : > { %v8531_v7 = vld [vmem:[%s8513_s15 + $0x24] ss:$0 sps:$4 sm:$0x11]   ;;  %v813_v10 = vshrl.u32 %v8525_v5, 16  ;;  %v815_v11 = vshll.u32 %v8525_v5, 16  ;;  %v844_v13 = vshrl.u32 %v8519_v1, 16 }
  0x15   : > { %v837_v8 = vrot.slane %v835_v3, 1  ;;  %v842_v9 = vrot.slane %v840_v4, 1  ;;  %v848_v14 = vshll.u32 %v8531_v7, 16  ;;  %v8539_v15 = vld [vmem:[%s8513_s15 + $0x10] ss:$0 sps:$4 sm:$0x11]  }
  0x16   : > { %v817_v17 = vrot.slane %v815_v11, 1  ;;  %v824_v18 = vshrl.u32 %v8528_v6, 16  ;;  %v822_v19 = vrot.slane %v820_v12, 1  ;;  %v828_v22 = vshll.u32 %v8539_v15, 16  ;;  %v8553_v27 = vld [vmem:[%s8513_s15 + $0x28] sm:$0xff]   ;;  %v8579_v46 = vld [vmem:[%s8513_s15 + $0x3c] sm:$0xff]  }
  0x17   : > { %v838_v16 = vor.u32 %v837_v8, %v833_v2  ;;  %v846_v20 = vor.u32 %v844_v13, %v842_v9  ;;  %v850_v21 = vrot.slane %v848_v14, 1  ;;  %v8550_v26 = vld [vmem:[%s8513_s15 + $0x38] ss:$0 sps:$4 sm:$0x11]   ;;  %v860_v31 = vshll.u32 %v8544_v23, 16  ;;  %v8566_v36 = vld [vmem:[%s8513_s15 + $0x44] sm:$0xff]  }
  0x18   : > { %v818_v25 = vor.u32 %v817_v17, %v813_v10  ;;  %v826_v29 = vor.u32 %v824_v18, %v822_v19  ;;  %v830_v30 = vrot.slane %v828_v22, 1  ;;  %v864_v33 = vshrl.u32 %v8544_v23, 16  ;;  %v8572_v41 = vld [vmem:[%s8513_s15 + $0x4c] ss:$0 sps:$4 sm:$0x11]   ;;  %v8589_v53 = vld [vmem:[%s8513_s15 + $0x58] sm:$0xff]  }
  0x19   : > { %v8547_v24 = vsel %vm811_vm0, %v838_v16, %v842_v9  ;;  %v8558_v28 = vsel %vm811_vm0, %v846_v20, %v850_v21  ;;  %v868_v34 = vshll.u32 %v8550_v26, 16  ;;  %v853_v35 = vshrl.u32 %v8553_v27, 16  ;;  %v8592_v54 = vld [vmem:[%s8513_s15 + $0x60] ss:$0 sps:$4 sm:$0x11]   ;;  %v8595_v57 = vld [vmem:[%s8513_s15 + $0x50] sm:$0xff]  }
  0x1a   : > { %14856 = vst [vmem:[#allocation3_spill] sm:$0xff] %v8547_v24  ;;  %1136 = vrot.lane.b32.xlu1 %v8547_v24, %s8394_s16  ;;  %14857 = vst [vmem:[#allocation4_spill] sm:$0xff] %v8558_v28  ;;  %v823_v32 = vsel %vm811_vm0, %v818_v25, %v822_v19  ;;  %v862_v37 = vrot.slane %v860_v31, 1  ;;  %v855_v38 = vshll.u32 %v8553_v27, 16  ;;  %v831_v39 = vsel %vm811_vm0, %v826_v29, %v830_v30  ;;  %v8605_v62 = vld [vmem:[%s8513_s15 + $0x6c] sm:$0xff]   ;;  %v8614_v8 = vld [vmem:[%s8513_s15 + $0x64] sm:$0xff]  }
  0x1b   : > { %1132 = vrot.lane.b32.xlu0 %v823_v32, %s8394_s16  ;;  %v870_v40 = vrot.slane %v868_v34, 1  ;;  %v880_v42 = vshll.u32 %v8566_v36, 16  ;;  %v884_v43 = vshrl.u32 %v8566_v36, 16  ;;  %v888_v48 = vshll.u32 %v8572_v41, 16  ;;  %v8637_v31 = vld [vmem:[%s8513_s15 + $0x80] sm:$0xff]   ;;  %s8418_s23 = smov 120  }
  0x1c   : > { %v866_v44 = vor.u32 %v864_v33, %v862_v37  ;;  %v857_v45 = vrot.slane %v855_v38, 1  ;;  %v873_v51 = vshrl.u32 %v8579_v46, 16  ;;  %v875_v52 = vshll.u32 %v8579_v46, 16  ;;  %v8619_v11 = vld [vmem:[%s8513_s15 + $0x74] ss:$0 sps:$4 sm:$0x11]  }
  0x1d   : > { %v882_v47 = vrot.slane %v880_v42, 1  ;;  %v890_v56 = vrot.slane %v888_v48, 1  ;;  %v900_v60 = vshll.u32 %v8589_v53, 16  ;;  %v904_v61 = vshrl.u32 %v8589_v53, 16  ;;  %v8643_v33 = vld [vmem:[%s8513_s15 + $0x78] sm:$0xff]  }
  0x1e   : > { %1138 = vrot.lane.b32.xlu1 %v8558_v28, %s8394_s16  ;;  %v8584_v49 = vsel %vm811_vm0, %v866_v44, %v870_v40  ;;  %v858_v50 = vor.u32 %v857_v45, %v853_v35  ;;  %v877_v59 = vrot.slane %v875_v52, 1  ;;  %v908_v2 = vshll.u32 %v8592_v54, 16  ;;  %v8640_v32 = vld [vmem:[%s8513_s15 + $0x88] ss:$0 sps:$4 sm:$0x11]   ;;  %v8649_v38 = vld [vmem:[%s8513_s15 + $0x94] sm:$0xff]  }
  0x1f   : > { %1134 = vrot.lane.b32.xlu0 %v831_v39, %s8394_s16  ;;  %14858 = vst [vmem:[#allocation5_spill] sm:$0xff] %v8584_v49  ;;  %v886_v55 = vor.u32 %v884_v43, %v882_v47  ;;  %v893_v3 = vshrl.u32 %v8595_v57, 16  ;;  %v895_v4 = vshll.u32 %v8595_v57, 16  ;;  %v902_v10 = vrot.slane %v900_v60, 1 }
  0x20   : > { %v8600_v58 = vsel %vm811_vm0, %v858_v50, %v862_v37  ;;  %v878_v9 = vor.u32 %v877_v59, %v873_v51  ;;  %v910_v12 = vrot.slane %v908_v2, 1  ;;  %v920_v14 = vshll.u32 %v8605_v62, 16  ;;  %v8665_v52 = vld [vmem:[%s8513_s15 + $0x9c] ss:$0 sps:$4 sm:$0x11]  }
  0x21   : > { %14859 = vst [vmem:[#allocation6_spill] sm:$0xff] %v8600_v58  ;;  %v8608_v63 = vsel %vm811_vm0, %v886_v55, %v890_v56  ;;  %v897_v13 = vrot.slane %v895_v4, 1  ;;  %v924_v16 = vshrl.u32 %v8605_v62, 16  ;;  %v906_v18 = vor.u32 %v904_v61, %v902_v10 }
  0x22   : > { %1142 = vrot.lane.b32.xlu1 %v8584_v49, %s8394_s16  ;;  %14860 = vst [vmem:[#allocation7_spill] sm:$0xff] %v8608_v63  ;;  %v8626_v17 = vsel %vm811_vm0, %v878_v9, %v882_v47  ;;  %v928_v19 = vshll.u32 %v8619_v11, 16  ;;  %v913_v20 = vshrl.u32 %v8614_v8, 16  ;;  %v922_v22 = vrot.slane %v920_v14, 1 }
  0x23   : > { %1140 = vrot.lane.b32.xlu0 %v8600_v58, %s8394_s16  ;;  %14861 = vst [vmem:[#allocation8_spill] sm:$0xff] %v8626_v17  ;;  %v898_v21 = vor.u32 %v897_v13, %v893_v3  ;;  %v915_v25 = vshll.u32 %v8614_v8, 16  ;;  %v8634_v29 = vsel %vm811_vm0, %v906_v18, %v910_v12  ;;  %v940_v39 = vshll.u32 %v8637_v31, 16  ;;  %v8675_v3 = vld [vmem:[%s8513_s15 + $0x8c] sm:$0xff]  }
  0x24   : > { %14862 = vst [vmem:[#allocation9_spill] sm:$0xff] %v8634_v29  ;;  %v930_v30 = vrot.slane %v928_v19, 1  ;;  %v926_v35 = vor.u32 %v924_v16, %v922_v22  ;;  %v944_v40 = vshrl.u32 %v8637_v31, 16  ;;  %v948_v42 = vshll.u32 %v8640_v32, 16  ;;  %v8691_v19 = vld [vmem:[%s8513_s15 + $0xa0] sm:$0xff]  }
  0x25   : > { %v8646_v34 = vsel %vm811_vm0, %v898_v21, %v902_v10  ;;  %v917_v37 = vrot.slane %v915_v25, 1  ;;  %v933_v43 = vshrl.u32 %v8643_v33, 16  ;;  %v935_v47 = vshll.u32 %v8643_v33, 16  ;;  %v8678_v10 = vld [vmem:[%s8513_s15 + $0xa8] sm:$0xff]  }
  0x26   : > { %1146 = vrot.lane.b32.xlu1 %v8608_v63, %s8394_s16  ;;  %14863 = vst [vmem:[#allocation10_spill] sm:$0xff] %v8646_v34  ;;  %v8658_v44 = vsel %vm811_vm0, %v926_v35, %v930_v30  ;;  %v960_v48 = vshll.u32 %v8649_v38, 16  ;;  %v942_v50 = vrot.slane %v940_v39, 1  ;;  %v950_v51 = vrot.slane %v948_v42, 1  ;;  %v8700_v30 = vld [vmem:[%s8513_s15 + $0xbc] sm:$0xff]  }
  0x27   : > { %1144 = vrot.lane.b32.xlu0 %v8626_v17, %s8394_s16  ;;  %14864 = vst [vmem:[#allocation11_spill] sm:$0xff] %v8658_v44  ;;  %v918_v45 = vor.u32 %v917_v37, %v913_v20  ;;  %v964_v55 = vshrl.u32 %v8649_v38, 16  ;;  %v937_v59 = vrot.slane %v935_v47, 1  ;;  %v968_v2 = vshll.u32 %v8665_v52, 16 }
  0x28   : > { %v962_v60 = vrot.slane %v960_v48, 1  ;;  %v946_v61 = vor.u32 %v944_v40, %v942_v50  ;;  %v8681_v12 = vld [vmem:[%s8513_s15 + $0xb0] ss:$0 sps:$4 sm:$0x11]   ;;  %v953_v16 = vshrl.u32 %v8675_v3, 16  ;;  %v955_v18 = vshll.u32 %v8675_v3, 16 }
  0x29   : > { %v8669_v56 = vsel %vm811_vm0, %v918_v45, %v922_v22  ;;  %v938_v4 = vor.u32 %v937_v59, %v933_v43  ;;  %v970_v14 = vrot.slane %v968_v2, 1  ;;  %v980_v21 = vshll.u32 %v8678_v10, 16  ;;  %v8707_v40 = vld [vmem:[%s8513_s15 + $0xb4] sm:$0xff]  }
  0x2a   : > { %1150 = vrot.lane.b32.xlu1 %v8634_v29, %s8394_s16  ;;  %14865 = vst [vmem:[#allocation12_spill] sm:$0xff] %v8669_v56  ;;  %v966_v9 = vor.u32 %v964_v55, %v962_v60  ;;  %v8686_v13 = vsel %vm811_vm0, %v946_v61, %v950_v51  ;;  %v984_v22 = vshrl.u32 %v8678_v10, 16  ;;  %v988_v25 = vshll.u32 %v8681_v12, 16  ;;  %v8806_v17 = vld [vmem:[%s8513_s15 + $0x114] ss:$0 sps:$4 sm:$0x11]  }
  0x2b   : > { %1148 = vrot.lane.b32.xlu0 %v8646_v34, %s8394_s16  ;;  %14866 = vst [vmem:[#allocation13_spill] sm:$0xff] %v8686_v13  ;;  %v8694_v20 = vsel %vm811_vm0, %v938_v4, %v942_v50  ;;  %v957_v35 = vrot.slane %v955_v18, 1  ;;  %v973_v37 = vshrl.u32 %v8691_v19, 16  ;;  %v975_v39 = vshll.u32 %v8691_v19, 16 }
  0x2c   : > { %14867 = vst [vmem:[#allocation14_spill] sm:$0xff] %v8694_v20  ;;  %v8710_v42 = vsel %vm811_vm0, %v966_v9, %v970_v14  ;;  %v982_v43 = vrot.slane %v980_v21, 1  ;;  %v990_v45 = vrot.slane %v988_v25, 1  ;;  %v8715_v50 = vld [vmem:[%s8513_s15 + $0xc4] ss:$0 sps:$4 sm:$0x11]  }
  0x2d   : > { %14868 = vst [vmem:[#allocation15_spill] sm:$0xff] %v8710_v42  ;;  %v958_v47 = vor.u32 %v957_v35, %v953_v16  ;;  %v977_v48 = vrot.slane %v975_v39, 1  ;;  %v1000_v51 = vshll.u32 %v8700_v30, 16  ;;  %v1004_v55 = vshrl.u32 %v8700_v30, 16 }
  0x2e   : > { %1154 = vrot.lane.b32.xlu1 %v8658_v44, %s8394_s16  ;;  %v986_v59 = vor.u32 %v984_v22, %v982_v43  ;;  %v993_v61 = vshrl.u32 %v8707_v40, 16  ;;  %v995_v2 = vshll.u32 %v8707_v40, 16  ;;  %v1008_v16 = vshll.u32 %v8715_v50, 16  ;;  %v8731_v22 = vld [vmem:[%s8513_s15 + $0xd0] sm:$0xff]  }
  0x2f   : > { %1152 = vrot.lane.b32.xlu0 %v8669_v56, %s8394_s16  ;;  %v8724_v4 = vsel %vm811_vm0, %v958_v47, %v962_v60  ;;  %v978_v9 = vor.u32 %v977_v48, %v973_v37  ;;  %v1002_v14 = vrot.slane %v1000_v51, 1  ;;  %v8736_v60 = vld [vmem:[%s8513_s15 + $0xd8] ss:$0 sps:$4 sm:$0x11]   ;;  %v1020_v47 = vshll.u32 %v8731_v22, 16  ;;  %v8744_v48 = vld [vmem:[%s8513_s15 + $0xc8] sm:$0xff]  }
  0x30   : > { %14869 = vst [vmem:[#allocation16_spill] sm:$0xff] %v8724_v4  ;;  %v8728_v18 = vsel %vm811_vm0, %v986_v59, %v990_v45  ;;  %v997_v21 = vrot.slane %v995_v2, 1  ;;  %v1010_v35 = vrot.slane %v1008_v16, 1  ;;  %v1024_v45 = vshrl.u32 %v8731_v22, 16  ;;  %v8747_v51 = vld [vmem:[%s8513_s15 + $0xe4] sm:$0xff]  }
  0x31   : > { %14870 = vst [vmem:[#allocation17_spill] sm:$0xff] %v8728_v18  ;;  %v1006_v25 = vor.u32 %v1004_v55, %v1002_v14  ;;  %v8739_v37 = vsel %vm811_vm0, %v978_v9, %v982_v43  ;;  %v1028_v59 = vshll.u32 %v8736_v60, 16  ;;  %v8756_v43 = vld [vmem:[%s8513_s15 + $0xdc] sm:$0xff]   ;;  %v1022_v2 = vrot.slane %v1020_v47, 1 }
  0x32   : > { %1158 = vrot.lane.b32.xlu1 %v8686_v13, %s8394_s16  ;;  %14871 = vst [vmem:[#allocation18_spill] sm:$0xff] %v8739_v37  ;;  %v998_v39 = vor.u32 %v997_v21, %v993_v61  ;;  %v1013_v9 = vshrl.u32 %v8744_v48, 16  ;;  %v1015_v16 = vshll.u32 %v8744_v48, 16  ;;  %v8764_v21 = vld [vmem:[%s8513_s15 + $0xec] ss:$0 sps:$4 sm:$0x11]  }
  0x33   : > { %1156 = vrot.lane.b32.xlu0 %v8694_v20, %s8394_s16  ;;  %v8752_v55 = vsel %vm811_vm0, %v1006_v25, %v1010_v35  ;;  %v1030_v25 = vrot.slane %v1028_v59, 1  ;;  %v1040_v35 = vshll.u32 %v8747_v51, 16  ;;  %v8774_v20 = vld [vmem:[%s8513_s15 + $0xf8] sm:$0xff]   ;;  %v8787_v34 = vld [vmem:[%s8513_s15 + $0x100] ss:$0 sps:$4 sm:$0x11]  }
  0x34   : > { %14872 = vst [vmem:[#allocation19_spill] sm:$0xff] %v8752_v55  ;;  %v8759_v61 = vsel %vm811_vm0, %v998_v39, %v1002_v14  ;;  %v1033_v14 = vshrl.u32 %v8756_v43, 16  ;;  %v1026_v39 = vor.u32 %v1024_v45, %v1022_v2  ;;  %v1017_v47 = vrot.slane %v1015_v16, 1 }
  0x35   : > { %14873 = vst [vmem:[#allocation20_spill] sm:$0xff] %v8759_v61  ;;  %v1042_v59 = vrot.slane %v1040_v35, 1  ;;  %v1060_v29 = vshll.u32 %v8774_v20, 16 }
  0x36   : > { %1162 = vrot.lane.b32.xlu1 %v8710_v42, %s8394_s16  ;;  %v1035_v42 = vshll.u32 %v8756_v43, 16  ;;  %v8782_v13 = vsel %vm811_vm0, %v1026_v39, %v1030_v25  ;;  %v1018_v56 = vor.u32 %v1017_v47, %v1013_v9  ;;  %v1068_v39 = vshll.u32 %v8787_v34, 16 }
  0x37   : > { %1160 = vrot.lane.b32.xlu0 %v8724_v4, %s8394_s16  ;;  %v1048_v4 = vshll.u32 %v8764_v21, 16  ;;  %14874 = vst [vmem:[#allocation21_spill] sm:$0xff] %v8782_v13 }
  0x38   : > { %v1037_v45 = vrot.slane %v1035_v42, 1  ;;  %v8793_v25 = vsel %vm811_vm0, %v1018_v56, %v1022_v2 }
  0x39   : > { %v1050_v44 = vrot.slane %v1048_v4, 1  ;;  %14875 = vst [vmem:[#allocation22_spill] sm:$0xff] %v8793_v25  ;;  %v8797_v4 = vld [vmem:[%s8513_s15 + $0x10c] sm:$0xff]  }
  0x3a   : > { %1166 = vrot.lane.b32.xlu1 %v8728_v18, %s8394_s16  ;;  %v1044_v18 = vshrl.u32 %v8747_v51, 16  ;;  %v1038_v9 = vor.u32 %v1037_v45, %v1033_v14  ;;  %v1080_v56 = vshll.u32 %v8797_v4, 16  ;;  %v1084_v2 = vshrl.u32 %v8797_v4, 16  ;;  %v8813_v45 = vld [vmem:[%s8513_s15 + $0x104] sm:$0xff]  }
  0x3b   : > { %1164 = vrot.lane.b32.xlu0 %v8739_v37, %s8394_s16  ;;  %v8779_v37 = vld [vmem:[%s8513_s15 + $0xf0] sm:$0xff]   ;;  %14877 = vst [vmem:[#allocation24_spill] sm:$0xff] %v8813_v45  ;;  %v1073_v63 = vshrl.u32 %v8813_v45, 16  ;;  %v1075_v58 = vshll.u32 %v8813_v45, 16 }
  0x3c   : > { %v1046_v16 = vor.u32 %v1044_v18, %v1042_v59  ;;  %v1053_v35 = vshrl.u32 %v8779_v37, 16  ;;  %v1055_v42 = vshll.u32 %v8779_v37, 16  ;;  %v1062_v18 = vrot.slane %v1060_v29, 1  ;;  %v8854_v45 = vld [vmem:[%s8513_s15 + $0x13c] ss:$0 sps:$4 sm:$0x11]  }
  0x3d   : > { %v1070_v29 = vrot.slane %v1068_v39, 1 }
  0x3e   : > { %1170 = vrot.lane.b32.xlu1 %v8752_v55, %s8394_s16  ;;  %v1064_v55 = vshrl.u32 %v8774_v20, 16  ;;  %v8803_v47 = vsel %vm811_vm0, %v1046_v16, %v1050_v44  ;;  %v8816_v44 = vsel %vm811_vm0, %v1038_v9, %v1042_v59  ;;  %v1077_v9 = vrot.slane %v1075_v58, 1 }
  0x3f   : > { %1168 = vrot.lane.b32.xlu0 %v8759_v61, %s8394_s16  ;;  %14876 = vst [vmem:[#allocation23_spill] sm:$0xff] %v8803_v47  ;;  %v1057_v61 = vrot.slane %v1055_v42, 1  ;;  %14878 = vst [vmem:[#allocation25_spill] sm:$0xff] %v8816_v44  ;;  %v1082_v42 = vrot.slane %v1080_v56, 1 }
  0x40   : > { %v1066_v14 = vor.u32 %v1064_v55, %v1062_v18  ;;  %v8827_v55 = vld [vmem:[%s8513_s15 + $0x118] sm:$0xff]  }
  0x41   : > { %v1058_v16 = vor.u32 %v1057_v61, %v1053_v35  ;;  %v1086_v59 = vor.u32 %v1084_v2, %v1082_v42  ;;  %v8833_v35 = vld [vmem:[%s8513_s15 + $0x128] ss:$0 sps:$4 sm:$0x11]   ;;  %v1093_v49 = vshrl.u32 %v8827_v55, 16 }
  0x42   : > { %1174 = vrot.lane.b32.xlu1 %v8782_v13, %s8394_s16  ;;  %v1088_v13 = vshll.u32 %v8806_v17, 16  ;;  %v8830_v39 = vsel %vm811_vm0, %v1066_v14, %v1070_v29  ;;  %v1108_v2 = vshll.u32 %v8833_v35, 16  ;;  %v1078_v14 = vor.u32 %v1077_v9, %v1073_v63 }
  0x43   : > { %1172 = vrot.lane.b32.xlu0 %v8793_v25, %s8394_s16  ;;  %v8824_v25 = vld [vmem:[%s8513_s15 + $0x120] sm:$0xff]   ;;  %14880 = vst [vmem:[#allocation27_spill] sm:$0xff] %v8830_v39  ;;  %v8841_v24 = vsel %vm811_vm0, %v1058_v16, %v1062_v18  ;;  %v8857_v18 = vld [vmem:[%s8513_s15 + $0x12c] sm:$0xff]  }
  0x44   : > { %14879 = vst [vmem:[#allocation26_spill] sm:$0xff] %v8824_v25  ;;  %v1090_v61 = vrot.slane %v1088_v13, 1  ;;  %v1100_v56 = vshll.u32 %v8824_v25, 16  ;;  %14881 = vst [vmem:[#allocation28_spill] sm:$0xff] %v8841_v24  ;;  %v1095_v13 = vshll.u32 %v8827_v55, 16  ;;  %v1110_v28 = vrot.slane %v1108_v2, 1 }
  0x45   : > { %14883 = vst [vmem:[#allocation30_spill] sm:$0xff] %v8857_v18  ;;  %v8862_v16 = vsel %vm811_vm0, %v1078_v14, %v1082_v42  ;;  %v1115_v2 = vshll.u32 %v8857_v18, 16 }
  0x46   : > { %1178 = vrot.lane.b32.xlu1 %v8803_v47, %s8394_s16  ;;  %v1104_v47 = vshrl.u32 %v8824_v25, 16  ;;  %v1102_v29 = vrot.slane %v1100_v56, 1  ;;  %v8851_v58 = vsel %vm811_vm0, %v1086_v59, %v1090_v61  ;;  %v1097_v25 = vrot.slane %v1095_v13, 1 }
  0x47   : > { %1176 = vrot.lane.b32.xlu0 %v8816_v44, %s8394_s16  ;;  %v8848_v44 = vld [vmem:[%s8513_s15 + $0x134] sm:$0xff]   ;;  %14882 = vst [vmem:[#allocation29_spill] sm:$0xff] %v8851_v58  ;;  %v1128_v59 = vshll.u32 %v8854_v45, 16  ;;  %v1113_v61 = vshrl.u32 %v8857_v18, 16 }
  0x48   : > { %v1120_v63 = vshll.u32 %v8848_v44, 16  ;;  %v1124_v9 = vshrl.u32 %v8848_v44, 16  ;;  %v1098_v56 = vor.u32 %v1097_v25, %v1093_v49 }
  0x49   : > { %v1130_v42 = vrot.slane %v1128_v59, 1  ;;  %v1202_v59 = vrot.slane %v8516_v0, 1 }
  0x4a   : > { %1182 = vrot.lane.b32.xlu1 %v8830_v39, %s8394_s16  ;;  %v1106_v39 = vor.u32 %v1104_v47, %v1102_v29  ;;  %v1122_v13 = vrot.slane %v1120_v63, 1  ;;  %v1117_v47 = vrot.slane %v1115_v2, 1  ;;  %v8877_v49 = vsel %vm811_vm0, %v1098_v56, %v1102_v29 }
  0x4b   : > { %1180 = vrot.lane.b32.xlu0 %v8841_v24, %s8394_s16  ;;  %v1198_v63 = vrot.slane %v8528_v6, 1  ;;  %v1197_v29 = vrot.slane %v8525_v5, 1  ;;  %v1203_v56 = vrot.slane %v8519_v1, 1  ;;  %v1205_v6 = vrot.slane %v8531_v7, 1 }
  0x4c   : > { %v8872_v24 = vsel %vm811_vm0, %v1106_v39, %v1110_v28  ;;  %v1126_v14 = vor.u32 %v1124_v9, %v1122_v13  ;;  %v1118_v25 = vor.u32 %v1117_v47, %v1113_v61  ;;  %v1200_v28 = vrot.slane %v8539_v15, 1 }
  0x4d   : > { %v1199_v15 = vsel %vm1196_vm1, %v1197_v29, %v1198_v63  ;;  %v8903_v5 = vsel %vm1196_vm1, %v1203_v56, %v1205_v6  ;;  %v1208_v61 = vrot.slane %v8544_v23, 1  ;;  %v1210_v2 = vrot.slane %v8550_v26, 1 }
  0x4e   : > { %1186 = vrot.lane.b32.xlu1 %v8851_v58, %s8394_s16  ;;  %v8882_v18 = vsel %vm811_vm0, %v1126_v14, %v1130_v42  ;;  %v8889_v39 = vsel %vm811_vm0, %v1118_v25, %v1122_v13  ;;  %v1201_v9 = vsel %vm1196_vm1, %v1198_v63, %v1200_v28  ;;  %v8909_v1 = vsel %vm1196_vm1, %v1202_v59, %v1203_v56 }
  0x4f   : > { %1184 = vrot.lane.b32.xlu0 %v8862_v16, %s8394_s16  ;;  %v1207_v7 = vrot.slane %v8553_v27, 1  ;;  %v8915_v0 = vsel %vm1196_vm1, %v1208_v61, %v1210_v2  ;;  %v1213_v13 = vrot.slane %v8566_v36, 1  ;;  %v1215_v42 = vrot.slane %v8572_v41, 1 }
  0x50   : > { %v1212_v47 = vrot.slane %v8579_v46, 1  ;;  %v1218_v25 = vrot.slane %v8589_v53, 1  ;;  %v1220_v63 = vrot.slane %v8592_v54, 1  ;;  %v1217_v28 = vrot.slane %v8595_v57, 1 }
  0x51   : > { %v8922_v26 = vsel %vm1196_vm1, %v1207_v7, %v1208_v61  ;;  %v8928_v14 = vsel %vm1196_vm1, %v1213_v13, %v1215_v42  ;;  %v1225_v56 = vrot.slane %v8619_v11, 1  ;;  %v1222_v6 = vrot.slane %v8614_v8, 1 }
  0x52   : > { %1190 = vrot.lane.b32.xlu1 %v8872_v24, %s8394_s16  ;;  %v8935_v41 = vsel %vm1196_vm1, %v1212_v47, %v1213_v13  ;;  %v8941_v29 = vsel %vm1196_vm1, %v1218_v25, %v1220_v63  ;;  %v8948_v54 = vsel %vm1196_vm1, %v1217_v28, %v1218_v25  ;;  %v1228_v59 = vrot.slane %v8637_v31, 1 }
  0x53   : > { %1188 = vrot.lane.b32.xlu0 %v8877_v49, %s8394_s16  ;;  %v1230_v61 = vrot.slane %v8640_v32, 1  ;;  %v1227_v2 = vrot.slane %v8643_v33, 1  ;;  %v1233_v13 = vrot.slane %v8649_v38, 1  ;;  %v1235_v42 = vrot.slane %v8665_v52, 1 }
  0x54   : > { %v1232_v47 = vrot.slane %v8675_v3, 1  ;;  %v1238_v63 = vrot.slane %v8678_v10, 1  ;;  %v1240_v28 = vrot.slane %v8681_v12, 1 }
  0x55   : > { %v8967_v7 = vsel %vm1196_vm1, %v1228_v59, %v1230_v61  ;;  %v8974_v32 = vsel %vm1196_vm1, %v1227_v2, %v1228_v59  ;;  %v8980_v25 = vsel %vm1196_vm1, %v1233_v13, %v1235_v42  ;;  %v1245_v59 = vrot.slane %v8715_v50, 1 }
  0x56   : > { %1194 = vrot.lane.b32.xlu1 %v8882_v18, %s8394_s16  ;;  %v8987_v52 = vsel %vm1196_vm1, %v1232_v47, %v1233_v13  ;;  %v1242_v61 = vrot.slane %v8707_v40, 1  ;;  %v1248_v13 = vrot.slane %v8731_v22, 1  ;;  %v1250_v42 = vrot.slane %v8736_v60, 1 }
  0x57   : > { %1192 = vrot.lane.b32.xlu0 %v8889_v39, %s8394_s16  ;;  %v1247_v47 = vrot.slane %v8744_v48, 1  ;;  %s8404_s16 = smov 8  }
  0x59   : > { %v9026_v60 = vsel %vm1196_vm1, %v1247_v47, %v1248_v13 }
  0x5a   : > { %1279 = vrot.lane.b32.xlu1 %v1201_v9, %s8395_s17  ;;  %v1223_v9 = vrot.slane %v8605_v62, 1  ;;  %14888 = vst [vmem:[#allocation35_spill] sm:$0xff] %v9026_v60 }
  0x5b   : > { %1277 = vrot.lane.b32.xlu0 %v1199_v15, %s8395_s17 }
  0x5c   : > { %v8954_v15 = vsel %vm1196_vm1, %v1223_v9, %v1225_v56  ;;  %v8961_v11 = vsel %vm1196_vm1, %v1222_v6, %v1223_v9  ;;  %v1237_v9 = vrot.slane %v8691_v19, 1  ;;  %v8993_v56 = vsel %vm1196_vm1, %v1238_v63, %v1240_v28 }
  0x5d   : > { %v1243_v6 = vrot.slane %v8700_v30, 1  ;;  %v1253_v28 = vrot.slane %v8747_v51, 1 }
  0x5e   : > { %1283 = vrot.lane.b32.xlu1 %v8903_v5, %s8395_s17  ;;  %v9000_v12 = vsel %vm1196_vm1, %v1237_v9, %v1238_v63  ;;  %v9019_v63 = vsel %vm1196_vm1, %v1248_v13, %v1250_v42  ;;  %v1255_v9 = vrot.slane %v8764_v21, 1  ;;  %v1260_v42 = vrot.slane %v8787_v34, 1 }
  0x5f   : > { %1281 = vrot.lane.b32.xlu0 %v8909_v1, %s8395_s17  ;;  %14884 = vst [vmem:[#allocation31_spill] sm:$0xff] %v9000_v12  ;;  %v9006_v2 = vsel %vm1196_vm1, %v1243_v6, %v1245_v59  ;;  %v9013_v50 = vsel %vm1196_vm1, %v1242_v61, %v1243_v6  ;;  %14887 = vst [vmem:[#allocation34_spill] sm:$0xff] %v9019_v63  ;;  %v1252_v6 = vrot.slane %v8756_v43, 1  ;;  %v1258_v61 = vrot.slane %v8774_v20, 1 }
  0x60   : > { %14885 = vst [vmem:[#allocation32_spill] sm:$0xff] %v9006_v2  ;;  %14886 = vst [vmem:[#allocation33_spill] sm:$0xff] %v9013_v50  ;;  %v9032_v59 = vsel %vm1196_vm1, %v1253_v28, %v1255_v9  ;;  %v1257_v13 = vrot.slane %v8779_v37, 1  ;;  %v1263_v9 = vrot.slane %v8797_v4, 1 }
  0x61   : > { %14889 = vst [vmem:[#allocation36_spill] sm:$0xff] %v9032_v59  ;;  %v9039_v21 = vsel %vm1196_vm1, %v1252_v6, %v1253_v28  ;;  %v9045_v47 = vsel %vm1196_vm1, %v1258_v61, %v1260_v42  ;;  %v14893_v28 = vld [vmem:[#allocation24_spill] sm:$0xff]  ;;  %v14895_v42 = vld [vmem:[#allocation26_spill] sm:$0xff] }
  0x62   : > { %1287 = vrot.lane.b32.xlu1 %v8915_v0, %s8395_s17  ;;  %14890 = vst [vmem:[#allocation37_spill] sm:$0xff] %v9039_v21  ;;  %14891 = vst [vmem:[#allocation38_spill] sm:$0xff] %v9045_v47  ;;  %v9052_v34 = vsel %vm1196_vm1, %v1257_v13, %v1258_v61  ;;  %v1262_v6 = vrot.slane %v14893_v28, 1  ;;  %v1267_v13 = vrot.slane %v8827_v55, 1 }
  0x63   : > { %1285 = vrot.lane.b32.xlu0 %v8922_v26, %s8395_s17  ;;  %14892 = vst [vmem:[#allocation39_spill] sm:$0xff] %v9052_v34 }
  0x64   : > { %v9067_v61 = vsel %vm1196_vm1, %v1262_v6, %v1263_v9 }
  0x65   : > { %14897 = vst [vmem:[#allocation40_spill] sm:$0xff] %v9067_v61 }
  0x66   : > { %1291 = vrot.lane.b32.xlu1 %v8928_v14, %s8395_s17 }
  0x67   : > { %1289 = vrot.lane.b32.xlu0 %v8935_v41, %s8395_s17 }
  0x6a   : > { %1295 = vrot.lane.b32.xlu1 %v8941_v29, %s8395_s17 }
  0x6b   : > { %1293 = vrot.lane.b32.xlu0 %v8948_v54, %s8395_s17 }
  0x6e   : > { %1299 = vrot.lane.b32.xlu1 %v8954_v15, %s8395_s17 }
  0x6f   : > { %1297 = vrot.lane.b32.xlu0 %v8961_v11, %s8395_s17 }
  0x72   : > { %1303 = vrot.lane.b32.xlu1 %v8967_v7, %s8395_s17 }
  0x73   : > { %1301 = vrot.lane.b32.xlu0 %v8974_v32, %s8395_s17 }
  0x76   : > { %1307 = vrot.lane.b32.xlu1 %v8980_v25, %s8395_s17 }
  0x77   : > { %1305 = vrot.lane.b32.xlu0 %v8987_v52, %s8395_s17 }
  0x7a   : > { %1311 = vrot.lane.b32.xlu1 %v8993_v56, %s8395_s17 }
  0x7b   : > { %1309 = vrot.lane.b32.xlu0 %v9000_v12, %s8395_s17  ;;  %v14934_v12 = vld [vmem:[#allocation7_spill] sm:$0xff] }
  0x7e   : > { %1315 = vrot.lane.b32.xlu1 %v9006_v2, %s8395_s17  ;;  %v14931_v2 = vld [vmem:[#allocation6_spill] sm:$0xff] }
  0x7f   : > { %1313 = vrot.lane.b32.xlu0 %v9013_v50, %s8395_s17  ;;  %v1270_v50 = vrot.slane %v8833_v35, 1  ;;  %v1273_v35 = vrot.slane %v8848_v44, 1 }
  0x82   : > { %1319 = vrot.lane.b32.xlu1 %v9019_v63, %s8395_s17  ;;  %v1265_v63 = vrot.slane %v8806_v17, 1 }
  0x83   : > { %1317 = vrot.lane.b32.xlu0 %v9026_v60, %s8395_s17  ;;  %v1268_v60 = vrot.slane %v14895_v42, 1 }
  0x85   : > { %v9084_v6 = vsel %vm1196_vm1, %v1267_v13, %v1268_v60 }
  0x86   : > { %1323 = vrot.lane.b32.xlu1 %v9032_v59, %s8395_s17  ;;  %v9058_v59 = vsel %vm1196_vm1, %v1263_v9, %v1265_v63  ;;  %v9075_v63 = vsel %vm1196_vm1, %v1268_v60, %v1270_v50  ;;  %14901 = vst [vmem:[#allocation44_spill] sm:$0xff] %v9084_v6 }
  0x87   : > { %1321 = vrot.lane.b32.xlu0 %v9039_v21, %s8395_s17  ;;  %14894 = vst [vmem:[#allocation24_spill] sm:$0xff] %v9058_v59  ;;  %14899 = vst [vmem:[#allocation42_spill] sm:$0xff] %v9075_v63 }
  0x8a   : > { %1327 = vrot.lane.b32.xlu1 %v9045_v47, %s8395_s17  ;;  %v1275_v47 = vrot.slane %v8854_v45, 1 }
  0x8b   : > { %1325 = vrot.lane.b32.xlu0 %v9052_v34, %s8395_s17  ;;  %v14930_v34 = vld [vmem:[#allocation5_spill] sm:$0xff] }
  0x8c   : > { %v9064_v17 = vpop.permute.xlu1 %1136  ;;  %v9092_v50 = vsel %vm1196_vm1, %v1273_v35, %v1275_v47 }
  0x8d   : > { %14896 = vst [vmem:[#allocation26_spill] sm:$0xff] %v9064_v17  ;;  %v9070_v21 = vpop.permute.xlu0 %1132  ;;  %v14902_v17 = vld [vmem:[#allocation30_spill] sm:$0xff]  ;;  %14904 = vst [vmem:[#allocation45_spill] sm:$0xff] %v9092_v50 }
  0x8e   : > { %14898 = vst [vmem:[#allocation41_spill] sm:$0xff] %v9070_v21  ;;  %1331 = vrot.lane.b32.xlu1 %v9058_v59, %s8395_s17  ;;  %v1272_v21 = vrot.slane %v14902_v17, 1 }
  0x8f   : > { %1329 = vrot.lane.b32.xlu0 %v9067_v61, %s8395_s17 }
  0x90   : > { %v9081_v9 = vpop.permute.xlu1 %1138 }
  0x91   : > { %14900 = vst [vmem:[#allocation43_spill] sm:$0xff] %v9081_v9  ;;  %v9087_v59 = vpop.permute.xlu0 %1134  ;;  %v9099_v9 = vsel %vm1196_vm1, %v1272_v21, %v1273_v35 }
  0x92   : > { %14903 = vst [vmem:[#allocation30_spill] sm:$0xff] %v9087_v59  ;;  %1335 = vrot.lane.b32.xlu1 %v9075_v63, %s8395_s17  ;;  %14906 = vst [vmem:[#allocation47_spill] sm:$0xff] %v9099_v9  ;;  %v8335_v59 = vld [vmem:[%s8513_s15 + $0x1c] sm:$0xff]   ;;  %v14926_v63 = vld [vmem:[#allocation4_spill] sm:$0xff] }
  0x93   : > { %1333 = vrot.lane.b32.xlu0 %v9084_v6, %s8395_s17 }
  0x94   : > { %v9096_v45 = vpop.permute.xlu1 %1142 }
  0x95   : > { %14905 = vst [vmem:[#allocation46_spill] sm:$0xff] %v9096_v45  ;;  %v9101_v60 = vpop.permute.xlu0 %1140  ;;  %v8336_v45 = vld [vmem:[%s8513_s15 + $0x14] sm:$0xff]  }
  0x96   : > { %14907 = vst [vmem:[#allocation48_spill] sm:$0xff] %v9101_v60  ;;  %1339 = vrot.lane.b32.xlu1 %v9092_v50, %s8395_s17  ;;  %v9226_v50 = vld [vmem:[%s8513_s15 + $0x148] sm:$0xff]  }
  0x97   : > { %1337 = vrot.lane.b32.xlu0 %v9099_v9, %s8395_s17  ;;  %s7563_s17 = sshll.u32 %s15655_s25, 5 }
  0x98   : > { %v9107_v13 = vpop.permute.xlu1 %1146 }
  0x99   : > { %14908 = vst [vmem:[#allocation49_spill] sm:$0xff] %v9107_v13  ;;  %v9109_v47 = vpop.permute.xlu0 %1144 }
  0x9a   : > { %14909 = vst [vmem:[#allocation50_spill] sm:$0xff] %v9109_v47  ;;  %1353 = vrot.lane.b32.xlu1 %v8335_v59, %s8396_s18 }
  0x9b   : > { %1351 = vrot.lane.b32.xlu0 %v8336_v45, %s8396_s18 }
  0x9c   : > { %v9115_v21 = vpop.permute.xlu1 %1150 }
  0x9d   : > { %14910 = vst [vmem:[#allocation51_spill] sm:$0xff] %v9115_v21  ;;  %v9117_v35 = vpop.permute.xlu0 %1148 }
  0x9e   : > { %14911 = vst [vmem:[#allocation52_spill] sm:$0xff] %v9117_v35  ;;  %1357 = vrot.lane.b32.xlu1 %v8544_v23, %s8396_s18 }
  0x9f   : > { %1355 = vrot.lane.b32.xlu0 %v8553_v27, %s8396_s18 }
  0xa0   : > { %v9123_v13 = vpop.permute.xlu1 %1154 }
  0xa1   : > { %14912 = vst [vmem:[#allocation53_spill] sm:$0xff] %v9123_v13  ;;  %v9125_v47 = vpop.permute.xlu0 %1152 }
  0xa2   : > { %14913 = vst [vmem:[#allocation54_spill] sm:$0xff] %v9125_v47  ;;  %1361 = vrot.lane.b32.xlu1 %v8566_v36, %s8396_s18 }
  0xa3   : > { %1359 = vrot.lane.b32.xlu0 %v8579_v46, %s8396_s18 }
  0xa4   : > { %v9131_v59 = vpop.permute.xlu1 %1158 }
  0xa5   : > { %14914 = vst [vmem:[#allocation55_spill] sm:$0xff] %v9131_v59  ;;  %v9133_v45 = vpop.permute.xlu0 %1156 }
  0xa6   : > { %14915 = vst [vmem:[#allocation56_spill] sm:$0xff] %v9133_v45  ;;  %1365 = vrot.lane.b32.xlu1 %v8589_v53, %s8396_s18 }
  0xa7   : > { %1363 = vrot.lane.b32.xlu0 %v8595_v57, %s8396_s18 }
  0xa8   : > { %v9139_v23 = vpop.permute.xlu1 %1162 }
  0xa9   : > { %14916 = vst [vmem:[#allocation57_spill] sm:$0xff] %v9139_v23  ;;  %v9141_v27 = vpop.permute.xlu0 %1160 }
  0xaa   : > { %14917 = vst [vmem:[#allocation58_spill] sm:$0xff] %v9141_v27  ;;  %1369 = vrot.lane.b32.xlu1 %v8605_v62, %s8396_s18 }
  0xab   : > { %1367 = vrot.lane.b32.xlu0 %v8614_v8, %s8396_s18 }
  0xac   : > { %v9147_v36 = vpop.permute.xlu1 %1166 }
  0xad   : > { %v9149_v46 = vpop.permute.xlu0 %1164 }
  0xae   : > { %1373 = vrot.lane.b32.xlu1 %v8637_v31, %s8396_s18 }
  0xaf   : > { %1371 = vrot.lane.b32.xlu0 %v8643_v33, %s8396_s18 }
  0xb0   : > { %v9155_v53 = vpop.permute.xlu1 %1170 }
  0xb1   : > { %v9157_v57 = vpop.permute.xlu0 %1168 }
  0xb2   : > { %1377 = vrot.lane.b32.xlu1 %v8649_v38, %s8396_s18 }
  0xb3   : > { %1375 = vrot.lane.b32.xlu0 %v8675_v3, %s8396_s18 }
  0xb4   : > { %v9163_v62 = vpop.permute.xlu1 %1174 }
  0xb5   : > { %v9165_v8 = vpop.permute.xlu0 %1172 }
  0xb6   : > { %1381 = vrot.lane.b32.xlu1 %v8678_v10, %s8396_s18 }
  0xb7   : > { %1379 = vrot.lane.b32.xlu0 %v8691_v19, %s8396_s18 }
  0xb8   : > { %v9171_v31 = vpop.permute.xlu1 %1178 }
  0xb9   : > { %v9173_v33 = vpop.permute.xlu0 %1176 }
  0xba   : > { %1385 = vrot.lane.b32.xlu1 %v8700_v30, %s8396_s18 }
  0xbb   : > { %1383 = vrot.lane.b32.xlu0 %v8707_v40, %s8396_s18 }
  0xbc   : > { %v9179_v38 = vpop.permute.xlu1 %1182 }
  0xbd   : > { %v9181_v3 = vpop.permute.xlu0 %1180 }
  0xbe   : > { %1389 = vrot.lane.b32.xlu1 %v8731_v22, %s8396_s18 }
  0xbf   : > { %1387 = vrot.lane.b32.xlu0 %v8744_v48, %s8396_s18 }
  0xc0   : > { %v9187_v23 = vpop.permute.xlu1 %1186 }
  0xc1   : > { %v9189_v27 = vpop.permute.xlu0 %1184 }
  0xc2   : > { %1393 = vrot.lane.b32.xlu1 %v8747_v51, %s8396_s18 }
  0xc3   : > { %1391 = vrot.lane.b32.xlu0 %v8756_v43, %s8396_s18 }
  0xc4   : > { %v9195_v59 = vpop.permute.xlu1 %1190 }
  0xc5   : > { %v9197_v45 = vpop.permute.xlu0 %1188 }
  0xc6   : > { %1397 = vrot.lane.b32.xlu1 %v8774_v20, %s8396_s18 }
  0xc7   : > { %1395 = vrot.lane.b32.xlu0 %v8779_v37, %s8396_s18 }
  0xc8   : > { %v9203_v13 = vpop.permute.xlu1 %1194 }
  0xc9   : > { %v9205_v47 = vpop.permute.xlu0 %1192 }
  0xca   : > { %1401 = vrot.lane.b32.xlu1 %v8797_v4, %s8396_s18 }
  0xcb   : > { %1399 = vrot.lane.b32.xlu0 %v14893_v28, %s8396_s18 }
  0xcc   : > { %v9211_v21 = vpop.permute.xlu1 %1279 }
  0xcd   : > { %14918 = vst [vmem:[#allocation59_spill] sm:$0xff] %v9211_v21  ;;  %v9213_v35 = vpop.permute.xlu0 %1277 }
  0xce   : > { %14919 = vst [vmem:[#allocation60_spill] sm:$0xff] %v9213_v35  ;;  %1405 = vrot.lane.b32.xlu1 %v14895_v42, %s8396_s18  ;;  %v9233_v35 = vld [vmem:[%s8513_s15 + $0x140] sm:$0xff]  }
  0xcf   : > { %1403 = vrot.lane.b32.xlu0 %v8827_v55, %s8396_s18 }
  0xd0   : > { %v9219_v60 = vpop.permute.xlu1 %1283 }
  0xd1   : > { %14920 = vst [vmem:[#allocation61_spill] sm:$0xff] %v9219_v60  ;;  %v9221_v9 = vpop.permute.xlu0 %1281 }
  0xd2   : > { %14921 = vst [vmem:[#allocation62_spill] sm:$0xff] %v9221_v9  ;;  %1409 = vrot.lane.b32.xlu1 %v8848_v44, %s8396_s18 }
  0xd3   : > { %1407 = vrot.lane.b32.xlu0 %v14902_v17, %s8396_s18 }
  0xd4   : > { %v9230_v21 = vpop.permute.xlu1 %1287 }
  0xd5   : > { %14922 = vst [vmem:[#allocation63_spill] sm:$0xff] %v9230_v21  ;;  %v9235_v6 = vpop.permute.xlu0 %1285  ;;  %v14927_v21 = vld [vmem:[#allocation3_spill] sm:$0xff] }
  0xd6   : > { %14923 = vst [vmem:[#allocation64_spill] sm:$0xff] %v9235_v6  ;;  %1413 = vrot.lane.b32.xlu1 %v9226_v50, %s8396_s18 }
  0xd7   : > { %1411 = vrot.lane.b32.xlu0 %v9233_v35, %s8396_s18  ;;  %s8412_s18 = smov 72  }
  0xd8   : > { %v9241_v60 = vpop.permute.xlu1 %1291 }
  0xd9   : > { %14924 = vst [vmem:[#allocation65_spill] sm:$0xff] %v9241_v60  ;;  %v9243_v9 = vpop.permute.xlu0 %1289 }
  0xda   : > { %14925 = vst [vmem:[#allocation66_spill] sm:$0xff] %v9243_v9  ;;  %1440 = vrot.lane.b32.xlu1 %v14926_v63, %s8397_s19  ;;  %v14935_v63 = vld [vmem:[#allocation8_spill] sm:$0xff] }
  0xdb   : > { %1438 = vrot.lane.b32.xlu0 %v14927_v21, %s8397_s19 }
  0xdc   : > { %v9249_v61 = vpop.permute.xlu1 %1295 }
  0xdd   : > { %14928 = vst [vmem:[#allocation4_spill] sm:$0xff] %v9249_v61  ;;  %v9251_v6 = vpop.permute.xlu0 %1293 }
  0xde   : > { %14929 = vst [vmem:[#allocation3_spill] sm:$0xff] %v9251_v6  ;;  %1444 = vrot.lane.b32.xlu1 %v14930_v34, %s8397_s19  ;;  %v14938_v6 = vld [vmem:[#allocation9_spill] sm:$0xff]  ;;  %v14939_v34 = vld [vmem:[#allocation10_spill] sm:$0xff] }
  0xdf   : > { %1442 = vrot.lane.b32.xlu0 %v14931_v2, %s8397_s19 }
  0xe0   : > { %v9257_v60 = vpop.permute.xlu1 %1299 }
  0xe1   : > { %14932 = vst [vmem:[#allocation67_spill] sm:$0xff] %v9257_v60  ;;  %v9259_v9 = vpop.permute.xlu0 %1297 }
  0xe2   : > { %14933 = vst [vmem:[#allocation68_spill] sm:$0xff] %v9259_v9  ;;  %1448 = vrot.lane.b32.xlu1 %v14934_v12, %s8397_s19  ;;  %v14942_v9 = vld [vmem:[#allocation11_spill] sm:$0xff] }
  0xe3   : > { %1446 = vrot.lane.b32.xlu0 %v14935_v63, %s8397_s19 }
  0xe4   : > { %v9265_v21 = vpop.permute.xlu1 %1303 }
  0xe5   : > { %14936 = vst [vmem:[#allocation7_spill] sm:$0xff] %v9265_v21  ;;  %v9267_v61 = vpop.permute.xlu0 %1301  ;;  %v1837_v21 = vsel %vm1801_vm2, %v8678_v10, %v9147_v36  ;;  %v1841_v10 = vsel %vm1801_vm2, %v8700_v30, %v9155_v53  ;;  %v14945_v36 = vld [vmem:[#allocation14_spill] sm:$0xff]  ;;  %v1845_v30 = vsel %vm1801_vm2, %v8731_v22, %v9163_v62  ;;  %v1849_v22 = vsel %vm1801_vm2, %v8747_v51, %v9171_v31  ;;  %v14951_v31 = vld [vmem:[#allocation20_spill] sm:$0xff] }
  0xe6   : > { %14937 = vst [vmem:[#allocation69_spill] sm:$0xff] %v9267_v61  ;;  %1452 = vrot.lane.b32.xlu1 %v14938_v6, %s8397_s19  ;;  %v14943_v61 = vld [vmem:[#allocation12_spill] sm:$0xff]  ;;  %v14949_v62 = vld [vmem:[#allocation18_spill] sm:$0xff]  ;;  %v1853_v51 = vsel %vm1801_vm2, %v8774_v20, %v9179_v38  ;;  %v1857_v20 = vsel %vm1801_vm2, %v8797_v4, %v9187_v23  ;;  %v1861_v4 = vsel %vm1801_vm2, %v14895_v42, %v9195_v59  ;;  %v14955_v23 = vld [vmem:[#allocation25_spill] sm:$0xff]  ;;  %v1426_v42 = vshll.u32 %v9226_v50, 16 }
  0xe7   : > { %1450 = vrot.lane.b32.xlu0 %v14939_v34, %s8397_s19  ;;  %v14953_v38 = vld [vmem:[#allocation22_spill] sm:$0xff]  ;;  %v1865_v59 = vsel %vm1801_vm2, %v8848_v44, %v9203_v13  ;;  %v1430_v13 = vshrl.u32 %v9226_v50, 16 }
  0xe8   : > { %v9273_v2 = vpop.permute.xlu1 %1307  ;;  %v1428_v44 = vrot.slane %v1426_v42, 1 }
  0xe9   : > { %14940 = vst [vmem:[#allocation70_spill] sm:$0xff] %v9273_v2  ;;  %v9275_v60 = vpop.permute.xlu0 %1305  ;;  %v1835_v2 = vsel %vm1801_vm2, %v8691_v19, %v9149_v46  ;;  %v1839_v19 = vsel %vm1801_vm2, %v8707_v40, %v9157_v57  ;;  %v1843_v40 = vsel %vm1801_vm2, %v8744_v48, %v9165_v8  ;;  %v1847_v48 = vsel %vm1801_vm2, %v8756_v43, %v9173_v33 }
  0xea   : > { %14941 = vst [vmem:[#allocation71_spill] sm:$0xff] %v9275_v60  ;;  %1456 = vrot.lane.b32.xlu1 %v14942_v9, %s8397_s19  ;;  %v14944_v9 = vld [vmem:[#allocation13_spill] sm:$0xff]  ;;  %v1851_v43 = vsel %vm1801_vm2, %v8779_v37, %v9181_v3  ;;  %v1855_v37 = vsel %vm1801_vm2, %v14893_v28, %v9189_v27  ;;  %v1859_v28 = vsel %vm1801_vm2, %v8827_v55, %v9197_v45  ;;  %v1421_v45 = vshll.u32 %v9233_v35, 16 }
  0xeb   : > { %1454 = vrot.lane.b32.xlu0 %v14943_v61, %s8397_s19 }
  0xec   : > { %v1312_v6 = vpop.permute.xlu1 %1311 }
  0xed   : > { %v9285_v63 = vsel %vm1866_vm3, %v1837_v21, %v1312_v6  ;;  %v1310_v60 = vpop.permute.xlu0 %1309 }
  0xee   : > { %1460 = vrot.lane.b32.xlu1 %v14944_v9, %s8397_s19  ;;  %v9293_v34 = vsel %vm1866_vm3, %v1835_v2, %v1310_v60  ;;  %v14946_v9 = vld [vmem:[#allocation15_spill] sm:$0xff]  ;;  %v14947_v60 = vld [vmem:[#allocation16_spill] sm:$0xff] }
  0xef   : > { %1458 = vrot.lane.b32.xlu0 %v14945_v36, %s8397_s19 }
  0xf0   : > { %v1316_v6 = vpop.permute.xlu1 %1315 }
  0xf1   : > { %v9301_v21 = vsel %vm1866_vm3, %v1841_v10, %v1316_v6  ;;  %v1314_v46 = vpop.permute.xlu0 %1313  ;;  %v14948_v6 = vld [vmem:[#allocation17_spill] sm:$0xff] }
  0xf2   : > { %1464 = vrot.lane.b32.xlu1 %v14946_v9, %s8397_s19  ;;  %v9309_v2 = vsel %vm1866_vm3, %v1839_v19, %v1314_v46 }
  0xf3   : > { %1462 = vrot.lane.b32.xlu0 %v14947_v60, %s8397_s19 }
  0xf4   : > { %v1320_v53 = vpop.permute.xlu1 %1319 }
  0xf5   : > { %v9317_v10 = vsel %vm1866_vm3, %v1845_v30, %v1320_v53  ;;  %v1318_v57 = vpop.permute.xlu0 %1317  ;;  %v14950_v53 = vld [vmem:[#allocation19_spill] sm:$0xff] }
  0xf6   : > { %1468 = vrot.lane.b32.xlu1 %v14948_v6, %s8397_s19  ;;  %v9325_v19 = vsel %vm1866_vm3, %v1843_v40, %v1318_v57 }
  0xf7   : > { %1466 = vrot.lane.b32.xlu0 %v14949_v62, %s8397_s19 }
  0xf8   : > { %v1324_v46 = vpop.permute.xlu1 %1323 }
  0xf9   : > { %v9333_v30 = vsel %vm1866_vm3, %v1849_v22, %v1324_v46  ;;  %v1322_v8 = vpop.permute.xlu0 %1321  ;;  %v14952_v46 = vld [vmem:[#allocation21_spill] sm:$0xff] }
  0xfa   : > { %1472 = vrot.lane.b32.xlu1 %v14950_v53, %s8397_s19  ;;  %v9341_v40 = vsel %vm1866_vm3, %v1847_v48, %v1322_v8 }
  0xfb   : > { %1470 = vrot.lane.b32.xlu0 %v14951_v31, %s8397_s19 }
  0xfc   : > { %v1328_v57 = vpop.permute.xlu1 %1327 }
  0xfd   : > { %v9349_v22 = vsel %vm1866_vm3, %v1853_v51, %v1328_v57  ;;  %v1326_v33 = vpop.permute.xlu0 %1325  ;;  %v14954_v57 = vld [vmem:[#allocation23_spill] sm:$0xff] }
  0xfe   : > { %1476 = vrot.lane.b32.xlu1 %v14952_v46, %s8397_s19  ;;  %v9357_v48 = vsel %vm1866_vm3, %v1851_v43, %v1326_v33 }
  0xff   : > { %1474 = vrot.lane.b32.xlu0 %v14953_v38, %s8397_s19 }
 0x100   : > { %v1332_v8 = vpop.permute.xlu1 %1331 }
 0x101   : > { %v9365_v51 = vsel %vm1866_vm3, %v1857_v20, %v1332_v8  ;;  %v1330_v3 = vpop.permute.xlu0 %1329  ;;  %v14956_v8 = vld [vmem:[#allocation27_spill] sm:$0xff] }
 0x102   : > { %1480 = vrot.lane.b32.xlu1 %v14954_v57, %s8397_s19  ;;  %v9373_v43 = vsel %vm1866_vm3, %v1855_v37, %v1330_v3  ;;  %v9392_v3 = vld [vmem:[%s8513_s15 + $0x150] ss:$0 sps:$4 sm:$0x11]  }
 0x103   : > { %1478 = vrot.lane.b32.xlu0 %v14955_v23, %s8397_s19 }
 0x104   : > { %v1336_v33 = vpop.permute.xlu1 %1335 }
 0x105   : > { %v9381_v20 = vsel %vm1866_vm3, %v1861_v4, %v1336_v33  ;;  %v1334_v27 = vpop.permute.xlu0 %1333  ;;  %v14957_v4 = vld [vmem:[#allocation28_spill] sm:$0xff] }
 0x106   : > { %1484 = vrot.lane.b32.xlu1 %v14956_v8, %s8397_s19  ;;  %v9389_v37 = vsel %vm1866_vm3, %v1859_v28, %v1334_v27  ;;  %v1863_v28 = vsel %vm1801_vm2, %v14902_v17, %v9205_v47  ;;  %v1423_v17 = vrot.slane %v1421_v45, 1 }
 0x107   : > { %1482 = vrot.lane.b32.xlu0 %v14957_v4, %s8397_s19  ;;  %v1434_v4 = vshll.u32 %v9392_v3, 16 }
 0x108   : > { %v1340_v33 = vpop.permute.xlu1 %1339 }
 0x109   : > { %v9401_v55 = vsel %vm1866_vm3, %v1865_v59, %v1340_v33  ;;  %v1338_v27 = vpop.permute.xlu0 %1337  ;;  %v1419_v33 = vshrl.u32 %v9233_v35, 16 }
 0x10a   : > { %1488 = vrot.lane.b32.xlu1 %v8851_v58, %s8397_s19  ;;  %v9410_v8 = vsel %vm1866_vm3, %v1863_v28, %v1338_v27  ;;  %v1432_v28 = vor.u32 %v1430_v13, %v1428_v44  ;;  %v1436_v27 = vrot.slane %v1434_v4, 1 }
 0x10b   : > { %1486 = vrot.lane.b32.xlu0 %v8862_v16, %s8397_s19  ;;  %v1424_v58 = vor.u32 %v1423_v17, %v1419_v33 }
 0x10c   : > { %v9416_v59 = vpop.permute.xlu1 %1353  ;;  %v9432_v45 = vsel %vm811_vm0, %v1432_v28, %v1436_v27 }
 0x10d   : > { %14958 = vst [vmem:[#allocation12_spill] sm:$0xff] %v9416_v59  ;;  %v9419_v47 = vpop.permute.xlu0 %1351  ;;  %v9439_v4 = vsel %vm811_vm0, %v1424_v58, %v1428_v44  ;;  %v14980_v59 = vld [vmem:[#allocation37_spill] sm:$0xff] }
 0x10e   : > { %14959 = vst [vmem:[#allocation14_spill] sm:$0xff] %v9419_v47  ;;  %1492 = vrot.lane.b32.xlu1 %v8872_v24, %s8397_s19 }
 0x10f   : > { %1490 = vrot.lane.b32.xlu0 %v8877_v49, %s8397_s19 }
 0x110   : > { %v9425_v42 = vpop.permute.xlu1 %1357 }
 0x111   : > { %14960 = vst [vmem:[#allocation15_spill] sm:$0xff] %v9425_v42  ;;  %v9427_v23 = vpop.permute.xlu0 %1355  ;;  %v14978_v42 = vld [vmem:[#allocation35_spill] sm:$0xff] }
 0x112   : > { %14961 = vst [vmem:[#allocation16_spill] sm:$0xff] %v9427_v23  ;;  %1496 = vrot.lane.b32.xlu1 %v8882_v18, %s8397_s19 }
 0x113   : > { %1494 = vrot.lane.b32.xlu0 %v8889_v39, %s8397_s19 }
 0x114   : > { %v9436_v47 = vpop.permute.xlu1 %1361 }
 0x115   : > { %14962 = vst [vmem:[#allocation17_spill] sm:$0xff] %v9436_v47  ;;  %v9441_v13 = vpop.permute.xlu0 %1359  ;;  %v14976_v47 = vld [vmem:[#allocation33_spill] sm:$0xff] }
 0x116   : > { %14963 = vst [vmem:[#allocation18_spill] sm:$0xff] %v9441_v13  ;;  %1500 = vrot.lane.b32.xlu1 %v9432_v45, %s8397_s19 }
 0x117   : > { %1498 = vrot.lane.b32.xlu0 %v9439_v4, %s8397_s19  ;;  %s8413_s19 = smov 80  }
 0x118   : > { %v9447_v33 = vpop.permute.xlu1 %1365 }
 0x119   : > { %14964 = vst [vmem:[#allocation19_spill] sm:$0xff] %v9447_v33  ;;  %v9449_v17 = vpop.permute.xlu0 %1363 }
 0x11a   : > { %14965 = vst [vmem:[#allocation20_spill] sm:$0xff] %v9449_v17  ;;  %1509 = vrot.lane.b32.xlu1 %v8903_v5, %s8398_s20 }
 0x11b   : > { %1507 = vrot.lane.b32.xlu0 %v8909_v1, %s8398_s20 }
 0x11c   : > { %v9455_v58 = vpop.permute.xlu1 %1369 }
 0x11d   : > { %14966 = vst [vmem:[#allocation21_spill] sm:$0xff] %v9455_v58  ;;  %v9457_v44 = vpop.permute.xlu0 %1367 }
 0x11e   : > { %14967 = vst [vmem:[#allocation22_spill] sm:$0xff] %v9457_v44  ;;  %1513 = vrot.lane.b32.xlu1 %v8915_v0, %s8398_s20 }
 0x11f   : > { %1511 = vrot.lane.b32.xlu0 %v8922_v26, %s8398_s20 }
 0x120   : > { %v9463_v28 = vpop.permute.xlu1 %1373 }
 0x121   : > { %14968 = vst [vmem:[#allocation23_spill] sm:$0xff] %v9463_v28  ;;  %v9465_v27 = vpop.permute.xlu0 %1371 }
 0x122   : > { %14969 = vst [vmem:[#allocation72_spill] sm:$0xff] %v9465_v27  ;;  %1517 = vrot.lane.b32.xlu1 %v8928_v14, %s8398_s20 }
 0x123   : > { %1515 = vrot.lane.b32.xlu0 %v8935_v41, %s8398_s20 }
 0x124   : > { %v9471_v5 = vpop.permute.xlu1 %1377 }
 0x125   : > { %14970 = vst [vmem:[#allocation73_spill] sm:$0xff] %v9471_v5  ;;  %v9473_v1 = vpop.permute.xlu0 %1375 }
 0x126   : > { %14971 = vst [vmem:[#allocation74_spill] sm:$0xff] %v9473_v1  ;;  %1521 = vrot.lane.b32.xlu1 %v8941_v29, %s8398_s20 }
 0x127   : > { %1519 = vrot.lane.b32.xlu0 %v8948_v54, %s8398_s20 }
 0x128   : > { %v9479_v58 = vpop.permute.xlu1 %1381 }
 0x129   : > { %14972 = vst [vmem:[#allocation75_spill] sm:$0xff] %v9479_v58  ;;  %v9481_v28 = vpop.permute.xlu0 %1379 }
 0x12a   : > { %14973 = vst [vmem:[#allocation76_spill] sm:$0xff] %v9481_v28  ;;  %1525 = vrot.lane.b32.xlu1 %v8954_v15, %s8398_s20 }
 0x12b   : > { %1523 = vrot.lane.b32.xlu0 %v8961_v11, %s8398_s20 }
 0x12c   : > { %v1386_v5 = vpop.permute.xlu1 %1385 }
 0x12d   : > { %v9489_v1 = vsel %vm1931_vm4, %v9285_v63, %v1386_v5  ;;  %v1384_v27 = vpop.permute.xlu0 %1383 }
 0x12e   : > { %1529 = vrot.lane.b32.xlu1 %v8967_v7, %s8398_s20  ;;  %v9495_v58 = vsel %vm1931_vm4, %v9293_v34, %v1384_v27 }
 0x12f   : > { %1527 = vrot.lane.b32.xlu0 %v8974_v32, %s8398_s20 }
 0x130   : > { %v1390_v28 = vpop.permute.xlu1 %1389 }
 0x131   : > { %v9501_v44 = vsel %vm1931_vm4, %v9301_v21, %v1390_v28  ;;  %v1388_v33 = vpop.permute.xlu0 %1387  ;;  %v14974_v28 = vld [vmem:[#allocation31_spill] sm:$0xff] }
 0x132   : > { %1533 = vrot.lane.b32.xlu1 %v8980_v25, %s8398_s20  ;;  %v9507_v63 = vsel %vm1931_vm4, %v9309_v2, %v1388_v33 }
 0x133   : > { %1531 = vrot.lane.b32.xlu0 %v8987_v52, %s8398_s20 }
 0x134   : > { %v1394_v34 = vpop.permute.xlu1 %1393 }
 0x135   : > { %v9513_v27 = vsel %vm1931_vm4, %v9317_v10, %v1394_v34  ;;  %v1392_v5 = vpop.permute.xlu0 %1391  ;;  %v14975_v10 = vld [vmem:[#allocation32_spill] sm:$0xff] }
 0x136   : > { %1537 = vrot.lane.b32.xlu1 %v8993_v56, %s8398_s20  ;;  %v9519_v21 = vsel %vm1931_vm4, %v9325_v19, %v1392_v5 }
 0x137   : > { %1535 = vrot.lane.b32.xlu0 %v14974_v28, %s8398_s20 }
 0x138   : > { %v1398_v2 = vpop.permute.xlu1 %1397 }
 0x139   : > { %v9525_v33 = vsel %vm1931_vm4, %v9333_v30, %v1398_v2  ;;  %v1396_v17 = vpop.permute.xlu0 %1395  ;;  %v14977_v30 = vld [vmem:[#allocation34_spill] sm:$0xff] }
 0x13a   : > { %1541 = vrot.lane.b32.xlu1 %v14975_v10, %s8398_s20  ;;  %v9531_v34 = vsel %vm1931_vm4, %v9341_v40, %v1396_v17 }
 0x13b   : > { %1539 = vrot.lane.b32.xlu0 %v14976_v47, %s8398_s20 }
 0x13c   : > { %v1402_v19 = vpop.permute.xlu1 %1401 }
 0x13d   : > { %v9537_v5 = vsel %vm1931_vm4, %v9349_v22, %v1402_v19  ;;  %v1400_v13 = vpop.permute.xlu0 %1399  ;;  %v14979_v22 = vld [vmem:[#allocation36_spill] sm:$0xff] }
 0x13e   : > { %1545 = vrot.lane.b32.xlu1 %v14977_v30, %s8398_s20  ;;  %v9543_v2 = vsel %vm1931_vm4, %v9357_v48, %v1400_v13 }
 0x13f   : > { %1543 = vrot.lane.b32.xlu0 %v14978_v42, %s8398_s20 }
 0x140   : > { %v1406_v40 = vpop.permute.xlu1 %1405 }
 0x141   : > { %v9549_v17 = vsel %vm1931_vm4, %v9365_v51, %v1406_v40  ;;  %v1404_v23 = vpop.permute.xlu0 %1403  ;;  %v14981_v51 = vld [vmem:[#allocation38_spill] sm:$0xff] }
 0x142   : > { %1549 = vrot.lane.b32.xlu1 %v14979_v22, %s8398_s20  ;;  %v9555_v19 = vsel %vm1931_vm4, %v9373_v43, %v1404_v23  ;;  %v14982_v22 = vld [vmem:[#allocation39_spill] sm:$0xff] }
 0x143   : > { %1547 = vrot.lane.b32.xlu0 %v14980_v59, %s8398_s20 }
 0x144   : > { %v1410_v48 = vpop.permute.xlu1 %1409 }
 0x145   : > { %v9561_v13 = vsel %vm1931_vm4, %v9381_v20, %v1410_v48  ;;  %v1408_v42 = vpop.permute.xlu0 %1407  ;;  %v14983_v20 = vld [vmem:[#allocation24_spill] sm:$0xff] }
 0x146   : > { %1553 = vrot.lane.b32.xlu1 %v14981_v51, %s8398_s20  ;;  %v9567_v40 = vsel %vm1931_vm4, %v9389_v37, %v1408_v42  ;;  %v14984_v51 = vld [vmem:[#allocation40_spill] sm:$0xff] }
 0x147   : > { %1551 = vrot.lane.b32.xlu0 %v14982_v22, %s8398_s20  ;;  %v14987_v22 = vld [vmem:[#allocation42_spill] sm:$0xff] }
 0x148   : > { %v1414_v43 = vpop.permute.xlu1 %1413 }
 0x149   : > { %v9573_v23 = vsel %vm1931_vm4, %v9401_v55, %v1414_v43  ;;  %v1412_v59 = vpop.permute.xlu0 %1411  ;;  %v1503_v55 = vrot.slane %v9226_v50, 1  ;;  %v1505_v43 = vrot.slane %v9392_v3, 1 }
 0x14a   : > { %1557 = vrot.lane.b32.xlu1 %v14983_v20, %s8398_s20  ;;  %v9579_v48 = vsel %vm1931_vm4, %v9410_v8, %v1412_v59  ;;  %v14988_v20 = vld [vmem:[#allocation44_spill] sm:$0xff]  ;;  %v1502_v59 = vrot.slane %v9233_v35, 1 }
 0x14b   : > { %1555 = vrot.lane.b32.xlu0 %v14984_v51, %s8398_s20 }
 0x14c   : > { %v9583_v37 = vpop.permute.xlu1 %1440 }
 0x14d   : > { %14985 = vst [vmem:[#allocation31_spill] sm:$0xff] %v9583_v37  ;;  %v9585_v42 = vpop.permute.xlu0 %1438  ;;  %v9601_v37 = vsel %vm1196_vm1, %v1503_v55, %v1505_v43 }
 0x14e   : > { %14986 = vst [vmem:[#allocation32_spill] sm:$0xff] %v9585_v42  ;;  %1561 = vrot.lane.b32.xlu1 %v14987_v22, %s8398_s20  ;;  %v14991_v42 = vld [vmem:[#allocation45_spill] sm:$0xff]  ;;  %v14993_v22 = vld [vmem:[#allocation47_spill] sm:$0xff] }
 0x14f   : > { %1559 = vrot.lane.b32.xlu0 %v14988_v20, %s8398_s20  ;;  %14992 = vst [vmem:[#allocation45_spill] sm:$0xff] %v9601_v37  ;;  %v9608_v20 = vsel %vm1196_vm1, %v1502_v59, %v1503_v55  ;;  %v9626_v55 = vld [vmem:[%s8513_s15 + $0x28] sm:$0xff]  }
 0x150   : > { %v9593_v8 = vpop.permute.xlu1 %1444  ;;  %14995 = vst [vmem:[#allocation78_spill] sm:$0xff] %v9608_v20  ;;  %15000 = vst [vmem:[#allocation83_spill] sm:$0xff] %v9626_v55 }
 0x151   : > { %14989 = vst [vmem:[#allocation33_spill] sm:$0xff] %v9593_v8  ;;  %v9596_v51 = vpop.permute.xlu0 %1442 }
 0x152   : > { %14990 = vst [vmem:[#allocation34_spill] sm:$0xff] %v9596_v51  ;;  %1565 = vrot.lane.b32.xlu1 %v14991_v42, %s8398_s20 }
 0x153   : > { %1563 = vrot.lane.b32.xlu0 %v14993_v22, %s8398_s20  ;;  %v9621_v22 = vld [vmem:[%s8513_s15 + $0x30] sm:$0xff]  }
 0x154   : > { %v9605_v3 = vpop.permute.xlu1 %1448  ;;  %14999 = vst [vmem:[#allocation82_spill] sm:$0xff] %v9621_v22 }
 0x155   : > { %14994 = vst [vmem:[#allocation77_spill] sm:$0xff] %v9605_v3  ;;  %v9610_v8 = vpop.permute.xlu0 %1446 }
 0x156   : > { %14996 = vst [vmem:[#allocation79_spill] sm:$0xff] %v9610_v8  ;;  %1569 = vrot.lane.b32.xlu1 %v9601_v37, %s8398_s20  ;;  %v8363_v37 = vld [vmem:[%s8513_s15 + $0x134] sm:$0xff]  }
 0x157   : > { %1567 = vrot.lane.b32.xlu0 %v9608_v20, %s8398_s20  ;;  %s488_s20 = scalar_lea.vmem %s14655_s10, %s7563_s17  ;;  %s8411_s17 = smov 64  }
 0x158   : > { %v9616_v43 = vpop.permute.xlu1 %1452 }
 0x159   : > { %14997 = vst [vmem:[#allocation80_spill] sm:$0xff] %v9616_v43  ;;  %v9618_v51 = vpop.permute.xlu0 %1450  ;;  %v9635_v43 = vld [vmem:[%s8513_s15 + $0x44] sm:$0xff]  }
 0x15a   : > { %14998 = vst [vmem:[#allocation81_spill] sm:$0xff] %v9618_v51  ;;  %1583 = vrot.lane.b32.xlu1 %v9621_v22, %s8399_s21  ;;  %15003 = vst [vmem:[#allocation86_spill] sm:$0xff] %v9635_v43  ;;  %v9640_v51 = vld [vmem:[%s8513_s15 + $0x3c] sm:$0xff]  }
 0x15b   : > { %1581 = vrot.lane.b32.xlu0 %v9626_v55, %s8399_s21  ;;  %15004 = vst [vmem:[#allocation87_spill] sm:$0xff] %v9640_v51  ;;  %v8349_v55 = vld [vmem:[%s8513_s15 + $0xa8] sm:$0xff]  }
 0x15c   : > { %v9630_v59 = vpop.permute.xlu1 %1456 }
 0x15d   : > { %15001 = vst [vmem:[#allocation84_spill] sm:$0xff] %v9630_v59  ;;  %v9632_v20 = vpop.permute.xlu0 %1454  ;;  %v9649_v59 = vld [vmem:[%s8513_s15 + $0x58] sm:$0xff]  }
 0x15e   : > { %15002 = vst [vmem:[#allocation85_spill] sm:$0xff] %v9632_v20  ;;  %1587 = vrot.lane.b32.xlu1 %v9635_v43, %s8399_s21  ;;  %15007 = vst [vmem:[#allocation90_spill] sm:$0xff] %v9649_v59  ;;  %v9654_v20 = vld [vmem:[%s8513_s15 + $0x50] sm:$0xff]  }
 0x15f   : > { %1585 = vrot.lane.b32.xlu0 %v9640_v51, %s8399_s21  ;;  %15008 = vst [vmem:[#allocation91_spill] sm:$0xff] %v9654_v20  ;;  %v9663_v51 = vld [vmem:[%s8513_s15 + $0x6c] sm:$0xff]  }
 0x160   : > { %v9644_v3 = vpop.permute.xlu1 %1460  ;;  %15011 = vst [vmem:[#allocation94_spill] sm:$0xff] %v9663_v51 }
 0x161   : > { %15005 = vst [vmem:[#allocation88_spill] sm:$0xff] %v9644_v3  ;;  %v9646_v22 = vpop.permute.xlu0 %1458  ;;  %v9668_v3 = vld [vmem:[%s8513_s15 + $0x64] sm:$0xff]  }
 0x162   : > { %15006 = vst [vmem:[#allocation89_spill] sm:$0xff] %v9646_v22  ;;  %1591 = vrot.lane.b32.xlu1 %v9649_v59, %s8399_s21  ;;  %15012 = vst [vmem:[#allocation95_spill] sm:$0xff] %v9668_v3 }
 0x163   : > { %1589 = vrot.lane.b32.xlu0 %v9654_v20, %s8399_s21  ;;  %v9677_v20 = vld [vmem:[%s8513_s15 + $0x80] sm:$0xff]  }
 0x164   : > { %v9658_v43 = vpop.permute.xlu1 %1464  ;;  %15015 = vst [vmem:[#allocation98_spill] sm:$0xff] %v9677_v20 }
 0x165   : > { %15009 = vst [vmem:[#allocation92_spill] sm:$0xff] %v9658_v43  ;;  %v9660_v8 = vpop.permute.xlu0 %1462  ;;  %v9682_v43 = vld [vmem:[%s8513_s15 + $0x78] sm:$0xff]  }
 0x166   : > { %15010 = vst [vmem:[#allocation93_spill] sm:$0xff] %v9660_v8  ;;  %1595 = vrot.lane.b32.xlu1 %v9663_v51, %s8399_s21  ;;  %15016 = vst [vmem:[#allocation99_spill] sm:$0xff] %v9682_v43 }
 0x167   : > { %1593 = vrot.lane.b32.xlu0 %v9668_v3, %s8399_s21  ;;  %v9700_v3 = vld [vmem:[%s8513_s15 + $0x8c] sm:$0xff]  }
 0x168   : > { %v9672_v22 = vpop.permute.xlu1 %1468  ;;  %15018 = vst [vmem:[#allocation101_spill] sm:$0xff] %v9700_v3 }
 0x169   : > { %15013 = vst [vmem:[#allocation96_spill] sm:$0xff] %v9672_v22  ;;  %v9674_v59 = vpop.permute.xlu0 %1466 }
 0x16a   : > { %15014 = vst [vmem:[#allocation97_spill] sm:$0xff] %v9674_v59  ;;  %1599 = vrot.lane.b32.xlu1 %v9677_v20, %s8399_s21  ;;  %v9691_v59 = vld [vmem:[%s8513_s15 + $0x94] sm:$0xff]  }
 0x16b   : > { %1597 = vrot.lane.b32.xlu0 %v9682_v43, %s8399_s21  ;;  %15017 = vst [vmem:[#allocation100_spill] sm:$0xff] %v9691_v59 }
 0x16c   : > { %v1473_v8 = vpop.permute.xlu1 %1472 }
 0x16d   : > { %v9688_v51 = vsel %vm1996_vm5, %v9489_v1, %v1473_v8  ;;  %v1471_v22 = vpop.permute.xlu0 %1470 }
 0x16e   : > { %1603 = vrot.lane.b32.xlu1 %v9691_v59, %s8399_s21  ;;  %v9697_v20 = vsel %vm1996_vm5, %v9495_v58, %v1471_v22  ;;  %v8350_v22 = vld [vmem:[%s8513_s15 + $0xa0] sm:$0xff]  }
 0x16f   : > { %1601 = vrot.lane.b32.xlu0 %v9700_v3, %s8399_s21 }
 0x170   : > { %v1477_v43 = vpop.permute.xlu1 %1476 }
 0x171   : > { %v9706_v1 = vsel %vm1996_vm5, %v9501_v44, %v1477_v43  ;;  %v1475_v8 = vpop.permute.xlu0 %1474  ;;  %v8351_v43 = vld [vmem:[%s8513_s15 + $0xbc] sm:$0xff]  }
 0x172   : > { %1607 = vrot.lane.b32.xlu1 %v8349_v55, %s8399_s21  ;;  %v9712_v58 = vsel %vm1996_vm5, %v9507_v63, %v1475_v8  ;;  %v8352_v63 = vld [vmem:[%s8513_s15 + $0xb4] sm:$0xff]  }
 0x173   : > { %1605 = vrot.lane.b32.xlu0 %v8350_v22, %s8399_s21 }
 0x174   : > { %v1481_v59 = vpop.permute.xlu1 %1480 }
 0x175   : > { %v9718_v3 = vsel %vm1996_vm5, %v9513_v27, %v1481_v59  ;;  %v1479_v44 = vpop.permute.xlu0 %1478  ;;  %v8353_v59 = vld [vmem:[%s8513_s15 + $0xd0] sm:$0xff]  }
 0x176   : > { %1611 = vrot.lane.b32.xlu1 %v8351_v43, %s8399_s21  ;;  %v9724_v55 = vsel %vm1996_vm5, %v9519_v21, %v1479_v44  ;;  %v8354_v21 = vld [vmem:[%s8513_s15 + $0xc8] sm:$0xff]  }
 0x177   : > { %1609 = vrot.lane.b32.xlu0 %v8352_v63, %s8399_s21 }
 0x178   : > { %v1485_v8 = vpop.permute.xlu1 %1484 }
 0x179   : > { %v9730_v22 = vsel %vm1996_vm5, %v9525_v33, %v1485_v8  ;;  %v1483_v27 = vpop.permute.xlu0 %1482  ;;  %v8355_v8 = vld [vmem:[%s8513_s15 + $0xe4] sm:$0xff]  }
 0x17a   : > { %1615 = vrot.lane.b32.xlu1 %v8353_v59, %s8399_s21  ;;  %v9736_v43 = vsel %vm1996_vm5, %v9531_v34, %v1483_v27  ;;  %v8356_v34 = vld [vmem:[%s8513_s15 + $0xdc] sm:$0xff]  }
 0x17b   : > { %1613 = vrot.lane.b32.xlu0 %v8354_v21, %s8399_s21 }
 0x17c   : > { %v1489_v44 = vpop.permute.xlu1 %1488 }
 0x17d   : > { %v9742_v63 = vsel %vm1996_vm5, %v9537_v5, %v1489_v44  ;;  %v1487_v33 = vpop.permute.xlu0 %1486  ;;  %v8357_v44 = vld [vmem:[%s8513_s15 + $0xf8] sm:$0xff]  }
 0x17e   : > { %1619 = vrot.lane.b32.xlu1 %v8355_v8, %s8399_s21  ;;  %v9748_v59 = vsel %vm1996_vm5, %v9543_v2, %v1487_v33  ;;  %v8358_v2 = vld [vmem:[%s8513_s15 + $0xf0] sm:$0xff]  }
 0x17f   : > { %1617 = vrot.lane.b32.xlu0 %v8356_v34, %s8399_s21 }
 0x180   : > { %v1493_v27 = vpop.permute.xlu1 %1492 }
 0x181   : > { %v9754_v21 = vsel %vm1996_vm5, %v9549_v17, %v1493_v27  ;;  %v1491_v5 = vpop.permute.xlu0 %1490  ;;  %v8359_v27 = vld [vmem:[%s8513_s15 + $0x10c] sm:$0xff]  }
 0x182   : > { %1623 = vrot.lane.b32.xlu1 %v8357_v44, %s8399_s21  ;;  %v9760_v8 = vsel %vm1996_vm5, %v9555_v19, %v1491_v5  ;;  %v8360_v19 = vld [vmem:[%s8513_s15 + $0x104] sm:$0xff]  }
 0x183   : > { %1621 = vrot.lane.b32.xlu0 %v8358_v2, %s8399_s21 }
 0x184   : > { %v1497_v33 = vpop.permute.xlu1 %1496 }
 0x185   : > { %v9766_v34 = vsel %vm1996_vm5, %v9561_v13, %v1497_v33  ;;  %v1495_v17 = vpop.permute.xlu0 %1494  ;;  %v8361_v33 = vld [vmem:[%s8513_s15 + $0x120] sm:$0xff]  }
 0x186   : > { %1627 = vrot.lane.b32.xlu1 %v8359_v27, %s8399_s21  ;;  %v9772_v44 = vsel %vm1996_vm5, %v9567_v40, %v1495_v17  ;;  %v8362_v40 = vld [vmem:[%s8513_s15 + $0x118] sm:$0xff]  }
 0x187   : > { %1625 = vrot.lane.b32.xlu0 %v8360_v19, %s8399_s21 }
 0x188   : > { %v1501_v5 = vpop.permute.xlu1 %1500 }
 0x189   : > { %v9778_v2 = vsel %vm1996_vm5, %v9573_v23, %v1501_v5  ;;  %v1499_v13 = vpop.permute.xlu0 %1498  ;;  %v8364_v23 = vld [vmem:[%s8513_s15 + $0x12c] sm:$0xff]  }
 0x18a   : > { %1631 = vrot.lane.b32.xlu1 %v8361_v33, %s8399_s21  ;;  %v9784_v27 = vsel %vm1996_vm5, %v9579_v48, %v1499_v13  ;;  %v9803_v48 = vld [vmem:[%s8513_s15 + $0x15c] sm:$0xff]  }
 0x18b   : > { %1629 = vrot.lane.b32.xlu0 %v8362_v40, %s8399_s21  ;;  %v9810_v40 = vld [vmem:[%s8513_s15 + $0x154] sm:$0xff]  }
 0x18c   : > { %v9788_v17 = vpop.permute.xlu1 %1509 }
 0x18d   : > { %v9790_v19 = vpop.permute.xlu0 %1507 }
 0x18e   : > { %15019 = vst [vmem:[#allocation102_spill] sm:$0xff] %v9790_v19  ;;  %1635 = vrot.lane.b32.xlu1 %v8363_v37, %s8399_s21  ;;  %v15032_v19 = vld [vmem:[#allocation9_spill] sm:$0xff] }
 0x18f   : > { %1633 = vrot.lane.b32.xlu0 %v8364_v23, %s8399_s21 }
 0x190   : > { %v9796_v5 = vpop.permute.xlu1 %1513 }
 0x191   : > { %15020 = vst [vmem:[#allocation103_spill] sm:$0xff] %v9796_v5  ;;  %v9798_v33 = vpop.permute.xlu0 %1511  ;;  %v15026_v5 = vld [vmem:[#allocation5_spill] sm:$0xff] }
 0x192   : > { %15021 = vst [vmem:[#allocation104_spill] sm:$0xff] %v9798_v33  ;;  %1639 = vrot.lane.b32.xlu1 %v9226_v50, %s8399_s21  ;;  %v15030_v33 = vld [vmem:[#allocation8_spill] sm:$0xff] }
 0x193   : > { %1637 = vrot.lane.b32.xlu0 %v9233_v35, %s8399_s21  ;;  %v15027_v35 = vld [vmem:[#allocation6_spill] sm:$0xff] }
 0x194   : > { %v9807_v13 = vpop.permute.xlu1 %1517 }
 0x195   : > { %15022 = vst [vmem:[#allocation105_spill] sm:$0xff] %v9807_v13  ;;  %v9812_v37 = vpop.permute.xlu0 %1515 }
 0x196   : > { %15023 = vst [vmem:[#allocation106_spill] sm:$0xff] %v9812_v37  ;;  %1643 = vrot.lane.b32.xlu1 %v9803_v48, %s8399_s21 }
 0x197   : > { %1641 = vrot.lane.b32.xlu0 %v9810_v40, %s8399_s21  ;;  %s8405_s21 = smov 16  }
 0x198   : > { %v9818_v23 = vpop.permute.xlu1 %1521 }
 0x199   : > { %15024 = vst [vmem:[#allocation107_spill] sm:$0xff] %v9818_v23  ;;  %v9820_v50 = vpop.permute.xlu0 %1519 }
 0x19a   : > { %15025 = vst [vmem:[#allocation108_spill] sm:$0xff] %v9820_v50  ;;  %1670 = vrot.lane.b32.xlu1 %v15026_v5, %s8400_s22  ;;  %v15033_v5 = vld [vmem:[#allocation10_spill] sm:$0xff] }
 0x19b   : > { %1668 = vrot.lane.b32.xlu0 %v15027_v35, %s8400_s22 }
 0x19c   : > { %v9826_v13 = vpop.permute.xlu1 %1525 }
 0x19d   : > { %15028 = vst [vmem:[#allocation5_spill] sm:$0xff] %v9826_v13  ;;  %v9828_v37 = vpop.permute.xlu0 %1523 }
 0x19e   : > { %15029 = vst [vmem:[#allocation6_spill] sm:$0xff] %v9828_v37  ;;  %1674 = vrot.lane.b32.xlu1 %v14934_v12, %s8400_s22  ;;  %v15034_v37 = vld [vmem:[#allocation11_spill] sm:$0xff] }
 0x19f   : > { %1672 = vrot.lane.b32.xlu0 %v15030_v33, %s8400_s22 }
 0x1a0   : > { %v9834_v23 = vpop.permute.xlu1 %1529 }
 0x1a1   : > { %15031 = vst [vmem:[#allocation8_spill] sm:$0xff] %v9834_v23  ;;  %v9836_v50 = vpop.permute.xlu0 %1527  ;;  %v15036_v23 = vld [vmem:[#allocation13_spill] sm:$0xff] }
 0x1a2   : > { %1678 = vrot.lane.b32.xlu1 %v15032_v19, %s8400_s22 }
 0x1a3   : > { %1676 = vrot.lane.b32.xlu0 %v15033_v5, %s8400_s22 }
 0x1a4   : > { %v9842_v35 = vpop.permute.xlu1 %1533 }
 0x1a5   : > { %v9844_v13 = vpop.permute.xlu0 %1531 }
 0x1a6   : > { %1682 = vrot.lane.b32.xlu1 %v15034_v37, %s8400_s22 }
 0x1a7   : > { %1680 = vrot.lane.b32.xlu0 %v14943_v61, %s8400_s22 }
 0x1a8   : > { %v9850_v12 = vpop.permute.xlu1 %1537 }
 0x1a9   : > { %15035 = vst [vmem:[#allocation9_spill] sm:$0xff] %v9850_v12  ;;  %v9852_v33 = vpop.permute.xlu0 %1535 }
 0x1aa   : > { %1686 = vrot.lane.b32.xlu1 %v15036_v23, %s8400_s22 }
 0x1ab   : > { %1684 = vrot.lane.b32.xlu0 %v14945_v36, %s8400_s22 }
 0x1ac   : > { %v1542_v19 = vpop.permute.xlu1 %1541 }
 0x1ad   : > { %v9860_v5 = vsel %vm2061_vm6, %v9688_v51, %v1542_v19  ;;  %v1540_v37 = vpop.permute.xlu0 %1539 }
 0x1ae   : > { %1690 = vrot.lane.b32.xlu1 %v14946_v9, %s8400_s22  ;;  %v9866_v61 = vsel %vm2061_vm6, %v9697_v20, %v1540_v37 }
 0x1af   : > { %1688 = vrot.lane.b32.xlu0 %v14947_v60, %s8400_s22 }
 0x1b0   : > { %v1546_v23 = vpop.permute.xlu1 %1545 }
 0x1b1   : > { %v9872_v36 = vsel %vm2061_vm6, %v9706_v1, %v1546_v23  ;;  %v1544_v12 = vpop.permute.xlu0 %1543  ;;  %v8401_v23 = vmov 65535  }
 0x1b2   : > { %1694 = vrot.lane.b32.xlu1 %v14948_v6, %s8400_s22  ;;  %v9878_v51 = vsel %vm2061_vm6, %v9712_v58, %v1544_v12 }
 0x1b3   : > { %1692 = vrot.lane.b32.xlu0 %v14949_v62, %s8400_s22 }
 0x1b4   : > { %v1550_v9 = vpop.permute.xlu1 %1549 }
 0x1b5   : > { %v9884_v60 = vsel %vm2061_vm6, %v9718_v3, %v1550_v9  ;;  %v1548_v20 = vpop.permute.xlu0 %1547  ;;  %v2410_v9 = vsel %vm2408_vm7, 4294967295, %v8401_v23 }
 0x1b6   : > { %1698 = vrot.lane.b32.xlu1 %v14950_v53, %s8400_s22  ;;  %v9890_v1 = vsel %vm2061_vm6, %v9724_v55, %v1548_v20 }
 0x1b7   : > { %1696 = vrot.lane.b32.xlu0 %v14951_v31, %s8400_s22 }
 0x1b8   : > { %v1554_v6 = vpop.permute.xlu1 %1553 }
 0x1b9   : > { %v9896_v62 = vsel %vm2061_vm6, %v9730_v22, %v1554_v6  ;;  %v1552_v58 = vpop.permute.xlu0 %1551  ;;  %v2411_v6 = vsel %vm2409_vm8, %v2410_v9, 0 }
 0x1ba   : > { %1702 = vrot.lane.b32.xlu1 %v14952_v46, %s8400_s22  ;;  %v9902_v3 = vsel %vm2061_vm6, %v9736_v43, %v1552_v58  ;;  %v15037_v46 = vld [vmem:[#allocation25_spill] sm:$0xff] }
 0x1bb   : > { %1700 = vrot.lane.b32.xlu0 %v14953_v38, %s8400_s22 }
 0x1bc   : > { %v1558_v53 = vpop.permute.xlu1 %1557 }
 0x1bd   : > { %v9908_v31 = vsel %vm2061_vm6, %v9742_v63, %v1558_v53  ;;  %v1556_v55 = vpop.permute.xlu0 %1555  ;;  %v15038_v63 = vld [vmem:[#allocation27_spill] sm:$0xff] }
 0x1be   : > { %1706 = vrot.lane.b32.xlu1 %v14954_v57, %s8400_s22  ;;  %v9914_v22 = vsel %vm2061_vm6, %v9748_v59, %v1556_v55  ;;  %v15039_v59 = vld [vmem:[#allocation28_spill] sm:$0xff]  ;;  %v9944_v53 = vld [vmem:[%s8513_s15 + $0x164] ss:$0 sps:$4 sm:$0x11]  }
 0x1bf   : > { %1704 = vrot.lane.b32.xlu0 %v15037_v46, %s8400_s22 }
 0x1c0   : > { %v1562_v43 = vpop.permute.xlu1 %1561 }
 0x1c1   : > { %v9920_v38 = vsel %vm2061_vm6, %v9754_v21, %v1562_v43  ;;  %v1560_v12 = vpop.permute.xlu0 %1559  ;;  %v7979_v21 = vld [vmem:[%s14647_s2 + $0x8] sm:$0x3f]  }
 0x1c2   : > { %1710 = vrot.lane.b32.xlu1 %v15038_v63, %s8400_s22  ;;  %v9926_v57 = vsel %vm2061_vm6, %v9760_v8, %v1560_v12  ;;  %v15040_v8 = vld [vmem:[#allocation29_spill] sm:$0xff]  ;;  %v2413_v55 = vand.u32 %v7979_v21, %v2411_v6  ;;  %v1651_v12 = vshll.u32 %v9810_v40, 16 }
 0x1c3   : > { %1708 = vrot.lane.b32.xlu0 %v15039_v59, %s8400_s22 }
 0x1c4   : > { %v1566_v19 = vpop.permute.xlu1 %1565  ;;  %7633 = vmatprep.subr.bf16.mxu0 %v2413_v55  ;;  %v1653_v23 = vrot.slane %v1651_v12, 1 }
 0x1c5   : > { %v9932_v37 = vsel %vm2061_vm6, %v9766_v34, %v1566_v19  ;;  %v1564_v20 = vpop.permute.xlu0 %1563  ;;  %v1656_v34 = vshll.u32 %v9803_v48, 16  ;;  %7634 = vmatpush3.bf16.msra.mxu0 %v2413_v55  ;;  %v1664_v19 = vshll.u32 %v9944_v53, 16 }
 0x1c6   : > { %1714 = vrot.lane.b32.xlu1 %v15040_v8, %s8400_s22  ;;  %v9941_v58 = vsel %vm2061_vm6, %v9772_v44, %v1564_v20 }
 0x1c7   : > { %1712 = vrot.lane.b32.xlu0 %v8862_v16, %s8400_s22  ;;  %v1658_v59 = vrot.slane %v1656_v34, 1  ;;  %v1660_v16 = vshrl.u32 %v9803_v48, 16  ;;  %v1666_v20 = vrot.slane %v1664_v19, 1 }
 0x1c8   : > { %v1570_v46 = vpop.permute.xlu1 %1569 }
 0x1c9   : > { %v9951_v43 = vsel %vm2061_vm6, %v9778_v2, %v1570_v46  ;;  %v1568_v63 = vpop.permute.xlu0 %1567  ;;  %v7980_v2 = vld [vmem:[%s14647_s2] sm:$0xff]   ;;  %v1662_v9 = vor.u32 %v1660_v16, %v1658_v59 }
 0x1ca   : > { %1718 = vrot.lane.b32.xlu1 %v8872_v24, %s8400_s22  ;;  %v9958_v44 = vsel %vm2061_vm6, %v9784_v27, %v1568_v63  ;;  %v1649_v24 = vshrl.u32 %v9810_v40, 16  ;;  %7635 = vmatprep.subr.bf16.mxu0 %v7980_v2 }
 0x1cb   : > { %1716 = vrot.lane.b32.xlu0 %v8877_v49, %s8400_s22  ;;  %7636 = vmatpush3.bf16.msra.mxu0 %v7980_v2  ;;  %v1667_v40 = vsel %vm811_vm0, %v1662_v9, %v1666_v20  ;;  %v15043_v20 = vld [vmem:[#allocation24_spill] sm:$0xff] }
 0x1cc   : > { %v9967_v21 = vpop.permute.xlu1 %1583  ;;  %v1654_v49 = vor.u32 %v1653_v23, %v1649_v24 }
 0x1cd   : > { %v9970_v27 = vpop.permute.xlu0 %1581 }
 0x1ce   : > { %1722 = vrot.lane.b32.xlu1 %v8882_v18, %s8400_s22  ;;  %v1659_v34 = vsel %vm811_vm0, %v1654_v49, %v1658_v59 }
 0x1cf   : > { %1720 = vrot.lane.b32.xlu0 %v8889_v39, %s8400_s22 }
 0x1d0   : > { %v9976_v8 = vpop.permute.xlu1 %1587 }
 0x1d1   : > { %v9978_v6 = vpop.permute.xlu0 %1585 }
 0x1d2   : > { %1726 = vrot.lane.b32.xlu1 %v9432_v45, %s8400_s22 }
 0x1d3   : > { %1724 = vrot.lane.b32.xlu0 %v9439_v4, %s8400_s22 }
 0x1d4   : > { %v9985_v18 = vpop.permute.xlu1 %1591 }
 0x1d5   : > { %v9988_v55 = vpop.permute.xlu0 %1589 }
 0x1d6   : > { %1730 = vrot.lane.b32.xlu1 %v1667_v40, %s8400_s22 }
 0x1d7   : > { %1728 = vrot.lane.b32.xlu0 %v1659_v34, %s8400_s22  ;;  %v15044_v34 = vld [vmem:[#allocation42_spill] sm:$0xff]  ;;  %s8417_s22 = smov 112  }
 0x1d8   : > { %v9992_v39 = vpop.permute.xlu1 %1595 }
 0x1d9   : > { %v9994_v46 = vpop.permute.xlu0 %1593 }
 0x1da   : > { %1739 = vrot.lane.b32.xlu1 %v8915_v0, %s8402_s14 }
 0x1db   : > { %1737 = vrot.lane.b32.xlu0 %v8922_v26, %s8402_s14 }
 0x1dc   : > { %v10000_v45 = vpop.permute.xlu1 %1599 }
 0x1dd   : > { %v10002_v4 = vpop.permute.xlu0 %1597 }
 0x1de   : > { %1743 = vrot.lane.b32.xlu1 %v8928_v14, %s8402_s14 }
 0x1df   : > { %1741 = vrot.lane.b32.xlu0 %v8935_v41, %s8402_s14 }
 0x1e0   : > { %v10008_v12 = vpop.permute.xlu1 %1603 }
 0x1e1   : > { %v10010_v63 = vpop.permute.xlu0 %1601 }
 0x1e2   : > { %1747 = vrot.lane.b32.xlu1 %v8941_v29, %s8402_s14 }
 0x1e3   : > { %1745 = vrot.lane.b32.xlu0 %v8948_v54, %s8402_s14 }
 0x1e4   : > { %v10016_v0 = vpop.permute.xlu1 %1607 }
 0x1e5   : > { %v10018_v26 = vpop.permute.xlu0 %1605 }
 0x1e6   : > { %1751 = vrot.lane.b32.xlu1 %v8954_v15, %s8402_s14 }
 0x1e7   : > { %1749 = vrot.lane.b32.xlu0 %v8961_v11, %s8402_s14 }
 0x1e8   : > { %v10024_v14 = vpop.permute.xlu1 %1611 }
 0x1e9   : > { %v10026_v41 = vpop.permute.xlu0 %1609 }
 0x1ea   : > { %1755 = vrot.lane.b32.xlu1 %v8967_v7, %s8402_s14 }
 0x1eb   : > { %1753 = vrot.lane.b32.xlu0 %v8974_v32, %s8402_s14 }
 0x1ec   : > { %v1616_v29 = vpop.permute.xlu1 %1615 }
 0x1ed   : > { %v10034_v54 = vsel %vm2126_vm9, %v9860_v5, %v1616_v29  ;;  %v1614_v15 = vpop.permute.xlu0 %1613 }
 0x1ee   : > { %1759 = vrot.lane.b32.xlu1 %v8980_v25, %s8402_s14  ;;  %v10040_v11 = vsel %vm2126_vm9, %v9866_v61, %v1614_v15 }
 0x1ef   : > { %1757 = vrot.lane.b32.xlu0 %v8987_v52, %s8402_s14 }
 0x1f0   : > { %v1620_v7 = vpop.permute.xlu1 %1619 }
 0x1f1   : > { %v10046_v32 = vsel %vm2126_vm9, %v9872_v36, %v1620_v7  ;;  %v1618_v59 = vpop.permute.xlu0 %1617 }
 0x1f2   : > { %1763 = vrot.lane.b32.xlu1 %v8993_v56, %s8402_s14  ;;  %v10052_v5 = vsel %vm2126_vm9, %v9878_v51, %v1618_v59  ;;  %v15045_v59 = vld [vmem:[#allocation45_spill] sm:$0xff] }
 0x1f3   : > { %1761 = vrot.lane.b32.xlu0 %v14974_v28, %s8402_s14 }
 0x1f4   : > { %v1624_v25 = vpop.permute.xlu1 %1623 }
 0x1f5   : > { %v10058_v52 = vsel %vm2126_vm9, %v9884_v60, %v1624_v25  ;;  %v1622_v61 = vpop.permute.xlu0 %1621 }
 0x1f6   : > { %1767 = vrot.lane.b32.xlu1 %v14975_v10, %s8402_s14  ;;  %v2168_v36 = vsel %vm2126_vm9, %v9890_v1, %v1622_v61  ;;  %v15041_v1 = vld [vmem:[#allocation36_spill] sm:$0xff] }
 0x1f7   : > { %1765 = vrot.lane.b32.xlu0 %v14976_v47, %s8402_s14 }
 0x1f8   : > { %v1628_v56 = vpop.permute.xlu1 %1627 }
 0x1f9   : > { %v2174_v51 = vsel %vm2126_vm9, %v9896_v62, %v1628_v56  ;;  %v1626_v28 = vpop.permute.xlu0 %1625 }
 0x1fa   : > { %1771 = vrot.lane.b32.xlu1 %v14977_v30, %s8402_s14  ;;  %v2172_v60 = vsel %vm2126_vm9, %v9902_v3, %v1626_v28  ;;  %v15042_v30 = vld [vmem:[#allocation38_spill] sm:$0xff] }
 0x1fc   : > { %v1632_v16 = vpop.permute.xlu1 %1631 }
 0x1fd   : > { %v2178_v10 = vsel %vm2126_vm9, %v9908_v31, %v1632_v16  ;;  %v1630_v19 = vpop.permute.xlu0 %1629 }
 0x1fe   : > { %1775 = vrot.lane.b32.xlu1 %v15041_v1, %s8402_s14  ;;  %v2176_v47 = vsel %vm2126_vm9, %v9914_v22, %v1630_v19 }
 0x200   : > { %v1636_v2 = vpop.permute.xlu1 %1635 }
 0x201   : > { %v2182_v62 = vsel %vm2126_vm9, %v9920_v38, %v1636_v2  ;;  %v1634_v24 = vpop.permute.xlu0 %1633 }
 0x202   : > { %1779 = vrot.lane.b32.xlu1 %v15042_v30, %s8402_s14  ;;  %v2180_v3 = vsel %vm2126_vm9, %v9926_v57, %v1634_v24 }
 0x204   : > { %v1640_v23 = vpop.permute.xlu1 %1639 }
 0x205   : > { %v2186_v31 = vsel %vm2126_vm9, %v9932_v37, %v1640_v23  ;;  %v1638_v9 = vpop.permute.xlu0 %1637 }
 0x206   : > { %1783 = vrot.lane.b32.xlu1 %v15043_v20, %s8402_s14  ;;  %v2184_v22 = vsel %vm2126_vm9, %v9941_v58, %v1638_v9  ;;  %v14756_v58 = vrot.slane %v9803_v48, 1 }
 0x208   : > { %v1644_v49 = vpop.permute.xlu1 %1643 }
 0x209   : > { %v10092_v38 = vsel %vm2126_vm9, %v9951_v43, %v1644_v49  ;;  %v1642_v40 = vpop.permute.xlu0 %1641  ;;  %v1735_v43 = vrot.slane %v9944_v53, 1 }
 0x20a   : > { %1787 = vrot.lane.b32.xlu1 %v15044_v34, %s8402_s14  ;;  %v10098_v57 = vsel %vm2126_vm9, %v9958_v44, %v1642_v40 }
 0x20b   : > { %v1736_v44 = vsel %vm1196_vm1, %v14756_v58, %v1735_v43 }
 0x20c   : > { %v10100_v37 = vpop.permute.xlu1 %1670 }
 0x20d   : > { %v10102_v29 = vpop.permute.xlu0 %1668 }
 0x20e   : > { %1791 = vrot.lane.b32.xlu1 %v14991_v42, %s8402_s14 }
 0x210   : > { %v10108_v15 = vpop.permute.xlu1 %1674 }
 0x211   : > { %v10110_v7 = vpop.permute.xlu0 %1672 }
 0x212   : > { %1795 = vrot.lane.b32.xlu1 %v15045_v59, %s8402_s14 }
 0x214   : > { %v10117_v25 = vpop.permute.xlu1 %1678 }
 0x215   : > { %v10119_v61 = vpop.permute.xlu0 %1676 }
 0x216   : > { %1799 = vrot.lane.b32.xlu1 %v1736_v44, %s8402_s14 }
 0x218   : > { %v10122_v42 = vpop.permute.xlu1 %1682 }
 0x219   : > { %v10124_v53 = vpop.permute.xlu0 %1680 }
 0x21c   : > { %v10126_v56 = vpop.permute.xlu1 %1686 }
 0x21d   : > { %v10128_v28 = vpop.permute.xlu0 %1684 }
 0x220   : > { %v10130_v16 = vpop.permute.xlu1 %1690 }
 0x221   : > { %v10132_v19 = vpop.permute.xlu0 %1688 }
 0x224   : > { %v10134_v1 = vpop.permute.xlu1 %1694 }
 0x225   : > { %v10136_v2 = vpop.permute.xlu0 %1692 }
 0x228   : > { %v10138_v24 = vpop.permute.xlu1 %1698 }
 0x229   : > { %v10140_v30 = vpop.permute.xlu0 %1696 }
 0x22c   : > { %v1703_v23 = vpop.permute.xlu1 %1702 }
 0x22d   : > { %v10144_v9 = vsel %vm2191_vm10, %v10034_v54, %v1703_v23  ;;  %v1701_v20 = vpop.permute.xlu0 %1700 }
 0x22e   : > { %v10148_v49 = vsel %vm2191_vm10, %v10040_v11, %v1701_v20 }
 0x230   : > { %v1707_v40 = vpop.permute.xlu1 %1706 }
 0x231   : > { %v10152_v34 = vsel %vm2191_vm10, %v10046_v32, %v1707_v40  ;;  %v1705_v43 = vpop.permute.xlu0 %1704 }
 0x232   : > { %v10156_v59 = vsel %vm2191_vm10, %v10052_v5, %v1705_v43 }
 0x234   : > { %v1711_v44 = vpop.permute.xlu1 %1710 }
 0x235   : > { %v10160_v54 = vsel %vm2191_vm10, %v10058_v52, %v1711_v44  ;;  %v1709_v23 = vpop.permute.xlu0 %1708 }
 0x236   : > { %15046 = vst [vmem:[#allocation10_spill] sm:$0xff] %v10160_v54  ;;  %v10163_v58 = vsel %vm2191_vm10, %v2168_v36, %v1709_v23 }
 0x238   : > { %v1715_v11 = vpop.permute.xlu1 %1714 }
 0x239   : > { %v10166_v20 = vsel %vm2191_vm10, %v2174_v51, %v1715_v11  ;;  %v1713_v32 = vpop.permute.xlu0 %1712 }
 0x23a   : > { %15047 = vst [vmem:[#allocation11_spill] sm:$0xff] %v10166_v20  ;;  %v10169_v40 = vsel %vm2191_vm10, %v2172_v60, %v1713_v32  ;;  %v8365_v20 = vld [vmem:[%s8513_s15 + $0x8] sm:$0xff]  }
 0x23c   : > { %v1719_v5 = vpop.permute.xlu1 %1718 }
 0x23d   : > { %v10172_v43 = vsel %vm2191_vm10, %v2178_v10, %v1719_v5  ;;  %v1717_v52 = vpop.permute.xlu0 %1716  ;;  %v15051_v10 = vld [vmem:[#allocation30_spill] sm:$0xff] }
 0x23e   : > { %v10175_v44 = vsel %vm2191_vm10, %v2176_v47, %v1717_v52  ;;  %v1805_v5 = vsel %vm1801_vm2, %v8365_v20, %v15051_v10  ;;  %v8366_v52 = vld [vmem:[%s8513_s15] sm:$0xff]  }
 0x23f   : > { %v15058_v10 = vld [vmem:[#allocation31_spill] sm:$0xff] }
 0x240   : > { %v1723_v36 = vpop.permute.xlu1 %1722 }
 0x241   : > { %v10178_v23 = vsel %vm2191_vm10, %v2182_v62, %v1723_v36  ;;  %v1721_v54 = vpop.permute.xlu0 %1720  ;;  %v15053_v62 = vld [vmem:[#allocation41_spill] sm:$0xff] }
 0x242   : > { %15048 = vst [vmem:[#allocation13_spill] sm:$0xff] %v10178_v23  ;;  %v10181_v51 = vsel %vm2191_vm10, %v2180_v3, %v1721_v54  ;;  %v1803_v36 = vsel %vm1801_vm2, %v8366_v52, %v15053_v62  ;;  %v15054_v23 = vld [vmem:[#allocation59_spill] sm:$0xff] }
 0x243   : > { %15049 = vst [vmem:[#allocation25_spill] sm:$0xff] %v10181_v51  ;;  %v1870_v3 = vsel %vm1866_vm3, %v1805_v5, %v15054_v23  ;;  %v15055_v51 = vld [vmem:[#allocation60_spill] sm:$0xff] }
 0x244   : > { %v1727_v11 = vpop.permute.xlu1 %1726 }
 0x245   : > { %v10184_v60 = vsel %vm2191_vm10, %v2186_v31, %v1727_v11  ;;  %v1725_v32 = vpop.permute.xlu0 %1724  ;;  %v1868_v31 = vsel %vm1866_vm3, %v1803_v36, %v15055_v51  ;;  %v15056_v11 = vld [vmem:[#allocation12_spill] sm:$0xff]  ;;  %v15060_v36 = vld [vmem:[#allocation26_spill] sm:$0xff] }
 0x246   : > { %15050 = vst [vmem:[#allocation27_spill] sm:$0xff] %v10184_v60  ;;  %v10190_v47 = vsel %vm2191_vm10, %v2184_v22, %v1725_v32  ;;  %v1935_v60 = vsel %vm1931_vm4, %v1870_v3, %v15056_v11  ;;  %v15057_v22 = vld [vmem:[#allocation14_spill] sm:$0xff] }
 0x247   : > { %15052 = vst [vmem:[#allocation28_spill] sm:$0xff] %v10190_v47  ;;  %v1933_v32 = vsel %vm1931_vm4, %v1868_v31, %v15057_v22  ;;  %v2000_v52 = vsel %vm1996_vm5, %v1935_v60, %v15058_v10  ;;  %v15059_v47 = vld [vmem:[#allocation32_spill] sm:$0xff]  ;;  %v15062_v11 = vld [vmem:[#allocation62_spill] sm:$0xff] }
 0x248   : > { %v1731_v54 = vpop.permute.xlu1 %1730  ;;  %v1998_v23 = vsel %vm1996_vm5, %v1933_v32, %v15059_v47  ;;  %v2065_v51 = vsel %vm2061_vm6, %v2000_v52, %v9788_v17  ;;  %v15063_v32 = vld [vmem:[#allocation16_spill] sm:$0xff] }
 0x249   : > { %v10203_v20 = vsel %vm2191_vm10, %v10092_v38, %v1731_v54  ;;  %v1729_v62 = vpop.permute.xlu0 %1728  ;;  %v8367_v38 = vld [vmem:[%s8513_s15 + $0x14] sm:$0xff]   ;;  %v2130_v31 = vsel %vm2126_vm9, %v2065_v51, %v9967_v21 }
 0x24a   : > { %v10215_v5 = vsel %vm2191_vm10, %v10098_v57, %v1729_v62  ;;  %v1807_v3 = vsel %vm1801_vm2, %v8367_v38, %v15060_v36  ;;  %v15061_v54 = vld [vmem:[#allocation102_spill] sm:$0xff]  ;;  %v2195_v22 = vsel %vm2191_vm10, %v2130_v31, %v10100_v37  ;;  %v15065_v36 = vld [vmem:[#allocation104_spill] sm:$0xff]  ;;  %v15068_v31 = vld [vmem:[#allocation83_spill] sm:$0xff] }
 0x24b   : > { %v2063_v60 = vsel %vm2061_vm6, %v1998_v23, %v15061_v54  ;;  %v1872_v17 = vsel %vm1866_vm3, %v1807_v3, %v15062_v11  ;;  %v15064_v23 = vld [vmem:[#allocation34_spill] sm:$0xff]  ;;  %v15066_v3 = vld [vmem:[#allocation43_spill] sm:$0xff]  ;;  %v15069_v11 = vld [vmem:[#allocation61_spill] sm:$0xff] }
 0x24c   : > { %v1740_v47 = vpop.permute.xlu1 %1739  ;;  %v2128_v57 = vsel %vm2126_vm9, %v2063_v60, %v9970_v27  ;;  %v1937_v10 = vsel %vm1931_vm4, %v1872_v17, %v15063_v32  ;;  %v8368_v37 = vld [vmem:[%s8513_s15 + $0x1c] sm:$0xff]   ;;  %v15067_v60 = vld [vmem:[#allocation48_spill] sm:$0xff] }
 0x24d   : > { %v2193_v52 = vsel %vm2191_vm10, %v2128_v57, %v10102_v29  ;;  %v2260_v62 = vsel %vm2256_vm11, %v2195_v22, %v1740_v47  ;;  %v1738_v21 = vpop.permute.xlu0 %1737  ;;  %v2002_v51 = vsel %vm1996_vm5, %v1937_v10, %v15064_v23  ;;  %v1809_v54 = vsel %vm1801_vm2, %v8368_v37, %v15066_v3  ;;  %v15070_v32 = vld [vmem:[#allocation64_spill] sm:$0xff] }
 0x24e   : > { %v2258_v38 = vsel %vm2256_vm11, %v2193_v52, %v1738_v21  ;;  %v2067_v27 = vsel %vm2061_vm6, %v2002_v51, %v15065_v36  ;;  %v1811_v47 = vsel %vm1801_vm2, %v15068_v31, %v15067_v60  ;;  %v1874_v17 = vsel %vm1866_vm3, %v1809_v54, %v15069_v11  ;;  %v15071_v52 = vld [vmem:[#allocation15_spill] sm:$0xff]  ;;  %v15073_v51 = vld [vmem:[#allocation33_spill] sm:$0xff]  ;;  %v15076_v54 = vld [vmem:[#allocation106_spill] sm:$0xff] }
 0x24f   : > { %7637 = vmatprep.mubr.msk.bf16.mxu0 %vm2343_vm12, %v2258_v38  ;;  %v2132_v29 = vsel %vm2126_vm9, %v2067_v27, %v9978_v6  ;;  %v1876_v10 = vsel %vm1866_vm3, %v1811_v47, %v15070_v32  ;;  %v1939_v21 = vsel %vm1931_vm4, %v1874_v17, %v15071_v52  ;;  %v15074_v36 = vld [vmem:[#allocation79_spill] sm:$0xff]  ;;  %v15078_v32 = vld [vmem:[#allocation82_spill] sm:$0xff] }
 0x250   : > { %7638 = vmatmul.mubr.msk.bf16.vlgmr.msra.gmra.mxu0 %vm2343_vm12, %v2260_v62  ;;  %v2197_v57 = vsel %vm2191_vm10, %v2132_v29, %v10110_v7  ;;  %v15072_v62 = vld [vmem:[#allocation18_spill] sm:$0xff]  ;;  %v2004_v38 = vsel %vm1996_vm5, %v1939_v21, %v15073_v51  ;;  %v15075_v27 = vld [vmem:[#allocation103_spill] sm:$0xff]  ;;  %v1744_v3 = vpop.permute.xlu1 %1743 }
 0x251   : > { %v1742_v22 = vpop.permute.xlu0 %1741  ;;  %v1941_v23 = vsel %vm1931_vm4, %v1876_v10, %v15072_v62  ;;  %v2069_v37 = vsel %vm2061_vm6, %v2004_v38, %v15075_v27  ;;  %v15080_v21 = vld [vmem:[#allocation87_spill] sm:$0xff]  ;;  %v15084_v38 = vld [vmem:[#allocation20_spill] sm:$0xff] }
 0x252   : > { %v2262_v6 = vsel %vm2256_vm11, %v2197_v57, %v1742_v22  ;;  %v2006_v7 = vsel %vm1996_vm5, %v1941_v23, %v15074_v36  ;;  %v2134_v60 = vsel %vm2126_vm9, %v2069_v37, %v9976_v8  ;;  %v15077_v22 = vld [vmem:[#allocation46_spill] sm:$0xff]  ;;  %v15083_v23 = vld [vmem:[#allocation17_spill] sm:$0xff] }
 0x253   : > { %7641 = vmatprep.mubr.msk.bf16.mxu0 %vm2343_vm12, %v2262_v6  ;;  %v2071_v29 = vsel %vm2061_vm6, %v2006_v7, %v15076_v54  ;;  %v2199_v11 = vsel %vm2191_vm10, %v2134_v60, %v10108_v15  ;;  %v1813_v10 = vsel %vm1801_vm2, %v15078_v32, %v15077_v22  ;;  %v15079_v8 = vld [vmem:[#allocation50_spill] sm:$0xff]  ;;  %v15081_v6 = vld [vmem:[#allocation63_spill] sm:$0xff]  ;;  %v15085_v7 = vld [vmem:[#allocation77_spill] sm:$0xff] }
 0x254   : > { %v2136_v47 = vsel %vm2126_vm9, %v2071_v29, %v9988_v55  ;;  %v2264_v57 = vsel %vm2256_vm11, %v2199_v11, %v1744_v3  ;;  %v1815_v55 = vsel %vm1801_vm2, %v15080_v21, %v15079_v8  ;;  %v1878_v15 = vsel %vm1866_vm3, %v1813_v10, %v15081_v6  ;;  %v15086_v37 = vld [vmem:[#allocation81_spill] sm:$0xff]  ;;  %v1748_v60 = vpop.permute.xlu1 %1747  ;;  %v15090_v8 = vld [vmem:[#allocation86_spill] sm:$0xff]  ;;  %v15092_v6 = vld [vmem:[#allocation91_spill] sm:$0xff] }
 0x255   : > { %v1746_v31 = vpop.permute.xlu0 %1745  ;;  %v2201_v17 = vsel %vm2191_vm10, %v2136_v47, %v10119_v61  ;;  %v15082_v61 = vld [vmem:[#allocation66_spill] sm:$0xff]  ;;  %v1943_v51 = vsel %vm1931_vm4, %v1878_v15, %v15083_v23  ;;  %v15087_v54 = vld [vmem:[#allocation105_spill] sm:$0xff] }
 0x256   : > { %v2266_v52 = vsel %vm2256_vm11, %v2201_v17, %v1746_v31  ;;  %v1880_v62 = vsel %vm1866_vm3, %v1815_v55, %v15082_v61  ;;  %v2008_v27 = vsel %vm1996_vm5, %v1943_v51, %v15085_v7  ;;  %v15088_v31 = vld [vmem:[#allocation108_spill] sm:$0xff]  ;;  %v15093_v15 = vld [vmem:[#allocation65_spill] sm:$0xff]  ;;  %v15096_v51 = vld [vmem:[#allocation22_spill] sm:$0xff] }
 0x257   : > { %v1945_v36 = vsel %vm1931_vm4, %v1880_v62, %v15084_v38  ;;  %v2073_v29 = vsel %vm2061_vm6, %v2008_v27, %v15087_v54  ;;  %v15095_v62 = vld [vmem:[#allocation19_spill] sm:$0xff]  ;;  %v15098_v27 = vld [vmem:[#allocation85_spill] sm:$0xff] }
 0x258   : > { %7642 = vmatmul.mubr.msk.bf16.gmra.mxu0 %vm2343_vm12, %v2264_v57  ;;  %v2010_v3 = vsel %vm1996_vm5, %v1945_v36, %v15086_v37  ;;  %v2138_v11 = vsel %vm2126_vm9, %v2073_v29, %v9985_v18  ;;  %v15091_v18 = vld [vmem:[#allocation52_spill] sm:$0xff]  ;;  %v1752_v29 = vpop.permute.xlu1 %1751 }
 0x259   : > { %7645 = vmatprep.mubr.msk.bf16.mxu0 %vm2343_vm12, %v2266_v52  ;;  %v2075_v47 = vsel %vm2061_vm6, %v2010_v3, %v15088_v31  ;;  %v1750_v17 = vpop.permute.xlu0 %1749  ;;  %v2203_v22 = vsel %vm2191_vm10, %v2138_v11, %v10117_v25  ;;  %v15089_v52 = vld [vmem:[#allocation49_spill] sm:$0xff]  ;;  %v15097_v36 = vld [vmem:[#allocation80_spill] sm:$0xff]  ;;  %v15099_v3 = vld [vmem:[#allocation107_spill] sm:$0xff] }
 0x25a   : > { %v2140_v57 = vsel %vm2126_vm9, %v2075_v47, %v9994_v46  ;;  %v2268_v10 = vsel %vm2256_vm11, %v2203_v22, %v1748_v60  ;;  %v1817_v21 = vsel %vm1801_vm2, %v15090_v8, %v15089_v52  ;;  %v1819_v46 = vsel %vm1801_vm2, %v15092_v6, %v15091_v18  ;;  %v15100_v60 = vld [vmem:[#allocation6_spill] sm:$0xff]  ;;  %v15105_v18 = vld [vmem:[#allocation4_spill] sm:$0xff] }
 0x25b   : > { %v2205_v32 = vsel %vm2191_vm10, %v2140_v57, %v10124_v53  ;;  %v1882_v25 = vsel %vm1866_vm3, %v1817_v21, %v15093_v15  ;;  %v15094_v53 = vld [vmem:[#allocation3_spill] sm:$0xff]  ;;  %v15102_v52 = vld [vmem:[#allocation90_spill] sm:$0xff] }
 0x25c   : > { %v2270_v55 = vsel %vm2256_vm11, %v2205_v32, %v1750_v17  ;;  %v1884_v61 = vsel %vm1866_vm3, %v1819_v46, %v15094_v53  ;;  %v1947_v23 = vsel %vm1931_vm4, %v1882_v25, %v15095_v62  ;;  %v15107_v46 = vld [vmem:[#allocation21_spill] sm:$0xff]  ;;  %v15108_v25 = vld [vmem:[#allocation72_spill] sm:$0xff] }
 0x25d   : > { %v1949_v38 = vsel %vm1931_vm4, %v1884_v61, %v15096_v51  ;;  %v2012_v7 = vsel %vm1996_vm5, %v1947_v23, %v15097_v36  ;;  %v1754_v11 = vpop.permute.xlu0 %1753  ;;  %v15109_v61 = vld [vmem:[#allocation84_spill] sm:$0xff]  ;;  %v15110_v23 = vld [vmem:[#allocation89_spill] sm:$0xff] }
 0x25e   : > { %v2014_v37 = vsel %vm1996_vm5, %v1949_v38, %v15098_v27  ;;  %v2077_v54 = vsel %vm2061_vm6, %v2012_v7, %v15099_v3  ;;  %v15111_v38 = vld [vmem:[#allocation5_spill] sm:$0xff]  ;;  %v1756_v7 = vpop.permute.xlu1 %1755 }
 0x25f   : > { %v2079_v31 = vsel %vm2061_vm6, %v2014_v37, %v15100_v60  ;;  %v2142_v47 = vsel %vm2126_vm9, %v2077_v54, %v9992_v39  ;;  %v15103_v39 = vld [vmem:[#allocation54_spill] sm:$0xff] }
 0x260   : > { %7646 = vmatmul.mubr.msk.bf16.gmra.mxu0 %vm2343_vm12, %v2268_v10  ;;  %v2144_v17 = vsel %vm2126_vm9, %v2079_v31, %v10002_v4  ;;  %v2207_v57 = vsel %vm2191_vm10, %v2142_v47, %v10122_v42  ;;  %v15101_v10 = vld [vmem:[#allocation51_spill] sm:$0xff]  ;;  %v15112_v47 = vld [vmem:[#allocation53_spill] sm:$0xff] }
 0x261   : > { %7649 = vmatprep.mubr.msk.bf16.mxu0 %vm2343_vm12, %v2270_v55  ;;  %v2209_v22 = vsel %vm2191_vm10, %v2144_v17, %v10128_v28  ;;  %v2272_v32 = vsel %vm2256_vm11, %v2207_v57, %v1752_v29  ;;  %v1821_v8 = vsel %vm1801_vm2, %v15102_v52, %v15101_v10  ;;  %v15104_v55 = vld [vmem:[#allocation95_spill] sm:$0xff]  ;;  %v15106_v28 = vld [vmem:[#allocation68_spill] sm:$0xff]  ;;  %v1758_v3 = vpop.permute.xlu0 %1757 }
 0x262   : > { %v2274_v21 = vsel %vm2256_vm11, %v2209_v22, %v1754_v11  ;;  %v1823_v4 = vsel %vm1801_vm2, %v15104_v55, %v15103_v39  ;;  %v1886_v42 = vsel %vm1866_vm3, %v1821_v8, %v15105_v18  ;;  %v15113_v11 = vld [vmem:[#allocation94_spill] sm:$0xff]  ;;  %v15115_v57 = vld [vmem:[#allocation99_spill] sm:$0xff]  ;;  %v15120_v39 = vld [vmem:[#allocation88_spill] sm:$0xff] }
 0x263   : > { %v1888_v6 = vsel %vm1866_vm3, %v1823_v4, %v15106_v28  ;;  %v1951_v15 = vsel %vm1931_vm4, %v1886_v42, %v15107_v46  ;;  %v1825_v17 = vsel %vm1801_vm2, %v15113_v11, %v15112_v47  ;;  %v15116_v22 = vld [vmem:[#allocation67_spill] sm:$0xff]  ;;  %v15119_v8 = vld [vmem:[#allocation74_spill] sm:$0xff]  ;;  %v15121_v4 = vld [vmem:[#allocation93_spill] sm:$0xff] }
 0x264   : > { %v1953_v53 = vsel %vm1931_vm4, %v1888_v6, %v15108_v25  ;;  %v2016_v62 = vsel %vm1996_vm5, %v1951_v15, %v15109_v61  ;;  %v15118_v10 = vld [vmem:[#allocation23_spill] sm:$0xff]  ;;  %v15122_v42 = vld [vmem:[#allocation8_spill] sm:$0xff]  ;;  %v1760_v6 = vpop.permute.xlu1 %1759  ;;  %v15132_v11 = vld [vmem:[#allocation97_spill] sm:$0xff] }
 0x265   : > { %v2018_v51 = vsel %vm1996_vm5, %v1953_v53, %v15110_v23  ;;  %v2081_v36 = vsel %vm2061_vm6, %v2016_v62, %v15111_v38  ;;  %v1762_v25 = vpop.permute.xlu0 %1761  ;;  %v15124_v38 = vld [vmem:[#allocation98_spill] sm:$0xff] }
 0x266   : > { %v2083_v27 = vsel %vm2061_vm6, %v2018_v51, %v9836_v50  ;;  %v2146_v37 = vsel %vm2126_vm9, %v2081_v36, %v10000_v45  ;;  %v15114_v45 = vld [vmem:[#allocation56_spill] sm:$0xff]  ;;  %v15123_v51 = vld [vmem:[#allocation55_spill] sm:$0xff] }
 0x267   : > { %v2148_v54 = vsel %vm2126_vm9, %v2083_v27, %v10010_v63  ;;  %v2211_v29 = vsel %vm2191_vm10, %v2146_v37, %v10126_v56  ;;  %v1827_v63 = vsel %vm1801_vm2, %v15115_v57, %v15114_v45  ;;  %v1890_v56 = vsel %vm1866_vm3, %v1825_v17, %v15116_v22  ;;  %v15127_v27 = vld [vmem:[#allocation7_spill] sm:$0xff] }
 0x268   : > { %7650 = vmatmul.mubr.msk.bf16.gmra.mxu0 %vm2343_vm12, %v2272_v32  ;;  %v2213_v60 = vsel %vm2191_vm10, %v2148_v54, %v10132_v19  ;;  %v2276_v31 = vsel %vm2256_vm11, %v2211_v29, %v1756_v7  ;;  %v15117_v19 = vld [vmem:[#allocation69_spill] sm:$0xff]  ;;  %v1955_v52 = vsel %vm1931_vm4, %v1890_v56, %v15118_v10  ;;  %v1829_v36 = vsel %vm1801_vm2, %v15124_v38, %v15123_v51  ;;  %v15130_v29 = vld [vmem:[#allocation76_spill] sm:$0xff]  ;;  %v1764_v45 = vpop.permute.xlu1 %1763 }
 0x269   : > { %7653 = vmatprep.mubr.msk.bf16.mxu0 %vm2343_vm12, %v2274_v21  ;;  %v2278_v50 = vsel %vm2256_vm11, %v2213_v60, %v1758_v3  ;;  %v1892_v32 = vsel %vm1866_vm3, %v1827_v63, %v15117_v19  ;;  %v2020_v55 = vsel %vm1996_vm5, %v1955_v52, %v15120_v39  ;;  %v15126_v7 = vld [vmem:[#allocation101_spill] sm:$0xff]  ;;  %v1766_v22 = vpop.permute.xlu0 %1765  ;;  %v15134_v52 = vld [vmem:[#allocation100_spill] sm:$0xff] }
 0x26a   : > { %v1957_v21 = vsel %vm1931_vm4, %v1892_v32, %v15119_v8  ;;  %v2085_v28 = vsel %vm2061_vm6, %v2020_v55, %v15122_v42  ;;  %v15129_v3 = vld [vmem:[#allocation73_spill] sm:$0xff]  ;;  %v15137_v39 = vld [vmem:[#allocation96_spill] sm:$0xff] }
 0x26b   : > { %v2022_v18 = vsel %vm1996_vm5, %v1957_v21, %v15121_v4  ;;  %v2150_v15 = vsel %vm2126_vm9, %v2085_v28, %v10008_v12  ;;  %v15125_v12 = vld [vmem:[#allocation58_spill] sm:$0xff]  ;;  %v15138_v55 = vld [vmem:[#allocation9_spill] sm:$0xff] }
 0x26c   : > { %v2087_v46 = vsel %vm2061_vm6, %v2022_v18, %v9844_v13  ;;  %v2215_v61 = vsel %vm2191_vm10, %v2150_v15, %v10130_v16  ;;  %v1894_v16 = vsel %vm1866_vm3, %v1829_v36, %v15127_v27  ;;  %v1768_v18 = vpop.permute.xlu1 %1767  ;;  %v7982_v15 = vld [vmem:[%s14649_s4] sm:$0xff]  }
 0x26d   : > { %v2152_v53 = vsel %vm2126_vm9, %v2087_v46, %v10018_v26  ;;  %v2280_v23 = vsel %vm2256_vm11, %v2215_v61, %v1760_v6  ;;  %v1831_v26 = vsel %vm1801_vm2, %v15126_v7, %v15125_v12  ;;  %v1959_v54 = vsel %vm1931_vm4, %v1894_v16, %v15129_v3  ;;  %v7981_v46 = vld [vmem:[%s14649_s4 + $0x8] sm:$0xff]  }
 0x26e   : > { %v2217_v62 = vsel %vm2191_vm10, %v2152_v53, %v10136_v2  ;;  %v15128_v2 = vld [vmem:[#allocation71_spill] sm:$0xff]  ;;  %7701 = vmatprep.subr.bf16.mxu1 %v7981_v46 }
 0x26f   : > { %v2282_v13 = vsel %vm2256_vm11, %v2217_v62, %v1762_v25  ;;  %v1896_v37 = vsel %vm1866_vm3, %v1831_v26, %v15128_v2  ;;  %7702 = vmatpush3.bf16.msra.mxu1 %v7981_v46 }
 0x270   : > { %7654 = vmatmul.mubr.msk.bf16.gmra.mxu0 %vm2343_vm12, %v2276_v31  ;;  %v1961_v60 = vsel %vm1931_vm4, %v1896_v37, %v15130_v29  ;;  %v15131_v31 = vld [vmem:[#allocation92_spill] sm:$0xff]  ;;  %7703 = vmatprep.subr.bf16.mxu1 %v7982_v15 }
 0x271   : > { %7657 = vmatprep.mubr.msk.bf16.mxu0 %vm2343_vm12, %v2278_v50  ;;  %v2024_v47 = vsel %vm1996_vm5, %v1959_v54, %v15131_v31  ;;  %v2026_v17 = vsel %vm1996_vm5, %v1961_v60, %v15132_v11 }
 0x272   : > { %v2089_v50 = vsel %vm2061_vm6, %v2024_v47, %v9842_v35  ;;  %v2091_v57 = vsel %vm2061_vm6, %v2026_v17, %v9852_v33  ;;  %v15133_v35 = vld [vmem:[#allocation57_spill] sm:$0xff] }
 0x273   : > { %v2154_v63 = vsel %vm2126_vm9, %v2089_v50, %v10016_v0  ;;  %v2156_v56 = vsel %vm2126_vm9, %v2091_v57, %v10026_v41  ;;  %v1833_v8 = vsel %vm1801_vm2, %v15134_v52, %v15133_v35  ;;  %v15135_v0 = vld [vmem:[#allocation70_spill] sm:$0xff]  ;;  %v15136_v41 = vld [vmem:[#allocation75_spill] sm:$0xff]  ;;  %7704 = vmatpush3.bf16.msra.mxu1 %v7982_v15 }
 0x274   : > { %v2219_v19 = vsel %vm2191_vm10, %v2154_v63, %v10134_v1  ;;  %v2221_v32 = vsel %vm2191_vm10, %v2156_v56, %v10140_v30  ;;  %v1898_v21 = vsel %vm1866_vm3, %v1833_v8, %v15135_v0 }
 0x275   : > { %v2284_v10 = vsel %vm2256_vm11, %v2219_v19, %v1764_v45  ;;  %v2286_v33 = vsel %vm2256_vm11, %v2221_v32, %v1766_v22  ;;  %v1963_v1 = vsel %vm1931_vm4, %v1898_v21, %v15136_v41 }
 0x276   : > { %v2028_v30 = vsel %vm1996_vm5, %v1963_v1, %v15137_v39 }
 0x277   : > { %v2093_v4 = vsel %vm2061_vm6, %v2028_v30, %v15138_v55 }
 0x278   : > { %7658 = vmatmul.mubr.msk.bf16.gmra.mxu0 %vm2343_vm12, %v2280_v23  ;;  %v2158_v42 = vsel %vm2126_vm9, %v2093_v4, %v10024_v14 }
 0x279   : > { %7661 = vmatprep.mubr.msk.bf16.mxu0 %vm2343_vm12, %v2282_v13  ;;  %v2223_v28 = vsel %vm2191_vm10, %v2158_v42, %v10138_v24  ;;  %v10478_v24 = vld [vmem:[%s14648_s3] ss:$0 sm:$0xff] }
 0x27a   : > { %v2288_v6 = vsel %vm2256_vm11, %v2223_v28, %v1768_v18 }
 0x280   : > { %7662 = vmatmul.mubr.msk.bf16.gmra.mxu0 %vm2343_vm12, %v2284_v10 }
 0x281   : > { %7665 = vmatprep.mubr.msk.bf16.mxu0 %vm2343_vm12, %v2286_v33 }
 0x288   : > { %7666 = vmatmul.mubr.msk.bf16.gmra.mxu0 %vm2343_vm12, %v2288_v6 }
 0x310   : > { %v7639_v14 = vpop.f32.mrf.mxu0 }
 0x311   : > { %v10487_v23 = vadd.f32 %v7639_v14, %v10478_v24 }
 0x312   : > { %v2449_v25 = vpop.f32.mrf.mxu0 }
 0x313   : > { %v10481_v61 = vadd.f32 %v10478_v24, %v2449_v25  ;;  %v2706_v26 = vmax.f32 %v10487_v23, 0.0 }
 0x314   : > { %v7640_v53 = vpop.f32.mrf.mxu0 }
 0x315   : > { %v10484_v62 = vadd.f32 %v7640_v53, %v10478_v24  ;;  %v2704_v12 = vmax.f32 %v10481_v61, 0.0 }
 0x316   : > { %v2452_v51 = vpop.f32.mrf.mxu0 }
 0x317   : > { %v10490_v38 = vadd.f32 %v10478_v24, %v2452_v51  ;;  %v2707_v36 = vmax.f32 %v10484_v62, 0.0 }
 0x318   : > { %v7643_v13 = vpop.f32.mrf.mxu0 }
 0x319   : > { %v2705_v7 = vmax.f32 %v10490_v38, 0.0  ;;  %v2769_v2 = vpack.c.bf16 %v2707_v36, %v2706_v26  ;;  %v10512_v29 = vadd.f32 %v7643_v13, %v10478_v24 }
 0x31a   : > { %v2465_v27 = vpop.f32.mrf.mxu0 }
 0x31b   : > { %v2768_v16 = vpack.c.bf16 %v2705_v7, %v2704_v12  ;;  %v10505_v3 = vadd.f32 %v10478_v24, %v2465_v27  ;;  %v2710_v45 = vmax.f32 %v10512_v29, 0.0 }
 0x31c   : > { %v7644_v37 = vpop.f32.mrf.mxu0 }
 0x31d   : > { %v10508_v54 = vadd.f32 %v7644_v37, %v10478_v24  ;;  %7705 = vmatprep.mubr.msk.bf16.mxu1 %vm2959_vm13, %v2768_v16  ;;  %v2708_v17 = vmax.f32 %v10505_v3, 0.0 }
 0x31e   : > { %v2468_v60 = vpop.f32.mrf.mxu0  ;;  %7706 = vmatmul.mubr.msk.bf16.vlgmr.msra.gmra.mxu1 %vm2959_vm13, %v2769_v2 }
 0x31f   : > { %v10516_v31 = vadd.f32 %v10478_v24, %v2468_v60  ;;  %v2711_v47 = vmax.f32 %v10508_v54, 0.0 }
 0x320   : > { %v7647_v11 = vpop.f32.mrf.mxu0 }
 0x321   : > { %v2709_v50 = vmax.f32 %v10516_v31, 0.0  ;;  %v2771_v22 = vpack.c.bf16 %v2711_v47, %v2710_v45  ;;  %v10538_v10 = vadd.f32 %v7647_v11, %v10478_v24 }
 0x322   : > { %v2481_v57 = vpop.f32.mrf.mxu0 }
 0x323   : > { %v2770_v63 = vpack.c.bf16 %v2709_v50, %v2708_v17  ;;  %v10531_v19 = vadd.f32 %v10478_v24, %v2481_v57  ;;  %v2714_v41 = vmax.f32 %v10538_v10, 0.0 }
 0x324   : > { %v7648_v56 = vpop.f32.mrf.mxu0 }
 0x325   : > { %v10534_v32 = vadd.f32 %v7648_v56, %v10478_v24  ;;  %7709 = vmatprep.mubr.msk.bf16.mxu1 %vm2959_vm13, %v2770_v63  ;;  %v2712_v0 = vmax.f32 %v10531_v19, 0.0 }
 0x326   : > { %v2484_v35 = vpop.f32.mrf.mxu0  ;;  %7710 = vmatmul.mubr.msk.bf16.gmra.mxu1 %vm2959_vm13, %v2771_v22 }
 0x327   : > { %v10542_v52 = vadd.f32 %v10478_v24, %v2484_v35  ;;  %v2715_v8 = vmax.f32 %v10534_v32, 0.0  ;;  %v15139_v32 = vld [vmem:[#allocation35_spill] sm:$0xff] }
 0x328   : > { %v7651_v33 = vpop.f32.mrf.mxu0 }
 0x329   : > { %v2713_v21 = vmax.f32 %v10542_v52, 0.0  ;;  %v2773_v30 = vpack.c.bf16 %v2715_v8, %v2714_v41  ;;  %v10564_v42 = vadd.f32 %v7651_v33, %v10478_v24 }
 0x32a   : > { %v2497_v1 = vpop.f32.mrf.mxu0 }
 0x32b   : > { %v2772_v39 = vpack.c.bf16 %v2713_v21, %v2712_v0  ;;  %v10557_v4 = vadd.f32 %v10478_v24, %v2497_v1  ;;  %v2718_v53 = vmax.f32 %v10564_v42, 0.0 }
 0x32c   : > { %v7652_v55 = vpop.f32.mrf.mxu0 }
 0x32d   : > { %v10560_v18 = vadd.f32 %v7652_v55, %v10478_v24  ;;  %7713 = vmatprep.mubr.msk.bf16.mxu1 %vm2959_vm13, %v2772_v39  ;;  %v2716_v14 = vmax.f32 %v10557_v4, 0.0  ;;  %v15144_v4 = vld [vmem:[#allocation47_spill] sm:$0xff] }
 0x32e   : > { %v2500_v28 = vpop.f32.mrf.mxu0  ;;  %7714 = vmatmul.mubr.msk.bf16.gmra.mxu1 %vm2959_vm13, %v2773_v30 }
 0x32f   : > { %v10568_v6 = vadd.f32 %v10478_v24, %v2500_v28  ;;  %v2719_v46 = vmax.f32 %v10560_v18, 0.0  ;;  %v8369_v18 = vld [vmem:[%s8513_s15 + $0x154] sm:$0xff]   ;;  %s7366_s15 = sshll.u32 %s15655_s25, 2 }
 0x330   : > { %v7655_v15 = vpop.f32.mrf.mxu0  ;;  %v1732_v42 = vrot.slane %v8369_v18, 1  ;;  %s497_s24 = scalar_lea.vmem %s14656_s11, %s7366_s15  ;;  %s8416_s15 = smov 104  }
 0x331   : > { %v2717_v25 = vmax.f32 %v10568_v6, 0.0  ;;  %v2775_v16 = vpack.c.bf16 %v2719_v46, %v2718_v53  ;;  %v2522_v11 = vadd.f32 %v7655_v15, %v10478_v24 }
 0x332   : > { %v2513_v51 = vpop.f32.mrf.mxu0 }
 0x333   : > { %v2774_v13 = vpack.c.bf16 %v2717_v25, %v2716_v14  ;;  %v2514_v27 = vadd.f32 %v10478_v24, %v2513_v51  ;;  %v2722_v1 = vmax.f32 %v2522_v11, 0.0 }
 0x334   : > { %v7656_v2 = vpop.f32.mrf.mxu0 }
 0x335   : > { %v2720_v37 = vmax.f32 %v2514_v27, 0.0  ;;  %v2525_v60 = vadd.f32 %v7656_v2, %v10478_v24  ;;  %7717 = vmatprep.mubr.msk.bf16.mxu1 %vm2959_vm13, %v2774_v13  ;;  %v7823_v27 = vpack.i.bf16 %v2722_v1, %v2706_v26 }
 0x336   : > { %v2516_v57 = vpop.f32.mrf.mxu0  ;;  %7718 = vmatmul.mubr.msk.bf16.gmra.mxu1 %vm2959_vm13, %v2775_v16 }
 0x337   : > { %v7819_v63 = vpack.i.bf16 %v2720_v37, %v2704_v12  ;;  %v2517_v22 = vadd.f32 %v10478_v24, %v2516_v57  ;;  %v2723_v56 = vmax.f32 %v2525_v60, 0.0 }
 0x338   : > { %v7659_v35 = vpop.f32.mrf.mxu0 }
 0x339   : > { %v2721_v33 = vmax.f32 %v2517_v22, 0.0  ;;  %7820 = vxpose.xlu0.b32.start [1/16] (narrow) %v7819_v63, 32  ;;  %v2777_v28 = vpack.c.bf16 %v2723_v56, %v2722_v1  ;;  %v2538_v61 = vadd.f32 %v7659_v35, %v10478_v24  ;;  %v7825_v57 = vpack.i.bf16 %v2723_v56, %v2707_v36 }
 0x33a   : > { %v2529_v39 = vpop.f32.mrf.mxu0 }
 0x33b   : > { %v7821_v30 = vpack.i.bf16 %v2721_v33, %v2705_v7  ;;  %v2776_v55 = vpack.c.bf16 %v2721_v33, %v2720_v37  ;;  %v2530_v51 = vadd.f32 %v10478_v24, %v2529_v39  ;;  %v2726_v60 = vmax.f32 %v2538_v61, 0.0 }
 0x33c   : > { %v7660_v15 = vpop.f32.mrf.mxu0 }
 0x33d   : > { %v2541_v13 = vadd.f32 %v7660_v15, %v10478_v24  ;;  %7822 = vxpose.xlu0.b32.cont [2/16] (narrow) %v7821_v30, 32  ;;  %7721 = vmatprep.mubr.msk.bf16.mxu1 %vm2959_vm13, %v2776_v55  ;;  %v2724_v2 = vmax.f32 %v2530_v51, 0.0 }
 0x33e   : > { %v2532_v12 = vpop.f32.mrf.mxu0  ;;  %7722 = vmatmul.mubr.msk.bf16.gmra.mxu1 %vm2959_vm13, %v2777_v28 }
 0x33f   : > { %v2533_v38 = vadd.f32 %v10478_v24, %v2532_v12  ;;  %v2727_v7 = vmax.f32 %v2541_v13, 0.0  ;;  %v7827_v39 = vpack.i.bf16 %v2724_v2, %v2708_v17 }
 0x340   : > { %v7663_v16 = vpop.f32.mrf.mxu0 }
 0x341   : > { %v2725_v37 = vmax.f32 %v2533_v38, 0.0  ;;  %7824 = vxpose.xlu0.b32.cont [3/16] (narrow) %v7823_v27, 32  ;;  %v2779_v22 = vpack.c.bf16 %v2727_v7, %v2726_v60  ;;  %v2554_v26 = vadd.f32 %v7663_v16, %v10478_v24  ;;  %v7831_v16 = vpack.i.bf16 %v2726_v60, %v2710_v45 }
 0x342   : > { %v2545_v11 = vpop.f32.mrf.mxu0 }
 0x343   : > { %v2778_v63 = vpack.c.bf16 %v2725_v37, %v2724_v2  ;;  %v2546_v33 = vadd.f32 %v10478_v24, %v2545_v11  ;;  %v2730_v28 = vmax.f32 %v2554_v26, 0.0  ;;  %v7829_v51 = vpack.i.bf16 %v2725_v37, %v2709_v50 }
 0x344   : > { %v7664_v35 = vpop.f32.mrf.mxu0 }
 0x345   : > { %v2557_v23 = vadd.f32 %v7664_v35, %v10478_v24  ;;  %7826 = vxpose.xlu0.b32.cont [4/16] (narrow) %v7825_v57, 32  ;;  %7725 = vmatprep.mubr.msk.bf16.mxu1 %vm2959_vm13, %v2778_v63  ;;  %v2728_v30 = vmax.f32 %v2546_v33, 0.0  ;;  %v7833_v57 = vpack.i.bf16 %v2727_v7, %v2711_v47  ;;  %v7839_v60 = vpack.i.bf16 %v2730_v28, %v2714_v41  ;;  %v15143_v41 = vld [vmem:[#allocation44_spill] sm:$0xff] }
 0x346   : > { %v2548_v1 = vpop.f32.mrf.mxu0  ;;  %7726 = vmatmul.mubr.msk.bf16.gmra.mxu1 %vm2959_vm13, %v2779_v22 }
 0x347   : > { %v2549_v62 = vadd.f32 %v10478_v24, %v2548_v1  ;;  %v2731_v36 = vmax.f32 %v2557_v23, 0.0  ;;  %v7835_v29 = vpack.i.bf16 %v2728_v30, %v2712_v0  ;;  %v15141_v0 = vld [vmem:[#allocation39_spill] sm:$0xff] }
 0x348   : > { %v7667_v56 = vpop.f32.mrf.mxu0 }
 0x349   : > { %v2729_v55 = vmax.f32 %v2549_v62, 0.0  ;;  %7828 = vxpose.xlu0.b32.cont [5/16] (narrow) %v7827_v39, 32  ;;  %v2781_v61 = vpack.c.bf16 %v2731_v36, %v2730_v28  ;;  %v2570_v17 = vadd.f32 %v7667_v56, %v10478_v24  ;;  %v7841_v54 = vpack.i.bf16 %v2731_v36, %v2715_v8  ;;  %v15140_v8 = vld [vmem:[#allocation37_spill] sm:$0xff] }
 0x34a   : > { %v2561_v15 = vpop.f32.mrf.mxu0 }
 0x34b   : > { %v2780_v13 = vpack.c.bf16 %v2729_v55, %v2728_v30  ;;  %v2562_v27 = vadd.f32 %v10478_v24, %v2561_v15  ;;  %v2734_v11 = vmax.f32 %v2570_v17, 0.0  ;;  %v7837_v45 = vpack.i.bf16 %v2729_v55, %v2713_v21  ;;  %v15142_v21 = vld [vmem:[#allocation40_spill] sm:$0xff] }
 0x34c   : > { %v7668_v12 = vpop.f32.mrf.mxu0  ;;  %v14757_v15 = vmov 0  }
 0x34d   : > { %v2573_v3 = vadd.f32 %v7668_v12, %v10478_v24  ;;  %7830 = vxpose.xlu0.b32.cont [6/16] (narrow) %v7829_v51, 32  ;;  %7729 = vmatprep.mubr.msk.bf16.mxu1 %vm2959_vm13, %v2780_v13  ;;  %v2732_v2 = vmax.f32 %v2562_v27, 0.0  ;;  %v7847_v52 = vpack.i.bf16 %v2734_v11, %v2718_v53  ;;  %v10675_v13 = vld [vmem:[%s14650_s5] ss:$0 sm:$0xff] }
 0x34e   : > { %v2564_v38 = vpop.f32.mrf.mxu0  ;;  %7730 = vmatmul.mubr.msk.bf16.gmra.mxu1 %vm2959_vm13, %v2781_v61 }
 0x34f   : > { %v2565_v31 = vadd.f32 %v10478_v24, %v2564_v38  ;;  %v2735_v50 = vmax.f32 %v2573_v3, 0.0  ;;  %v7843_v47 = vpack.i.bf16 %v2732_v2, %v2716_v14  ;;  %v15146_v14 = vrot.slane %v9803_v48, 1 }
 0x351   : > { %v2733_v37 = vmax.f32 %v2565_v31, 0.0  ;;  %7832 = vxpose.xlu0.b32.cont [7/16] (narrow) %v7831_v16, 32  ;;  %v2783_v22 = vpack.c.bf16 %v2735_v50, %v2734_v11  ;;  %v7849_v10 = vpack.i.bf16 %v2735_v50, %v2719_v46  ;;  %v15145_v46 = vld [vmem:[#allocation78_spill] sm:$0xff] }
 0x353   : > { %v2782_v63 = vpack.c.bf16 %v2733_v37, %v2732_v2  ;;  %v7845_v19 = vpack.i.bf16 %v2733_v37, %v2717_v25  ;;  %v1734_v25 = vsel %vm1196_vm1, %v1732_v42, %v15146_v14 }
 0x355   : > { %7834 = vxpose.xlu0.b32.cont [8/16] (narrow) %v7833_v57, 32  ;;  %7733 = vmatprep.mubr.msk.bf16.mxu1 %vm2959_vm13, %v2782_v63 }
 0x356   : > { %7734 = vmatmul.mubr.msk.bf16.gmra.mxu1 %vm2959_vm13, %v2783_v22 }
 0x359   : > { %7836 = vxpose.xlu0.b32.cont [9/16] (narrow) %v7835_v29, 32 }
 0x35d   : > { %7838 = vxpose.xlu0.b32.cont [10/16] (narrow) %v7837_v45, 32 }
 0x361   : > { %7840 = vxpose.xlu0.b32.cont [11/16] (narrow) %v7839_v60, 32 }
 0x365   : > { %7842 = vxpose.xlu0.b32.cont [12/16] (narrow) %v7841_v54, 32 }
 0x369   : > { %7844 = vxpose.xlu0.b32.cont [13/16] (narrow) %v7843_v47, 32 }
 0x36d   : > { %7846 = vxpose.xlu0.b32.cont [14/16] (narrow) %v7845_v19, 32 }
 0x371   : > { %7848 = vxpose.xlu0.b32.cont [15/16] (narrow) %v7847_v52, 32 }
 0x375   : > { %7850 = vxpose.xlu0.b32.end [16/16] (narrow) %v7849_v10, 32 }
 0x39e   : > { %1769 = vrot.lane.b32.xlu0 %v15139_v32, %s8402_s14 }
 0x39f   : > { %7924 = vset.pattern.permute.xlu0 %v14757_v15 }
 0x3a2   : > { %1773 = vrot.lane.b32.xlu0 %v15140_v8, %s8402_s14 }
 0x3a6   : > { %1777 = vrot.lane.b32.xlu0 %v15141_v0, %s8402_s14 }
 0x3aa   : > { %1781 = vrot.lane.b32.xlu0 %v15142_v21, %s8402_s14 }
 0x3ae   : > { %1785 = vrot.lane.b32.xlu0 %v15143_v41, %s8402_s14 }
 0x3b2   : > { %1789 = vrot.lane.b32.xlu0 %v15144_v4, %s8402_s14 }
 0x3b5   : > { %v7851_v6 = vpop.trf.xlu0 }
 0x3b6   : > { %1793 = vrot.lane.b32.xlu0 %v15145_v46, %s8402_s14  ;;  %v7855_v26 = vunpack.i.h.bf16 %v7851_v6  ;;  %v7852_v36 = vunpack.i.l.bf16 %v7851_v6 }
 0x3b9   : > { %v7856_v53 = vpop.trf.xlu0 }
 0x3ba   : > { %1797 = vrot.lane.b32.xlu0 %v1734_v25, %s8402_s14  ;;  %v7860_v23 = vunpack.i.h.bf16 %v7856_v53  ;;  %v7857_v56 = vunpack.i.l.bf16 %v7856_v53 }
 0x3bc   : > { %v10663_v48 = vpack.c.bf16 %v7860_v23, %v7855_v26  ;;  %v10667_v28 = vpack.c.bf16 %v7857_v56, %v7852_v36 }
 0x3bd   : > { %v7861_v7 = vpop.trf.xlu0 }
 0x3be   : > { %v7862_v35 = vunpack.i.l.bf16 %v7861_v7  ;;  %v7865_v33 = vunpack.i.h.bf16 %v7861_v7  ;;  %15149 = vst [vmem:[#allocation38_spill] sm:$0xff] %v10667_v28 }
 0x3c1   : > { %v7866_v1 = vpop.trf.xlu0 }
 0x3c2   : > { %v7867_v39 = vunpack.i.l.bf16 %v7866_v1  ;;  %v7870_v62 = vunpack.i.h.bf16 %v7866_v1 }
 0x3c4   : > { %v10659_v30 = vpack.c.bf16 %v7870_v62, %v7865_v33  ;;  %v10661_v55 = vpack.c.bf16 %v7867_v39, %v7862_v35 }
 0x3c6   : > { %15147 = vst [vmem:[#allocation29_spill] sm:$0xff] %v10659_v30  ;;  %15148 = vst [vmem:[#allocation36_spill] sm:$0xff] %v10661_v55  ;;  %4072 = vmatprep.subr.bf16.mxu0 %v10659_v30 }
 0x3c7   : > { %4073 = vmatpush1.bf16.msra.mxu0 %v10661_v55 }
 0x3c8   : > { %4074 = vmatprep.subr.bf16.mxu0 %v10663_v48 }
 0x3cb   : > { %4075 = vmatpush1.bf16.msra.mxu0 %v10667_v28 }
 0x3de   : > { %v7707_v51 = vpop.f32.mrf.mxu1 }
 0x3df   : > { %v10681_v3 = vadd.f32 %v7707_v51, %v10675_v13 }
 0x3e0   : > { %v3090_v61 = vpop.f32.mrf.mxu1 }
 0x3e1   : > { %v10678_v12 = vadd.f32 %v10675_v13, %v3090_v61  ;;  %v3352_v50 = vsel %vm3345_vm14, %v10681_v3, -inf  ;;  %v1772_v61 = vpop.permute.xlu1 %1771 }
 0x3e2   : > { %v7708_v27 = vpop.f32.mrf.mxu1 }
 0x3e3   : > { %v3346_v17 = vsel %vm3345_vm14, %v10678_v12, -inf  ;;  %v10690_v31 = vadd.f32 %v7708_v27, %v10675_v13 }
 0x3e4   : > { %v10685_v38 = vpop.f32.mrf.mxu1  ;;  %3347 = vmax.xlane.f32.xlu0 %v3346_v17 }
 0x3e5   : > { %v3355_v11 = vsel %vm3345_vm14, %v10690_v31, -inf }
 0x3e6   : > { %v10687_v16 = vpop.f32.mrf.mxu1 }
 0x3e8   : > { %v10694_v2 = vpop.f32.mrf.mxu1  ;;  %3353 = vmax.xlane.f32.xlu0 %v3352_v50 }
 0x3ea   : > { %v7712_v37 = vpop.f32.mrf.mxu1 }
 0x3eb   : > { %v10704_v29 = vadd.f32 %v7712_v37, %v10675_v13 }
 0x3ec   : > { %v3109_v57 = vpop.f32.mrf.mxu1  ;;  %3356 = vmax.xlane.f32.xlu0 %v3355_v11 }
 0x3ed   : > { %v10699_v63 = vadd.f32 %v10675_v13, %v3109_v57  ;;  %v3367_v47 = vsel %vm3345_vm14, %v10704_v29, -inf  ;;  %v2292_v57 = vsel %vm2256_vm11, %v10144_v9, %v1772_v61 }
 0x3ee   : > { %v10701_v22 = vpop.f32.mrf.mxu1 }
 0x3ef   : > { %v3361_v45 = vsel %vm3345_vm14, %v10699_v63, -inf }
 0x3f0   : > { %v10708_v60 = vpop.f32.mrf.mxu1  ;;  %3362 = vmax.xlane.f32.xlu0 %v3361_v45 }
 0x3f2   : > { %v7716_v54 = vpop.f32.mrf.mxu1 }
 0x3f3   : > { %v10718_v32 = vadd.f32 %v7716_v54, %v10675_v13 }
 0x3f4   : > { %v3125_v19 = vpop.f32.mrf.mxu1  ;;  %3368 = vmax.xlane.f32.xlu0 %v3367_v47 }
 0x3f5   : > { %v10713_v52 = vadd.f32 %v10675_v13, %v3125_v19  ;;  %v3379_v41 = vsel %vm3345_vm14, %v10718_v32, -inf }
 0x3f6   : > { %v10715_v10 = vpop.f32.mrf.mxu1 }
 0x3f7   : > { %v3373_v8 = vsel %vm3345_vm14, %v10713_v52, -inf }
 0x3f8   : > { %v10722_v0 = vpop.f32.mrf.mxu1  ;;  %3374 = vmax.xlane.f32.xlu0 %v3373_v8 }
 0x3fa   : > { %v7720_v21 = vpop.f32.mrf.mxu1 }
 0x3fb   : > { %v10732_v6 = vadd.f32 %v7720_v21, %v10675_v13  ;;  %v1776_v21 = vpop.permute.xlu1 %1775 }
 0x3fc   : > { %v3141_v4 = vpop.f32.mrf.mxu1  ;;  %3380 = vmax.xlane.f32.xlu0 %v3379_v41 }
 0x3fd   : > { %v10727_v18 = vadd.f32 %v10675_v13, %v3141_v4  ;;  %v3391_v53 = vsel %vm3345_vm14, %v10732_v6, -inf }
 0x3fe   : > { %v10729_v42 = vpop.f32.mrf.mxu1 }
 0x3ff   : > { %v3385_v46 = vsel %vm3345_vm14, %v10727_v18, -inf }
 0x400   : > { %v10736_v14 = vpop.f32.mrf.mxu1  ;;  %3386 = vmax.xlane.f32.xlu0 %v3385_v46 }
 0x402   : > { %v7724_v25 = vpop.f32.mrf.mxu1 }
 0x403   : > { %v10746_v23 = vadd.f32 %v7724_v25, %v10675_v13 }
 0x404   : > { %v3157_v7 = vpop.f32.mrf.mxu1  ;;  %3392 = vmax.xlane.f32.xlu0 %v3391_v53  ;;  %v2296_v53 = vsel %vm2256_vm11, %v10152_v34, %v1776_v21 }
 0x405   : > { %v10741_v35 = vadd.f32 %v10675_v13, %v3157_v7  ;;  %v3403_v62 = vsel %vm3345_vm14, %v10746_v23, -inf }
 0x406   : > { %v10743_v33 = vpop.f32.mrf.mxu1 }
 0x407   : > { %v3397_v26 = vsel %vm3345_vm14, %v10741_v35, -inf }
 0x408   : > { %v10750_v1 = vpop.f32.mrf.mxu1  ;;  %3398 = vmax.xlane.f32.xlu0 %v3397_v26 }
 0x40a   : > { %v7728_v39 = vpop.f32.mrf.mxu1 }
 0x40b   : > { %v10760_v27 = vadd.f32 %v7728_v39, %v10675_v13 }
 0x40c   : > { %v3173_v36 = vpop.f32.mrf.mxu1  ;;  %3404 = vmax.xlane.f32.xlu0 %v3403_v62 }
 0x40d   : > { %v10755_v56 = vadd.f32 %v10675_v13, %v3173_v36  ;;  %15151 = vst [vmem:[#allocation42_spill] sm:$0xff] %v10760_v27  ;;  %v3415_v54 = vsel %vm3345_vm14, %v10760_v27, -inf  ;;  %v1780_v36 = vpop.permute.xlu1 %1779 }
 0x40e   : > { %v10757_v51 = vpop.f32.mrf.mxu1 }
 0x40f   : > { %15150 = vst [vmem:[#allocation24_spill] sm:$0xff] %v10755_v56  ;;  %v3409_v17 = vsel %vm3345_vm14, %v10755_v56, -inf }
 0x410   : > { %v10764_v50 = vpop.f32.mrf.mxu1  ;;  %3410 = vmax.xlane.f32.xlu0 %v3409_v17  ;;  %v1770_v37 = vpop.permute.xlu0 %1769  ;;  %v15156_v17 = vld [vmem:[#allocation10_spill] sm:$0xff] }
 0x411   : > { %v2290_v11 = vsel %vm2256_vm11, %v10148_v49, %v1770_v37  ;;  %v2300_v37 = vsel %vm2256_vm11, %v15156_v17, %v1780_v36 }
 0x412   : > { %7669 = vmatprep.mubr.msk.bf16.mxu0 %vm2343_vm12, %v2290_v11  ;;  %v7732_v45 = vpop.f32.mrf.mxu1 }
 0x413   : > { %7670 = vmatmul.mubr.msk.bf16.gmra.mxu0 %vm2343_vm12, %v2292_v57  ;;  %v10783_v41 = vadd.f32 %v7732_v45, %v10675_v13  ;;  %v1784_v45 = vpop.permute.xlu1 %1783 }
 0x414   : > { %v3189_v47 = vpop.f32.mrf.mxu1  ;;  %3416 = vmax.xlane.f32.xlu0 %v3415_v54  ;;  %v1774_v19 = vpop.permute.xlu0 %1773 }
 0x415   : > { %v10775_v8 = vadd.f32 %v10675_v13, %v3189_v47  ;;  %v2294_v49 = vsel %vm2256_vm11, %v10156_v59, %v1774_v19  ;;  %15153 = vst [vmem:[#allocation30_spill] sm:$0xff] %v10783_v41  ;;  %v3427_v26 = vsel %vm3345_vm14, %v10783_v41, -inf  ;;  %v15157_v47 = vld [vmem:[#allocation11_spill] sm:$0xff] }
 0x416   : > { %7673 = vmatprep.mubr.msk.bf16.mxu0 %vm2343_vm12, %v2294_v49  ;;  %v10780_v9 = vpop.f32.mrf.mxu1  ;;  %v2304_v19 = vsel %vm2256_vm11, %v15157_v47, %v1784_v45  ;;  %v10844_v45 = vld [vmem:[%s14651_s6] sm:$0xf] }
 0x417   : > { %15152 = vst [vmem:[#allocation45_spill] sm:$0xff] %v10775_v8  ;;  %v3421_v4 = vsel %vm3345_vm14, %v10775_v8, -inf }
 0x418   : > { %3422 = vmax.xlane.f32.xlu0 %v3421_v4  ;;  %v1778_v46 = vpop.permute.xlu0 %1777  ;;  %v10787_v25 = vpop.f32.mrf.mxu1 }
 0x419   : > { %v2298_v59 = vsel %vm2256_vm11, %v10163_v58, %v1778_v46  ;;  %v15158_v46 = vld [vmem:[#allocation25_spill] sm:$0xff] }
 0x41a   : > { %v7736_v7 = vpop.f32.mrf.mxu1 }
 0x41b   : > { %7674 = vmatmul.mubr.msk.bf16.gmra.mxu0 %vm2343_vm12, %v2296_v53  ;;  %v10801_v61 = vadd.f32 %v7736_v7, %v10675_v13 }
 0x41c   : > { %3428 = vmax.xlane.f32.xlu0 %v3427_v26  ;;  %7677 = vmatprep.mubr.msk.bf16.mxu0 %vm2343_vm12, %v2298_v59  ;;  %v3205_v39 = vpop.f32.mrf.mxu1  ;;  %v1782_v58 = vpop.permute.xlu0 %1781  ;;  %v15159_v26 = vld [vmem:[#allocation13_spill] sm:$0xff] }
 0x41d   : > { %v10798_v62 = vadd.f32 %v10675_v13, %v3205_v39  ;;  %15155 = vst [vmem:[#allocation59_spill] sm:$0xff] %v10801_v61  ;;  %v2302_v11 = vsel %vm2256_vm11, %v10169_v40, %v1782_v58  ;;  %v3439_v57 = vsel %vm3345_vm14, %v10801_v61, -inf  ;;  %v1788_v40 = vpop.permute.xlu1 %1787  ;;  %v15160_v39 = vld [vmem:[#allocation28_spill] sm:$0xff]  ;;  %v15161_v58 = vld [vmem:[#allocation27_spill] sm:$0xff] }
 0x41e   : > { %v2308_v4 = vsel %vm2256_vm11, %v10172_v43, %v1788_v40 }
 0x41f   : > { %15154 = vst [vmem:[#allocation41_spill] sm:$0xff] %v10798_v62  ;;  %v3433_v34 = vsel %vm3345_vm14, %v10798_v62, -inf }
 0x420   : > { %3434 = vmax.xlane.f32.xlu0 %v3433_v34  ;;  %v1786_v54 = vpop.permute.xlu0 %1785 }
 0x421   : > { %v2306_v49 = vsel %vm2256_vm11, %v10175_v44, %v1786_v54  ;;  %v1792_v7 = vpop.permute.xlu1 %1791 }
 0x422   : > { %v2312_v44 = vsel %vm2256_vm11, %v15159_v26, %v1792_v7 }
 0x423   : > { %7678 = vmatmul.mubr.msk.bf16.gmra.mxu0 %vm2343_vm12, %v2300_v37 }
 0x424   : > { %7681 = vmatprep.mubr.msk.bf16.mxu0 %vm2343_vm12, %v2302_v11  ;;  %3440 = vmax.xlane.f32.xlu0 %v3439_v57  ;;  %v1790_v21 = vpop.permute.xlu0 %1789 }
 0x425   : > { %v2310_v53 = vsel %vm2256_vm11, %v15158_v46, %v1790_v21  ;;  %v1796_v43 = vpop.permute.xlu1 %1795 }
 0x426   : > { %v2316_v17 = vsel %vm2256_vm11, %v15161_v58, %v1796_v43 }
 0x428   : > { %v1794_v59 = vpop.permute.xlu0 %1793 }
 0x429   : > { %v2314_v36 = vsel %vm2256_vm11, %v15160_v39, %v1794_v59  ;;  %v1800_v11 = vpop.permute.xlu1 %1799 }
 0x42a   : > { %v2320_v57 = vsel %vm2256_vm11, %v10203_v20, %v1800_v11 }
 0x42b   : > { %7682 = vmatmul.mubr.msk.bf16.gmra.mxu0 %vm2343_vm12, %v2304_v19 }
 0x42c   : > { %7685 = vmatprep.mubr.msk.bf16.mxu0 %vm2343_vm12, %v2306_v49  ;;  %v1798_v34 = vpop.permute.xlu0 %1797 }
 0x42d   : > { %v2318_v37 = vsel %vm2256_vm11, %v10215_v5, %v1798_v34 }
 0x433   : > { %7686 = vmatmul.mubr.msk.bf16.gmra.mxu0 %vm2343_vm12, %v2308_v4 }
 0x434   : > { %7689 = vmatprep.mubr.msk.bf16.mxu0 %vm2343_vm12, %v2310_v53 }
 0x43b   : > { %7690 = vmatmul.mubr.msk.bf16.gmra.mxu0 %vm2343_vm12, %v2312_v44 }
 0x43c   : > { %7693 = vmatprep.mubr.msk.bf16.mxu0 %vm2343_vm12, %v2314_v36 }
 0x443   : > { %7694 = vmatmul.mubr.msk.bf16.gmra.mxu0 %vm2343_vm12, %v2316_v17 }
 0x444   : > { %7697 = vmatprep.mubr.msk.bf16.mxu0 %vm2343_vm12, %v2318_v37 }
 0x44b   : > { %7698 = vmatmul.mubr.msk.bf16.gmra.mxu0 %vm2343_vm12, %v2320_v57 }
 0x44c   : > { %4092 = vmatprep.mubr.bf16.mxu0 %v14757_v15 }
 0x453   : > { %7494 = vmatmul.mubr.msk.bf16.vlgmr.msra.gmra.mxu0 %vm2959_vm13, %v10844_v45 }
 0x454   : > { %6924 = vmatprep.mubr.bf16.mxu0 %v10663_v48 }
 0x4d3   : > { %v7671_v5 = vpop.f32.mrf.mxu0 }
 0x4d4   : > { %v10856_v49 = vadd.f32 %v7671_v5, %v10478_v24 }
 0x4d5   : > { %v2577_v54 = vpop.f32.mrf.mxu0 }
 0x4d6   : > { %v10850_v19 = vadd.f32 %v10478_v24, %v2577_v54  ;;  %v14764_v7 = vmax.f32 %v10856_v49, 0.0 }
 0x4d7   : > { %v7672_v47 = vpop.f32.mrf.mxu0 }
 0x4d8   : > { %v10853_v20 = vadd.f32 %v7672_v47, %v10478_v24  ;;  %v2736_v48 = vmax.f32 %v10850_v19, 0.0 }
 0x4d9   : > { %v2580_v40 = vpop.f32.mrf.mxu0 }
 0x4da   : > { %v10859_v21 = vadd.f32 %v10478_v24, %v2580_v40  ;;  %v14763_v4 = vmax.f32 %v10853_v20, 0.0 }
 0x4db   : > { %v7675_v46 = vpop.f32.mrf.mxu0 }
 0x4dc   : > { %v14769_v53 = vmax.f32 %v10859_v21, 0.0  ;;  %v2785_v44 = vpack.c.bf16 %v14763_v4, %v14764_v7  ;;  %v10879_v34 = vadd.f32 %v7675_v46, %v10478_v24 }
 0x4dd   : > { %v2593_v59 = vpop.f32.mrf.mxu0 }
 0x4de   : > { %v2784_v26 = vpack.c.bf16 %v14769_v53, %v2736_v48  ;;  %v10872_v36 = vadd.f32 %v10478_v24, %v2593_v59  ;;  %v14760_v54 = vmax.f32 %v10879_v34, 0.0 }
 0x4df   : > { %v7676_v39 = vpop.f32.mrf.mxu0 }
 0x4e0   : > { %v10875_v43 = vadd.f32 %v7676_v39, %v10478_v24  ;;  %7737 = vmatprep.mubr.msk.bf16.mxu1 %vm2959_vm13, %v2784_v26  ;;  %v14762_v57 = vmax.f32 %v10872_v36, 0.0 }
 0x4e1   : > { %v2596_v58 = vpop.f32.mrf.mxu0  ;;  %7738 = vmatmul.mubr.msk.bf16.gmra.mxu1 %vm2959_vm13, %v2785_v44 }
 0x4e2   : > { %v10883_v17 = vadd.f32 %v10478_v24, %v2596_v58  ;;  %v14759_v37 = vmax.f32 %v10875_v43, 0.0 }
 0x4e3   : > { %v7679_v11 = vpop.f32.mrf.mxu0 }
 0x4e4   : > { %v14761_v5 = vmax.f32 %v10883_v17, 0.0  ;;  %v2787_v40 = vpack.c.bf16 %v14759_v37, %v14760_v54  ;;  %v10905_v44 = vadd.f32 %v7679_v11, %v10478_v24 }
 0x4e5   : > { %v2609_v47 = vpop.f32.mrf.mxu0 }
 0x4e6   : > { %v2786_v19 = vpack.c.bf16 %v14761_v5, %v14762_v57  ;;  %v10898_v59 = vadd.f32 %v10478_v24, %v2609_v47 }
 0x4e7   : > { %v7680_v46 = vpop.f32.mrf.mxu0 }
 0x4e8   : > { %v10901_v26 = vadd.f32 %v7680_v46, %v10478_v24  ;;  %7741 = vmatprep.mubr.msk.bf16.mxu1 %vm2959_vm13, %v2786_v19  ;;  %v14768_v47 = vmax.f32 %v10898_v59, 0.0  ;;  %v14767_v46 = vmax.f32 %v10905_v44, 0.0 }
 0x4e9   : > { %v2612_v39 = vpop.f32.mrf.mxu0  ;;  %7742 = vmatmul.mubr.msk.bf16.gmra.mxu1 %vm2959_vm13, %v2787_v40 }
 0x4ea   : > { %v10909_v58 = vadd.f32 %v10478_v24, %v2612_v39  ;;  %v14766_v15 = vmax.f32 %v10901_v26, 0.0 }
 0x4eb   : > { %v7683_v37 = vpop.f32.mrf.mxu0 }
 0x4ec   : > { %v14765_v54 = vmax.f32 %v10909_v58, 0.0  ;;  %v2789_v19 = vpack.c.bf16 %v14766_v15, %v14767_v46  ;;  %v10931_v4 = vadd.f32 %v7683_v37, %v10478_v24 }
 0x4ed   : > { %v2625_v5 = vpop.f32.mrf.mxu0 }
 0x4ee   : > { %v2788_v11 = vpack.c.bf16 %v14765_v54, %v14768_v47  ;;  %v10924_v39 = vadd.f32 %v10478_v24, %v2625_v5 }
 0x4ef   : > { %v7684_v40 = vpop.f32.mrf.mxu0 }
 0x4f0   : > { %v10927_v57 = vadd.f32 %v7684_v40, %v10478_v24  ;;  %7745 = vmatprep.mubr.msk.bf16.mxu1 %vm2959_vm13, %v2788_v11  ;;  %v14776_v5 = vmax.f32 %v10924_v39, 0.0  ;;  %v14780_v40 = vmax.f32 %v10931_v4, 0.0 }
 0x4f1   : > { %v2628_v7 = vpop.f32.mrf.mxu0  ;;  %7746 = vmatmul.mubr.msk.bf16.gmra.mxu1 %vm2959_vm13, %v2789_v19 }
 0x4f2   : > { %v10935_v54 = vadd.f32 %v10478_v24, %v2628_v7  ;;  %v14779_v15 = vmax.f32 %v10927_v57, 0.0 }
 0x4f3   : > { %v7687_v46 = vpop.f32.mrf.mxu0 }
 0x4f4   : > { %v14775_v47 = vmax.f32 %v10935_v54, 0.0  ;;  %v2791_v7 = vpack.c.bf16 %v14779_v15, %v14780_v40  ;;  %v2650_v28 = vadd.f32 %v7687_v46, %v10478_v24 }
 0x4f5   : > { %v2641_v53 = vpop.f32.mrf.mxu0 }
 0x4f6   : > { %v2790_v37 = vpack.c.bf16 %v14775_v47, %v14776_v5  ;;  %v2642_v11 = vadd.f32 %v10478_v24, %v2641_v53  ;;  %v2754_v8 = vmax.f32 %v2650_v28, 0.0  ;;  %v15163_v28 = vmax.f32 %v10856_v49, 0.0 }
 0x4f7   : > { %v7688_v19 = vpop.f32.mrf.mxu0 }
 0x4f8   : > { %v2752_v55 = vmax.f32 %v2642_v11, 0.0  ;;  %v2653_v30 = vadd.f32 %v7688_v19, %v10478_v24  ;;  %7749 = vmatprep.mubr.msk.bf16.mxu1 %vm2959_vm13, %v2790_v37  ;;  %v15162_v11 = vmax.f32 %v10859_v21, 0.0 }
 0x4f9   : > { %v2644_v61 = vpop.f32.mrf.mxu0  ;;  %7750 = vmatmul.mubr.msk.bf16.gmra.mxu1 %vm2959_vm13, %v2791_v7 }
 0x4fa   : > { %v7871_v62 = vpack.i.bf16 %v2752_v55, %v2736_v48  ;;  %v2645_v47 = vadd.f32 %v10478_v24, %v2644_v61  ;;  %v2755_v53 = vmax.f32 %v2653_v30, 0.0 }
 0x4fb   : > { %v7691_v5 = vpop.f32.mrf.mxu0 }
 0x4fc   : > { %v2753_v41 = vmax.f32 %v2645_v47, 0.0  ;;  %7872 = vxpose.xlu1.b32.start [1/16] (narrow) %v7871_v62, 32  ;;  %v2793_v27 = vpack.c.bf16 %v2755_v53, %v2754_v8  ;;  %v2666_v30 = vadd.f32 %v7691_v5, %v10478_v24  ;;  %v7875_v62 = vpack.i.bf16 %v2754_v8, %v15163_v28 }
 0x4fd   : > { %v2657_v15 = vpop.f32.mrf.mxu0 }
 0x4fe   : > { %v7873_v40 = vpack.i.bf16 %v2753_v41, %v15162_v11  ;;  %v2792_v19 = vpack.c.bf16 %v2753_v41, %v2752_v55  ;;  %v2658_v46 = vadd.f32 %v10478_v24, %v2657_v15  ;;  %v2758_v15 = vmax.f32 %v2666_v30, 0.0 }
 0x4ff   : > { %v7692_v37 = vpop.f32.mrf.mxu0 }
 0x500   : > { %v2669_v56 = vadd.f32 %v7692_v37, %v10478_v24  ;;  %7874 = vxpose.xlu1.b32.cont [2/16] (narrow) %v7873_v40, 32  ;;  %7753 = vmatprep.mubr.msk.bf16.mxu1 %vm2959_vm13, %v2792_v19  ;;  %v2756_v48 = vmax.f32 %v2658_v46, 0.0  ;;  %v15164_v40 = vmax.f32 %v10853_v20, 0.0  ;;  %v15165_v46 = vmax.f32 %v10872_v36, 0.0 }
 0x501   : > { %v2660_v61 = vpop.f32.mrf.mxu0  ;;  %7754 = vmatmul.mubr.msk.bf16.gmra.mxu1 %vm2959_vm13, %v2793_v27 }
 0x502   : > { %v2661_v21 = vadd.f32 %v10478_v24, %v2660_v61  ;;  %v2759_v55 = vmax.f32 %v2669_v56, 0.0  ;;  %v7877_v11 = vpack.i.bf16 %v2755_v53, %v15164_v40  ;;  %v7879_v30 = vpack.i.bf16 %v2756_v48, %v15165_v46 }
 0x503   : > { %v7695_v41 = vpop.f32.mrf.mxu0  ;;  %v15166_v40 = vmax.f32 %v10883_v17, 0.0 }
 0x504   : > { %v2757_v47 = vmax.f32 %v2661_v21, 0.0  ;;  %7876 = vxpose.xlu1.b32.cont [3/16] (narrow) %v7875_v62, 32  ;;  %v2795_v5 = vpack.c.bf16 %v2759_v55, %v2758_v15  ;;  %v2682_v56 = vadd.f32 %v7695_v41, %v10478_v24 }
 0x505   : > { %v2673_v7 = vpop.f32.mrf.mxu0 }
 0x506   : > { %v2794_v19 = vpack.c.bf16 %v2757_v47, %v2756_v48  ;;  %v2674_v27 = vadd.f32 %v10478_v24, %v2673_v7  ;;  %v2762_v21 = vmax.f32 %v2682_v56, 0.0 }
 0x507   : > { %v7696_v37 = vpop.f32.mrf.mxu0 }
 0x508   : > { %v2685_v49 = vadd.f32 %v7696_v37, %v10478_v24  ;;  %7878 = vxpose.xlu1.b32.cont [4/16] (narrow) %v7877_v11, 32  ;;  %7757 = vmatprep.mubr.msk.bf16.mxu1 %vm2959_vm13, %v2794_v19  ;;  %v2760_v28 = vmax.f32 %v2674_v27, 0.0  ;;  %v7881_v11 = vpack.i.bf16 %v2757_v47, %v15166_v40 }
 0x509   : > { %v2676_v8 = vpop.f32.mrf.mxu0  ;;  %7758 = vmatmul.mubr.msk.bf16.gmra.mxu1 %vm2959_vm13, %v2795_v5 }
 0x50a   : > { %v2677_v20 = vadd.f32 %v10478_v24, %v2676_v8  ;;  %v2763_v53 = vmax.f32 %v2685_v49, 0.0  ;;  %v15167_v49 = vmax.f32 %v10879_v34, 0.0  ;;  %v15169_v34 = vmax.f32 %v10898_v59, 0.0 }
 0x50b   : > { %v7699_v61 = vpop.f32.mrf.mxu0  ;;  %v15175_v59 = vmax.f32 %v10935_v54, 0.0 }
 0x50c   : > { %v2761_v62 = vmax.f32 %v2677_v20, 0.0  ;;  %7880 = vxpose.xlu1.b32.cont [5/16] (narrow) %v7879_v30, 32  ;;  %v2797_v41 = vpack.c.bf16 %v2763_v53, %v2762_v21  ;;  %v2698_v48 = vadd.f32 %v7699_v61, %v10478_v24  ;;  %v7883_v56 = vpack.i.bf16 %v2758_v15, %v15167_v49 }
 0x50d   : > { %v2689_v7 = vpop.f32.mrf.mxu0  ;;  %v15168_v20 = vmax.f32 %v10875_v43, 0.0  ;;  %v7887_v15 = vpack.i.bf16 %v2760_v28, %v15169_v34  ;;  %v15170_v61 = vmov 0   ;;  %v15172_v43 = vmax.f32 %v10905_v44, 0.0 }
 0x50e   : > { %v2796_v19 = vpack.c.bf16 %v2761_v62, %v2760_v28  ;;  %v2690_v5 = vadd.f32 %v10478_v24, %v2689_v7  ;;  %v2766_v30 = vmax.f32 %v2698_v48, 0.0  ;;  %v15177_v44 = vmax.f32 %v10927_v57, 0.0 }
 0x50f   : > { %v7700_v37 = vpop.f32.mrf.mxu0  ;;  %v7885_v7 = vpack.i.bf16 %v2759_v55, %v15168_v20  ;;  %v7891_v55 = vpack.i.bf16 %v2762_v21, %v15172_v43  ;;  %v11037_v48 = vadd.f32 %v10675_v13, %v10722_v0  ;;  %v11049_v49 = vadd.f32 %v10675_v13, %v10736_v14 }
 0x510   : > { %v2701_v36 = vadd.f32 %v7700_v37, %v10478_v24  ;;  %7882 = vxpose.xlu1.b32.cont [6/16] (narrow) %v7881_v11, 32  ;;  %7761 = vmatprep.mubr.msk.bf16.mxu1 %vm2959_vm13, %v2796_v19  ;;  %v2764_v8 = vmax.f32 %v2690_v5, 0.0  ;;  %v15174_v5 = vmax.f32 %v10924_v39, 0.0  ;;  %v11013_v39 = vadd.f32 %v10675_v13, %v10694_v2 }
 0x511   : > { %v2692_v27 = vpop.f32.mrf.mxu0  ;;  %7762 = vmatmul.mubr.msk.bf16.gmra.mxu1 %vm2959_vm13, %v2797_v41  ;;  %v15173_v41 = vmax.f32 %v10901_v26, 0.0  ;;  %v11009_v26 = vadd.f32 %v10675_v13, %v10685_v38  ;;  %v11025_v38 = vadd.f32 %v10675_v13, %v10708_v60 }
 0x512   : > { %v2693_v17 = vadd.f32 %v10478_v24, %v2692_v27  ;;  %v2767_v47 = vmax.f32 %v2701_v36, 0.0  ;;  %v15171_v24 = vmax.f32 %v10909_v58, 0.0  ;;  %v7895_v36 = vpack.i.bf16 %v2764_v8, %v15174_v5 }
 0x513   : > { %v7893_v37 = vpack.i.bf16 %v2763_v53, %v15173_v41  ;;  %v15176_v58 = vmax.f32 %v10931_v4, 0.0  ;;  %v3349_v54 = vsel %vm3345_vm14, %v11009_v26, -inf  ;;  %v11019_v4 = vadd.f32 %v10687_v16, %v10675_v13 }
 0x514   : > { %v2765_v46 = vmax.f32 %v2693_v17, 0.0  ;;  %7884 = vxpose.xlu1.b32.cont [7/16] (narrow) %v7883_v56, 32  ;;  %v2799_v11 = vpack.c.bf16 %v2767_v47, %v2766_v30  ;;  %v7889_v19 = vpack.i.bf16 %v2761_v62, %v15171_v24  ;;  %v7901_v21 = vpack.i.bf16 %v2767_v47, %v15177_v44 }
 0x515   : > { %v7899_v62 = vpack.i.bf16 %v2766_v30, %v15176_v58  ;;  %v3358_v57 = vsel %vm3345_vm14, %v11013_v39, -inf  ;;  %v3364_v2 = vsel %vm3345_vm14, %v11019_v4, -inf  ;;  %v11031_v53 = vadd.f32 %v10701_v22, %v10675_v13 }
 0x516   : > { %v2798_v40 = vpack.c.bf16 %v2765_v46, %v2764_v8  ;;  %v7897_v28 = vpack.i.bf16 %v2765_v46, %v15175_v59  ;;  %v3370_v16 = vsel %vm3345_vm14, %v11025_v38, -inf  ;;  %v11043_v27 = vadd.f32 %v10715_v10, %v10675_v13 }
 0x517   : > { %v3376_v60 = vsel %vm3345_vm14, %v11031_v53, -inf  ;;  %v3382_v22 = vsel %vm3345_vm14, %v11037_v48, -inf  ;;  %v11055_v17 = vadd.f32 %v10729_v42, %v10675_v13  ;;  %v3394_v10 = vsel %vm3345_vm14, %v11049_v49, -inf }
 0x518   : > { %7886 = vxpose.xlu1.b32.cont [8/16] (narrow) %v7885_v7, 32  ;;  %7765 = vmatprep.mubr.msk.bf16.mxu1 %vm2959_vm13, %v2798_v40  ;;  %v3388_v0 = vsel %vm3345_vm14, %v11043_v27, -inf  ;;  %v11061_v8 = vadd.f32 %v10675_v13, %v10750_v1  ;;  %v11067_v30 = vadd.f32 %v10743_v33, %v10675_v13  ;;  %v11073_v24 = vadd.f32 %v10675_v13, %v10764_v50 }
 0x519   : > { %7766 = vmatmul.mubr.msk.bf16.gmra.mxu1 %vm2959_vm13, %v2799_v11  ;;  %v3400_v14 = vsel %vm3345_vm14, %v11055_v17, -inf  ;;  %v11084_v5 = vadd.f32 %v10757_v51, %v10675_v13  ;;  %v11093_v59 = vadd.f32 %v10675_v13, %v10787_v25  ;;  %v11102_v51 = vadd.f32 %v10780_v9, %v10675_v13 }
 0x51a   : > { %4133 = vmatprep.mubr.bf16.mxu1 %v15170_v61  ;;  %v3406_v42 = vsel %vm3345_vm14, %v11061_v8, -inf  ;;  %v3418_v50 = vsel %vm3345_vm14, %v11073_v24, -inf }
 0x51b   : > { %v3430_v58 = vsel %vm3345_vm14, %v11093_v59, -inf  ;;  %v3436_v25 = vsel %vm3345_vm14, %v11102_v51, -inf }
 0x51c   : > { %7888 = vxpose.xlu1.b32.cont [9/16] (narrow) %v7887_v15, 32 }
 0x520   : > { %7890 = vxpose.xlu1.b32.cont [10/16] (narrow) %v7889_v19, 32  ;;  %v3412_v19 = vsel %vm3345_vm14, %v11067_v30, -inf }
 0x524   : > { %7892 = vxpose.xlu1.b32.cont [11/16] (narrow) %v7891_v55, 32 }
 0x528   : > { %7894 = vxpose.xlu1.b32.cont [12/16] (narrow) %v7893_v37, 32 }
 0x52c   : > { %7896 = vxpose.xlu1.b32.cont [13/16] (narrow) %v7895_v36, 32 }
 0x530   : > { %7898 = vxpose.xlu1.b32.cont [14/16] (narrow) %v7897_v28, 32  ;;  %v3424_v28 = vsel %vm3345_vm14, %v11084_v5, -inf }
 0x534   : > { %7900 = vxpose.xlu1.b32.cont [15/16] (narrow) %v7899_v62, 32 }
 0x538   : > { %7902 = vxpose.xlu1.b32.end [16/16] (narrow) %v7901_v21, 32 }
 0x556   : > { %7923 = vset.pattern.permute.xlu1 %v15170_v61 }
 0x55f   : > { %3350 = vmax.xlane.f32.xlu1 %v3349_v54 }
 0x563   : > { %3359 = vmax.xlane.f32.xlu1 %v3358_v57 }
 0x567   : > { %3365 = vmax.xlane.f32.xlu1 %v3364_v2 }
 0x56b   : > { %3371 = vmax.xlane.f32.xlu1 %v3370_v16 }
 0x56f   : > { %3377 = vmax.xlane.f32.xlu1 %v3376_v60 }
 0x573   : > { %3383 = vmax.xlane.f32.xlu1 %v3382_v22 }
 0x577   : > { %3389 = vmax.xlane.f32.xlu1 %v3388_v0 }
 0x578   : > { %v7903_v56 = vpop.trf.xlu1 }
 0x579   : > { %v7907_v11 = vunpack.i.h.bf16 %v7903_v56  ;;  %v7904_v33 = vunpack.i.l.bf16 %v7903_v56 }
 0x57b   : > { %3395 = vmax.xlane.f32.xlu1 %v3394_v10 }
 0x57c   : > { %v7908_v47 = vpop.trf.xlu1 }
 0x57d   : > { %v7912_v40 = vunpack.i.h.bf16 %v7908_v47  ;;  %v7909_v43 = vunpack.i.l.bf16 %v7908_v47 }
 0x57f   : > { %3401 = vmax.xlane.f32.xlu1 %v3400_v14  ;;  %v2931_v37 = vpack.c.bf16 %v7912_v40, %v7907_v11  ;;  %v11089_v36 = vpack.c.bf16 %v7909_v43, %v7904_v33 }
 0x580   : > { %v7913_v46 = vpop.trf.xlu1 }
 0x581   : > { %v7914_v20 = vunpack.i.l.bf16 %v7913_v46  ;;  %v7917_v7 = vunpack.i.h.bf16 %v7913_v46  ;;  %15180 = vst [vmem:[#allocation14_spill] sm:$0xff] %v11089_v36 }
 0x583   : > { %3407 = vmax.xlane.f32.xlu1 %v3406_v42 }
 0x584   : > { %v7918_v34 = vpop.trf.xlu1 }
 0x585   : > { %v7919_v1 = vunpack.i.l.bf16 %v7918_v34  ;;  %v7922_v15 = vunpack.i.h.bf16 %v7918_v34 }
 0x587   : > { %3413 = vmax.xlane.f32.xlu1 %v3412_v19  ;;  %v11077_v55 = vpack.c.bf16 %v7922_v15, %v7917_v7  ;;  %v11079_v41 = vpack.c.bf16 %v7919_v1, %v7914_v20 }
 0x589   : > { %15178 = vst [vmem:[#allocation60_spill] sm:$0xff] %v11077_v55  ;;  %15179 = vst [vmem:[#allocation12_spill] sm:$0xff] %v11079_v41  ;;  %4113 = vmatprep.subr.bf16.mxu1 %v11077_v55 }
 0x58a   : > { %4114 = vmatpush1.bf16.msra.mxu1 %v11079_v41 }
 0x58b   : > { %3419 = vmax.xlane.f32.xlu1 %v3418_v50  ;;  %4115 = vmatprep.subr.bf16.mxu1 %v2931_v37 }
 0x58e   : > { %4116 = vmatpush1.bf16.msra.mxu1 %v11089_v36 }
 0x58f   : > { %3425 = vmax.xlane.f32.xlu1 %v3424_v28 }
 0x591   : > { %7495 = vmatmul.mubr.msk.bf16.vlgmr.msra.gmra.mxu1 %vm2959_vm13, %v10844_v45 }
 0x592   : > { %6977 = vmatprep.mubr.bf16.mxu1 %v2931_v37 }
 0x593   : > { %3431 = vmax.xlane.f32.xlu1 %v3430_v58 }
 0x597   : > { %3437 = vmax.xlane.f32.xlu1 %v3436_v25 }
 0x5a1   : > { %v7739_v62 = vpop.f32.mrf.mxu1 }
 0x5a2   : > { %v11112_v45 = vadd.f32 %v7739_v62, %v10675_v13 }
 0x5a3   : > { %v3218_v44 = vpop.f32.mrf.mxu1 }
 0x5a4   : > { %v11109_v21 = vadd.f32 %v10675_v13, %v3218_v44  ;;  %v3448_v0 = vsel %vm3345_vm14, %v11112_v45, -inf }
 0x5a5   : > { %v7740_v54 = vpop.f32.mrf.mxu1 }
 0x5a6   : > { %v3442_v9 = vsel %vm3345_vm14, %v11109_v21, -inf  ;;  %v11120_v60 = vadd.f32 %v7740_v54, %v10675_v13 }
 0x5a7   : > { %v3221_v57 = vpop.f32.mrf.mxu1  ;;  %3443 = vmax.xlane.f32.xlu1 %v3442_v9 }
 0x5a8   : > { %v11117_v2 = vadd.f32 %v10675_v13, %v3221_v57  ;;  %v3451_v46 = vsel %vm3345_vm14, %v11120_v60, -inf  ;;  %v3348_v57 = vpop.xlane.xlu0 %3347 }
 0x5a9   : > { %v7743_v16 = vpop.f32.mrf.mxu1 }
 0x5aa   : > { %v3445_v22 = vsel %vm3345_vm14, %v11117_v2, -inf  ;;  %v11130_v14 = vadd.f32 %v7743_v16, %v10675_v13 }
 0x5ab   : > { %v3234_v56 = vpop.f32.mrf.mxu1  ;;  %3446 = vmax.xlane.f32.xlu0 %v3445_v22  ;;  %3449 = vmax.xlane.f32.xlu1 %v3448_v0 }
 0x5ac   : > { %v11127_v10 = vadd.f32 %v10675_v13, %v3234_v56  ;;  %v3460_v1 = vsel %vm3345_vm14, %v11130_v14, -inf }
 0x5ad   : > { %v7744_v47 = vpop.f32.mrf.mxu1 }
 0x5ae   : > { %v3454_v42 = vsel %vm3345_vm14, %v11127_v10, -inf  ;;  %v11140_v11 = vadd.f32 %v7744_v47, %v10675_v13 }
 0x5af   : > { %v3237_v20 = vpop.f32.mrf.mxu1  ;;  %3452 = vmax.xlane.f32.xlu0 %v3451_v46  ;;  %3455 = vmax.xlane.f32.xlu1 %v3454_v42 }
 0x5b0   : > { %v11137_v7 = vadd.f32 %v10675_v13, %v3237_v20  ;;  %v3463_v37 = vsel %vm3345_vm14, %v11140_v11, -inf }
 0x5b1   : > { %v7747_v40 = vpop.f32.mrf.mxu1 }
 0x5b2   : > { %v3457_v34 = vsel %vm3345_vm14, %v11137_v7, -inf  ;;  %v11150_v43 = vadd.f32 %v7747_v40, %v10675_v13  ;;  %v3354_v40 = vpop.xlane.xlu0 %3353 }
 0x5b3   : > { %v3250_v15 = vpop.f32.mrf.mxu1  ;;  %3458 = vmax.xlane.f32.xlu0 %v3457_v34  ;;  %3461 = vmax.xlane.f32.xlu1 %v3460_v1 }
 0x5b4   : > { %v11147_v19 = vadd.f32 %v10675_v13, %v3250_v15  ;;  %v3472_v54 = vsel %vm3345_vm14, %v11150_v43, -inf }
 0x5b5   : > { %v7748_v33 = vpop.f32.mrf.mxu1 }
 0x5b6   : > { %v3466_v50 = vsel %vm3345_vm14, %v11147_v19, -inf  ;;  %v11160_v62 = vadd.f32 %v7748_v33, %v10675_v13 }
 0x5b7   : > { %v3253_v28 = vpop.f32.mrf.mxu1  ;;  %3464 = vmax.xlane.f32.xlu0 %v3463_v37  ;;  %3467 = vmax.xlane.f32.xlu1 %v3466_v50 }
 0x5b8   : > { %v11157_v58 = vadd.f32 %v10675_v13, %v3253_v28  ;;  %v3475_v56 = vsel %vm3345_vm14, %v11160_v62, -inf }
 0x5b9   : > { %v7751_v25 = vpop.f32.mrf.mxu1 }
 0x5ba   : > { %v3469_v44 = vsel %vm3345_vm14, %v11157_v58, -inf  ;;  %v11170_v0 = vadd.f32 %v7751_v25, %v10675_v13 }
 0x5bb   : > { %v3266_v9 = vpop.f32.mrf.mxu1  ;;  %3470 = vmax.xlane.f32.xlu0 %v3469_v44  ;;  %3473 = vmax.xlane.f32.xlu1 %v3472_v54 }
 0x5bc   : > { %v11167_v16 = vadd.f32 %v10675_v13, %v3266_v9  ;;  %v3484_v15 = vsel %vm3345_vm14, %v11170_v0, -inf  ;;  %v11196_v9 = vpop.xlane.xlu0 %3356 }
 0x5bd   : > { %v7752_v22 = vpop.f32.mrf.mxu1 }
 0x5be   : > { %v3478_v47 = vsel %vm3345_vm14, %v11167_v16, -inf  ;;  %v11180_v34 = vadd.f32 %v7752_v22, %v10675_v13 }
 0x5bf   : > { %v3269_v46 = vpop.f32.mrf.mxu1  ;;  %3476 = vmax.xlane.f32.xlu0 %v3475_v56  ;;  %3479 = vmax.xlane.f32.xlu1 %v3478_v47 }
 0x5c0   : > { %v11177_v42 = vadd.f32 %v10675_v13, %v3269_v46  ;;  %v3487_v25 = vsel %vm3345_vm14, %v11180_v34, -inf }
 0x5c1   : > { %v7755_v20 = vpop.f32.mrf.mxu1 }
 0x5c2   : > { %v3481_v1 = vsel %vm3345_vm14, %v11177_v42, -inf  ;;  %v11190_v28 = vadd.f32 %v7755_v20, %v10675_v13 }
 0x5c3   : > { %v3282_v33 = vpop.f32.mrf.mxu1  ;;  %3482 = vmax.xlane.f32.xlu0 %v3481_v1  ;;  %3485 = vmax.xlane.f32.xlu1 %v3484_v15 }
 0x5c4   : > { %v11187_v37 = vadd.f32 %v10675_v13, %v3282_v33  ;;  %v3496_v20 = vsel %vm3345_vm14, %v11190_v28, -inf  ;;  %v3538_v33 = vsub.f32 %v10678_v12, %v3348_v57  ;;  %v3540_v57 = vsub.f32 %v10681_v3, %v3354_v40 }
 0x5c5   : > { %v7756_v50 = vpop.f32.mrf.mxu1 }
 0x5c6   : > { %v3490_v44 = vsel %vm3345_vm14, %v11187_v37, -inf  ;;  %v11202_v47 = vadd.f32 %v7756_v50, %v10675_v13  ;;  %v3606_v3 = vmul.f32 1.442695, %v3540_v57 }
 0x5c7   : > { %v3285_v54 = vpop.f32.mrf.mxu1  ;;  %3488 = vmax.xlane.f32.xlu0 %v3487_v25  ;;  %3491 = vmax.xlane.f32.xlu1 %v3490_v44  ;;  %v11212_v44 = vpop.xlane.xlu0 %3362 }
 0x5c8   : > { %v11199_v22 = vadd.f32 %v10675_v13, %v3285_v54  ;;  %v3499_v54 = vsel %vm3345_vm14, %v11202_v47, -inf }
 0x5c9   : > { %v7759_v56 = vpop.f32.mrf.mxu1 }
 0x5ca   : > { %v3493_v46 = vsel %vm3345_vm14, %v11199_v22, -inf  ;;  %v11215_v50 = vadd.f32 %v7759_v56, %v10675_v13 }
 0x5cb   : > { %v3298_v1 = vpop.f32.mrf.mxu1  ;;  %3494 = vmax.xlane.f32.xlu0 %v3493_v46  ;;  %3497 = vmax.xlane.f32.xlu1 %v3496_v20  ;;  %v3602_v20 = vmul.f32 1.442695, %v3538_v33 }
 0x5cc   : > { %v11209_v15 = vadd.f32 %v10675_v13, %v3298_v1  ;;  %15181 = vst [vmem:[#allocation31_spill] sm:$0xff] %v11215_v50  ;;  %v3508_v36 = vsel %vm3345_vm14, %v11215_v50, -inf }
 0x5cd   : > { %v7760_v25 = vpop.f32.mrf.mxu1  ;;  %8079 = vpow2.f32 %v3602_v20 }
 0x5ce   : > { %v3502_v41 = vsel %vm3345_vm14, %v11209_v15, -inf  ;;  %v11226_v1 = vadd.f32 %v7760_v25, %v10675_v13  ;;  %8081 = vpow2.f32 %v3606_v3 }
 0x5cf   : > { %v3301_v55 = vpop.f32.mrf.mxu1  ;;  %3500 = vmax.xlane.f32.xlu0 %v3499_v54  ;;  %3503 = vmax.xlane.f32.xlu1 %v3502_v41  ;;  %v11232_v41 = vpop.xlane.xlu0 %3368 }
 0x5d0   : > { %v11222_v46 = vadd.f32 %v10675_v13, %v3301_v55  ;;  %15183 = vst [vmem:[#allocation26_spill] sm:$0xff] %v11226_v1  ;;  %v3511_v25 = vsel %vm3345_vm14, %v11226_v1, -inf }
 0x5d1   : > { %v7763_v12 = vpop.f32.mrf.mxu1 }
 0x5d2   : > { %15182 = vst [vmem:[#allocation32_spill] sm:$0xff] %v11222_v46  ;;  %v3505_v56 = vsel %vm3345_vm14, %v11222_v46, -inf  ;;  %v11238_v40 = vadd.f32 %v7763_v12, %v10675_v13 }
 0x5d3   : > { %v3314_v61 = vpop.f32.mrf.mxu1  ;;  %3506 = vmax.xlane.f32.xlu0 %v3505_v56  ;;  %3509 = vmax.xlane.f32.xlu1 %v3508_v36  ;;  %v3375_v20 = vpop.xlane.xlu0 %3374 }
 0x5d4   : > { %v11235_v55 = vadd.f32 %v10675_v13, %v3314_v61  ;;  %15185 = vst [vmem:[#allocation62_spill] sm:$0xff] %v11238_v40  ;;  %v3520_v56 = vsel %vm3345_vm14, %v11238_v40, -inf }
 0x5d5   : > { %v7764_v33 = vpop.f32.mrf.mxu1 }
 0x5d6   : > { %15184 = vst [vmem:[#allocation102_spill] sm:$0xff] %v11235_v55  ;;  %v3514_v54 = vsel %vm3345_vm14, %v11235_v55, -inf  ;;  %v11248_v57 = vadd.f32 %v7764_v33, %v10675_v13 }
 0x5d7   : > { %v3317_v50 = vpop.f32.mrf.mxu1  ;;  %3512 = vmax.xlane.f32.xlu0 %v3511_v25  ;;  %3515 = vmax.xlane.f32.xlu1 %v3514_v54  ;;  %v3381_v40 = vpop.xlane.xlu0 %3380 }
 0x5d8   : > { %v11245_v36 = vadd.f32 %v10675_v13, %v3317_v50  ;;  %15187 = vst [vmem:[#allocation34_spill] sm:$0xff] %v11248_v57  ;;  %v3523_v33 = vsel %vm3345_vm14, %v11248_v57, -inf }
 0x5d9   : > { %v7767_v61 = vpop.f32.mrf.mxu1 }
 0x5da   : > { %15186 = vst [vmem:[#allocation16_spill] sm:$0xff] %v11245_v36  ;;  %v3517_v12 = vsel %vm3345_vm14, %v11245_v36, -inf  ;;  %v11258_v54 = vadd.f32 %v7767_v61, %v10675_v13 }
 0x5db   : > { %v3330_v1 = vpop.f32.mrf.mxu1  ;;  %3518 = vmax.xlane.f32.xlu0 %v3517_v12  ;;  %3521 = vmax.xlane.f32.xlu1 %v3520_v56  ;;  %v11267_v56 = vpop.eup %8079 }
 0x5dc   : > { %v11255_v25 = vadd.f32 %v10675_v13, %v3330_v1  ;;  %15189 = vst [vmem:[#allocation43_spill] sm:$0xff] %v11258_v54  ;;  %15191 = vst [vmem:[#allocation83_spill] sm:$0xff] %v11267_v56  ;;  %v3532_v57 = vsel %vm3345_vm14, %v11258_v54, -inf }
 0x5dd   : > { %v7768_v50 = vpop.f32.mrf.mxu1 }
 0x5de   : > { %15188 = vst [vmem:[#allocation104_spill] sm:$0xff] %v11255_v25  ;;  %v3526_v3 = vsel %vm3345_vm14, %v11255_v25, -inf  ;;  %v11270_v1 = vadd.f32 %v7768_v50, %v10675_v13  ;;  %v3387_v25 = vpop.xlane.xlu0 %3386 }
 0x5df   : > { %v3333_v36 = vpop.f32.mrf.mxu1  ;;  %3524 = vmax.xlane.f32.xlu0 %v3523_v33  ;;  %3527 = vmax.xlane.f32.xlu1 %v3526_v3  ;;  %v11280_v3 = vpop.eup %8081 }
 0x5e0   : > { %v11265_v12 = vadd.f32 %v10675_v13, %v3333_v36  ;;  %15192 = vst [vmem:[#allocation61_spill] sm:$0xff] %v11270_v1  ;;  %v3535_v33 = vsel %vm3345_vm14, %v11270_v1, -inf  ;;  %v3730_v36 = vsel %vm3345_vm14, %v11267_v56, 0.0  ;;  %v3541_v13 = vsub.f32 %v10690_v31, %v11196_v9 }
 0x5e1   : > { %v3543_v1 = vsub.f32 %v10699_v63, %v11212_v44  ;;  %v3545_v9 = vsub.f32 %v10704_v29, %v11232_v41  ;;  %v3547_v44 = vsub.f32 %v10713_v52, %v3375_v20 }
 0x5e2   : > { %15190 = vst [vmem:[#allocation48_spill] sm:$0xff] %v11265_v12  ;;  %v3529_v61 = vsel %vm3345_vm14, %v11265_v12, -inf  ;;  %v3393_v56 = vpop.xlane.xlu0 %3392 }
 0x5e3   : > { %3530 = vmax.xlane.f32.xlu0 %v3529_v61  ;;  %3533 = vmax.xlane.f32.xlu1 %v3532_v57  ;;  %v3736_v57 = vsel %vm3345_vm14, %v11280_v3, 0.0  ;;  %v3608_v61 = vmul.f32 1.442695, %v3541_v13  ;;  %v3612_v31 = vmul.f32 1.442695, %v3543_v1 }
 0x5e4   : > { %v3616_v63 = vmul.f32 1.442695, %v3545_v9  ;;  %v3553_v9 = vsub.f32 %v10732_v6, %v3393_v56 }
 0x5e6   : > { %v3399_v13 = vpop.xlane.xlu0 %3398  ;;  %v3632_v6 = vmul.f32 1.442695, %v3553_v9 }
 0x5e7   : > { %3536 = vmax.xlane.f32.xlu0 %v3535_v33  ;;  %3731 = vadd.xlane.f32.xlu1 %v3730_v36  ;;  %v3555_v56 = vsub.f32 %v10741_v35, %v3399_v13 }
 0x5e8   : > { %v3351_v50 = vpop.xlane.xlu1 %3350 }
 0x5e9   : > { %v3539_v12 = vsub.f32 %v11009_v26, %v3351_v50  ;;  %v3636_v35 = vmul.f32 1.442695, %v3555_v56  ;;  %v15194_v56 = vld [vmem:[#allocation42_spill] sm:$0xff] }
 0x5eb   : > { %v3604_v54 = vmul.f32 1.442695, %v3539_v12  ;;  %3737 = vadd.xlane.f32.xlu1 %v3736_v57  ;;  %v3551_v57 = vsub.f32 %v10727_v18, %v3387_v25 }
 0x5ec   : > { %v3360_v55 = vpop.xlane.xlu1 %3359 }
 0x5ed   : > { %8083 = vpow2.f32 %v3604_v54  ;;  %v3542_v46 = vsub.f32 %v11013_v39, %v3360_v55  ;;  %v3620_v55 = vmul.f32 1.442695, %v3547_v44  ;;  %v3549_v54 = vsub.f32 %v10718_v32, %v3381_v40 }
 0x5ee   : > { %8085 = vpow2.f32 %v3608_v61 }
 0x5ef   : > { %v3610_v26 = vmul.f32 1.442695, %v3542_v46  ;;  %v3405_v46 = vpop.xlane.xlu0 %3404  ;;  %v3624_v52 = vmul.f32 1.442695, %v3549_v54 }
 0x5f0   : > { %v3366_v33 = vpop.xlane.xlu1 %3365  ;;  %v3557_v13 = vsub.f32 %v10746_v23, %v3405_v46  ;;  %v15193_v23 = vld [vmem:[#allocation24_spill] sm:$0xff] }
 0x5f1   : > { %8087 = vpow2.f32 %v3610_v26  ;;  %v3544_v36 = vsub.f32 %v11019_v4, %v3366_v33 }
 0x5f2   : > { %8089 = vpow2.f32 %v3612_v31 }
 0x5f3   : > { %v3614_v12 = vmul.f32 1.442695, %v3544_v36  ;;  %v3411_v26 = vpop.xlane.xlu0 %3410 }
 0x5f4   : > { %v3372_v50 = vpop.xlane.xlu1 %3371  ;;  %v3559_v46 = vsub.f32 %v15193_v23, %v3411_v26 }
 0x5f5   : > { %8091 = vpow2.f32 %v3614_v12  ;;  %v3546_v39 = vsub.f32 %v11025_v38, %v3372_v50 }
 0x5f6   : > { %8093 = vpow2.f32 %v3616_v63  ;;  %v3644_v26 = vmul.f32 1.442695, %v3559_v46 }
 0x5f7   : > { %v3618_v29 = vmul.f32 1.442695, %v3546_v39  ;;  %v3417_v54 = vpop.xlane.xlu0 %3416 }
 0x5f8   : > { %v3378_v41 = vpop.xlane.xlu1 %3377 }
 0x5f9   : > { %8095 = vpow2.f32 %v3618_v29  ;;  %v3548_v4 = vsub.f32 %v11031_v53, %v3378_v41  ;;  %v3628_v53 = vmul.f32 1.442695, %v3551_v57 }
 0x5fa   : > { %v11297_v1 = vpop.eup %8083  ;;  %8097 = vpow2.f32 %v3620_v55 }
 0x5fb   : > { %v3622_v20 = vmul.f32 1.442695, %v3548_v4  ;;  %v3733_v38 = vsel %vm3345_vm14, %v11297_v1, 0.0  ;;  %v11302_v61 = vpop.eup %8085 }
 0x5fc   : > { %v3384_v31 = vpop.xlane.xlu1 %3383  ;;  %3734 = vadd.xlane.f32.xlu0 %v3733_v38  ;;  %v3739_v25 = vsel %vm3345_vm14, %v11302_v61, 0.0 }
 0x5fd   : > { %8099 = vpow2.f32 %v3622_v20  ;;  %v3550_v32 = vsub.f32 %v11037_v48, %v3384_v31 }
 0x5fe   : > { %v11305_v40 = vpop.eup %8087  ;;  %8101 = vpow2.f32 %v3624_v52 }
 0x5ff   : > { %v3626_v18 = vmul.f32 1.442695, %v3550_v32  ;;  %v3742_v33 = vsel %vm3345_vm14, %v11305_v40, 0.0  ;;  %v11312_v36 = vpop.eup %8089  ;;  %v3640_v32 = vmul.f32 1.442695, %v3557_v13 }
 0x600   : > { %v3390_v63 = vpop.xlane.xlu1 %3389  ;;  %3740 = vadd.xlane.f32.xlu0 %v3739_v25  ;;  %3743 = vadd.xlane.f32.xlu1 %v3742_v33  ;;  %v3745_v50 = vsel %vm3345_vm14, %v11312_v36, 0.0 }
 0x601   : > { %8103 = vpow2.f32 %v3626_v18  ;;  %v3552_v48 = vsub.f32 %v11043_v27, %v3390_v63 }
 0x602   : > { %v11315_v44 = vpop.eup %8091  ;;  %8105 = vpow2.f32 %v3628_v53  ;;  %v3423_v53 = vpop.xlane.xlu0 %3422 }
 0x603   : > { %v3630_v12 = vmul.f32 1.442695, %v3552_v48  ;;  %v3748_v39 = vsel %vm3345_vm14, %v11315_v44, 0.0  ;;  %v11322_v55 = vpop.eup %8093 }
 0x604   : > { %v3396_v29 = vpop.xlane.xlu1 %3395  ;;  %3746 = vadd.xlane.f32.xlu0 %v3745_v50  ;;  %3749 = vadd.xlane.f32.xlu1 %v3748_v39  ;;  %v3751_v57 = vsel %vm3345_vm14, %v11322_v55, 0.0 }
 0x605   : > { %8107 = vpow2.f32 %v3630_v12  ;;  %v3554_v27 = vsub.f32 %v11049_v49, %v3396_v29  ;;  %v3561_v12 = vsub.f32 %v15194_v56, %v3417_v54 }
 0x606   : > { %v11325_v41 = vpop.eup %8095  ;;  %8109 = vpow2.f32 %v3632_v6 }
 0x607   : > { %v3634_v4 = vmul.f32 1.442695, %v3554_v27  ;;  %v3754_v52 = vsel %vm3345_vm14, %v11325_v41, 0.0  ;;  %v11332_v20 = vpop.eup %8097  ;;  %v3429_v27 = vpop.xlane.xlu0 %3428 }
 0x608   : > { %v3402_v38 = vpop.xlane.xlu1 %3401  ;;  %3752 = vadd.xlane.f32.xlu0 %v3751_v57  ;;  %3755 = vadd.xlane.f32.xlu1 %v3754_v52  ;;  %v3757_v18 = vsel %vm3345_vm14, %v11332_v20, 0.0  ;;  %v3648_v57 = vmul.f32 1.442695, %v3561_v12  ;;  %v15195_v52 = vld [vmem:[#allocation45_spill] sm:$0xff] }
 0x609   : > { %8111 = vpow2.f32 %v3634_v4  ;;  %v3556_v49 = vsub.f32 %v11055_v17, %v3402_v38  ;;  %v3563_v38 = vsub.f32 %v15195_v52, %v3423_v53 }
 0x60a   : > { %v11335_v31 = vpop.eup %8099  ;;  %8113 = vpow2.f32 %v3636_v35 }
 0x60b   : > { %v3638_v9 = vmul.f32 1.442695, %v3556_v49  ;;  %v3760_v25 = vsel %vm3345_vm14, %v11335_v31, 0.0  ;;  %v11342_v33 = vpop.eup %8101  ;;  %v3652_v53 = vmul.f32 1.442695, %v3563_v38 }
 0x60c   : > { %v3408_v63 = vpop.xlane.xlu1 %3407  ;;  %3758 = vadd.xlane.f32.xlu0 %v3757_v18  ;;  %3761 = vadd.xlane.f32.xlu1 %v3760_v25  ;;  %v3763_v39 = vsel %vm3345_vm14, %v11342_v33, 0.0  ;;  %v3435_v25 = vpop.xlane.xlu0 %3434 }
 0x60d   : > { %8115 = vpow2.f32 %v3638_v9  ;;  %v3558_v17 = vsub.f32 %v11061_v8, %v3408_v63  ;;  %v15196_v9 = vld [vmem:[#allocation30_spill] sm:$0xff] }
 0x60e   : > { %v11345_v48 = vpop.eup %8103  ;;  %8117 = vpow2.f32 %v3640_v32  ;;  %v3565_v18 = vsub.f32 %v15196_v9, %v3429_v27  ;;  %v15198_v9 = vld [vmem:[#allocation59_spill] sm:$0xff] }
 0x60f   : > { %v11347_v6 = vpop.eup %8105  ;;  %v3642_v50 = vmul.f32 1.442695, %v3558_v17  ;;  %v3766_v29 = vsel %vm3345_vm14, %v11345_v48, 0.0 }
 0x610   : > { %v3414_v35 = vpop.xlane.xlu1 %3413  ;;  %3764 = vadd.xlane.f32.xlu0 %v3763_v39  ;;  %3767 = vadd.xlane.f32.xlu1 %v3766_v29  ;;  %v3769_v54 = vsel %vm3345_vm14, %v11347_v6, 0.0  ;;  %v3656_v39 = vmul.f32 1.442695, %v3565_v18  ;;  %v3441_v52 = vpop.xlane.xlu0 %3440 }
 0x611   : > { %8119 = vpow2.f32 %v3642_v50  ;;  %v3560_v8 = vsub.f32 %v11067_v30, %v3414_v35  ;;  %v15197_v35 = vld [vmem:[#allocation41_spill] sm:$0xff]  ;;  %v3569_v18 = vsub.f32 %v15198_v9, %v3441_v52 }
 0x612   : > { %v11355_v13 = vpop.eup %8107  ;;  %8121 = vpow2.f32 %v3644_v26 }
 0x613   : > { %v11359_v4 = vpop.eup %8109  ;;  %v3646_v49 = vmul.f32 1.442695, %v3560_v8  ;;  %v3772_v32 = vsel %vm3345_vm14, %v11355_v13, 0.0  ;;  %v3567_v8 = vsub.f32 %v15197_v35, %v3435_v25 }
 0x614   : > { %v3420_v23 = vpop.xlane.xlu1 %3419  ;;  %3770 = vadd.xlane.f32.xlu0 %v3769_v54  ;;  %3773 = vadd.xlane.f32.xlu1 %v3772_v32  ;;  %v3775_v63 = vsel %vm3345_vm14, %v11359_v4, 0.0 }
 0x615   : > { %8123 = vpow2.f32 %v3646_v49  ;;  %v3562_v30 = vsub.f32 %v11073_v24, %v3420_v23 }
 0x616   : > { %v11365_v46 = vpop.eup %8111  ;;  %8125 = vpow2.f32 %v3648_v57 }
 0x617   : > { %v11370_v17 = vpop.eup %8113  ;;  %v3650_v26 = vmul.f32 1.442695, %v3562_v30  ;;  %v3778_v56 = vsel %vm3345_vm14, %v11365_v46, 0.0  ;;  %v3660_v30 = vmul.f32 1.442695, %v3567_v8 }
 0x618   : > { %v3426_v12 = vpop.xlane.xlu1 %3425  ;;  %3776 = vadd.xlane.f32.xlu0 %v3775_v63  ;;  %3779 = vadd.xlane.f32.xlu1 %v3778_v56  ;;  %v3781_v29 = vsel %vm3345_vm14, %v11370_v17, 0.0 }
 0x619   : > { %8127 = vpow2.f32 %v3650_v26  ;;  %v3564_v24 = vsub.f32 %v11084_v5, %v3426_v12  ;;  %v3664_v12 = vmul.f32 1.442695, %v3569_v18 }
 0x61a   : > { %v11375_v50 = vpop.eup %8115  ;;  %8129 = vpow2.f32 %v3652_v53 }
 0x61b   : > { %v11379_v27 = vpop.eup %8117  ;;  %v3654_v54 = vmul.f32 1.442695, %v3564_v24  ;;  %v3784_v57 = vsel %vm3345_vm14, %v11375_v50, 0.0 }
 0x61c   : > { %3782 = vadd.xlane.f32.xlu0 %v3781_v29  ;;  %3785 = vadd.xlane.f32.xlu1 %v3784_v57  ;;  %v3432_v38 = vpop.xlane.xlu1 %3431  ;;  %v3787_v32 = vsel %vm3345_vm14, %v11379_v27, 0.0 }
 0x61d   : > { %8131 = vpow2.f32 %v3654_v54  ;;  %v3566_v5 = vsub.f32 %v11093_v59, %v3432_v38 }
 0x61e   : > { %v11385_v49 = vpop.eup %8119  ;;  %8133 = vpow2.f32 %v3656_v39 }
 0x61f   : > { %v11389_v23 = vpop.eup %8121  ;;  %v3658_v25 = vmul.f32 1.442695, %v3566_v5  ;;  %v3790_v63 = vsel %vm3345_vm14, %v11385_v49, 0.0 }
 0x620   : > { %3788 = vadd.xlane.f32.xlu0 %v3787_v32  ;;  %3791 = vadd.xlane.f32.xlu1 %v3790_v63  ;;  %v3438_v53 = vpop.xlane.xlu1 %3437  ;;  %v3793_v56 = vsel %vm3345_vm14, %v11389_v23, 0.0 }
 0x621   : > { %8135 = vpow2.f32 %v3658_v25  ;;  %v3568_v59 = vsub.f32 %v11102_v51, %v3438_v53 }
 0x622   : > { %v11395_v26 = vpop.eup %8123  ;;  %8137 = vpow2.f32 %v3660_v30 }
 0x623   : > { %v3662_v24 = vmul.f32 1.442695, %v3568_v59  ;;  %v3796_v39 = vsel %vm3345_vm14, %v11395_v26, 0.0  ;;  %v11401_v29 = vpop.eup %8125 }
 0x624   : > { %3794 = vadd.xlane.f32.xlu0 %v3793_v56  ;;  %3797 = vadd.xlane.f32.xlu1 %v3796_v39  ;;  %v3799_v51 = vsel %vm3345_vm14, %v11401_v29, 0.0 }
 0x625   : > { %8139 = vpow2.f32 %v3662_v24 }
 0x626   : > { %v11403_v35 = vpop.eup %8127  ;;  %8141 = vpow2.f32 %v3664_v12 }
 0x627   : > { %v3802_v8 = vsel %vm3345_vm14, %v11403_v35, 0.0  ;;  %v11409_v54 = vpop.eup %8129 }
 0x628   : > { %3800 = vadd.xlane.f32.xlu0 %v3799_v51  ;;  %3803 = vadd.xlane.f32.xlu1 %v3802_v8  ;;  %v3805_v38 = vsel %vm3345_vm14, %v11409_v54, 0.0 }
 0x62a   : > { %v11411_v57 = vpop.eup %8131 }
 0x62b   : > { %v11413_v52 = vpop.eup %8133  ;;  %v3808_v5 = vsel %vm3345_vm14, %v11411_v57, 0.0 }
 0x62c   : > { %3806 = vadd.xlane.f32.xlu0 %v3805_v38  ;;  %3809 = vadd.xlane.f32.xlu1 %v3808_v5  ;;  %v3811_v30 = vsel %vm3345_vm14, %v11413_v52, 0.0 }
 0x62e   : > { %v11419_v32 = vpop.eup %8135 }
 0x62f   : > { %v3814_v9 = vsel %vm3345_vm14, %v11419_v32, 0.0  ;;  %v11425_v18 = vpop.eup %8137 }
 0x630   : > { %3812 = vadd.xlane.f32.xlu0 %v3811_v30  ;;  %3815 = vadd.xlane.f32.xlu1 %v3814_v9  ;;  %v3444_v25 = vpop.xlane.xlu1 %3443  ;;  %v3817_v56 = vsel %vm3345_vm14, %v11425_v18, 0.0 }
 0x631   : > { %v3570_v63 = vsub.f32 %v11109_v21, %v3444_v25 }
 0x632   : > { %v11428_v53 = vpop.eup %8139 }
 0x633   : > { %15199 = vst [vmem:[#allocation64_spill] sm:$0xff] %v11428_v53  ;;  %v3666_v59 = vmul.f32 1.442695, %v3570_v63  ;;  %v3820_v12 = vsel %vm3345_vm14, %v11428_v53, 0.0  ;;  %v11434_v24 = vpop.eup %8141 }
 0x634   : > { %3818 = vadd.xlane.f32.xlu0 %v3817_v56  ;;  %v3447_v39 = vpop.xlane.xlu0 %3446  ;;  %3821 = vadd.xlane.f32.xlu1 %v3820_v12  ;;  %v3450_v51 = vpop.xlane.xlu1 %3449  ;;  %v3823_v30 = vsel %vm3345_vm14, %v11434_v24, 0.0 }
 0x635   : > { %8143 = vpow2.f32 %v3666_v59  ;;  %v3571_v8 = vsub.f32 %v11117_v2, %v3447_v39  ;;  %v3572_v21 = vsub.f32 %v11112_v45, %v3450_v51 }
 0x637   : > { %v3668_v38 = vmul.f32 1.442695, %v3571_v8  ;;  %v3670_v5 = vmul.f32 1.442695, %v3572_v21 }
 0x638   : > { %3824 = vadd.xlane.f32.xlu0 %v3823_v30  ;;  %v3453_v9 = vpop.xlane.xlu0 %3452  ;;  %v3456_v25 = vpop.xlane.xlu1 %3455 }
 0x639   : > { %8145 = vpow2.f32 %v3668_v38  ;;  %v3573_v63 = vsub.f32 %v11120_v60, %v3453_v9  ;;  %v3574_v56 = vsub.f32 %v11127_v10, %v3456_v25 }
 0x63a   : > { %8147 = vpow2.f32 %v3670_v5 }
 0x63b   : > { %v3672_v12 = vmul.f32 1.442695, %v3573_v63  ;;  %v3674_v59 = vmul.f32 1.442695, %v3574_v56 }
 0x63c   : > { %v3459_v53 = vpop.xlane.xlu0 %3458  ;;  %v3462_v2 = vpop.xlane.xlu1 %3461 }
 0x63d   : > { %8149 = vpow2.f32 %v3672_v12  ;;  %v3575_v45 = vsub.f32 %v11137_v7, %v3459_v53  ;;  %v3576_v39 = vsub.f32 %v11130_v14, %v3462_v2 }
 0x63e   : > { %8151 = vpow2.f32 %v3674_v59 }
 0x63f   : > { %v3676_v51 = vmul.f32 1.442695, %v3575_v45  ;;  %v3678_v8 = vmul.f32 1.442695, %v3576_v39 }
 0x640   : > { %v3465_v21 = vpop.xlane.xlu0 %3464  ;;  %v3468_v30 = vpop.xlane.xlu1 %3467 }
 0x641   : > { %8153 = vpow2.f32 %v3676_v51  ;;  %v3577_v60 = vsub.f32 %v11140_v11, %v3465_v21  ;;  %v3578_v10 = vsub.f32 %v11147_v19, %v3468_v30 }
 0x642   : > { %v11446_v38 = vpop.eup %8143  ;;  %8155 = vpow2.f32 %v3678_v8 }
 0x643   : > { %v3680_v5 = vmul.f32 1.442695, %v3577_v60  ;;  %v3682_v9 = vmul.f32 1.442695, %v3578_v10  ;;  %v3826_v7 = vsel %vm3345_vm14, %v11446_v38, 0.0 }
 0x644   : > { %v3471_v53 = vpop.xlane.xlu0 %3470  ;;  %3827 = vadd.xlane.f32.xlu1 %v3826_v7  ;;  %v3474_v14 = vpop.xlane.xlu1 %3473 }
 0x645   : > { %8157 = vpow2.f32 %v3680_v5  ;;  %v3579_v25 = vsub.f32 %v11157_v58, %v3471_v53  ;;  %v3580_v63 = vsub.f32 %v11150_v43, %v3474_v14 }
 0x646   : > { %v11452_v56 = vpop.eup %8145  ;;  %8159 = vpow2.f32 %v3682_v9 }
 0x647   : > { %v11454_v11 = vpop.eup %8147  ;;  %v3684_v19 = vmul.f32 1.442695, %v3579_v25  ;;  %v3686_v12 = vmul.f32 1.442695, %v3580_v63  ;;  %v3829_v59 = vsel %vm3345_vm14, %v11452_v56, 0.0 }
 0x648   : > { %3830 = vadd.xlane.f32.xlu0 %v3829_v59  ;;  %v3477_v2 = vpop.xlane.xlu0 %3476  ;;  %v3832_v45 = vsel %vm3345_vm14, %v11454_v11, 0.0  ;;  %v3480_v39 = vpop.xlane.xlu1 %3479 }
 0x649   : > { %8161 = vpow2.f32 %v3684_v19  ;;  %v3581_v58 = vsub.f32 %v11160_v62, %v3477_v2  ;;  %3833 = vadd.xlane.f32.xlu1 %v3832_v45  ;;  %v3582_v43 = vsub.f32 %v11167_v16, %v3480_v39 }
 0x64a   : > { %v11462_v51 = vpop.eup %8149  ;;  %8163 = vpow2.f32 %v3686_v12 }
 0x64b   : > { %v11464_v8 = vpop.eup %8151  ;;  %v3688_v21 = vmul.f32 1.442695, %v3581_v58  ;;  %v3690_v30 = vmul.f32 1.442695, %v3582_v43  ;;  %v3835_v60 = vsel %vm3345_vm14, %v11462_v51, 0.0 }
 0x64c   : > { %3836 = vadd.xlane.f32.xlu0 %v3835_v60  ;;  %v3483_v10 = vpop.xlane.xlu0 %3482  ;;  %v3838_v5 = vsel %vm3345_vm14, %v11464_v8, 0.0  ;;  %v3486_v9 = vpop.xlane.xlu1 %3485 }
 0x64d   : > { %8165 = vpow2.f32 %v3688_v21  ;;  %v3583_v62 = vsub.f32 %v11177_v42, %v3483_v10  ;;  %3839 = vadd.xlane.f32.xlu1 %v3838_v5  ;;  %v3584_v16 = vsub.f32 %v11170_v0, %v3486_v9 }
 0x64e   : > { %v11472_v7 = vpop.eup %8153  ;;  %8167 = vpow2.f32 %v3690_v30 }
 0x64f   : > { %v11474_v53 = vpop.eup %8155  ;;  %v3692_v14 = vmul.f32 1.442695, %v3583_v62  ;;  %v3694_v25 = vmul.f32 1.442695, %v3584_v16  ;;  %v3841_v63 = vsel %vm3345_vm14, %v11472_v7, 0.0 }
 0x650   : > { %3842 = vadd.xlane.f32.xlu0 %v3841_v63  ;;  %v3489_v19 = vpop.xlane.xlu0 %3488  ;;  %v3844_v12 = vsel %vm3345_vm14, %v11474_v53, 0.0  ;;  %v3492_v59 = vpop.xlane.xlu1 %3491 }
 0x651   : > { %8169 = vpow2.f32 %v3692_v14  ;;  %v3585_v42 = vsub.f32 %v11180_v34, %v3489_v19  ;;  %3845 = vadd.xlane.f32.xlu1 %v3844_v12  ;;  %v3586_v0 = vsub.f32 %v11187_v37, %v3492_v59 }
 0x652   : > { %v11482_v2 = vpop.eup %8157  ;;  %8171 = vpow2.f32 %v3694_v25 }
 0x653   : > { %v11484_v45 = vpop.eup %8159  ;;  %v3696_v39 = vmul.f32 1.442695, %v3585_v42  ;;  %v3698_v58 = vmul.f32 1.442695, %v3586_v0  ;;  %v3847_v43 = vsel %vm3345_vm14, %v11482_v2, 0.0 }
 0x654   : > { %3848 = vadd.xlane.f32.xlu0 %v3847_v43  ;;  %v3495_v21 = vpop.xlane.xlu0 %3494  ;;  %v3850_v30 = vsel %vm3345_vm14, %v11484_v45, 0.0  ;;  %v3498_v60 = vpop.xlane.xlu1 %3497 }
 0x655   : > { %8173 = vpow2.f32 %v3696_v39  ;;  %v3587_v34 = vsub.f32 %v11199_v22, %v3495_v21  ;;  %3851 = vadd.xlane.f32.xlu1 %v3850_v30  ;;  %v3588_v37 = vsub.f32 %v11190_v28, %v3498_v60 }
 0x656   : > { %v11492_v10 = vpop.eup %8161  ;;  %8175 = vpow2.f32 %v3698_v58 }
 0x657   : > { %v11494_v5 = vpop.eup %8163  ;;  %v3700_v9 = vmul.f32 1.442695, %v3587_v34  ;;  %v3702_v62 = vmul.f32 1.442695, %v3588_v37  ;;  %v3853_v16 = vsel %vm3345_vm14, %v11492_v10, 0.0 }
 0x658   : > { %3854 = vadd.xlane.f32.xlu0 %v3853_v16  ;;  %v3501_v14 = vpop.xlane.xlu0 %3500  ;;  %v3856_v25 = vsel %vm3345_vm14, %v11494_v5, 0.0  ;;  %v3504_v63 = vpop.xlane.xlu1 %3503 }
 0x659   : > { %8177 = vpow2.f32 %v3700_v9  ;;  %v3589_v22 = vsub.f32 %v11202_v47, %v3501_v14  ;;  %3857 = vadd.xlane.f32.xlu1 %v3856_v25  ;;  %v3590_v28 = vsub.f32 %v11209_v15, %v3504_v63  ;;  %v15200_v47 = vld [vmem:[#allocation32_spill] sm:$0xff]  ;;  %v15201_v15 = vld [vmem:[#allocation31_spill] sm:$0xff]  ;;  %v15202_v63 = vld [vmem:[#allocation26_spill] sm:$0xff] }
 0x65a   : > { %v11502_v19 = vpop.eup %8165  ;;  %8179 = vpow2.f32 %v3702_v62 }
 0x65b   : > { %v11504_v12 = vpop.eup %8167  ;;  %v3704_v59 = vmul.f32 1.442695, %v3589_v22  ;;  %v3706_v42 = vmul.f32 1.442695, %v3590_v28  ;;  %v3859_v0 = vsel %vm3345_vm14, %v11502_v19, 0.0  ;;  %v15203_v28 = vld [vmem:[#allocation102_spill] sm:$0xff] }
 0x65c   : > { %3860 = vadd.xlane.f32.xlu0 %v3859_v0  ;;  %v3507_v39 = vpop.xlane.xlu0 %3506  ;;  %v3862_v58 = vsel %vm3345_vm14, %v11504_v12, 0.0  ;;  %v3510_v43 = vpop.xlane.xlu1 %3509 }
 0x65d   : > { %8181 = vpow2.f32 %v3704_v59  ;;  %v3591_v21 = vsub.f32 %v15200_v47, %v3507_v39  ;;  %3863 = vadd.xlane.f32.xlu1 %v3862_v58  ;;  %v3592_v30 = vsub.f32 %v15201_v15, %v3510_v43 }
 0x65e   : > { %v11512_v60 = vpop.eup %8169  ;;  %8183 = vpow2.f32 %v3706_v42 }
 0x65f   : > { %v11514_v34 = vpop.eup %8171  ;;  %v3708_v37 = vmul.f32 1.442695, %v3591_v21  ;;  %v3710_v9 = vmul.f32 1.442695, %v3592_v30  ;;  %v3865_v62 = vsel %vm3345_vm14, %v11512_v60, 0.0  ;;  %v15204_v30 = vld [vmem:[#allocation16_spill] sm:$0xff] }
 0x660   : > { %3866 = vadd.xlane.f32.xlu0 %v3865_v62  ;;  %v3513_v16 = vpop.xlane.xlu0 %3512  ;;  %v3868_v14 = vsel %vm3345_vm14, %v11514_v34, 0.0  ;;  %v3516_v25 = vpop.xlane.xlu1 %3515  ;;  %v15205_v62 = vld [vmem:[#allocation62_spill] sm:$0xff] }
 0x661   : > { %8185 = vpow2.f32 %v3708_v37  ;;  %v3593_v22 = vsub.f32 %v15202_v63, %v3513_v16  ;;  %3869 = vadd.xlane.f32.xlu1 %v3868_v14  ;;  %v3594_v59 = vsub.f32 %v15203_v28, %v3516_v25 }
 0x662   : > { %v11522_v42 = vpop.eup %8173  ;;  %8187 = vpow2.f32 %v3710_v9 }
 0x663   : > { %v11524_v0 = vpop.eup %8175  ;;  %v3712_v39 = vmul.f32 1.442695, %v3593_v22  ;;  %v3714_v58 = vmul.f32 1.442695, %v3594_v59  ;;  %v3871_v43 = vsel %vm3345_vm14, %v11522_v42, 0.0 }
 0x664   : > { %3872 = vadd.xlane.f32.xlu0 %v3871_v43  ;;  %v3519_v47 = vpop.xlane.xlu0 %3518  ;;  %v3874_v21 = vsel %vm3345_vm14, %v11524_v0, 0.0  ;;  %v3522_v15 = vpop.xlane.xlu1 %3521  ;;  %v15208_v43 = vld [vmem:[#allocation34_spill] sm:$0xff] }
 0x665   : > { %8189 = vpow2.f32 %v3712_v39  ;;  %v3595_v37 = vsub.f32 %v15204_v30, %v3519_v47  ;;  %3875 = vadd.xlane.f32.xlu1 %v3874_v21  ;;  %v3596_v16 = vsub.f32 %v15205_v62, %v3522_v15  ;;  %v15209_v21 = vld [vmem:[#allocation104_spill] sm:$0xff] }
 0x666   : > { %v11532_v9 = vpop.eup %8177  ;;  %8191 = vpow2.f32 %v3714_v58 }
 0x667   : > { %15206 = vst [vmem:[#allocation15_spill] sm:$0xff] %v11532_v9  ;;  %v11534_v14 = vpop.eup %8179  ;;  %v3716_v25 = vmul.f32 1.442695, %v3595_v37  ;;  %v3718_v63 = vmul.f32 1.442695, %v3596_v16  ;;  %v3877_v22 = vsel %vm3345_vm14, %v11532_v9, 0.0 }
 0x668   : > { %15207 = vst [vmem:[#allocation18_spill] sm:$0xff] %v11534_v14  ;;  %3878 = vadd.xlane.f32.xlu0 %v3877_v22  ;;  %v3525_v28 = vpop.xlane.xlu0 %3524  ;;  %v3880_v59 = vsel %vm3345_vm14, %v11534_v14, 0.0  ;;  %v3528_v39 = vpop.xlane.xlu1 %3527 }
 0x669   : > { %8193 = vpow2.f32 %v3716_v25  ;;  %v3597_v47 = vsub.f32 %v15208_v43, %v3525_v28  ;;  %3881 = vadd.xlane.f32.xlu1 %v3880_v59  ;;  %v3598_v15 = vsub.f32 %v15209_v21, %v3528_v39  ;;  %v15212_v28 = vld [vmem:[#allocation48_spill] sm:$0xff]  ;;  %v15213_v39 = vld [vmem:[#allocation43_spill] sm:$0xff] }
 0x66a   : > { %v11542_v58 = vpop.eup %8181  ;;  %8195 = vpow2.f32 %v3718_v63 }
 0x66b   : > { %15210 = vst [vmem:[#allocation33_spill] sm:$0xff] %v11542_v58  ;;  %v11544_v30 = vpop.eup %8183  ;;  %v3720_v37 = vmul.f32 1.442695, %v3597_v47  ;;  %v3722_v62 = vmul.f32 1.442695, %v3598_v15  ;;  %v3883_v16 = vsel %vm3345_vm14, %v11542_v58, 0.0 }
 0x66c   : > { %15211 = vst [vmem:[#allocation79_spill] sm:$0xff] %v11544_v30  ;;  %3884 = vadd.xlane.f32.xlu0 %v3883_v16  ;;  %v3531_v22 = vpop.xlane.xlu0 %3530  ;;  %v3886_v25 = vsel %vm3345_vm14, %v11544_v30, 0.0  ;;  %v3534_v14 = vpop.xlane.xlu1 %3533 }
 0x66d   : > { %8197 = vpow2.f32 %v3720_v37  ;;  %v3599_v59 = vsub.f32 %v15212_v28, %v3531_v22  ;;  %3887 = vadd.xlane.f32.xlu1 %v3886_v25  ;;  %v3600_v43 = vsub.f32 %v15213_v39, %v3534_v14  ;;  %v15216_v22 = vld [vmem:[#allocation61_spill] sm:$0xff] }
 0x66e   : > { %v11552_v63 = vpop.eup %8185  ;;  %8199 = vpow2.f32 %v3722_v62 }
 0x66f   : > { %15214 = vst [vmem:[#allocation103_spill] sm:$0xff] %v11552_v63  ;;  %v11554_v47 = vpop.eup %8187  ;;  %v3724_v21 = vmul.f32 1.442695, %v3599_v59  ;;  %v3726_v15 = vmul.f32 1.442695, %v3600_v43  ;;  %v3889_v16 = vsel %vm3345_vm14, %v11552_v63, 0.0 }
 0x670   : > { %15215 = vst [vmem:[#allocation106_spill] sm:$0xff] %v11554_v47  ;;  %3890 = vadd.xlane.f32.xlu0 %v3889_v16  ;;  %v3537_v58 = vpop.xlane.xlu0 %3536  ;;  %v3892_v37 = vsel %vm3345_vm14, %v11554_v47, 0.0 }
 0x671   : > { %8201 = vpow2.f32 %v3724_v21  ;;  %v3601_v25 = vsub.f32 %v15216_v22, %v3537_v58  ;;  %3893 = vadd.xlane.f32.xlu1 %v3892_v37 }
 0x672   : > { %v11561_v14 = vpop.eup %8189  ;;  %8203 = vpow2.f32 %v3726_v15 }
 0x673   : > { %15217 = vst [vmem:[#allocation46_spill] sm:$0xff] %v11561_v14  ;;  %v11563_v62 = vpop.eup %8191  ;;  %v3728_v28 = vmul.f32 1.442695, %v3601_v25  ;;  %v3895_v59 = vsel %vm3345_vm14, %v11561_v14, 0.0 }
 0x674   : > { %15218 = vst [vmem:[#allocation82_spill] sm:$0xff] %v11563_v62  ;;  %3896 = vadd.xlane.f32.xlu0 %v3895_v59  ;;  %v3898_v39 = vsel %vm3345_vm14, %v11563_v62, 0.0  ;;  %v15226_v62 = vld [vmem:[#allocation83_spill] sm:$0xff] }
 0x675   : > { %8205 = vpow2.f32 %v3728_v28  ;;  %3899 = vadd.xlane.f32.xlu1 %v3898_v39  ;;  %v3732_v39 = vpop.xlane.xlu1 %3731 }
 0x676   : > { %v11569_v43 = vpop.eup %8193  ;;  %8207 = vrcp.f32 %v3732_v39 }
 0x677   : > { %15219 = vst [vmem:[#allocation50_spill] sm:$0xff] %v11569_v43  ;;  %v11571_v21 = vpop.eup %8195  ;;  %v3901_v58 = vsel %vm3345_vm14, %v11569_v43, 0.0 }
 0x678   : > { %15220 = vst [vmem:[#allocation87_spill] sm:$0xff] %v11571_v21  ;;  %3902 = vadd.xlane.f32.xlu0 %v3901_v58  ;;  %v3904_v15 = vsel %vm3345_vm14, %v11571_v21, 0.0 }
 0x679   : > { %3905 = vadd.xlane.f32.xlu1 %v3904_v15 }
 0x67a   : > { %v11577_v16 = vpop.eup %8197 }
 0x67b   : > { %15221 = vst [vmem:[#allocation63_spill] sm:$0xff] %v11577_v16  ;;  %v11579_v37 = vpop.eup %8199  ;;  %v3907_v22 = vsel %vm3345_vm14, %v11577_v16, 0.0 }
 0x67c   : > { %15222 = vst [vmem:[#allocation66_spill] sm:$0xff] %v11579_v37  ;;  %3908 = vadd.xlane.f32.xlu0 %v3907_v22  ;;  %v3910_v25 = vsel %vm3345_vm14, %v11579_v37, 0.0 }
 0x67d   : > { %3911 = vadd.xlane.f32.xlu1 %v3910_v25  ;;  %v3738_v25 = vpop.xlane.xlu1 %3737 }
 0x67e   : > { %v11585_v28 = vpop.eup %8201 }
 0x67f   : > { %15223 = vst [vmem:[#allocation17_spill] sm:$0xff] %v11585_v28  ;;  %v11587_v59 = vpop.eup %8203  ;;  %v3913_v58 = vsel %vm3345_vm14, %v11585_v28, 0.0 }
 0x680   : > { %15224 = vst [vmem:[#allocation20_spill] sm:$0xff] %v11587_v59  ;;  %3914 = vadd.xlane.f32.xlu0 %v3913_v58  ;;  %v3916_v15 = vsel %vm3345_vm14, %v11587_v59, 0.0 }
 0x681   : > { %3917 = vadd.xlane.f32.xlu1 %v3916_v15  ;;  %v4051_v15 = vld [vmem:[%s14652_s7] sm:$0xff] }
 0x682   : > { %v11593_v21 = vpop.eup %8205 }
 0x683   : > { %15225 = vst [vmem:[#allocation77_spill] sm:$0xff] %v11593_v21  ;;  %v3919_v22 = vsel %vm3345_vm14, %v11593_v21, 0.0 }
 0x684   : > { %3920 = vadd.xlane.f32.xlu0 %v3919_v22  ;;  %v8208_v22 = vpop.eup %8207 }
 0x685   : > { %v3735_v37 = vpop.xlane.xlu0 %3734  ;;  %v3923_v14 = vmul.f32 %v8208_v22, %v15226_v62 }
 0x686   : > { %8209 = vrcp.f32 %v3735_v37 }
 0x687   : > { %8211 = vrcp.f32 %v3738_v25 }
 0x689   : > { %v3741_v16 = vpop.xlane.xlu0 %3740  ;;  %v3744_v43 = vpop.xlane.xlu1 %3743 }
 0x68a   : > { %8213 = vrcp.f32 %v3741_v16 }
 0x68b   : > { %8215 = vrcp.f32 %v3744_v43 }
 0x68d   : > { %v3747_v58 = vpop.xlane.xlu0 %3746  ;;  %v3750_v28 = vpop.xlane.xlu1 %3749 }
 0x68e   : > { %8217 = vrcp.f32 %v3747_v58 }
 0x68f   : > { %8219 = vrcp.f32 %v3750_v28 }
 0x691   : > { %v3753_v59 = vpop.xlane.xlu0 %3752  ;;  %v3756_v21 = vpop.xlane.xlu1 %3755 }
 0x692   : > { %8221 = vrcp.f32 %v3753_v59  ;;  %4054 = vperm.xlu1 %7923, %v4051_v15  }
 0x693   : > { %v8210_v39 = vpop.eup %8209  ;;  %8223 = vrcp.f32 %v3756_v21 }
 0x694   : > { %v3925_v37 = vmul.f32 %v8210_v39, %v11297_v1  ;;  %v8212_v25 = vpop.eup %8211 }
 0x695   : > { %v3759_v16 = vpop.xlane.xlu0 %3758  ;;  %v3762_v43 = vpop.xlane.xlu1 %3761  ;;  %v3927_v47 = vmul.f32 %v8212_v25, %v11280_v3 }
 0x696   : > { %8225 = vrcp.f32 %v3759_v16  ;;  %v11603_v63 = vpack.c.bf16 %v3925_v37, %v3923_v14 }
 0x697   : > { %v8214_v58 = vpop.eup %8213  ;;  %8227 = vrcp.f32 %v3762_v43 }
 0x698   : > { %15227 = vst [vmem:[#allocation81_spill] sm:$0xff] %v11603_v63  ;;  %v3929_v28 = vmul.f32 %v8214_v58, %v11302_v61  ;;  %v8216_v59 = vpop.eup %8215 }
 0x699   : > { %v3765_v15 = vpop.xlane.xlu0 %3764  ;;  %v3768_v30 = vpop.xlane.xlu1 %3767  ;;  %v3931_v62 = vmul.f32 %v8216_v59, %v11305_v40 }
 0x69a   : > { %v11606_v9 = vpack.c.bf16 %v3929_v28, %v3927_v47  ;;  %8229 = vrcp.f32 %v3765_v15  ;;  %4440 = vrot.lane.b32.xlu0 %v11603_v63, %s8404_s16 }
 0x69b   : > { %v8218_v1 = vpop.eup %8217  ;;  %8231 = vrcp.f32 %v3768_v30 }
 0x69c   : > { %v3933_v3 = vmul.f32 %v8218_v1, %v11312_v36  ;;  %4442 = vrot.lane.b32.xlu1 %v11606_v9, %s8404_s16  ;;  %v8220_v61 = vpop.eup %8219 }
 0x69d   : > { %v3771_v14 = vpop.xlane.xlu0 %3770  ;;  %v3774_v21 = vpop.xlane.xlu1 %3773  ;;  %v3935_v39 = vmul.f32 %v8220_v61, %v11315_v44 }
 0x69e   : > { %v11614_v22 = vpack.c.bf16 %v3933_v3, %v3931_v62  ;;  %8233 = vrcp.f32 %v3771_v14 }
 0x69f   : > { %v8222_v47 = vpop.eup %8221  ;;  %8235 = vrcp.f32 %v3774_v21 }
 0x6a0   : > { %v3937_v37 = vmul.f32 %v8222_v47, %v11322_v55  ;;  %4444 = vrot.lane.b32.xlu1 %v11614_v22, %s8404_s16  ;;  %v8224_v40 = vpop.eup %8223 }
 0x6a1   : > { %v3777_v36 = vpop.xlane.xlu0 %3776  ;;  %v3780_v30 = vpop.xlane.xlu1 %3779  ;;  %v3939_v43 = vmul.f32 %v8224_v40, %v11325_v41 }
 0x6a2   : > { %v11620_v25 = vpack.c.bf16 %v3937_v37, %v3935_v39  ;;  %8237 = vrcp.f32 %v3777_v36 }
 0x6a3   : > { %v8226_v16 = vpop.eup %8225  ;;  %8239 = vrcp.f32 %v3780_v30 }
 0x6a4   : > { %v3941_v58 = vmul.f32 %v8226_v16, %v11332_v20  ;;  %4446 = vrot.lane.b32.xlu0 %v11620_v25, %s8404_s16  ;;  %v8228_v44 = vpop.eup %8227 }
 0x6a5   : > { %v3783_v55 = vpop.xlane.xlu0 %3782  ;;  %v3786_v28 = vpop.xlane.xlu1 %3785  ;;  %v3943_v1 = vmul.f32 %v8228_v44, %v11335_v31 }
 0x6a6   : > { %v11626_v59 = vpack.c.bf16 %v3941_v58, %v3939_v43  ;;  %8241 = vrcp.f32 %v3783_v55 }
 0x6a7   : > { %v8230_v15 = vpop.eup %8229  ;;  %8243 = vrcp.f32 %v3786_v28 }
 0x6a8   : > { %v3945_v62 = vmul.f32 %v8230_v15, %v11342_v33  ;;  %4448 = vrot.lane.b32.xlu1 %v11626_v59, %s8404_s16  ;;  %v8232_v41 = vpop.eup %8231 }
 0x6a9   : > { %v3789_v20 = vpop.xlane.xlu0 %3788  ;;  %v3792_v3 = vpop.xlane.xlu1 %3791  ;;  %v3947_v21 = vmul.f32 %v8232_v41, %v11345_v48 }
 0x6aa   : > { %v11632_v61 = vpack.c.bf16 %v3945_v62, %v3943_v1  ;;  %8245 = vrcp.f32 %v3789_v20 }
 0x6ab   : > { %v8234_v14 = vpop.eup %8233  ;;  %8247 = vrcp.f32 %v3792_v3 }
 0x6ac   : > { %v3949_v47 = vmul.f32 %v8234_v14, %v11347_v6  ;;  %4450 = vrot.lane.b32.xlu0 %v11632_v61, %s8404_s16  ;;  %v8236_v31 = vpop.eup %8235 }
 0x6ad   : > { %v3795_v33 = vpop.xlane.xlu0 %3794  ;;  %v3798_v39 = vpop.xlane.xlu1 %3797  ;;  %v3951_v36 = vmul.f32 %v8236_v31, %v11355_v13 }
 0x6ae   : > { %v11638_v37 = vpack.c.bf16 %v3949_v47, %v3947_v21  ;;  %8249 = vrcp.f32 %v3795_v33  ;;  %v11650_v13 = vpop.f32.mrf.mxu0 }
 0x6af   : > { %v8238_v40 = vpop.eup %8237  ;;  %8251 = vrcp.f32 %v3798_v39 }
 0x6b0   : > { %v3953_v30 = vmul.f32 %v8238_v40, %v11359_v4  ;;  %4452 = vrot.lane.b32.xlu1 %v11638_v37, %s8404_s16  ;;  %v8240_v48 = vpop.eup %8239  ;;  %v11652_v4 = vpop.f32.mrf.mxu1 }
 0x6b1   : > { %v3801_v6 = vpop.xlane.xlu0 %3800  ;;  %v3804_v16 = vpop.xlane.xlu1 %3803  ;;  %v3955_v44 = vmul.f32 %v8240_v48, %v11365_v46 }
 0x6b2   : > { %v11644_v43 = vpack.c.bf16 %v3953_v30, %v3951_v36  ;;  %8253 = vrcp.f32 %v3801_v6  ;;  %v11662_v3 = vpop.f32.mrf.mxu1 }
 0x6b3   : > { %v8242_v58 = vpop.eup %8241  ;;  %8255 = vrcp.f32 %v3804_v16 }
 0x6b4   : > { %v3957_v55 = vmul.f32 %v8242_v58, %v11370_v17  ;;  %4454 = vrot.lane.b32.xlu0 %v11644_v43, %s8404_s16  ;;  %v8244_v28 = vpop.eup %8243  ;;  %v11660_v17 = vpop.f32.mrf.mxu0 }
 0x6b5   : > { %v3807_v15 = vpop.xlane.xlu0 %3806  ;;  %v3810_v1 = vpop.xlane.xlu1 %3809  ;;  %v3959_v20 = vmul.f32 %v8244_v28, %v11375_v50 }
 0x6b6   : > { %v11654_v62 = vpack.c.bf16 %v3957_v55, %v3955_v44  ;;  %8257 = vrcp.f32 %v3807_v15  ;;  %v4098_v33 = vpop.f32.mrf.mxu0  ;;  %v4139_v39 = vpop.f32.mrf.mxu1 }
 0x6b7   : > { %v8246_v41 = vpop.eup %8245  ;;  %8259 = vrcp.f32 %v3810_v1 }
 0x6b8   : > { %15228 = vst [vmem:[#allocation105_spill] sm:$0xff] %v11654_v62  ;;  %v3961_v46 = vmul.f32 %v8246_v41, %v11379_v27  ;;  %4456 = vrot.lane.b32.xlu1 %v11654_v62, %s8404_s16  ;;  %v8248_v14 = vpop.eup %8247  ;;  %v4099_v36 = vpop.f32.mrf.mxu0 }
 0x6b9   : > { %v3813_v21 = vpop.xlane.xlu0 %3812  ;;  %v3816_v47 = vpop.xlane.xlu1 %3815  ;;  %v3963_v50 = vmul.f32 %v8248_v14, %v11385_v49 }
 0x6ba   : > { %v11664_v31 = vpack.c.bf16 %v3961_v46, %v3959_v20  ;;  %8261 = vrcp.f32 %v3813_v21  ;;  %v4140_v30 = vpop.f32.mrf.mxu1 }
 0x6bb   : > { %v8250_v40 = vpop.eup %8249  ;;  %8263 = vrcp.f32 %v3816_v47 }
 0x6bc   : > { %15229 = vst [vmem:[#allocation108_spill] sm:$0xff] %v11664_v31  ;;  %v3965_v27 = vmul.f32 %v8250_v40, %v11389_v23  ;;  %4458 = vrot.lane.b32.xlu0 %v11664_v31, %s8404_s16  ;;  %v8252_v48 = vpop.eup %8251 }
 0x6bd   : > { %v3819_v6 = vpop.xlane.xlu0 %3818  ;;  %v3822_v16 = vpop.xlane.xlu1 %3821  ;;  %v3967_v55 = vmul.f32 %v8252_v48, %v11395_v26 }
 0x6be   : > { %v11670_v58 = vpack.c.bf16 %v3965_v27, %v3963_v50  ;;  %8265 = vrcp.f32 %v3819_v6 }
 0x6bf   : > { %v8254_v44 = vpop.eup %8253  ;;  %8267 = vrcp.f32 %v3822_v16 }
 0x6c0   : > { %15230 = vst [vmem:[#allocation49_spill] sm:$0xff] %v11670_v58  ;;  %v3969_v28 = vmul.f32 %v8254_v44, %v11401_v29  ;;  %4460 = vrot.lane.b32.xlu1 %v11670_v58, %s8404_s16  ;;  %v8256_v49 = vpop.eup %8255 }
 0x6c1   : > { %v3825_v23 = vpop.xlane.xlu0 %3824  ;;  %v3971_v41 = vmul.f32 %v8256_v49, %v11403_v35 }
 0x6c2   : > { %v11676_v15 = vpack.c.bf16 %v3969_v28, %v3967_v55  ;;  %8269 = vrcp.f32 %v3825_v23 }
 0x6c3   : > { %v8258_v1 = vpop.eup %8257 }
 0x6c4   : > { %15231 = vst [vmem:[#allocation86_spill] sm:$0xff] %v11676_v15  ;;  %v3973_v20 = vmul.f32 %v8258_v1, %v11409_v54  ;;  %4462 = vrot.lane.b32.xlu0 %v11676_v15, %s8404_s16  ;;  %v8260_v26 = vpop.eup %8259 }
 0x6c5   : > { %v3975_v14 = vmul.f32 %v8260_v26, %v11411_v57 }
 0x6c6   : > { %v11682_v46 = vpack.c.bf16 %v3973_v20, %v3971_v41 }
 0x6c7   : > { %v8262_v29 = vpop.eup %8261 }
 0x6c8   : > { %15232 = vst [vmem:[#allocation52_spill] sm:$0xff] %v11682_v46  ;;  %v3977_v21 = vmul.f32 %v8262_v29, %v11413_v52  ;;  %4464 = vrot.lane.b32.xlu1 %v11682_v46, %s8404_s16  ;;  %v8264_v47 = vpop.eup %8263  ;;  %v15235_v52 = vld [vmem:[#allocation64_spill] sm:$0xff] }
 0x6c9   : > { %v3979_v54 = vmul.f32 %v8264_v47, %v11419_v32 }
 0x6ca   : > { %v11688_v33 = vpack.c.bf16 %v3977_v21, %v3975_v14 }
 0x6cb   : > { %v8266_v35 = vpop.eup %8265 }
 0x6cc   : > { %15233 = vst [vmem:[#allocation91_spill] sm:$0xff] %v11688_v33  ;;  %v3981_v39 = vmul.f32 %v8266_v35, %v11425_v18  ;;  %4466 = vrot.lane.b32.xlu0 %v11688_v33, %s8404_s16  ;;  %v8268_v40 = vpop.eup %8267 }
 0x6cd   : > { %v3828_v50 = vpop.xlane.xlu1 %3827  ;;  %v3983_v36 = vmul.f32 %v8268_v40, %v15235_v52 }
 0x6ce   : > { %v11694_v27 = vpack.c.bf16 %v3981_v39, %v3979_v54  ;;  %8271 = vrcp.f32 %v3828_v50 }
 0x6cf   : > { %v8270_v57 = vpop.eup %8269 }
 0x6d0   : > { %15234 = vst [vmem:[#allocation65_spill] sm:$0xff] %v11694_v27  ;;  %v3985_v30 = vmul.f32 %v8270_v57, %v11434_v24  ;;  %4468 = vrot.lane.b32.xlu1 %v11694_v27, %s8404_s16 }
 0x6d1   : > { %v3831_v48 = vpop.xlane.xlu0 %3830 }
 0x6d2   : > { %v11700_v32 = vpack.c.bf16 %v3985_v30, %v3983_v36  ;;  %8273 = vrcp.f32 %v3831_v48  ;;  %v3834_v18 = vpop.xlane.xlu1 %3833 }
 0x6d3   : > { %8275 = vrcp.f32 %v3834_v18 }
 0x6d4   : > { %15236 = vst [vmem:[#allocation3_spill] sm:$0xff] %v11700_v32  ;;  %4470 = vrot.lane.b32.xlu0 %v11700_v32, %s8404_s16 }
 0x6d5   : > { %v3837_v6 = vpop.xlane.xlu0 %3836 }
 0x6d6   : > { %8277 = vrcp.f32 %v3837_v6  ;;  %v3840_v16 = vpop.xlane.xlu1 %3839 }
 0x6d7   : > { %8279 = vrcp.f32 %v3840_v16 }
 0x6d9   : > { %v3843_v44 = vpop.xlane.xlu0 %3842 }
 0x6da   : > { %8281 = vrcp.f32 %v3843_v44  ;;  %v3846_v24 = vpop.xlane.xlu1 %3845 }
 0x6db   : > { %8283 = vrcp.f32 %v3846_v24  ;;  %v8272_v55 = vpop.eup %8271 }
 0x6dc   : > { %v3987_v1 = vmul.f32 %v8272_v55, %v11446_v38 }
 0x6dd   : > { %v3849_v28 = vpop.xlane.xlu0 %3848 }
 0x6de   : > { %8285 = vrcp.f32 %v3849_v28  ;;  %v3852_v49 = vpop.xlane.xlu1 %3851 }
 0x6df   : > { %v8274_v23 = vpop.eup %8273  ;;  %8287 = vrcp.f32 %v3852_v49 }
 0x6e0   : > { %v3989_v41 = vmul.f32 %v8274_v23, %v11452_v56  ;;  %v8276_v20 = vpop.eup %8275 }
 0x6e1   : > { %v3855_v26 = vpop.xlane.xlu0 %3854  ;;  %v3991_v47 = vmul.f32 %v8276_v20, %v11454_v11 }
 0x6e2   : > { %v11706_v29 = vpack.c.bf16 %v3989_v41, %v3987_v1  ;;  %8289 = vrcp.f32 %v3855_v26  ;;  %v3858_v14 = vpop.xlane.xlu1 %3857 }
 0x6e3   : > { %v8278_v21 = vpop.eup %8277  ;;  %8291 = vrcp.f32 %v3858_v14 }
 0x6e4   : > { %15237 = vst [vmem:[#allocation19_spill] sm:$0xff] %v11706_v29  ;;  %v3993_v35 = vmul.f32 %v8278_v21, %v11462_v51  ;;  %4472 = vrot.lane.b32.xlu1 %v11706_v29, %s8404_s16  ;;  %v8280_v54 = vpop.eup %8279 }
 0x6e5   : > { %v3861_v38 = vpop.xlane.xlu0 %3860  ;;  %v3995_v50 = vmul.f32 %v8280_v54, %v11464_v8 }
 0x6e6   : > { %v11712_v39 = vpack.c.bf16 %v3993_v35, %v3991_v47  ;;  %8293 = vrcp.f32 %v3861_v38  ;;  %v3864_v56 = vpop.xlane.xlu1 %3863 }
 0x6e7   : > { %v8282_v40 = vpop.eup %8281  ;;  %8295 = vrcp.f32 %v3864_v56 }
 0x6e8   : > { %v3997_v57 = vmul.f32 %v8282_v40, %v11472_v7  ;;  %4474 = vrot.lane.b32.xlu0 %v11712_v39, %s8404_s16  ;;  %v8284_v11 = vpop.eup %8283 }
 0x6e9   : > { %v3867_v51 = vpop.xlane.xlu0 %3866  ;;  %v3999_v48 = vmul.f32 %v8284_v11, %v11474_v53 }
 0x6ea   : > { %v11718_v52 = vpack.c.bf16 %v3997_v57, %v3995_v50  ;;  %8297 = vrcp.f32 %v3867_v51  ;;  %v3870_v36 = vpop.xlane.xlu1 %3869 }
 0x6eb   : > { %v8286_v30 = vpop.eup %8285  ;;  %8299 = vrcp.f32 %v3870_v36  ;;  %v15239_v36 = vld [vmem:[#allocation15_spill] sm:$0xff] }
 0x6ec   : > { %v4001_v18 = vmul.f32 %v8286_v30, %v11482_v2  ;;  %4476 = vrot.lane.b32.xlu1 %v11718_v52, %s8404_s16  ;;  %v8288_v8 = vpop.eup %8287 }
 0x6ed   : > { %v3873_v7 = vpop.xlane.xlu0 %3872  ;;  %v4003_v24 = vmul.f32 %v8288_v8, %v11484_v45 }
 0x6ee   : > { %v11724_v6 = vpack.c.bf16 %v4001_v18, %v3999_v48  ;;  %8301 = vrcp.f32 %v3873_v7  ;;  %v3876_v16 = vpop.xlane.xlu1 %3875  ;;  %v15241_v7 = vld [vmem:[#allocation18_spill] sm:$0xff] }
 0x6ef   : > { %v8290_v44 = vpop.eup %8289  ;;  %8303 = vrcp.f32 %v3876_v16 }
 0x6f0   : > { %v4005_v55 = vmul.f32 %v8290_v44, %v11492_v10  ;;  %4478 = vrot.lane.b32.xlu0 %v11724_v6, %s8404_s16  ;;  %v8292_v53 = vpop.eup %8291  ;;  %v15242_v44 = vld [vmem:[#allocation33_spill] sm:$0xff] }
 0x6f1   : > { %v3879_v2 = vpop.xlane.xlu0 %3878  ;;  %v4007_v1 = vmul.f32 %v8292_v53, %v11494_v5 }
 0x6f2   : > { %v11730_v28 = vpack.c.bf16 %v4005_v55, %v4003_v24  ;;  %8305 = vrcp.f32 %v3879_v2  ;;  %v3882_v49 = vpop.xlane.xlu1 %3881 }
 0x6f3   : > { %v8294_v23 = vpop.eup %8293  ;;  %8307 = vrcp.f32 %v3882_v49 }
 0x6f4   : > { %v4009_v41 = vmul.f32 %v8294_v23, %v11502_v19  ;;  %4480 = vrot.lane.b32.xlu1 %v11730_v28, %s8404_s16  ;;  %v8296_v45 = vpop.eup %8295  ;;  %v15244_v23 = vld [vmem:[#allocation79_spill] sm:$0xff] }
 0x6f5   : > { %v3885_v10 = vpop.xlane.xlu0 %3884  ;;  %v4011_v21 = vmul.f32 %v8296_v45, %v11504_v12 }
 0x6f6   : > { %v11736_v20 = vpack.c.bf16 %v4009_v41, %v4007_v1  ;;  %8309 = vrcp.f32 %v3885_v10  ;;  %v3888_v26 = vpop.xlane.xlu1 %3887  ;;  %v15245_v41 = vld [vmem:[#allocation103_spill] sm:$0xff] }
 0x6f7   : > { %v8298_v14 = vpop.eup %8297  ;;  %8311 = vrcp.f32 %v3888_v26 }
 0x6f8   : > { %15238 = vst [vmem:[#allocation22_spill] sm:$0xff] %v11736_v20  ;;  %v4013_v47 = vmul.f32 %v8298_v14, %v11512_v60  ;;  %4482 = vrot.lane.b32.xlu0 %v11736_v20, %s8404_s16  ;;  %v8300_v5 = vpop.eup %8299 }
 0x6f9   : > { %v3891_v19 = vpop.xlane.xlu0 %3890  ;;  %v4015_v56 = vmul.f32 %v8300_v5, %v11514_v34  ;;  %v15247_v5 = vld [vmem:[#allocation106_spill] sm:$0xff] }
 0x6fa   : > { %v11742_v35 = vpack.c.bf16 %v4013_v47, %v4011_v21  ;;  %8313 = vrcp.f32 %v3891_v19  ;;  %v3894_v54 = vpop.xlane.xlu1 %3893 }
 0x6fb   : > { %v8302_v38 = vpop.eup %8301  ;;  %8315 = vrcp.f32 %v3894_v54  ;;  %v15248_v54 = vld [vmem:[#allocation46_spill] sm:$0xff] }
 0x6fc   : > { %v4017_v40 = vmul.f32 %v8302_v38, %v11522_v42  ;;  %4484 = vrot.lane.b32.xlu1 %v11742_v35, %s8404_s16  ;;  %v8304_v12 = vpop.eup %8303 }
 0x6fd   : > { %v3897_v60 = vpop.xlane.xlu0 %3896  ;;  %v4019_v51 = vmul.f32 %v8304_v12, %v11524_v0 }
 0x6fe   : > { %v11748_v50 = vpack.c.bf16 %v4017_v40, %v4015_v56  ;;  %8317 = vrcp.f32 %v3897_v60  ;;  %v3900_v57 = vpop.xlane.xlu1 %3899 }
 0x6ff   : > { %v8306_v11 = vpop.eup %8305  ;;  %8319 = vrcp.f32 %v3900_v57 }
 0x700   : > { %v4021_v30 = vmul.f32 %v8306_v11, %v15239_v36  ;;  %4486 = vrot.lane.b32.xlu0 %v11748_v50, %s8404_s16  ;;  %v8308_v34 = vpop.eup %8307 }
 0x701   : > { %v3903_v42 = vpop.xlane.xlu0 %3902  ;;  %v4023_v16 = vmul.f32 %v8308_v34, %v15241_v7 }
 0x702   : > { %v11754_v48 = vpack.c.bf16 %v4021_v30, %v4019_v51  ;;  %8321 = vrcp.f32 %v3903_v42  ;;  %v3906_v18 = vpop.xlane.xlu1 %3905  ;;  %v15250_v42 = vld [vmem:[#allocation82_spill] sm:$0xff] }
 0x703   : > { %v8310_v8 = vpop.eup %8309  ;;  %8323 = vrcp.f32 %v3906_v18 }
 0x704   : > { %15240 = vst [vmem:[#allocation80_spill] sm:$0xff] %v11754_v48  ;;  %v4025_v24 = vmul.f32 %v8310_v8, %v15242_v44  ;;  %4488 = vrot.lane.b32.xlu1 %v11754_v48, %s8404_s16  ;;  %v8312_v0 = vpop.eup %8311  ;;  %v15251_v8 = vld [vmem:[#allocation50_spill] sm:$0xff] }
 0x705   : > { %v3909_v55 = vpop.xlane.xlu0 %3908  ;;  %v4027_v1 = vmul.f32 %v8312_v0, %v15244_v23 }
 0x706   : > { %v11760_v53 = vpack.c.bf16 %v4025_v24, %v4023_v16  ;;  %8325 = vrcp.f32 %v3909_v55  ;;  %v3912_v2 = vpop.xlane.xlu1 %3911  ;;  %v15253_v24 = vld [vmem:[#allocation87_spill] sm:$0xff] }
 0x707   : > { %v8314_v49 = vpop.eup %8313  ;;  %8327 = vrcp.f32 %v3912_v2  ;;  %v15254_v2 = vld [vmem:[#allocation63_spill] sm:$0xff] }
 0x708   : > { %15243 = vst [vmem:[#allocation85_spill] sm:$0xff] %v11760_v53  ;;  %v4029_v45 = vmul.f32 %v8314_v49, %v15245_v41  ;;  %4490 = vrot.lane.b32.xlu0 %v11760_v53, %s8404_s16  ;;  %v8316_v10 = vpop.eup %8315 }
 0x709   : > { %v3915_v26 = vpop.xlane.xlu0 %3914  ;;  %v4031_v19 = vmul.f32 %v8316_v10, %v15247_v5 }
 0x70a   : > { %v11766_v14 = vpack.c.bf16 %v4029_v45, %v4027_v1  ;;  %8329 = vrcp.f32 %v3915_v26  ;;  %v3918_v21 = vpop.xlane.xlu1 %3917 }
 0x70b   : > { %v8318_v47 = vpop.eup %8317  ;;  %8331 = vrcp.f32 %v3918_v21  ;;  %v15258_v21 = vmov 0  }
 0x70c   : > { %15246 = vst [vmem:[#allocation107_spill] sm:$0xff] %v11766_v14  ;;  %v4033_v38 = vmul.f32 %v8318_v47, %v15248_v54  ;;  %4492 = vrot.lane.b32.xlu1 %v11766_v14, %s8404_s16  ;;  %v8320_v56 = vpop.eup %8319  ;;  %v15259_v54 = vld [vmem:[#allocation66_spill] sm:$0xff] }
 0x70d   : > { %v3921_v40 = vpop.xlane.xlu0 %3920  ;;  %v4035_v18 = vmul.f32 %v8320_v56, %v15250_v42 }
 0x70e   : > { %v11773_v12 = vpack.c.bf16 %v4033_v38, %v4031_v19  ;;  %8333 = vrcp.f32 %v3921_v40  ;;  %v4055_v60 = vpop.permute.xlu1 %4054 }
 0x70f   : > { %v8322_v57 = vpop.eup %8321  ;;  %v11779_v11 = vadd.f32 %v11650_v13, %v4055_v60  ;;  %v11782_v51 = vadd.f32 %v11652_v4, %v4055_v60  ;;  %v11785_v36 = vadd.f32 %v11660_v17, %v4055_v60  ;;  %v11788_v30 = vadd.f32 %v11662_v3, %v4055_v60 }
 0x710   : > { %15249 = vst [vmem:[#allocation6_spill] sm:$0xff] %v11773_v12  ;;  %v8324_v34 = vpop.eup %8323  ;;  %v4037_v7 = vmul.f32 %v8322_v57, %v15251_v8  ;;  %4494 = vrot.lane.b32.xlu0 %v11773_v12, %s8404_s16  ;;  %v15260_v57 = vld [vmem:[#allocation17_spill] sm:$0xff] }
 0x711   : > { %4142 = vst [vmem:[%s488_s20] sm:$0xff] %v11779_v11  ;;  %4144 = vst [vmem:[%s488_s20 + $0x10] sm:$0xff] %v11782_v51  ;;  %v4150_v13 = vrot.slane %v11779_v11, 7  ;;  %v4151_v4 = vrot.slane %v11785_v36, 7  ;;  %v4152_v17 = vrot.slane %v11782_v51, 7  ;;  %v4153_v16 = vrot.slane %v11788_v30, 7 }
 0x712   : > { %4143 = vst [vmem:[%s488_s20 + $0x8] sm:$0xff] %v11785_v36  ;;  %4145 = vst [vmem:[%s488_s20 + $0x18] sm:$0xff] %v11788_v30  ;;  %v11801_v3 = vpack.c.bf16 %v4037_v7, %v4035_v18  ;;  %v4039_v0 = vmul.f32 %v8324_v34, %v15253_v24  ;;  %s8414_s20 = smov 88  }
 0x713   : > { %v8326_v44 = vpop.eup %8325  ;;  %vm4158_vm15 = vcmp.gt.f32.partialorder %v11779_v11, %v4150_v13  ;;  %vm4159_vm0 = vcmp.gt.f32.partialorder %v11785_v36, %v4151_v4  ;;  %vm4160_vm1 = vcmp.gt.f32.partialorder %v11782_v51, %v4152_v17  ;;  %vm11812_vm2 = vcmp.gt.f32.partialorder %v11788_v30, %v4153_v16 }
 0x714   : > { %15252 = vst [vmem:[#allocation51_spill] sm:$0xff] %v11801_v3  ;;  %v8328_v55 = vpop.eup %8327  ;;  %v4041_v49 = vmul.f32 %v8326_v44, %v15254_v2  ;;  %4496 = vrot.lane.b32.xlu1 %v11801_v3, %s8404_s16  ;;  %v4162_v1 = vsel %vm4158_vm15, %v11779_v11, %v4150_v13  ;;  %v4163_v41 = vsel %vm4159_vm0, %v11785_v36, %v4151_v4  ;;  %v4166_v47 = vsel %vm4158_vm15, 1, %v15258_v21 }
 0x715   : > { %v4164_v45 = vsel %vm4160_vm1, %v11782_v51, %v4152_v17  ;;  %v4165_v10 = vsel %vm11812_vm2, %v11788_v30, %v4153_v16  ;;  %v4167_v5 = vsel %vm4159_vm0, 1, %v15258_v21  ;;  %v4043_v38 = vmul.f32 %v8328_v55, %v15259_v54 }
 0x716   : > { %v11822_v26 = vpack.c.bf16 %v4041_v49, %v4039_v0  ;;  %v4168_v56 = vsel %vm4160_vm1, 1, %v15258_v21  ;;  %v4174_v40 = vrot.slane %v4162_v1, 7  ;;  %v4175_v60 = vrot.slane %v4163_v41, 7  ;;  %v15270_v41 = vld [vmem:[#allocation20_spill] sm:$0xff] }
 0x717   : > { %v8330_v19 = vpop.eup %8329  ;;  %v4169_v42 = vsel %vm11812_vm2, 1, %v15258_v21  ;;  %v4176_v18 = vrot.slane %v4164_v45, 7  ;;  %v4177_v8 = vrot.slane %v4165_v10, 7  ;;  %v4190_v17 = vrot.slane %v4166_v47, 7  ;;  %v15271_v10 = vld [vmem:[#allocation77_spill] sm:$0xff] }
 0x718   : > { %15257 = vst [vmem:[#allocation90_spill] sm:$0xff] %v11822_v26  ;;  %v4045_v34 = vmul.f32 %v8330_v19, %v15260_v57  ;;  %4504 = vrot.lane.b32.xlu1 %v11603_v63, %s8405_s21  ;;  %4498 = vrot.lane.b32.xlu0 %v11822_v26, %s8404_s16  ;;  %v8332_v7 = vpop.eup %8331  ;;  %vm11837_vm3 = vcmp.gt.f32.partialorder %v11779_v11, %v4174_v40  ;;  %v4191_v16 = vrot.slane %v4167_v5, 7  ;;  %v4192_v5 = vrot.slane %v4168_v56, 7 }
 0x719   : > { %vm11842_vm4 = vcmp.gt.f32.partialorder %v11785_v36, %v4175_v60  ;;  %vm11849_vm5 = vcmp.gt.f32.partialorder %v11782_v51, %v4176_v18  ;;  %vm11854_vm6 = vcmp.gt.f32.partialorder %v11788_v30, %v4177_v8  ;;  %v4186_v55 = vsel %vm11837_vm3, %v11779_v11, %v4174_v40 }
 0x71a   : > { %v11846_v44 = vpack.c.bf16 %v4045_v34, %v4043_v38  ;;  %v4187_v49 = vsel %vm11842_vm4, %v11785_v36, %v4175_v60  ;;  %v4188_v23 = vsel %vm11849_vm5, %v11782_v51, %v4176_v18  ;;  %v4189_v1 = vsel %vm11854_vm6, %v11788_v30, %v4177_v8 }
 0x71b   : > { %v8334_v2 = vpop.eup %8333  ;;  %v4047_v45 = vmul.f32 %v8332_v7, %v15270_v41  ;;  %v4193_v19 = vrot.slane %v4169_v42, 7  ;;  %v4194_v54 = vsel %vm11837_vm3, 2, %v4190_v17  ;;  %v4202_v38 = vrot.slane %v4186_v55, 7 }
 0x71c   : > { %15265 = vst [vmem:[#allocation54_spill] sm:$0xff] %v11846_v44  ;;  %v4049_v47 = vmul.f32 %v8334_v2, %v15271_v10  ;;  %4500 = vrot.lane.b32.xlu1 %v11846_v44, %s8404_s16  ;;  %v4203_v40 = vrot.slane %v4187_v49, 7  ;;  %v4204_v60 = vrot.slane %v4188_v23, 7  ;;  %v4195_v34 = vsel %vm11842_vm4, 2, %v4191_v16 }
 0x71d   : > { %v4196_v18 = vsel %vm11849_vm5, 2, %v4192_v5  ;;  %v4205_v8 = vrot.slane %v4189_v1, 7  ;;  %v4197_v7 = vsel %vm11854_vm6, 2, %v4193_v19  ;;  %vm4210_vm7 = vcmp.gt.f32.partialorder %v11779_v11, %v4202_v38 }
 0x71e   : > { %v11876_v57 = vpack.c.bf16 %v4049_v47, %v4047_v45  ;;  %vm11886_vm8 = vcmp.gt.f32.partialorder %v11785_v36, %v4203_v40  ;;  %vm11891_vm9 = vcmp.gt.f32.partialorder %v11782_v51, %v4204_v60  ;;  %v4214_v4 = vsel %vm4210_vm7, %v11779_v11, %v4202_v38 }
 0x71f   : > { %vm11900_vm10 = vcmp.gt.f32.partialorder %v11788_v30, %v4205_v8  ;;  %v4215_v17 = vsel %vm11886_vm8, %v11785_v36, %v4203_v40  ;;  %v4218_v16 = vrot.slane %v4194_v54, 7  ;;  %v4216_v24 = vsel %vm11891_vm9, %v11782_v51, %v4204_v60 }
 0x720   : > { %15272 = vst [vmem:[#allocation95_spill] sm:$0xff] %v11876_v57  ;;  %4508 = vrot.lane.b32.xlu1 %v11614_v22, %s8405_s21  ;;  %4502 = vrot.lane.b32.xlu0 %v11876_v57, %s8404_s16  ;;  %v4217_v0 = vsel %vm11900_vm10, %v11788_v30, %v4205_v8  ;;  %v4219_v55 = vrot.slane %v4195_v34, 7  ;;  %v4220_v2 = vrot.slane %v4196_v18, 7  ;;  %v4221_v49 = vrot.slane %v4197_v7, 7  ;;  %s8410_s16 = smov 56  }
 0x721   : > { %v4222_v23 = vsel %vm4210_vm7, 3, %v4218_v16  ;;  %v4230_v1 = vrot.slane %v4214_v4, 7  ;;  %v4231_v41 = vrot.slane %v4215_v17, 7  ;;  %v4232_v47 = vrot.slane %v4216_v24, 7 }
 0x722   : > { %v4223_v45 = vsel %vm11886_vm8, 3, %v4219_v55  ;;  %v4224_v10 = vsel %vm11891_vm9, 3, %v4220_v2  ;;  %v8406_v5 = vmov 1966171168   ;;  %v4225_v54 = vsel %vm11900_vm10, 3, %v4221_v49 }
 0x723   : > { %v11918_v19 = vunpack.c.l.s4 %v8406_v5  ;;  %v4233_v38 = vrot.slane %v4217_v0, 7  ;;  %vm4238_vm12 = vcmp.gt.f32.partialorder %v11779_v11, %v4230_v1  ;;  %vm4239_vm15 = vcmp.gt.f32.partialorder %v11785_v36, %v4231_v41 }
 0x724   : > { %4512 = vrot.lane.b32.xlu1 %v11626_v59, %s8405_s21  ;;  %4506 = vrot.lane.b32.xlu0 %v11606_v9, %s8405_s21  ;;  %vm4240_vm0 = vcmp.gt.f32.partialorder %v11782_v51, %v4232_v47  ;;  %v4242_v40 = vsel %vm4238_vm12, %v11779_v11, %v4230_v1  ;;  %v4243_v60 = vsel %vm4239_vm15, %v11785_v36, %v4231_v41  ;;  %v4246_v34 = vrot.slane %v4222_v23, 7 }
 0x725   : > { %vm4241_vm1 = vcmp.gt.f32.partialorder %v11788_v30, %v4233_v38  ;;  %v4244_v18 = vsel %vm4240_vm0, %v11782_v51, %v4232_v47  ;;  %v4247_v8 = vrot.slane %v4223_v45, 7  ;;  %v4248_v7 = vrot.slane %v4224_v10, 7 }
 0x726   : > { %v4245_v56 = vsel %vm4241_vm1, %v11788_v30, %v4233_v38  ;;  %v4249_v42 = vrot.slane %v4225_v54, 7  ;;  %v4250_v13 = vsel %vm4238_vm12, 4, %v4246_v34  ;;  %v14815_v4 = vlaneseq }
 0x727   : > { %v4251_v17 = vsel %vm4239_vm15, 4, %v4247_v8  ;;  %v4252_v16 = vsel %vm4240_vm0, 4, %v4248_v7  ;;  %v4258_v24 = vrot.slane %v4242_v40, 7  ;;  %v4259_v0 = vrot.slane %v4243_v60, 7 }
 0x728   : > { %4516 = vrot.lane.b32.xlu1 %v11638_v37, %s8405_s21  ;;  %4510 = vrot.lane.b32.xlu0 %v11620_v25, %s8405_s21  ;;  %v4253_v55 = vsel %vm4241_vm1, 4, %v4249_v42  ;;  %v4260_v2 = vrot.slane %v4244_v18, 7  ;;  %v4261_v49 = vrot.slane %v4245_v56, 7  ;;  %v4274_v23 = vrot.slane %v4250_v13, 7 }
 0x729   : > { %vm4266_vm2 = vcmp.gt.f32.partialorder %v11779_v11, %v4258_v24  ;;  %vm4267_vm3 = vcmp.gt.f32.partialorder %v11785_v36, %v4259_v0  ;;  %v4275_v1 = vrot.slane %v4251_v17, 7  ;;  %v4276_v41 = vrot.slane %v4252_v16, 7 }
 0x72a   : > { %vm4268_vm4 = vcmp.gt.f32.partialorder %v11782_v51, %v4260_v2  ;;  %vm11942_vm5 = vcmp.gt.f32.partialorder %v11788_v30, %v4261_v49  ;;  %v4270_v10 = vsel %vm4266_vm2, %v11779_v11, %v4258_v24  ;;  %v4338_v47 = vunpack.c.0.s8 %v11918_v19 }
 0x72b   : > { %v4271_v5 = vsel %vm4267_vm3, %v11785_v36, %v4259_v0  ;;  %v4272_v54 = vsel %vm4268_vm4, %v11782_v51, %v4260_v2  ;;  %v4273_v38 = vsel %vm11942_vm5, %v11788_v30, %v4261_v49  ;;  %v4277_v40 = vrot.slane %v4253_v55, 7 }
 0x72c   : > { %4520 = vrot.lane.b32.xlu1 %v11654_v62, %s8405_s21  ;;  %4514 = vrot.lane.b32.xlu0 %v11632_v61, %s8405_s21  ;;  %v4278_v60 = vsel %vm4266_vm2, 5, %v4274_v23  ;;  %v4279_v34 = vsel %vm4267_vm3, 5, %v4275_v1  ;;  %v4280_v18 = vsel %vm4268_vm4, 5, %v4276_v41  ;;  %v4286_v8 = vrot.slane %v4270_v10, 7 }
 0x72d   : > { %v4287_v19 = vrot.slane %v4271_v5, 7  ;;  %v4288_v7 = vrot.slane %v4272_v54, 7  ;;  %v4289_v56 = vrot.slane %v4273_v38, 7  ;;  %v4340_v42 = vshrl.u32 %v14815_v4, 7 }
 0x72e   : > { %v4281_v13 = vsel %vm11942_vm5, 5, %v4277_v40  ;;  %vm4294_vm6 = vcmp.gt.f32.partialorder %v11779_v11, %v4286_v8  ;;  %v4302_v17 = vrot.slane %v4278_v60, 7  ;;  %v4303_v16 = vrot.slane %v4279_v34, 7 }
 0x72f   : > { %vm4295_vm7 = vcmp.gt.f32.partialorder %v11785_v36, %v4287_v19  ;;  %vm4296_vm8 = vcmp.gt.f32.partialorder %v11782_v51, %v4288_v7  ;;  %vm11968_vm9 = vcmp.gt.f32.partialorder %v11788_v30, %v4289_v56  ;;  %v4304_v0 = vrot.slane %v4280_v18, 7 }
 0x730   : > { %4524 = vrot.lane.b32.xlu1 %v11670_v58, %s8405_s21  ;;  %4518 = vrot.lane.b32.xlu0 %v11644_v43, %s8405_s21  ;;  %v4298_v55 = vsel %vm4294_vm6, %v11779_v11, %v4286_v8  ;;  %v4299_v2 = vsel %vm4295_vm7, %v11785_v36, %v4287_v19  ;;  %v4300_v49 = vsel %vm4296_vm8, %v11782_v51, %v4288_v7  ;;  %v4305_v1 = vrot.slane %v4281_v13, 7 }
 0x731   : > { %v4301_v23 = vsel %vm11968_vm9, %v11788_v30, %v4289_v56  ;;  %v4306_v41 = vsel %vm4294_vm6, 6, %v4302_v17  ;;  %v4307_v45 = vsel %vm4295_vm7, 6, %v4303_v16  ;;  %v4308_v10 = vsel %vm4296_vm8, 6, %v4304_v0  ;;  %v12018_v0 = vpop.permute.xlu1 %4442 }
 0x732   : > { %v4314_v5 = vrot.slane %v4298_v55, 7  ;;  %v4315_v54 = vrot.slane %v4299_v2, 7  ;;  %v4316_v38 = vrot.slane %v4300_v49, 7  ;;  %v11978_v40 = vsub.s32 %v4338_v47, %v4340_v42  ;;  %15284 = vst [vmem:[#allocation68_spill] sm:$0xff] %v12018_v0  ;;  %v12030_v2 = vpop.permute.xlu0 %4440 }
 0x733   : > { %v4309_v60 = vsel %vm11968_vm9, 6, %v4305_v1  ;;  %v4317_v34 = vrot.slane %v4301_v23, 7  ;;  %v4326_v18 = vrot.slane %v4306_v41, 7  ;;  %v4327_v8 = vrot.slane %v4307_v45, 7  ;;  %15286 = vst [vmem:[#allocation72_spill] sm:$0xff] %v12030_v2 }
 0x734   : > { %15283 = vst [vmem:[#allocation4_spill] sm:$0xff] %v11978_v40  ;;  %4528 = vrot.lane.b32.xlu1 %v11682_v46, %s8405_s21  ;;  %4522 = vrot.lane.b32.xlu0 %v11664_v31, %s8405_s21  ;;  %vm4322_vm10 = vcmp.gt.f32.partialorder %v11779_v11, %v4314_v5  ;;  %vm4323_vm12 = vcmp.gt.f32.partialorder %v11785_v36, %v4315_v54  ;;  %v4328_v47 = vrot.slane %v4308_v10, 7  ;;  %v4329_v19 = vrot.slane %v4309_v60, 7 }
 0x735   : > { %vm4324_vm15 = vcmp.gt.f32.partialorder %v11782_v51, %v4316_v38  ;;  %vm4325_vm0 = vcmp.gt.f32.partialorder %v11788_v30, %v4317_v34  ;;  %v4330_v7 = vsel %vm4322_vm10, 7, %v4326_v18  ;;  %v4331_v56 = vsel %vm4323_vm12, 7, %v4327_v8  ;;  %v12024_v55 = vpop.permute.xlu1 %4444 }
 0x736   : > { %v4332_v42 = vsel %vm4324_vm15, 7, %v4328_v47  ;;  %v4334_v13 = vcombine.high %v4330_v7, %v4331_v56  ;;  %v4333_v11 = vsel %vm4325_vm0, 7, %v4329_v19  ;;  %vm4361_vm1 = vcmp.lt.s32.totalorder %v14815_v4, 512  ;;  %15285 = vst [vmem:[#allocation21_spill] sm:$0xff] %v12024_v55  ;;  %v12042_v23 = vpop.permute.xlu0 %4446 }
 0x737   : > { %v4335_v17 = vcombine.high %v4332_v42, %v4333_v11  ;;  %15288 = vst [vmem:[#allocation89_spill] sm:$0xff] %v12042_v23  ;;  %vm5496_vm2 = vcmask 130048   ;;  %vm5689_vm3 = vcmask 326656   ;;  %vm5754_vm4 = vcmask 392192  }
 0x738   : > { %4532 = vrot.lane.b32.xlu1 %v11694_v27, %s8405_s21  ;;  %4526 = vrot.lane.b32.xlu0 %v11676_v15, %s8405_s21  ;;  %v4342_v36 = vrot.slane %v4334_v13, %v11978_v40  ;;  %vm5884_vm5 = vcmask 523264   ;;  %vm5819_vm6 = vcmask 457728   ;;  %vm5949_vm7 = vcmask 588800  }
 0x739   : > { %v4349_v51 = vrot.slane %v4335_v17, %v11978_v40  ;;  %v12036_v49 = vpop.permute.xlu1 %4448  ;;  %vm6014_vm8 = vcmask 654336   ;;  %vm6079_vm9 = vcmask 719872   ;;  %vm6144_vm10 = vcmask 785408  }
 0x73a   : > { %15287 = vst [vmem:[#allocation84_spill] sm:$0xff] %v12036_v49  ;;  %v12050_v41 = vpop.permute.xlu0 %4450  ;;  %vm6209_vm12 = vcmask 850944   ;;  %vm6274_vm15 = vcmask 916480   ;;  %vm6339_vm0 = vcmask 982016  }
 0x73b   : > { %v4350_v30 = vcombine.high %v4342_v36, %v4349_v51 }
 0x73c   : > { %4536 = vrot.lane.b32.xlu1 %v11706_v29, %s8405_s21  ;;  %4530 = vrot.lane.b32.xlu0 %v11688_v33, %s8405_s21 }
 0x73d   : > { %v4357_v16 = vrot.slane %v4350_v30, %v11978_v40  ;;  %v12044_v1 = vpop.permute.xlu1 %4452 }
 0x73e   : > { %v12058_v10 = vpop.permute.xlu0 %4454 }
 0x73f   : > { %v4358_v24 = vcombine.high %v4357_v16, %v4357_v16 }
 0x740   : > { %4540 = vrot.lane.b32.xlu1 %v11718_v52, %s8405_s21  ;;  %4534 = vrot.lane.b32.xlu0 %v11700_v32, %s8405_s21 }
 0x741   : > { %4363 = vst.msk [vmem:[%s497_s24] sm:$0xf] %vm4361_vm1, %v4358_v24  ;;  %v12052_v45 = vpop.permute.xlu1 %4456 }
 0x742   : > { %15289 = vst [vmem:[#allocation5_spill] sm:$0xff] %v12052_v45  ;;  %v12066_v54 = vpop.permute.xlu0 %4458 }
 0x743   : > { %15291 = vst [vmem:[#allocation94_spill] sm:$0xff] %v12066_v54 }
 0x744   : > { %4544 = vrot.lane.b32.xlu1 %v11730_v28, %s8405_s21  ;;  %4538 = vrot.lane.b32.xlu0 %v11712_v39, %s8405_s21 }
 0x745   : > { %v12060_v5 = vpop.permute.xlu1 %4460 }
 0x746   : > { %15290 = vst [vmem:[#allocation53_spill] sm:$0xff] %v12060_v5  ;;  %v12074_v60 = vpop.permute.xlu0 %4462 }
 0x747   : > { %15293 = vst [vmem:[#allocation99_spill] sm:$0xff] %v12074_v60 }
 0x748   : > { %4548 = vrot.lane.b32.xlu1 %v11742_v35, %s8405_s21  ;;  %4542 = vrot.lane.b32.xlu0 %v11724_v6, %s8405_s21 }
 0x749   : > { %v12068_v38 = vpop.permute.xlu1 %4464 }
 0x74a   : > { %15292 = vst [vmem:[#allocation56_spill] sm:$0xff] %v12068_v38  ;;  %v12082_v18 = vpop.permute.xlu0 %4466 }
 0x74b   : > { %15295 = vst [vmem:[#allocation69_spill] sm:$0xff] %v12082_v18 }
 0x74c   : > { %4552 = vrot.lane.b32.xlu1 %v11754_v48, %s8405_s21  ;;  %4546 = vrot.lane.b32.xlu0 %v11736_v20, %s8405_s21 }
 0x74d   : > { %v12076_v34 = vpop.permute.xlu1 %4468 }
 0x74e   : > { %15294 = vst [vmem:[#allocation67_spill] sm:$0xff] %v12076_v34  ;;  %v12090_v47 = vpop.permute.xlu0 %4470 }
 0x74f   : > { %15297 = vst [vmem:[#allocation74_spill] sm:$0xff] %v12090_v47 }
 0x750   : > { %4556 = vrot.lane.b32.xlu1 %v11766_v14, %s8405_s21  ;;  %4550 = vrot.lane.b32.xlu0 %v11748_v50, %s8405_s21 }
 0x754   : > { %4560 = vrot.lane.b32.xlu1 %v11801_v3, %s8405_s21  ;;  %4554 = vrot.lane.b32.xlu0 %v11760_v53, %s8405_s21 }
 0x756   : > { %v12084_v8 = vpop.permute.xlu1 %4472 }
 0x757   : > { %15296 = vst [vmem:[#allocation23_spill] sm:$0xff] %v12084_v8 }
 0x758   : > { %4564 = vrot.lane.b32.xlu1 %v11846_v44, %s8405_s21  ;;  %4558 = vrot.lane.b32.xlu0 %v11773_v12, %s8405_s21 }
 0x75a   : > { %v12098_v7 = vpop.permute.xlu0 %4474 }
 0x75b   : > { %15299 = vst [vmem:[#allocation93_spill] sm:$0xff] %v12098_v7 }
 0x75c   : > { %4568 = vrot.lane.b32.xlu1 %v11603_v63, %s8402_s14  ;;  %4562 = vrot.lane.b32.xlu0 %v11822_v26, %s8405_s21 }
 0x75e   : > { %v12092_v19 = vpop.permute.xlu1 %4476 }
 0x75f   : > { %15298 = vst [vmem:[#allocation88_spill] sm:$0xff] %v12092_v19 }
 0x760   : > { %4572 = vrot.lane.b32.xlu1 %v11614_v22, %s8402_s14  ;;  %4566 = vrot.lane.b32.xlu0 %v11876_v57, %s8405_s21  ;;  %s8415_s21 = smov 96  }
 0x762   : > { %v12106_v42 = vpop.permute.xlu0 %4478 }
 0x763   : > { %15301 = vst [vmem:[#allocation55_spill] sm:$0xff] %v12106_v42 }
 0x764   : > { %4576 = vrot.lane.b32.xlu1 %v11626_v59, %s8402_s14  ;;  %4570 = vrot.lane.b32.xlu0 %v11606_v9, %s8402_s14 }
 0x766   : > { %v12100_v56 = vpop.permute.xlu1 %4480 }
 0x767   : > { %15300 = vst [vmem:[#allocation8_spill] sm:$0xff] %v12100_v56 }
 0x768   : > { %4580 = vrot.lane.b32.xlu1 %v11638_v37, %s8402_s14  ;;  %4574 = vrot.lane.b32.xlu0 %v11620_v25, %s8402_s14 }
 0x76a   : > { %v12114_v11 = vpop.permute.xlu0 %4482 }
 0x76b   : > { %15302 = vst [vmem:[#allocation98_spill] sm:$0xff] %v12114_v11 }
 0x76c   : > { %4584 = vrot.lane.b32.xlu1 %v11654_v62, %s8402_s14  ;;  %4578 = vrot.lane.b32.xlu0 %v11632_v61, %s8402_s14 }
 0x76e   : > { %v12108_v13 = vpop.permute.xlu1 %4484 }
 0x770   : > { %4588 = vrot.lane.b32.xlu1 %v11670_v58, %s8402_s14  ;;  %4582 = vrot.lane.b32.xlu0 %v11644_v43, %s8402_s14 }
 0x772   : > { %v12122_v36 = vpop.permute.xlu0 %4486 }
 0x774   : > { %4592 = vrot.lane.b32.xlu1 %v11682_v46, %s8402_s14  ;;  %4586 = vrot.lane.b32.xlu0 %v11664_v31, %s8402_s14 }
 0x776   : > { %v12116_v17 = vpop.permute.xlu1 %4488 }
 0x777   : > { %15303 = vst [vmem:[#allocation58_spill] sm:$0xff] %v12116_v17 }
 0x778   : > { %4596 = vrot.lane.b32.xlu1 %v11694_v27, %s8402_s14  ;;  %4590 = vrot.lane.b32.xlu0 %v11676_v15, %s8402_s14 }
 0x77a   : > { %v12130_v30 = vpop.permute.xlu0 %4490 }
 0x77b   : > { %15305 = vst [vmem:[#allocation7_spill] sm:$0xff] %v12130_v30 }
 0x77c   : > { %4600 = vrot.lane.b32.xlu1 %v11706_v29, %s8402_s14  ;;  %4594 = vrot.lane.b32.xlu0 %v11688_v33, %s8402_s14 }
 0x77e   : > { %v12124_v51 = vpop.permute.xlu1 %4492 }
 0x77f   : > { %15304 = vst [vmem:[#allocation101_spill] sm:$0xff] %v12124_v51 }
 0x780   : > { %4604 = vrot.lane.b32.xlu1 %v11718_v52, %s8402_s14  ;;  %4598 = vrot.lane.b32.xlu0 %v11700_v32, %s8402_s14 }
 0x782   : > { %v12138_v24 = vpop.permute.xlu0 %4494 }
 0x783   : > { %15307 = vst [vmem:[#allocation73_spill] sm:$0xff] %v12138_v24 }
 0x784   : > { %4608 = vrot.lane.b32.xlu1 %v11730_v28, %s8402_s14  ;;  %4602 = vrot.lane.b32.xlu0 %v11712_v39, %s8402_s14 }
 0x786   : > { %v12132_v16 = vpop.permute.xlu1 %4496 }
 0x787   : > { %15306 = vst [vmem:[#allocation71_spill] sm:$0xff] %v12132_v16 }
 0x788   : > { %4612 = vrot.lane.b32.xlu1 %v11742_v35, %s8402_s14  ;;  %4606 = vrot.lane.b32.xlu0 %v11724_v6, %s8402_s14 }
 0x78a   : > { %v12140_v4 = vpop.permute.xlu1 %4504  ;;  %v12146_v40 = vpop.permute.xlu0 %4498 }
 0x78b   : > { %15308 = vst [vmem:[#allocation76_spill] sm:$0xff] %v12140_v4  ;;  %15309 = vst [vmem:[#allocation92_spill] sm:$0xff] %v12146_v40 }
 0x78c   : > { %4616 = vrot.lane.b32.xlu1 %v11754_v48, %s8402_s14  ;;  %4610 = vrot.lane.b32.xlu0 %v11736_v20, %s8402_s14 }
 0x78e   : > { %v12148_v21 = vpop.permute.xlu1 %4500 }
 0x78f   : > { %15310 = vst [vmem:[#allocation97_spill] sm:$0xff] %v12148_v21 }
 0x790   : > { %4620 = vrot.lane.b32.xlu1 %v11766_v14, %s8402_s14  ;;  %4614 = vrot.lane.b32.xlu0 %v11748_v50, %s8402_s14 }
 0x792   : > { %v12154_v17 = vpop.permute.xlu0 %4502  ;;  %v12156_v45 = vpop.permute.xlu1 %4508 }
 0x793   : > { %15311 = vst [vmem:[#allocation57_spill] sm:$0xff] %v12154_v17  ;;  %15312 = vst [vmem:[#allocation100_spill] sm:$0xff] %v12156_v45 }
 0x794   : > { %4624 = vrot.lane.b32.xlu1 %v11801_v3, %s8402_s14  ;;  %4618 = vrot.lane.b32.xlu0 %v11760_v53, %s8402_s14 }
 0x796   : > { %v12162_v30 = vpop.permute.xlu0 %4506  ;;  %v12164_v54 = vpop.permute.xlu1 %4512 }
 0x797   : > { %15313 = vst [vmem:[#allocation70_spill] sm:$0xff] %v12162_v30  ;;  %15314 = vst [vmem:[#allocation75_spill] sm:$0xff] %v12164_v54 }
 0x798   : > { %4622 = vrot.lane.b32.xlu0 %v11773_v12, %s8402_s14  ;;  %4628 = vrot.lane.b32.xlu1 %v11846_v44, %s8402_s14 }
 0x79a   : > { %v12170_v51 = vpop.permute.xlu0 %4510  ;;  %v12172_v5 = vpop.permute.xlu1 %4516 }
 0x79b   : > { %15315 = vst [vmem:[#allocation96_spill] sm:$0xff] %v12170_v51 }
 0x79c   : > { %4626 = vrot.lane.b32.xlu0 %v11822_v26, %s8402_s14  ;;  %4632 = vrot.lane.b32.xlu1 %v11603_v63, %s8407_s29 }
 0x79e   : > { %v12178_v24 = vpop.permute.xlu0 %4514  ;;  %v12180_v60 = vpop.permute.xlu1 %4520 }
 0x79f   : > { %15316 = vst [vmem:[#allocation9_spill] sm:$0xff] %v12178_v24  ;;  %15317 = vst [vmem:[#allocation35_spill] sm:$0xff] %v12180_v60 }
 0x7a0   : > { %4630 = vrot.lane.b32.xlu0 %v11876_v57, %s8402_s14  ;;  %4636 = vrot.lane.b32.xlu1 %v11614_v22, %s8407_s29  ;;  %s8408_s14 = smov 40  }
 0x7a2   : > { %v12186_v16 = vpop.permute.xlu0 %4518  ;;  %v12188_v38 = vpop.permute.xlu1 %4524 }
 0x7a3   : > { %15318 = vst [vmem:[#allocation37_spill] sm:$0xff] %v12188_v38 }
 0x7a4   : > { %4634 = vrot.lane.b32.xlu0 %v11606_v9, %s8407_s29  ;;  %4640 = vrot.lane.b32.xlu1 %v11626_v59, %s8407_s29 }
 0x7a6   : > { %v12194_v40 = vpop.permute.xlu0 %4522  ;;  %v12196_v18 = vpop.permute.xlu1 %4528 }
 0x7a7   : > { %15319 = vst [vmem:[#allocation39_spill] sm:$0xff] %v12194_v40  ;;  %15320 = vst [vmem:[#allocation40_spill] sm:$0xff] %v12196_v18 }
 0x7a8   : > { %4638 = vrot.lane.b32.xlu0 %v11620_v25, %s8407_s29  ;;  %4644 = vrot.lane.b32.xlu1 %v11638_v37, %s8407_s29 }
 0x7aa   : > { %v12202_v60 = vpop.permute.xlu0 %4526  ;;  %v12204_v21 = vpop.permute.xlu1 %4532 }
 0x7ab   : > { %15321 = vst [vmem:[#allocation44_spill] sm:$0xff] %v12202_v60  ;;  %15322 = vst [vmem:[#allocation47_spill] sm:$0xff] %v12204_v21 }
 0x7ac   : > { %4642 = vrot.lane.b32.xlu0 %v11632_v61, %s8407_s29  ;;  %4648 = vrot.lane.b32.xlu1 %v11654_v62, %s8407_s29 }
 0x7ae   : > { %v12210_v38 = vpop.permute.xlu0 %4530  ;;  %v12212_v40 = vpop.permute.xlu1 %4536 }
 0x7af   : > { %15323 = vst [vmem:[#allocation78_spill] sm:$0xff] %v12210_v38  ;;  %15324 = vst [vmem:[#allocation10_spill] sm:$0xff] %v12212_v40 }
 0x7b0   : > { %4646 = vrot.lane.b32.xlu0 %v11644_v43, %s8407_s29  ;;  %4652 = vrot.lane.b32.xlu1 %v11670_v58, %s8407_s29 }
 0x7b2   : > { %v12218_v18 = vpop.permute.xlu0 %4534  ;;  %v12220_v60 = vpop.permute.xlu1 %4540 }
 0x7b3   : > { %15325 = vst [vmem:[#allocation11_spill] sm:$0xff] %v12218_v18  ;;  %15326 = vst [vmem:[#allocation25_spill] sm:$0xff] %v12220_v60 }
 0x7b4   : > { %4650 = vrot.lane.b32.xlu0 %v11664_v31, %s8407_s29  ;;  %4656 = vrot.lane.b32.xlu1 %v11682_v46, %s8407_s29 }
 0x7b6   : > { %v12226_v21 = vpop.permute.xlu0 %4538  ;;  %v12228_v38 = vpop.permute.xlu1 %4544 }
 0x7b7   : > { %15327 = vst [vmem:[#allocation13_spill] sm:$0xff] %v12226_v21  ;;  %15328 = vst [vmem:[#allocation28_spill] sm:$0xff] %v12228_v38 }
 0x7b8   : > { %4654 = vrot.lane.b32.xlu0 %v11676_v15, %s8407_s29  ;;  %4660 = vrot.lane.b32.xlu1 %v11694_v27, %s8407_s29 }
 0x7ba   : > { %v12234_v34 = vpop.permute.xlu0 %4542  ;;  %v12236_v17 = vpop.permute.xlu1 %4548 }
 0x7bb   : > { %15329 = vst [vmem:[#allocation27_spill] sm:$0xff] %v12234_v34 }
 0x7bc   : > { %4658 = vrot.lane.b32.xlu0 %v11688_v33, %s8407_s29  ;;  %4664 = vrot.lane.b32.xlu1 %v11706_v29, %s8407_s29 }
 0x7be   : > { %v12242_v18 = vpop.permute.xlu0 %4546  ;;  %v12244_v47 = vpop.permute.xlu1 %4552 }
 0x7bf   : > { %15330 = vst [vmem:[#allocation24_spill] sm:$0xff] %v12242_v18  ;;  %15331 = vst [vmem:[#allocation42_spill] sm:$0xff] %v12244_v47 }
 0x7c0   : > { %4662 = vrot.lane.b32.xlu0 %v11700_v32, %s8407_s29  ;;  %4668 = vrot.lane.b32.xlu1 %v11718_v52, %s8407_s29 }
 0x7c2   : > { %v12250_v40 = vpop.permute.xlu0 %4550  ;;  %v12252_v8 = vpop.permute.xlu1 %4556 }
 0x7c3   : > { %15332 = vst [vmem:[#allocation45_spill] sm:$0xff] %v12252_v8 }
 0x7c4   : > { %4666 = vrot.lane.b32.xlu0 %v11712_v39, %s8407_s29  ;;  %4672 = vrot.lane.b32.xlu1 %v11730_v28, %s8407_s29 }
 0x7c6   : > { %v12258_v4 = vpop.permute.xlu0 %4554  ;;  %v12260_v2 = vpop.permute.xlu1 %4560 }
 0x7c7   : > { %15333 = vst [vmem:[#allocation30_spill] sm:$0xff] %v12258_v4  ;;  %15334 = vst [vmem:[#allocation41_spill] sm:$0xff] %v12260_v2 }
 0x7c8   : > { %4670 = vrot.lane.b32.xlu0 %v11724_v6, %s8407_s29  ;;  %4676 = vrot.lane.b32.xlu1 %v11742_v35, %s8407_s29 }
 0x7ca   : > { %v12266_v47 = vpop.permute.xlu0 %4558  ;;  %v12268_v21 = vpop.permute.xlu1 %4564 }
 0x7cb   : > { %15335 = vst [vmem:[#allocation59_spill] sm:$0xff] %v12266_v47  ;;  %15336 = vst [vmem:[#allocation32_spill] sm:$0xff] %v12268_v21 }
 0x7cc   : > { %4674 = vrot.lane.b32.xlu0 %v11736_v20, %s8407_s29  ;;  %4680 = vrot.lane.b32.xlu1 %v11754_v48, %s8407_s29 }
 0x7ce   : > { %v12274_v8 = vpop.permute.xlu0 %4562  ;;  %v12276_v4 = vpop.permute.xlu1 %4568 }
 0x7cf   : > { %15337 = vst [vmem:[#allocation31_spill] sm:$0xff] %v12274_v8  ;;  %15338 = vst [vmem:[#allocation26_spill] sm:$0xff] %v12276_v4 }
 0x7d0   : > { %4678 = vrot.lane.b32.xlu0 %v11748_v50, %s8407_s29  ;;  %4684 = vrot.lane.b32.xlu1 %v11766_v14, %s8407_s29 }
 0x7d2   : > { %v12282_v2 = vpop.permute.xlu0 %4566  ;;  %v12284_v47 = vpop.permute.xlu1 %4572 }
 0x7d3   : > { %15339 = vst [vmem:[#allocation102_spill] sm:$0xff] %v12282_v2  ;;  %15340 = vst [vmem:[#allocation16_spill] sm:$0xff] %v12284_v47 }
 0x7d4   : > { %4682 = vrot.lane.b32.xlu0 %v11760_v53, %s8407_s29  ;;  %4688 = vrot.lane.b32.xlu1 %v11801_v3, %s8407_s29 }
 0x7d6   : > { %v12290_v21 = vpop.permute.xlu0 %4570  ;;  %v12292_v8 = vpop.permute.xlu1 %4576 }
 0x7d7   : > { %15341 = vst [vmem:[#allocation62_spill] sm:$0xff] %v12290_v21  ;;  %15342 = vst [vmem:[#allocation34_spill] sm:$0xff] %v12292_v8 }
 0x7d8   : > { %4686 = vrot.lane.b32.xlu0 %v11773_v12, %s8407_s29  ;;  %4692 = vrot.lane.b32.xlu1 %v11846_v44, %s8407_s29 }
 0x7da   : > { %v12298_v4 = vpop.permute.xlu0 %4574  ;;  %v12300_v2 = vpop.permute.xlu1 %4580 }
 0x7db   : > { %15343 = vst [vmem:[#allocation104_spill] sm:$0xff] %v12298_v4 }
 0x7dc   : > { %4690 = vrot.lane.b32.xlu0 %v11822_v26, %s8407_s29  ;;  %4696 = vrot.lane.b32.xlu1 %v11603_v63, %s8408_s14 }
 0x7de   : > { %v12306_v7 = vpop.permute.xlu0 %4578  ;;  %v12308_v21 = vpop.permute.xlu1 %4584 }
 0x7df   : > { %15344 = vst [vmem:[#allocation48_spill] sm:$0xff] %v12306_v7  ;;  %15345 = vst [vmem:[#allocation43_spill] sm:$0xff] %v12308_v21 }
 0x7e0   : > { %4694 = vrot.lane.b32.xlu0 %v11876_v57, %s8407_s29  ;;  %4700 = vrot.lane.b32.xlu1 %v11614_v22, %s8408_s14  ;;  %s7369_s29 = sshll.u32 %s15655_s25, 1 }
 0x7e2   : > { %v12314_v30 = vpop.permute.xlu0 %4582  ;;  %v12316_v0 = vpop.permute.xlu1 %4588 }
 0x7e3   : > { %15346 = vst [vmem:[#allocation61_spill] sm:$0xff] %v12316_v0 }
 0x7e4   : > { %4698 = vrot.lane.b32.xlu0 %v11606_v9, %s8408_s14  ;;  %4704 = vrot.lane.b32.xlu1 %v11626_v59, %s8408_s14 }
 0x7e6   : > { %v12322_v60 = vpop.permute.xlu0 %4586  ;;  %v12324_v19 = vpop.permute.xlu1 %4592 }
 0x7e7   : > { %15347 = vst [vmem:[#allocation83_spill] sm:$0xff] %v12322_v60  ;;  %15348 = vst [vmem:[#allocation64_spill] sm:$0xff] %v12324_v19 }
 0x7e8   : > { %4702 = vrot.lane.b32.xlu0 %v11620_v25, %s8408_s14  ;;  %4708 = vrot.lane.b32.xlu1 %v11638_v37, %s8408_s14 }
 0x7ea   : > { %v12330_v21 = vpop.permute.xlu0 %4590  ;;  %v12332_v47 = vpop.permute.xlu1 %4596 }
 0x7eb   : > { %15349 = vst [vmem:[#allocation15_spill] sm:$0xff] %v12330_v21  ;;  %15350 = vst [vmem:[#allocation18_spill] sm:$0xff] %v12332_v47 }
 0x7ec   : > { %4706 = vrot.lane.b32.xlu0 %v11632_v61, %s8408_s14  ;;  %4712 = vrot.lane.b32.xlu1 %v11654_v62, %s8408_s14 }
 0x7ee   : > { %v12338_v0 = vpop.permute.xlu0 %4594  ;;  %v12340_v60 = vpop.permute.xlu1 %4600 }
 0x7ef   : > { %15351 = vst [vmem:[#allocation33_spill] sm:$0xff] %v12338_v0  ;;  %15352 = vst [vmem:[#allocation79_spill] sm:$0xff] %v12340_v60 }
 0x7f0   : > { %4710 = vrot.lane.b32.xlu0 %v11644_v43, %s8408_s14  ;;  %4716 = vrot.lane.b32.xlu1 %v11670_v58, %s8408_s14 }
 0x7f2   : > { %v12346_v19 = vpop.permute.xlu0 %4598  ;;  %v12348_v21 = vpop.permute.xlu1 %4604 }
 0x7f3   : > { %15353 = vst [vmem:[#allocation103_spill] sm:$0xff] %v12346_v19  ;;  %15354 = vst [vmem:[#allocation106_spill] sm:$0xff] %v12348_v21 }
 0x7f4   : > { %4714 = vrot.lane.b32.xlu0 %v11664_v31, %s8408_s14  ;;  %4720 = vrot.lane.b32.xlu1 %v11682_v46, %s8408_s14 }
 0x7f6   : > { %v12354_v47 = vpop.permute.xlu0 %4602  ;;  %v12356_v0 = vpop.permute.xlu1 %4608 }
 0x7f7   : > { %15355 = vst [vmem:[#allocation46_spill] sm:$0xff] %v12354_v47  ;;  %15356 = vst [vmem:[#allocation82_spill] sm:$0xff] %v12356_v0 }
 0x7f8   : > { %4718 = vrot.lane.b32.xlu0 %v11676_v15, %s8408_s14  ;;  %4724 = vrot.lane.b32.xlu1 %v11694_v27, %s8408_s14 }
 0x7fa   : > { %v12362_v60 = vpop.permute.xlu0 %4606  ;;  %v12364_v19 = vpop.permute.xlu1 %4612 }
 0x7fb   : > { %15357 = vst [vmem:[#allocation50_spill] sm:$0xff] %v12362_v60 }
 0x7fc   : > { %4722 = vrot.lane.b32.xlu0 %v11688_v33, %s8408_s14  ;;  %4728 = vrot.lane.b32.xlu1 %v11706_v29, %s8408_s14 }
 0x7fe   : > { %v12370_v21 = vpop.permute.xlu0 %4610  ;;  %v12372_v47 = vpop.permute.xlu1 %4616 }
 0x7ff   : > { %15358 = vst [vmem:[#allocation87_spill] sm:$0xff] %v12370_v21  ;;  %15359 = vst [vmem:[#allocation63_spill] sm:$0xff] %v12372_v47 }
 0x800   : > { %4726 = vrot.lane.b32.xlu0 %v11700_v32, %s8408_s14  ;;  %4732 = vrot.lane.b32.xlu1 %v11718_v52, %s8408_s14 }
 0x802   : > { %v12378_v45 = vpop.permute.xlu0 %4614  ;;  %v12380_v55 = vpop.permute.xlu1 %4620 }
 0x803   : > { %15360 = vst [vmem:[#allocation66_spill] sm:$0xff] %v12380_v55 }
 0x804   : > { %4730 = vrot.lane.b32.xlu0 %v11712_v39, %s8408_s14  ;;  %4736 = vrot.lane.b32.xlu1 %v11730_v28, %s8408_s14 }
 0x806   : > { %v12386_v4 = vpop.permute.xlu0 %4618  ;;  %v12388_v51 = vpop.permute.xlu1 %4624 }
 0x807   : > { %15361 = vst [vmem:[#allocation17_spill] sm:$0xff] %v12386_v4  ;;  %15362 = vst [vmem:[#allocation20_spill] sm:$0xff] %v12388_v51 }
 0x808   : > { %4734 = vrot.lane.b32.xlu0 %v11724_v6, %s8408_s14  ;;  %4740 = vrot.lane.b32.xlu1 %v11742_v35, %s8408_s14 }
 0x80a   : > { %v12394_v47 = vpop.permute.xlu0 %4622  ;;  %v12396_v23 = vpop.permute.xlu1 %4628 }
 0x80b   : > { %15363 = vst [vmem:[#allocation77_spill] sm:$0xff] %v12394_v47  ;;  %15364 = vst [vmem:[#allocation109_spill] sm:$0xff] %v12396_v23 }
 0x80c   : > { %4738 = vrot.lane.b32.xlu0 %v11736_v20, %s8408_s14  ;;  %4744 = vrot.lane.b32.xlu1 %v11754_v48, %s8408_s14 }
 0x80e   : > { %v12402_v55 = vpop.permute.xlu0 %4626  ;;  %v12404_v4 = vpop.permute.xlu1 %4632 }
 0x80f   : > { %15365 = vst [vmem:[#allocation110_spill] sm:$0xff] %v12402_v55  ;;  %15366 = vst [vmem:[#allocation111_spill] sm:$0xff] %v12404_v4 }
 0x810   : > { %4742 = vrot.lane.b32.xlu0 %v11748_v50, %s8408_s14  ;;  %4748 = vrot.lane.b32.xlu1 %v11766_v14, %s8408_s14 }
 0x812   : > { %v12410_v51 = vpop.permute.xlu0 %4630  ;;  %v12412_v47 = vpop.permute.xlu1 %4636 }
 0x813   : > { %15367 = vst [vmem:[#allocation112_spill] sm:$0xff] %v12410_v51  ;;  %15368 = vst [vmem:[#allocation113_spill] sm:$0xff] %v12412_v47 }
 0x814   : > { %4746 = vrot.lane.b32.xlu0 %v11760_v53, %s8408_s14  ;;  %4752 = vrot.lane.b32.xlu1 %v11801_v3, %s8408_s14 }
 0x816   : > { %v12418_v23 = vpop.permute.xlu0 %4634  ;;  %v12420_v55 = vpop.permute.xlu1 %4640 }
 0x817   : > { %15369 = vst [vmem:[#allocation114_spill] sm:$0xff] %v12418_v23  ;;  %15370 = vst [vmem:[#allocation115_spill] sm:$0xff] %v12420_v55 }
 0x818   : > { %4750 = vrot.lane.b32.xlu0 %v11773_v12, %s8408_s14  ;;  %4756 = vrot.lane.b32.xlu1 %v11846_v44, %s8408_s14 }
 0x81a   : > { %v12426_v4 = vpop.permute.xlu0 %4638  ;;  %v12428_v51 = vpop.permute.xlu1 %4644 }
 0x81b   : > { %15371 = vst [vmem:[#allocation116_spill] sm:$0xff] %v12426_v4 }
 0x81c   : > { %4754 = vrot.lane.b32.xlu0 %v11822_v26, %s8408_s14  ;;  %4760 = vrot.lane.b32.xlu1 %v11603_v63, %s8409_s30 }
 0x81e   : > { %v12434_v23 = vpop.permute.xlu0 %4642  ;;  %v12436_v47 = vpop.permute.xlu1 %4648 }
 0x81f   : > { %15372 = vst [vmem:[#allocation117_spill] sm:$0xff] %v12434_v23  ;;  %15373 = vst [vmem:[#allocation118_spill] sm:$0xff] %v12436_v47 }
 0x820   : > { %4758 = vrot.lane.b32.xlu0 %v11876_v57, %s8408_s14  ;;  %4764 = vrot.lane.b32.xlu1 %v11614_v22, %s8409_s30  ;;  %s7564_s14 = sshll.u32 %s15655_s25, 4 }
 0x821   : > { %s503_s24 = scalar_lea.vmem %s14657_s12, %s7564_s14 }
 0x822   : > { %v12442_v4 = vpop.permute.xlu0 %4646  ;;  %v12444_v60 = vpop.permute.xlu1 %4652 }
 0x823   : > { %15374 = vst [vmem:[#allocation119_spill] sm:$0xff] %v12444_v60 }
 0x824   : > { %4762 = vrot.lane.b32.xlu0 %v11606_v9, %s8409_s30  ;;  %4768 = vrot.lane.b32.xlu1 %v11626_v59, %s8409_s30 }
 0x826   : > { %v12450_v34 = vpop.permute.xlu0 %4650  ;;  %v12452_v42 = vpop.permute.xlu1 %4656 }
 0x827   : > { %15375 = vst [vmem:[#allocation120_spill] sm:$0xff] %v12450_v34  ;;  %15376 = vst [vmem:[#allocation121_spill] sm:$0xff] %v12452_v42 }
 0x828   : > { %4766 = vrot.lane.b32.xlu0 %v11620_v25, %s8409_s30  ;;  %4772 = vrot.lane.b32.xlu1 %v11638_v37, %s8409_s30 }
 0x82a   : > { %v12458_v47 = vpop.permute.xlu0 %4654  ;;  %v12460_v0 = vpop.permute.xlu1 %4660 }
 0x82b   : > { %15377 = vst [vmem:[#allocation122_spill] sm:$0xff] %v12458_v47  ;;  %15378 = vst [vmem:[#allocation123_spill] sm:$0xff] %v12460_v0 }
 0x82c   : > { %4770 = vrot.lane.b32.xlu0 %v11632_v61, %s8409_s30  ;;  %4776 = vrot.lane.b32.xlu1 %v11654_v62, %s8409_s30 }
 0x82e   : > { %v12466_v60 = vpop.permute.xlu0 %4658  ;;  %v12468_v34 = vpop.permute.xlu1 %4664 }
 0x82f   : > { %15379 = vst [vmem:[#allocation124_spill] sm:$0xff] %v12466_v60  ;;  %15380 = vst [vmem:[#allocation125_spill] sm:$0xff] %v12468_v34 }
 0x830   : > { %4774 = vrot.lane.b32.xlu0 %v11644_v43, %s8409_s30  ;;  %4780 = vrot.lane.b32.xlu1 %v11670_v58, %s8409_s30 }
 0x832   : > { %v12474_v42 = vpop.permute.xlu0 %4662  ;;  %v12476_v47 = vpop.permute.xlu1 %4668 }
 0x833   : > { %15381 = vst [vmem:[#allocation126_spill] sm:$0xff] %v12474_v42  ;;  %15382 = vst [vmem:[#allocation127_spill] sm:$0xff] %v12476_v47 }
 0x834   : > { %4778 = vrot.lane.b32.xlu0 %v11664_v31, %s8409_s30  ;;  %4784 = vrot.lane.b32.xlu1 %v11682_v46, %s8409_s30 }
 0x836   : > { %v12482_v62 = vpop.permute.xlu0 %4666  ;;  %v12484_v60 = vpop.permute.xlu1 %4672 }
 0x837   : > { %15383 = vst [vmem:[#allocation128_spill] sm:$0xff] %v12482_v62  ;;  %15384 = vst [vmem:[#allocation129_spill] sm:$0xff] %v12484_v60 }
 0x838   : > { %4782 = vrot.lane.b32.xlu0 %v11676_v15, %s8409_s30  ;;  %4788 = vrot.lane.b32.xlu1 %v11694_v27, %s8409_s30 }
 0x83a   : > { %v12490_v0 = vpop.permute.xlu0 %4670  ;;  %v12492_v42 = vpop.permute.xlu1 %4676 }
 0x83b   : > { %15385 = vst [vmem:[#allocation130_spill] sm:$0xff] %v12490_v0 }
 0x83c   : > { %4786 = vrot.lane.b32.xlu0 %v11688_v33, %s8409_s30  ;;  %4792 = vrot.lane.b32.xlu1 %v11706_v29, %s8409_s30 }
 0x83e   : > { %v12498_v31 = vpop.permute.xlu0 %4674  ;;  %v12500_v58 = vpop.permute.xlu1 %4680 }
 0x83f   : > { %15386 = vst [vmem:[#allocation131_spill] sm:$0xff] %v12498_v31  ;;  %15387 = vst [vmem:[#allocation132_spill] sm:$0xff] %v12500_v58 }
 0x840   : > { %4790 = vrot.lane.b32.xlu0 %v11700_v32, %s8409_s30  ;;  %4796 = vrot.lane.b32.xlu1 %v11718_v52, %s8409_s30 }
 0x842   : > { %v12506_v34 = vpop.permute.xlu0 %4678  ;;  %v12508_v15 = vpop.permute.xlu1 %4684 }
 0x843   : > { %15388 = vst [vmem:[#allocation133_spill] sm:$0xff] %v12508_v15 }
 0x844   : > { %4794 = vrot.lane.b32.xlu0 %v11712_v39, %s8409_s30  ;;  %4800 = vrot.lane.b32.xlu1 %v11730_v28, %s8409_s30 }
 0x846   : > { %v12514_v62 = vpop.permute.xlu0 %4682  ;;  %v12516_v46 = vpop.permute.xlu1 %4688 }
 0x847   : > { %15389 = vst [vmem:[#allocation134_spill] sm:$0xff] %v12514_v62  ;;  %15390 = vst [vmem:[#allocation135_spill] sm:$0xff] %v12516_v46 }
 0x848   : > { %4798 = vrot.lane.b32.xlu0 %v11724_v6, %s8409_s30  ;;  %4804 = vrot.lane.b32.xlu1 %v11742_v35, %s8409_s30 }
 0x84a   : > { %v12522_v58 = vpop.permute.xlu0 %4686  ;;  %v12524_v47 = vpop.permute.xlu1 %4692 }
 0x84b   : > { %15391 = vst [vmem:[#allocation136_spill] sm:$0xff] %v12522_v58  ;;  %15392 = vst [vmem:[#allocation137_spill] sm:$0xff] %v12524_v47 }
 0x84c   : > { %4802 = vrot.lane.b32.xlu0 %v11736_v20, %s8409_s30  ;;  %4808 = vrot.lane.b32.xlu1 %v11754_v48, %s8409_s30 }
 0x84e   : > { %v12530_v15 = vpop.permute.xlu0 %4690  ;;  %v12532_v62 = vpop.permute.xlu1 %4696 }
 0x84f   : > { %15393 = vst [vmem:[#allocation138_spill] sm:$0xff] %v12530_v15  ;;  %15394 = vst [vmem:[#allocation139_spill] sm:$0xff] %v12532_v62 }
 0x850   : > { %4806 = vrot.lane.b32.xlu0 %v11748_v50, %s8409_s30  ;;  %4812 = vrot.lane.b32.xlu1 %v11766_v14, %s8409_s30 }
 0x852   : > { %v12538_v46 = vpop.permute.xlu0 %4694  ;;  %v12540_v58 = vpop.permute.xlu1 %4700 }
 0x853   : > { %15395 = vst [vmem:[#allocation140_spill] sm:$0xff] %v12538_v46  ;;  %15396 = vst [vmem:[#allocation141_spill] sm:$0xff] %v12540_v58 }
 0x854   : > { %4810 = vrot.lane.b32.xlu0 %v11760_v53, %s8409_s30  ;;  %4816 = vrot.lane.b32.xlu1 %v11801_v3, %s8409_s30 }
 0x856   : > { %v12546_v48 = vpop.permute.xlu0 %4698  ;;  %v12548_v15 = vpop.permute.xlu1 %4704 }
 0x857   : > { %15397 = vst [vmem:[#allocation142_spill] sm:$0xff] %v12546_v48  ;;  %15398 = vst [vmem:[#allocation143_spill] sm:$0xff] %v12548_v15 }
 0x858   : > { %4814 = vrot.lane.b32.xlu0 %v11773_v12, %s8409_s30  ;;  %4820 = vrot.lane.b32.xlu1 %v11846_v44, %s8409_s30 }
 0x85a   : > { %v12554_v47 = vpop.permute.xlu0 %4702  ;;  %v12556_v46 = vpop.permute.xlu1 %4708 }
 0x85b   : > { %15399 = vst [vmem:[#allocation144_spill] sm:$0xff] %v12554_v47 }
 0x85c   : > { %4818 = vrot.lane.b32.xlu0 %v11822_v26, %s8409_s30  ;;  %4824 = vrot.lane.b32.xlu1 %v11603_v63, %s8410_s16 }
 0x85e   : > { %v12562_v53 = vpop.permute.xlu0 %4706  ;;  %v12564_v14 = vpop.permute.xlu1 %4712 }
 0x85f   : > { %15400 = vst [vmem:[#allocation145_spill] sm:$0xff] %v12562_v53  ;;  %15401 = vst [vmem:[#allocation146_spill] sm:$0xff] %v12564_v14 }
 0x860   : > { %4822 = vrot.lane.b32.xlu0 %v11876_v57, %s8409_s30  ;;  %4838 = vrot.lane.b32.xlu1 %v11644_v43, %s8410_s16 }
 0x862   : > { %v12570_v12 = vpop.permute.xlu0 %4710  ;;  %v12572_v62 = vpop.permute.xlu1 %4716 }
 0x863   : > { %15402 = vst [vmem:[#allocation147_spill] sm:$0xff] %v12572_v62 }
 0x864   : > { %4826 = vrot.lane.b32.xlu0 %v11606_v9, %s8410_s16  ;;  %4902 = vrot.lane.b32.xlu1 %v11644_v43, %s8411_s17 }
 0x866   : > { %v12578_v3 = vpop.permute.xlu0 %4714  ;;  %v12580_v14 = vpop.permute.xlu1 %4720 }
 0x867   : > { %15403 = vst [vmem:[#allocation148_spill] sm:$0xff] %v12578_v3  ;;  %15404 = vst [vmem:[#allocation149_spill] sm:$0xff] %v12580_v14 }
 0x868   : > { %4870 = vrot.lane.b32.xlu0 %v11748_v50, %s8410_s16  ;;  %4966 = vrot.lane.b32.xlu1 %v11644_v43, %s8412_s18 }
 0x86a   : > { %v12586_v48 = vpop.permute.xlu0 %4718  ;;  %v12588_v62 = vpop.permute.xlu1 %4724 }
 0x86b   : > { %15405 = vst [vmem:[#allocation150_spill] sm:$0xff] %v12586_v48  ;;  %15406 = vst [vmem:[#allocation151_spill] sm:$0xff] %v12588_v62 }
 0x86c   : > { %4934 = vrot.lane.b32.xlu0 %v11748_v50, %s8411_s17  ;;  %5030 = vrot.lane.b32.xlu1 %v11644_v43, %s8413_s19 }
 0x86e   : > { %v12594_v3 = vpop.permute.xlu0 %4722  ;;  %v12596_v14 = vpop.permute.xlu1 %4728 }
 0x86f   : > { %15407 = vst [vmem:[#allocation152_spill] sm:$0xff] %v12594_v3  ;;  %15408 = vst [vmem:[#allocation153_spill] sm:$0xff] %v12596_v14 }
 0x870   : > { %4998 = vrot.lane.b32.xlu0 %v11748_v50, %s8412_s18  ;;  %4836 = vrot.lane.b32.xlu1 %v11638_v37, %s8410_s16 }
 0x872   : > { %v12602_v48 = vpop.permute.xlu0 %4726  ;;  %v12604_v62 = vpop.permute.xlu1 %4732 }
 0x873   : > { %15409 = vst [vmem:[#allocation154_spill] sm:$0xff] %v12602_v48  ;;  %15410 = vst [vmem:[#allocation155_spill] sm:$0xff] %v12604_v62 }
 0x874   : > { %5062 = vrot.lane.b32.xlu0 %v11748_v50, %s8413_s19  ;;  %5094 = vrot.lane.b32.xlu1 %v11644_v43, %s8414_s20 }
 0x876   : > { %v12610_v3 = vpop.permute.xlu0 %4730  ;;  %v12612_v14 = vpop.permute.xlu1 %4736 }
 0x877   : > { %15411 = vst [vmem:[#allocation156_spill] sm:$0xff] %v12610_v3  ;;  %15412 = vst [vmem:[#allocation157_spill] sm:$0xff] %v12612_v14 }
 0x878   : > { %4868 = vrot.lane.b32.xlu0 %v11742_v35, %s8410_s16  ;;  %4900 = vrot.lane.b32.xlu1 %v11638_v37, %s8411_s17 }
 0x87a   : > { %v12618_v48 = vpop.permute.xlu0 %4734  ;;  %v12620_v62 = vpop.permute.xlu1 %4740 }
 0x87b   : > { %15413 = vst [vmem:[#allocation158_spill] sm:$0xff] %v12618_v48 }
 0x87c   : > { %5126 = vrot.lane.b32.xlu0 %v11748_v50, %s8414_s20  ;;  %5158 = vrot.lane.b32.xlu1 %v11644_v43, %s8415_s21 }
 0x87e   : > { %v12626_v3 = vpop.permute.xlu0 %4738  ;;  %v12628_v26 = vpop.permute.xlu1 %4744 }
 0x87f   : > { %15414 = vst [vmem:[#allocation159_spill] sm:$0xff] %v12626_v3  ;;  %15415 = vst [vmem:[#allocation160_spill] sm:$0xff] %v12628_v26 }
 0x880   : > { %4932 = vrot.lane.b32.xlu0 %v11742_v35, %s8411_s17  ;;  %4964 = vrot.lane.b32.xlu1 %v11638_v37, %s8412_s18 }
 0x882   : > { %v12634_v58 = vpop.permute.xlu0 %4742  ;;  %v12636_v33 = vpop.permute.xlu1 %4748 }
 0x883   : > { %15416 = vst [vmem:[#allocation161_spill] sm:$0xff] %v12636_v33 }
 0x884   : > { %5190 = vrot.lane.b32.xlu0 %v11748_v50, %s8415_s21  ;;  %5222 = vrot.lane.b32.xlu1 %v11644_v43, %s8416_s15 }
 0x886   : > { %v12642_v47 = vpop.permute.xlu0 %4746  ;;  %v12644_v26 = vpop.permute.xlu1 %4752 }
 0x887   : > { %15417 = vst [vmem:[#allocation162_spill] sm:$0xff] %v12642_v47  ;;  %15418 = vst [vmem:[#allocation163_spill] sm:$0xff] %v12644_v26 }
 0x888   : > { %4996 = vrot.lane.b32.xlu0 %v11742_v35, %s8412_s18  ;;  %5028 = vrot.lane.b32.xlu1 %v11638_v37, %s8413_s19 }
 0x88a   : > { %v12650_v48 = vpop.permute.xlu0 %4750  ;;  %v12652_v33 = vpop.permute.xlu1 %4756 }
 0x88b   : > { %15419 = vst [vmem:[#allocation164_spill] sm:$0xff] %v12650_v48  ;;  %15420 = vst [vmem:[#allocation165_spill] sm:$0xff] %v12652_v33 }
 0x88c   : > { %5254 = vrot.lane.b32.xlu0 %v11748_v50, %s8416_s15  ;;  %5286 = vrot.lane.b32.xlu1 %v11644_v43, %s8417_s22 }
 0x88e   : > { %v12658_v47 = vpop.permute.xlu0 %4754  ;;  %v12660_v26 = vpop.permute.xlu1 %4760 }
 0x88f   : > { %15421 = vst [vmem:[#allocation166_spill] sm:$0xff] %v12658_v47  ;;  %15422 = vst [vmem:[#allocation167_spill] sm:$0xff] %v12660_v26 }
 0x890   : > { %5060 = vrot.lane.b32.xlu0 %v11742_v35, %s8413_s19  ;;  %4834 = vrot.lane.b32.xlu1 %v11632_v61, %s8410_s16 }
 0x892   : > { %v12666_v48 = vpop.permute.xlu0 %4758  ;;  %v12668_v33 = vpop.permute.xlu1 %4764 }
 0x893   : > { %15423 = vst [vmem:[#allocation168_spill] sm:$0xff] %v12666_v48  ;;  %15424 = vst [vmem:[#allocation169_spill] sm:$0xff] %v12668_v33 }
 0x894   : > { %5318 = vrot.lane.b32.xlu0 %v11748_v50, %s8417_s22  ;;  %5092 = vrot.lane.b32.xlu1 %v11638_v37, %s8414_s20 }
 0x896   : > { %v12674_v44 = vpop.permute.xlu0 %4762  ;;  %v12676_v47 = vpop.permute.xlu1 %4768 }
 0x897   : > { %15425 = vst [vmem:[#allocation170_spill] sm:$0xff] %v12674_v44  ;;  %15426 = vst [vmem:[#allocation171_spill] sm:$0xff] %v12676_v47 }
 0x898   : > { %4866 = vrot.lane.b32.xlu0 %v11736_v20, %s8410_s16  ;;  %5350 = vrot.lane.b32.xlu1 %v11644_v43, %s8418_s23 }
 0x89a   : > { %v12682_v48 = vpop.permute.xlu0 %4766  ;;  %v12684_v26 = vpop.permute.xlu1 %4772 }
 0x89b   : > { %15427 = vst [vmem:[#allocation172_spill] sm:$0xff] %v12682_v48 }
 0x89c   : > { %5124 = vrot.lane.b32.xlu0 %v11742_v35, %s8414_s20  ;;  %4898 = vrot.lane.b32.xlu1 %v11632_v61, %s8411_s17 }
 0x89e   : > { %v12690_v44 = vpop.permute.xlu0 %4770  ;;  %v12692_v33 = vpop.permute.xlu1 %4776 }
 0x89f   : > { %15428 = vst [vmem:[#allocation173_spill] sm:$0xff] %v12690_v44  ;;  %15429 = vst [vmem:[#allocation174_spill] sm:$0xff] %v12692_v33  ;;  %v5423_v44 = vsel %vm3345_vm14, %v11644_v43, %v12058_v10 }
 0x8a0   : > { %5382 = vrot.lane.b32.xlu0 %v11748_v50, %s8418_s23  ;;  %5156 = vrot.lane.b32.xlu1 %v11638_v37, %s8415_s21  ;;  %v5512_v53 = vsel %vm5496_vm2, %v5423_v44, %v12186_v16 }
 0x8a1   : > { %v5576_v7 = vsel %vm2256_vm11, %v5512_v53, %v12314_v30 }
 0x8a2   : > { %v12698_v0 = vpop.permute.xlu0 %4774  ;;  %v12700_v48 = vpop.permute.xlu1 %4780  ;;  %v5640_v24 = vsel %vm2959_vm13, %v5576_v7, %v12442_v4 }
 0x8a3   : > { %15430 = vst [vmem:[#allocation175_spill] sm:$0xff] %v12700_v48  ;;  %v5705_v43 = vsel %vm5689_vm3, %v5640_v24, %v12570_v12  ;;  %v5471_v12 = vsel %vm3345_vm14, %v11748_v50, %v12122_v36 }
 0x8a4   : > { %4930 = vrot.lane.b32.xlu0 %v11736_v20, %s8411_s17  ;;  %4962 = vrot.lane.b32.xlu1 %v11632_v61, %s8412_s18  ;;  %v5770_v44 = vsel %vm5754_vm4, %v5705_v43, %v12698_v0 }
 0x8a6   : > { %v12706_v27 = vpop.permute.xlu0 %4778  ;;  %v12708_v14 = vpop.permute.xlu1 %4784 }
 0x8a7   : > { %15431 = vst [vmem:[#allocation176_spill] sm:$0xff] %v12706_v27  ;;  %15432 = vst [vmem:[#allocation177_spill] sm:$0xff] %v12708_v14 }
 0x8a8   : > { %5188 = vrot.lane.b32.xlu0 %v11742_v35, %s8415_s21  ;;  %5220 = vrot.lane.b32.xlu1 %v11638_v37, %s8416_s15 }
 0x8aa   : > { %v12714_v33 = vpop.permute.xlu0 %4782  ;;  %v12716_v60 = vpop.permute.xlu1 %4788 }
 0x8ab   : > { %15433 = vst [vmem:[#allocation178_spill] sm:$0xff] %v12714_v33  ;;  %15434 = vst [vmem:[#allocation179_spill] sm:$0xff] %v12716_v60 }
 0x8ac   : > { %4994 = vrot.lane.b32.xlu0 %v11736_v20, %s8412_s18  ;;  %5026 = vrot.lane.b32.xlu1 %v11632_v61, %s8413_s19 }
 0x8ae   : > { %v12722_v48 = vpop.permute.xlu0 %4786  ;;  %v12724_v27 = vpop.permute.xlu1 %4792 }
 0x8af   : > { %15435 = vst [vmem:[#allocation180_spill] sm:$0xff] %v12722_v48  ;;  %15436 = vst [vmem:[#allocation181_spill] sm:$0xff] %v12724_v27 }
 0x8b0   : > { %5252 = vrot.lane.b32.xlu0 %v11742_v35, %s8416_s15  ;;  %5284 = vrot.lane.b32.xlu1 %v11638_v37, %s8417_s22 }
 0x8b2   : > { %v12730_v14 = vpop.permute.xlu0 %4790  ;;  %v12732_v33 = vpop.permute.xlu1 %4796 }
 0x8b3   : > { %15437 = vst [vmem:[#allocation182_spill] sm:$0xff] %v12730_v14  ;;  %15438 = vst [vmem:[#allocation183_spill] sm:$0xff] %v12732_v33 }
 0x8b4   : > { %5058 = vrot.lane.b32.xlu0 %v11736_v20, %s8413_s19  ;;  %4832 = vrot.lane.b32.xlu1 %v11626_v59, %s8410_s16 }
 0x8b6   : > { %v12738_v60 = vpop.permute.xlu0 %4794  ;;  %v12740_v48 = vpop.permute.xlu1 %4800 }
 0x8b7   : > { %15439 = vst [vmem:[#allocation184_spill] sm:$0xff] %v12738_v60  ;;  %15440 = vst [vmem:[#allocation185_spill] sm:$0xff] %v12740_v48 }
 0x8b8   : > { %5316 = vrot.lane.b32.xlu0 %v11742_v35, %s8417_s22  ;;  %5090 = vrot.lane.b32.xlu1 %v11632_v61, %s8414_s20 }
 0x8ba   : > { %v12746_v27 = vpop.permute.xlu0 %4798  ;;  %v12748_v14 = vpop.permute.xlu1 %4804 }
 0x8bb   : > { %15441 = vst [vmem:[#allocation186_spill] sm:$0xff] %v12746_v27 }
 0x8bc   : > { %4864 = vrot.lane.b32.xlu0 %v11730_v28, %s8410_s16  ;;  %5348 = vrot.lane.b32.xlu1 %v11638_v37, %s8418_s23 }
 0x8be   : > { %v12754_v33 = vpop.permute.xlu0 %4802  ;;  %v12756_v60 = vpop.permute.xlu1 %4808 }
 0x8bf   : > { %15442 = vst [vmem:[#allocation187_spill] sm:$0xff] %v12754_v33  ;;  %15443 = vst [vmem:[#allocation188_spill] sm:$0xff] %v12756_v60 }
 0x8c0   : > { %5122 = vrot.lane.b32.xlu0 %v11736_v20, %s8414_s20  ;;  %4896 = vrot.lane.b32.xlu1 %v11626_v59, %s8411_s17 }
 0x8c2   : > { %v12762_v48 = vpop.permute.xlu0 %4806  ;;  %v12764_v27 = vpop.permute.xlu1 %4812 }
 0x8c3   : > { %15444 = vst [vmem:[#allocation189_spill] sm:$0xff] %v12764_v27 }
 0x8c4   : > { %5380 = vrot.lane.b32.xlu0 %v11742_v35, %s8418_s23  ;;  %5154 = vrot.lane.b32.xlu1 %v11632_v61, %s8415_s21 }
 0x8c6   : > { %v12770_v38 = vpop.permute.xlu0 %4810  ;;  %v12772_v56 = vpop.permute.xlu1 %4816 }
 0x8c7   : > { %15445 = vst [vmem:[#allocation190_spill] sm:$0xff] %v12770_v38  ;;  %15446 = vst [vmem:[#allocation191_spill] sm:$0xff] %v12772_v56 }
 0x8c8   : > { %4928 = vrot.lane.b32.xlu0 %v11730_v28, %s8411_s17  ;;  %4960 = vrot.lane.b32.xlu1 %v11626_v59, %s8412_s18 }
 0x8ca   : > { %v12778_v60 = vpop.permute.xlu0 %4814  ;;  %v12780_v47 = vpop.permute.xlu1 %4820 }
 0x8cb   : > { %15447 = vst [vmem:[#allocation192_spill] sm:$0xff] %v12778_v60  ;;  %15448 = vst [vmem:[#allocation193_spill] sm:$0xff] %v12780_v47 }
 0x8cc   : > { %5186 = vrot.lane.b32.xlu0 %v11736_v20, %s8415_s21  ;;  %5218 = vrot.lane.b32.xlu1 %v11632_v61, %s8416_s15 }
 0x8ce   : > { %v12786_v27 = vpop.permute.xlu0 %4818  ;;  %v12788_v38 = vpop.permute.xlu1 %4824 }
 0x8cf   : > { %15449 = vst [vmem:[#allocation194_spill] sm:$0xff] %v12786_v27  ;;  %15450 = vst [vmem:[#allocation195_spill] sm:$0xff] %v12788_v38 }
 0x8d0   : > { %4992 = vrot.lane.b32.xlu0 %v11730_v28, %s8412_s18  ;;  %5024 = vrot.lane.b32.xlu1 %v11626_v59, %s8413_s19 }
 0x8d2   : > { %v12794_v56 = vpop.permute.xlu0 %4822  ;;  %v4839_v60 = vpop.permute.xlu1 %4838 }
 0x8d3   : > { %15451 = vst [vmem:[#allocation196_spill] sm:$0xff] %v12794_v56  ;;  %v5835_v10 = vsel %vm5819_vm6, %v5770_v44, %v4839_v60  ;;  %v5544_v60 = vsel %vm5496_vm2, %v5471_v12, %v12250_v40  ;;  %v7985_v40 = vld [vmem:[%s14646_s1 + $0x74] ss:$8 sps:$4 sm:$0xff]  }
 0x8d4   : > { %5250 = vrot.lane.b32.xlu0 %v11736_v20, %s8416_s15  ;;  %5282 = vrot.lane.b32.xlu1 %v11632_v61, %s8417_s22  ;;  %v5608_v24 = vsel %vm2256_vm11, %v5544_v60, %v12378_v45 }
 0x8d5   : > { %v5672_v50 = vsel %vm2959_vm13, %v5608_v24, %v12506_v34 }
 0x8d6   : > { %v12800_v47 = vpop.permute.xlu0 %4826  ;;  %v4903_v27 = vpop.permute.xlu1 %4902  ;;  %v5737_v45 = vsel %vm5689_vm3, %v5672_v50, %v12634_v58 }
 0x8d7   : > { %15452 = vst [vmem:[#allocation197_spill] sm:$0xff] %v12800_v47  ;;  %v5900_v7 = vsel %vm5884_vm5, %v5835_v10, %v4903_v27 }
 0x8d8   : > { %5056 = vrot.lane.b32.xlu0 %v11730_v28, %s8413_s19  ;;  %4830 = vrot.lane.b32.xlu1 %v11620_v25, %s8410_s16 }
 0x8da   : > { %v12806_v38 = vpop.permute.xlu0 %4870  ;;  %v4967_v15 = vpop.permute.xlu1 %4966 }
 0x8db   : > { %v5965_v0 = vsel %vm5949_vm7, %v5900_v7, %v4967_v15 }
 0x8dc   : > { %5314 = vrot.lane.b32.xlu0 %v11736_v20, %s8417_s22  ;;  %5088 = vrot.lane.b32.xlu1 %v11626_v59, %s8414_s20 }
 0x8de   : > { %v12812_v56 = vpop.permute.xlu0 %4934  ;;  %v5031_v57 = vpop.permute.xlu1 %5030 }
 0x8df   : > { %v6030_v30 = vsel %vm6014_vm8, %v5965_v0, %v5031_v57  ;;  %v7983_v57 = vld [vmem:[%s14646_s1 + $0x70] ss:$8 sps:$4 sm:$0xff]  }
 0x8e0   : > { %4862 = vrot.lane.b32.xlu0 %v11724_v6, %s8410_s16  ;;  %5346 = vrot.lane.b32.xlu1 %v11632_v61, %s8418_s23 }
 0x8e2   : > { %v12818_v47 = vpop.permute.xlu0 %4998  ;;  %v12820_v55 = vpop.permute.xlu1 %4836 }
 0x8e4   : > { %5120 = vrot.lane.b32.xlu0 %v11730_v28, %s8414_s20  ;;  %4894 = vrot.lane.b32.xlu1 %v11620_v25, %s8411_s17 }
 0x8e6   : > { %v12826_v8 = vpop.permute.xlu0 %5062  ;;  %v5095_v54 = vpop.permute.xlu1 %5094 }
 0x8e7   : > { %v6095_v43 = vsel %vm6079_vm9, %v6030_v30, %v5095_v54  ;;  %v5802_v54 = vsel %vm5754_vm4, %v5737_v45, %v12762_v48 }
 0x8e8   : > { %5378 = vrot.lane.b32.xlu0 %v11736_v20, %s8418_s23  ;;  %5152 = vrot.lane.b32.xlu1 %v11626_v59, %s8415_s21  ;;  %v5867_v10 = vsel %vm5819_vm6, %v5802_v54, %v12806_v38  ;;  %v5420_v54 = vsel %vm3345_vm14, %v11638_v37, %v12044_v1 }
 0x8e9   : > { %v5932_v12 = vsel %vm5884_vm5, %v5867_v10, %v12812_v56 }
 0x8ea   : > { %v12832_v49 = vpop.permute.xlu0 %4868  ;;  %v12834_v32 = vpop.permute.xlu1 %4900 }
 0x8ec   : > { %4926 = vrot.lane.b32.xlu0 %v11724_v6, %s8411_s17  ;;  %4958 = vrot.lane.b32.xlu1 %v11620_v25, %s8412_s18 }
 0x8ee   : > { %v12840_v33 = vpop.permute.xlu0 %5126  ;;  %v5159_v3 = vpop.permute.xlu1 %5158 }
 0x8ef   : > { %v6160_v15 = vsel %vm6144_vm10, %v6095_v43, %v5159_v3 }
 0x8f0   : > { %5184 = vrot.lane.b32.xlu0 %v11730_v28, %s8415_s21  ;;  %5216 = vrot.lane.b32.xlu1 %v11626_v59, %s8416_s15 }
 0x8f2   : > { %v12846_v31 = vpop.permute.xlu0 %4932  ;;  %v12848_v21 = vpop.permute.xlu1 %4964 }
 0x8f4   : > { %4990 = vrot.lane.b32.xlu0 %v11724_v6, %s8412_s18  ;;  %5022 = vrot.lane.b32.xlu1 %v11620_v25, %s8413_s19 }
 0x8f6   : > { %v12854_v18 = vpop.permute.xlu0 %5190  ;;  %v5223_v20 = vpop.permute.xlu1 %5222 }
 0x8f7   : > { %v6225_v3 = vsel %vm6209_vm12, %v6160_v15, %v5223_v20  ;;  %v5997_v20 = vsel %vm5949_vm7, %v5932_v12, %v12818_v47  ;;  %v7988_v47 = vld [vmem:[%s14646_s1 + $0x174] ss:$8 sps:$4 sm:$0xff]  }
 0x8f8   : > { %5248 = vrot.lane.b32.xlu0 %v11730_v28, %s8416_s15  ;;  %5280 = vrot.lane.b32.xlu1 %v11626_v59, %s8417_s22  ;;  %v6062_v48 = vsel %vm6014_vm8, %v5997_v20, %v12826_v8  ;;  %v7986_v8 = vld [vmem:[%s14646_s1 + $0x170] ss:$8 sps:$4 sm:$0xff]  }
 0x8f9   : > { %v6127_v56 = vsel %vm6079_vm9, %v6062_v48, %v12840_v33 }
 0x8fa   : > { %v12860_v11 = vpop.permute.xlu0 %4996  ;;  %v12862_v63 = vpop.permute.xlu1 %5028  ;;  %v6192_v60 = vsel %vm6144_vm10, %v6127_v56, %v12854_v18 }
 0x8fc   : > { %5054 = vrot.lane.b32.xlu0 %v11724_v6, %s8413_s19  ;;  %4828 = vrot.lane.b32.xlu1 %v11614_v22, %s8410_s16 }
 0x8fe   : > { %v12873_v29 = vpop.permute.xlu0 %5254  ;;  %v5287_v23 = vpop.permute.xlu1 %5286 }
 0x8ff   : > { %v6290_v34 = vsel %vm6274_vm15, %v6225_v3, %v5287_v23  ;;  %v6257_v33 = vsel %vm6209_vm12, %v6192_v60, %v12873_v29 }
 0x900   : > { %5312 = vrot.lane.b32.xlu0 %v11730_v28, %s8417_s22  ;;  %5086 = vrot.lane.b32.xlu1 %v11620_v25, %s8414_s20 }
 0x902   : > { %v12887_v53 = vpop.permute.xlu0 %5060  ;;  %v12889_v4 = vpop.permute.xlu1 %4834 }
 0x904   : > { %4860 = vrot.lane.b32.xlu0 %v11718_v52, %s8410_s16  ;;  %5344 = vrot.lane.b32.xlu1 %v11626_v59, %s8418_s23 }
 0x906   : > { %v5319_v27 = vpop.permute.xlu0 %5318  ;;  %v12904_v16 = vpop.permute.xlu1 %5092 }
 0x907   : > { %v6322_v30 = vsel %vm6274_vm15, %v6257_v33, %v5319_v27 }
 0x908   : > { %5118 = vrot.lane.b32.xlu0 %v11724_v6, %s8414_s20  ;;  %4892 = vrot.lane.b32.xlu1 %v11614_v22, %s8411_s17 }
 0x90a   : > { %v12928_v36 = vpop.permute.xlu0 %4866  ;;  %v5351_v44 = vpop.permute.xlu1 %5350 }
 0x90b   : > { %v6362_v7 = vsel %vm6339_vm0, %v6290_v34, %v5351_v44  ;;  %v5510_v34 = vsel %vm5496_vm2, %v5420_v54, %v12172_v5 }
 0x90c   : > { %v6834_v0 = vmul.bf16 %v7983_v57, %v6362_v7  ;;  %v6835_v58 = vmul.bf16 %v7985_v40, %v6362_v7  ;;  %5376 = vrot.lane.b32.xlu0 %v11730_v28, %s8418_s23  ;;  %5150 = vrot.lane.b32.xlu1 %v11620_v25, %s8415_s21  ;;  %v5574_v7 = vsel %vm2256_vm11, %v5510_v34, %v12300_v2 }
 0x90d   : > { %v5638_v12 = vsel %vm2959_vm13, %v5574_v7, %v12428_v51 }
 0x90e   : > { %v12943_v23 = vpop.permute.xlu0 %5124  ;;  %6892 = vmatprep.subr.bf16.mxu0 %v6835_v58  ;;  %v12945_v38 = vpop.permute.xlu1 %4898  ;;  %v5703_v37 = vsel %vm5689_vm3, %v5638_v12, %v12556_v46  ;;  %v5468_v46 = vsel %vm3345_vm14, %v11742_v35, %v12108_v13 }
 0x90f   : > { %6893 = vmatpush1.bf16.msra.mxu0 %v6834_v0  ;;  %v5768_v1 = vsel %vm5754_vm4, %v5703_v37, %v12684_v26  ;;  %v5542_v58 = vsel %vm5496_vm2, %v5468_v46, %v12236_v17  ;;  %v15453_v46 = vld [vmem:[#allocation9_spill] sm:$0xff] }
 0x910   : > { %4924 = vrot.lane.b32.xlu0 %v11718_v52, %s8411_s17  ;;  %4956 = vrot.lane.b32.xlu1 %v11614_v22, %s8412_s18  ;;  %v5833_v2 = vsel %vm5819_vm6, %v5768_v1, %v12820_v55  ;;  %v5606_v48 = vsel %vm2256_vm11, %v5542_v58, %v12364_v19  ;;  %v7991_v19 = vld [vmem:[%s14646_s1 + $0x64] ss:$8 sps:$4 sm:$0xff]  }
 0x911   : > { %v5898_v51 = vsel %vm5884_vm5, %v5833_v2, %v12834_v32  ;;  %v5670_v35 = vsel %vm2959_vm13, %v5606_v48, %v12492_v42 }
 0x912   : > { %v5383_v18 = vpop.permute.xlu0 %5382  ;;  %v5157_v24 = vpop.permute.xlu1 %5156  ;;  %v5963_v26 = vsel %vm5949_vm7, %v5898_v51, %v12848_v21  ;;  %v5735_v13 = vsel %vm5689_vm3, %v5670_v35, %v12620_v62  ;;  %v5417_v51 = vsel %vm3345_vm14, %v11632_v61, %v12050_v41  ;;  %v15458_v41 = vld [vmem:[#allocation173_spill] sm:$0xff] }
 0x913   : > { %v6410_v43 = vsel %vm6339_vm0, %v6322_v30, %v5383_v18  ;;  %v6028_v55 = vsel %vm6014_vm8, %v5963_v26, %v12862_v63  ;;  %v7989_v63 = vld [vmem:[%s14646_s1 + $0x60] ss:$8 sps:$4 sm:$0xff]   ;;  %v5800_v17 = vsel %vm5754_vm4, %v5735_v13, %v12748_v14  ;;  %v5508_v26 = vsel %vm5496_vm2, %v5417_v51, %v15453_v46 }
 0x914   : > { %v6866_v50 = vmul.bf16 %v7986_v8, %v6410_v43  ;;  %v6867_v15 = vmul.bf16 %v7988_v47, %v6410_v43  ;;  %5182 = vrot.lane.b32.xlu0 %v11724_v6, %s8415_s21  ;;  %5214 = vrot.lane.b32.xlu1 %v11620_v25, %s8416_s15  ;;  %v6093_v56 = vsel %vm6079_vm9, %v6028_v55, %v12904_v16 }
 0x915   : > { %v6158_v21 = vsel %vm6144_vm10, %v6093_v56, %v5157_v24  ;;  %v5865_v47 = vsel %vm5819_vm6, %v5800_v17, %v12832_v49  ;;  %v15455_v56 = vld [vmem:[#allocation117_spill] sm:$0xff] }
 0x916   : > { %6945 = vmatprep.subr.bf16.mxu1 %v6867_v15  ;;  %v12969_v57 = vpop.permute.xlu0 %4930  ;;  %v12971_v40 = vpop.permute.xlu1 %4962  ;;  %v5930_v30 = vsel %vm5884_vm5, %v5865_v47, %v12846_v31  ;;  %v15460_v47 = vld [vmem:[#allocation98_spill] sm:$0xff] }
 0x917   : > { %6946 = vmatpush1.bf16.msra.mxu1 %v6866_v50  ;;  %v5995_v14 = vsel %vm5949_vm7, %v5930_v30, %v12860_v11  ;;  %v7992_v11 = vld [vmem:[%s14646_s1 + $0x160] ss:$8 sps:$4 sm:$0xff]  }
 0x918   : > { %4988 = vrot.lane.b32.xlu0 %v11718_v52, %s8412_s18  ;;  %5020 = vrot.lane.b32.xlu1 %v11614_v22, %s8413_s19  ;;  %v6060_v24 = vsel %vm6014_vm8, %v5995_v14, %v12887_v53  ;;  %v7994_v53 = vld [vmem:[%s14646_s1 + $0x164] ss:$8 sps:$4 sm:$0xff]  }
 0x919   : > { %v6125_v31 = vsel %vm6079_vm9, %v6060_v24, %v12943_v23 }
 0x91a   : > { %v5189_v29 = vpop.permute.xlu0 %5188  ;;  %v5221_v27 = vpop.permute.xlu1 %5220 }
 0x91b   : > { %v6223_v42 = vsel %vm6209_vm12, %v6158_v21, %v5221_v27  ;;  %v6190_v50 = vsel %vm6144_vm10, %v6125_v31, %v5189_v29  ;;  %v15456_v21 = vld [vmem:[#allocation19_spill] sm:$0xff] }
 0x91c   : > { %5246 = vrot.lane.b32.xlu0 %v11724_v6, %s8416_s15  ;;  %5278 = vrot.lane.b32.xlu1 %v11620_v25, %s8417_s22  ;;  %v15463_v31 = vld [vmem:[#allocation87_spill] sm:$0xff] }
 0x91e   : > { %v12981_v45 = vpop.permute.xlu0 %4994  ;;  %v12983_v3 = vpop.permute.xlu1 %5026 }
 0x920   : > { %5052 = vrot.lane.b32.xlu0 %v11718_v52, %s8413_s19  ;;  %4858 = vrot.lane.b32.xlu1 %v11712_v39, %s8410_s16 }
 0x922   : > { %v5253_v44 = vpop.permute.xlu0 %5252  ;;  %v5285_v10 = vpop.permute.xlu1 %5284 }
 0x923   : > { %v6288_v16 = vsel %vm6274_vm15, %v6223_v42, %v5285_v10  ;;  %v6255_v15 = vsel %vm6209_vm12, %v6190_v50, %v5253_v44 }
 0x924   : > { %5310 = vrot.lane.b32.xlu0 %v11724_v6, %s8417_s22  ;;  %5116 = vrot.lane.b32.xlu1 %v11718_v52, %s8414_s20 }
 0x926   : > { %v13006_v5 = vpop.permute.xlu0 %5058  ;;  %v13008_v0 = vpop.permute.xlu1 %4832 }
 0x928   : > { %5084 = vrot.lane.b32.xlu0 %v11614_v22, %s8414_s20  ;;  %5374 = vrot.lane.b32.xlu1 %v11724_v6, %s8418_s23 }
 0x92a   : > { %v5317_v32 = vpop.permute.xlu0 %5316  ;;  %v13027_v20 = vpop.permute.xlu1 %5090 }
 0x92b   : > { %v6320_v23 = vsel %vm6274_vm15, %v6255_v15, %v5317_v32  ;;  %v15454_v32 = vld [vmem:[#allocation48_spill] sm:$0xff] }
 0x92c   : > { %5342 = vrot.lane.b32.xlu0 %v11620_v25, %s8418_s23  ;;  %4922 = vrot.lane.b32.xlu1 %v11712_v39, %s8411_s17  ;;  %v5572_v48 = vsel %vm2256_vm11, %v5508_v26, %v15454_v32 }
 0x92d   : > { %v5636_v35 = vsel %vm2959_vm13, %v5572_v48, %v15455_v56 }
 0x92e   : > { %v13052_v60 = vpop.permute.xlu0 %4864  ;;  %v5349_v8 = vpop.permute.xlu1 %5348 }
 0x92f   : > { %v6359_v33 = vsel %vm6339_vm0, %v6288_v16, %v5349_v8  ;;  %v15459_v8 = vld [vmem:[#allocation81_spill] sm:$0xff] }
 0x930   : > { %v6832_v18 = vmul.bf16 %v7989_v63, %v6359_v33  ;;  %v6833_v62 = vmul.bf16 %v7991_v19, %v6359_v33  ;;  %4890 = vrot.lane.b32.xlu0 %v11606_v9, %s8411_s17  ;;  %5180 = vrot.lane.b32.xlu1 %v11718_v52, %s8415_s21  ;;  %v15457_v63 = vld [vmem:[#allocation145_spill] sm:$0xff]  ;;  %v15461_v33 = vld [vmem:[#allocation22_spill] sm:$0xff] }
 0x931   : > { %v5701_v61 = vsel %vm5689_vm3, %v5636_v35, %v15457_v63  ;;  %v5465_v30 = vsel %vm3345_vm14, %v15461_v33, %v15460_v47 }
 0x932   : > { %v13067_v49 = vpop.permute.xlu0 %5122  ;;  %6894 = vmatprep.subr.bf16.mxu0 %v6833_v62  ;;  %v13069_v43 = vpop.permute.xlu1 %4896  ;;  %v5766_v19 = vsel %vm5754_vm4, %v5701_v61, %v15458_v41  ;;  %v15462_v62 = vld [vmem:[#allocation24_spill] sm:$0xff] }
 0x933   : > { %6895 = vmatpush1.bf16.msra.mxu0 %v6832_v18  ;;  %v5831_v17 = vsel %vm5819_vm6, %v5766_v19, %v12889_v4  ;;  %v5540_v14 = vsel %vm5496_vm2, %v5465_v30, %v15462_v62  ;;  %v15467_v62 = vld [vmem:[#allocation3_spill] sm:$0xff] }
 0x934   : > { %5148 = vrot.lane.b32.xlu0 %v11614_v22, %s8415_s21  ;;  %4986 = vrot.lane.b32.xlu1 %v11712_v39, %s8412_s18  ;;  %v5896_v16 = vsel %vm5884_vm5, %v5831_v17, %v12945_v38  ;;  %v5604_v50 = vsel %vm2256_vm11, %v5540_v14, %v15463_v31 }
 0x935   : > { %v5961_v18 = vsel %vm5949_vm7, %v5896_v16, %v12971_v40 }
 0x936   : > { %v5381_v27 = vpop.permute.xlu0 %5380  ;;  %v5155_v29 = vpop.permute.xlu1 %5154  ;;  %v6026_v4 = vsel %vm6014_vm8, %v5961_v18, %v12983_v3  ;;  %v7995_v3 = vld [vmem:[%s14646_s1 + $0x50] ss:$8 sps:$4 sm:$0xff]  }
 0x937   : > { %v6407_v54 = vsel %vm6339_vm0, %v6320_v23, %v5381_v27  ;;  %v7997_v23 = vld [vmem:[%s14646_s1 + $0x54] ss:$8 sps:$4 sm:$0xff]  }
 0x938   : > { %v6864_v34 = vmul.bf16 %v7992_v11, %v6407_v54  ;;  %v6865_v10 = vmul.bf16 %v7994_v53, %v6407_v54  ;;  %4954 = vrot.lane.b32.xlu0 %v11606_v9, %s8412_s18  ;;  %5244 = vrot.lane.b32.xlu1 %v11718_v52, %s8416_s15  ;;  %v6091_v11 = vsel %vm6079_vm9, %v6026_v4, %v13027_v20  ;;  %v15464_v53 = vld [vmem:[#allocation131_spill] sm:$0xff] }
 0x939   : > { %v5668_v15 = vsel %vm2959_vm13, %v5604_v50, %v15464_v53  ;;  %v6156_v40 = vsel %vm6144_vm10, %v6091_v11, %v5155_v29  ;;  %v15465_v20 = vld [vmem:[#allocation159_spill] sm:$0xff] }
 0x93a   : > { %v13091_v7 = vpop.permute.xlu0 %4928  ;;  %6947 = vmatprep.subr.bf16.mxu1 %v6865_v10  ;;  %v13093_v12 = vpop.permute.xlu1 %4960  ;;  %v5733_v27 = vsel %vm5689_vm3, %v5668_v15, %v15465_v20  ;;  %v15466_v29 = vld [vmem:[#allocation187_spill] sm:$0xff] }
 0x93b   : > { %6948 = vmatpush1.bf16.msra.mxu1 %v6864_v34  ;;  %v5798_v34 = vsel %vm5754_vm4, %v5733_v27, %v15466_v29  ;;  %v15469_v50 = vld [vmem:[#allocation75_spill] sm:$0xff] }
 0x93c   : > { %5212 = vrot.lane.b32.xlu0 %v11614_v22, %s8416_s15  ;;  %5050 = vrot.lane.b32.xlu1 %v11712_v39, %s8413_s19  ;;  %v5863_v26 = vsel %vm5819_vm6, %v5798_v34, %v12928_v36  ;;  %v15472_v27 = vld [vmem:[#allocation95_spill] sm:$0xff] }
 0x93d   : > { %v5928_v48 = vsel %vm5884_vm5, %v5863_v26, %v12969_v57  ;;  %v15474_v29 = vld [vmem:[#allocation171_spill] sm:$0xff] }
 0x93e   : > { %v5187_v44 = vpop.permute.xlu0 %5186  ;;  %v5219_v37 = vpop.permute.xlu1 %5218 }
 0x93f   : > { %v6221_v54 = vsel %vm6209_vm12, %v6156_v40, %v5219_v37  ;;  %v5993_v37 = vsel %vm5949_vm7, %v5928_v48, %v12981_v45  ;;  %v7998_v45 = vld [vmem:[%s14646_s1 + $0x150] ss:$8 sps:$4 sm:$0xff]   ;;  %v15475_v48 = vld [vmem:[#allocation8_spill] sm:$0xff] }
 0x940   : > { %5018 = vrot.lane.b32.xlu0 %v11606_v9, %s8413_s19  ;;  %5308 = vrot.lane.b32.xlu1 %v11718_v52, %s8417_s22  ;;  %v15470_v40 = vld [vmem:[#allocation34_spill] sm:$0xff] }
 0x942   : > { %v13103_v1 = vpop.permute.xlu0 %4992  ;;  %v13105_v2 = vpop.permute.xlu1 %5024 }
 0x944   : > { %5276 = vrot.lane.b32.xlu0 %v11614_v22, %s8417_s22  ;;  %5082 = vrot.lane.b32.xlu1 %v11606_v9, %s8414_s20 }
 0x946   : > { %v5251_v58 = vpop.permute.xlu0 %5250  ;;  %v5283_v55 = vpop.permute.xlu1 %5282 }
 0x947   : > { %v6286_v10 = vsel %vm6274_vm15, %v6221_v54, %v5283_v55  ;;  %v6058_v55 = vsel %vm6014_vm8, %v5993_v37, %v13006_v5  ;;  %v8000_v5 = vld [vmem:[%s14646_s1 + $0x154] ss:$8 sps:$4 sm:$0xff]   ;;  %v15473_v54 = vld [vmem:[#allocation143_spill] sm:$0xff]  ;;  %v15476_v37 = vld [vmem:[#allocation28_spill] sm:$0xff] }
 0x948   : > { %4856 = vrot.lane.b32.xlu0 %v15456_v21, %s8410_s16  ;;  %5340 = vrot.lane.b32.xlu1 %v11614_v22, %s8418_s23  ;;  %v6123_v57 = vsel %vm6079_vm9, %v6058_v55, %v13067_v49 }
 0x949   : > { %v6188_v61 = vsel %vm6144_vm10, %v6123_v57, %v5187_v44 }
 0x94a   : > { %v13128_v13 = vpop.permute.xlu0 %5056  ;;  %v13130_v42 = vpop.permute.xlu1 %4830  ;;  %v6253_v41 = vsel %vm6209_vm12, %v6188_v61, %v5251_v58  ;;  %v15477_v61 = vld [vmem:[#allocation82_spill] sm:$0xff] }
 0x94c   : > { %5114 = vrot.lane.b32.xlu0 %v11712_v39, %s8414_s20  ;;  %4888 = vrot.lane.b32.xlu1 %v15459_v8, %s8411_s17 }
 0x94e   : > { %v5315_v38 = vpop.permute.xlu0 %5314  ;;  %v13149_v24 = vpop.permute.xlu1 %5088 }
 0x94f   : > { %v6318_v49 = vsel %vm6274_vm15, %v6253_v41, %v5315_v38  ;;  %v15468_v38 = vld [vmem:[#allocation84_spill] sm:$0xff]  ;;  %v15478_v41 = vld [vmem:[#allocation129_spill] sm:$0xff] }
 0x950   : > { %5372 = vrot.lane.b32.xlu0 %v11718_v52, %s8418_s23  ;;  %5146 = vrot.lane.b32.xlu1 %v11606_v9, %s8415_s21  ;;  %v5414_v31 = vsel %vm3345_vm14, %v11626_v59, %v15468_v38 }
 0x951   : > { %v5506_v11 = vsel %vm5496_vm2, %v5414_v31, %v15469_v50 }
 0x952   : > { %v13174_v51 = vpop.permute.xlu0 %4862  ;;  %v5347_v46 = vpop.permute.xlu1 %5346 }
 0x953   : > { %v6356_v32 = vsel %vm6339_vm0, %v6286_v10, %v5347_v46 }
 0x954   : > { %v6830_v56 = vmul.bf16 %v7995_v3, %v6356_v32  ;;  %v6831_v35 = vmul.bf16 %v7997_v23, %v6356_v32  ;;  %4920 = vrot.lane.b32.xlu0 %v15456_v21, %s8411_s17  ;;  %4952 = vrot.lane.b32.xlu1 %v15459_v8, %s8412_s18  ;;  %v5570_v3 = vsel %vm2256_vm11, %v5506_v11, %v15470_v40  ;;  %v15471_v23 = vld [vmem:[#allocation115_spill] sm:$0xff] }
 0x955   : > { %v5634_v20 = vsel %vm2959_vm13, %v5570_v3, %v15471_v23 }
 0x956   : > { %v13189_v36 = vpop.permute.xlu0 %5120  ;;  %6896 = vmatprep.subr.bf16.mxu0 %v6831_v35  ;;  %v13191_v63 = vpop.permute.xlu1 %4894  ;;  %v5699_v59 = vsel %vm5689_vm3, %v5634_v20, %v15473_v54 }
 0x957   : > { %6897 = vmatpush1.bf16.msra.mxu0 %v6830_v56  ;;  %v5764_v34 = vsel %vm5754_vm4, %v5699_v59, %v15474_v29  ;;  %v5462_v56 = vsel %vm3345_vm14, %v11730_v28, %v15475_v48 }
 0x958   : > { %5178 = vrot.lane.b32.xlu0 %v11712_v39, %s8415_s21  ;;  %5210 = vrot.lane.b32.xlu1 %v11606_v9, %s8416_s15  ;;  %v5829_v26 = vsel %vm5819_vm6, %v5764_v34, %v13008_v0  ;;  %v5538_v55 = vsel %vm5496_vm2, %v5462_v56, %v15476_v37  ;;  %v15481_v37 = vld [vmem:[#allocation65_spill] sm:$0xff] }
 0x959   : > { %v5894_v32 = vsel %vm5884_vm5, %v5829_v26, %v13069_v43 }
 0x95a   : > { %v5379_v19 = vpop.permute.xlu0 %5378  ;;  %v5153_v44 = vpop.permute.xlu1 %5152  ;;  %v5959_v35 = vsel %vm5949_vm7, %v5894_v32, %v13093_v12 }
 0x95b   : > { %v6404_v17 = vsel %vm6339_vm0, %v6318_v49, %v5379_v19  ;;  %v6024_v0 = vsel %vm6014_vm8, %v5959_v35, %v13105_v2  ;;  %v8001_v2 = vld [vmem:[%s14646_s1 + $0x40] ss:$8 sps:$4 sm:$0xff]   ;;  %v8003_v49 = vld [vmem:[%s14646_s1 + $0x44] ss:$8 sps:$4 sm:$0xff]  }
 0x95c   : > { %v6862_v16 = vmul.bf16 %v7998_v45, %v6404_v17  ;;  %v6863_v47 = vmul.bf16 %v8000_v5, %v6404_v17  ;;  %4984 = vrot.lane.b32.xlu0 %v15456_v21, %s8412_s18  ;;  %5016 = vrot.lane.b32.xlu1 %v15459_v8, %s8413_s19  ;;  %v5602_v45 = vsel %vm2256_vm11, %v5538_v55, %v15477_v61 }
 0x95d   : > { %v6089_v5 = vsel %vm6079_vm9, %v6024_v0, %v13149_v24  ;;  %v5666_v28 = vsel %vm2959_vm13, %v5602_v45, %v15478_v41  ;;  %v15479_v24 = vld [vmem:[#allocation157_spill] sm:$0xff]  ;;  %v15483_v45 = vld [vmem:[#allocation27_spill] sm:$0xff] }
 0x95e   : > { %v13213_v33 = vpop.permute.xlu0 %4926  ;;  %6949 = vmatprep.subr.bf16.mxu1 %v6863_v47  ;;  %v13215_v30 = vpop.permute.xlu1 %4958  ;;  %v6154_v12 = vsel %vm6144_vm10, %v6089_v5, %v5153_v44  ;;  %v5731_v19 = vsel %vm5689_vm3, %v5666_v28, %v15479_v24  ;;  %v15480_v44 = vld [vmem:[#allocation185_spill] sm:$0xff] }
 0x95f   : > { %6950 = vmatpush1.bf16.msra.mxu1 %v6862_v16  ;;  %v5796_v16 = vsel %vm5754_vm4, %v5731_v19, %v15480_v44  ;;  %v15486_v19 = vld [vmem:[#allocation54_spill] sm:$0xff] }
 0x960   : > { %5242 = vrot.lane.b32.xlu0 %v11712_v39, %s8416_s15  ;;  %5274 = vrot.lane.b32.xlu1 %v11606_v9, %s8417_s22  ;;  %v5861_v50 = vsel %vm5819_vm6, %v5796_v16, %v13052_v60  ;;  %v15488_v44 = vld [vmem:[#allocation158_spill] sm:$0xff] }
 0x961   : > { %v5926_v40 = vsel %vm5884_vm5, %v5861_v50, %v13091_v7  ;;  %v15490_v50 = vld [vmem:[#allocation186_spill] sm:$0xff] }
 0x962   : > { %v5185_v58 = vpop.permute.xlu0 %5184  ;;  %v5217_v18 = vpop.permute.xlu1 %5216 }
 0x963   : > { %v6219_v17 = vsel %vm6209_vm12, %v6154_v12, %v5217_v18  ;;  %v5991_v18 = vsel %vm5949_vm7, %v5926_v40, %v13103_v1  ;;  %v8004_v1 = vld [vmem:[%s14646_s1 + $0x140] ss:$8 sps:$4 sm:$0xff]   ;;  %v15484_v12 = vld [vmem:[#allocation50_spill] sm:$0xff] }
 0x964   : > { %5048 = vrot.lane.b32.xlu0 %v15456_v21, %s8413_s19  ;;  %4854 = vrot.lane.b32.xlu1 %v15467_v62, %s8410_s16 }
 0x966   : > { %v13225_v14 = vpop.permute.xlu0 %4990  ;;  %v13227_v4 = vpop.permute.xlu1 %5022 }
 0x968   : > { %5306 = vrot.lane.b32.xlu0 %v11712_v39, %s8417_s22  ;;  %5080 = vrot.lane.b32.xlu1 %v15459_v8, %s8414_s20 }
 0x96a   : > { %v5249_v53 = vpop.permute.xlu0 %5248  ;;  %v5281_v15 = vpop.permute.xlu1 %5280 }
 0x96b   : > { %v6284_v47 = vsel %vm6274_vm15, %v6219_v17, %v5281_v15  ;;  %v6056_v15 = vsel %vm6014_vm8, %v5991_v18, %v13128_v13  ;;  %v8006_v13 = vld [vmem:[%s14646_s1 + $0x144] ss:$8 sps:$4 sm:$0xff]   ;;  %v15487_v17 = vld [vmem:[#allocation89_spill] sm:$0xff] }
 0x96c   : > { %4886 = vrot.lane.b32.xlu0 %v15472_v27, %s8410_s16  ;;  %5338 = vrot.lane.b32.xlu1 %v11606_v9, %s8418_s23  ;;  %v6121_v7 = vsel %vm6079_vm9, %v6056_v15, %v13189_v36 }
 0x96d   : > { %v6186_v54 = vsel %vm6144_vm10, %v6121_v7, %v5185_v58 }
 0x96e   : > { %v13250_v10 = vpop.permute.xlu0 %5054  ;;  %v13252_v46 = vpop.permute.xlu1 %4828  ;;  %v6251_v59 = vsel %vm6209_vm12, %v6186_v54, %v5249_v53 }
 0x970   : > { %5112 = vrot.lane.b32.xlu0 %v15456_v21, %s8414_s20  ;;  %4918 = vrot.lane.b32.xlu1 %v15467_v62, %s8411_s17 }
 0x972   : > { %v5313_v43 = vpop.permute.xlu0 %5312  ;;  %v13271_v57 = vpop.permute.xlu1 %5086 }
 0x973   : > { %v6316_v36 = vsel %vm6274_vm15, %v6251_v59, %v5313_v43  ;;  %v15482_v43 = vld [vmem:[#allocation55_spill] sm:$0xff] }
 0x974   : > { %5370 = vrot.lane.b32.xlu0 %v11712_v39, %s8418_s23  ;;  %5144 = vrot.lane.b32.xlu1 %v15459_v8, %s8415_s21  ;;  %v5459_v61 = vsel %vm3345_vm14, %v11724_v6, %v15482_v43  ;;  %v5411_v6 = vsel %vm3345_vm14, %v11620_v25, %v15487_v17  ;;  %v15492_v25 = vld [vmem:[#allocation116_spill] sm:$0xff] }
 0x975   : > { %v5536_v5 = vsel %vm5496_vm2, %v5459_v61, %v15483_v45 }
 0x976   : > { %v13296_v38 = vpop.permute.xlu0 %4860  ;;  %v5345_v31 = vpop.permute.xlu1 %5344 }
 0x977   : > { %v6353_v11 = vsel %vm6339_vm0, %v6284_v47, %v5345_v31  ;;  %v15489_v47 = vld [vmem:[#allocation96_spill] sm:$0xff] }
 0x978   : > { %v6828_v3 = vmul.bf16 %v8001_v2, %v6353_v11  ;;  %v6829_v23 = vmul.bf16 %v8003_v49, %v6353_v11  ;;  %4950 = vrot.lane.b32.xlu0 %v15472_v27, %s8411_s17  ;;  %4982 = vrot.lane.b32.xlu1 %v15467_v62, %s8412_s18  ;;  %v5600_v2 = vsel %vm2256_vm11, %v5536_v5, %v15484_v12  ;;  %v15485_v49 = vld [vmem:[#allocation130_spill] sm:$0xff] }
 0x979   : > { %v5664_v24 = vsel %vm2959_vm13, %v5600_v2, %v15485_v49  ;;  %v5504_v31 = vsel %vm5496_vm2, %v5411_v6, %v15489_v47 }
 0x97a   : > { %v5119_v60 = vpop.permute.xlu0 %5118  ;;  %6898 = vmatprep.subr.bf16.mxu0 %v6829_v23  ;;  %v13311_v20 = vpop.permute.xlu1 %4892  ;;  %v5729_v16 = vsel %vm5689_vm3, %v5664_v24, %v15488_v44  ;;  %v15491_v23 = vld [vmem:[#allocation104_spill] sm:$0xff] }
 0x97b   : > { %6899 = vmatpush1.bf16.msra.mxu0 %v6828_v3  ;;  %v5794_v11 = vsel %vm5754_vm4, %v5729_v16, %v15490_v50  ;;  %v5568_v18 = vsel %vm2256_vm11, %v5504_v31, %v15491_v23 }
 0x97c   : > { %5176 = vrot.lane.b32.xlu0 %v15456_v21, %s8415_s21  ;;  %5208 = vrot.lane.b32.xlu1 %v15459_v8, %s8416_s15  ;;  %v5859_v15 = vsel %vm5819_vm6, %v5794_v11, %v13174_v51  ;;  %v5632_v7 = vsel %vm2959_vm13, %v5568_v18, %v15492_v25  ;;  %v15495_v18 = vld [vmem:[#allocation91_spill] sm:$0xff] }
 0x97d   : > { %v5924_v54 = vsel %vm5884_vm5, %v5859_v15, %v13213_v33  ;;  %v15496_v15 = vld [vmem:[#allocation21_spill] sm:$0xff] }
 0x97e   : > { %v5377_v29 = vpop.permute.xlu0 %5376  ;;  %v13328_v58 = vpop.permute.xlu1 %5150  ;;  %v5989_v59 = vsel %vm5949_vm7, %v5924_v54, %v13225_v14  ;;  %v8007_v14 = vld [vmem:[%s14646_s1 + $0x130] ss:$8 sps:$4 sm:$0xff]   ;;  %v5408_v25 = vsel %vm3345_vm14, %v11614_v22, %v15496_v15 }
 0x97f   : > { %v6401_v34 = vsel %vm6339_vm0, %v6316_v36, %v5377_v29  ;;  %v15494_v36 = vld [vmem:[#allocation172_spill] sm:$0xff]  ;;  %v6054_v29 = vsel %vm6014_vm8, %v5989_v59, %v13250_v10 }
 0x980   : > { %v6860_v26 = vmul.bf16 %v8004_v1, %v6401_v34  ;;  %v6861_v32 = vmul.bf16 %v8006_v13, %v6401_v34  ;;  %5014 = vrot.lane.b32.xlu0 %v15472_v27, %s8412_s18  ;;  %5046 = vrot.lane.b32.xlu1 %v15467_v62, %s8413_s19  ;;  %v15493_v1 = vld [vmem:[#allocation144_spill] sm:$0xff] }
 0x981   : > { %v5697_v13 = vsel %vm5689_vm3, %v5632_v7, %v15493_v1  ;;  %v15497_v7 = vld [vmem:[#allocation100_spill] sm:$0xff] }
 0x982   : > { %v13335_v48 = vpop.permute.xlu0 %4924  ;;  %6951 = vmatprep.subr.bf16.mxu1 %v6861_v32  ;;  %v13337_v56 = vpop.permute.xlu1 %4956  ;;  %v5762_v51 = vsel %vm5754_vm4, %v5697_v13, %v15494_v36  ;;  %v6119_v32 = vsel %vm6079_vm9, %v6054_v29, %v5119_v60  ;;  %v5502_v54 = vsel %vm5496_vm2, %v5408_v25, %v15497_v7  ;;  %v15498_v59 = vld [vmem:[#allocation16_spill] sm:$0xff] }
 0x983   : > { %6952 = vmatpush1.bf16.msra.mxu1 %v6860_v26  ;;  %v5827_v26 = vsel %vm5819_vm6, %v5762_v51, %v13130_v42  ;;  %v8009_v42 = vld [vmem:[%s14646_s1 + $0x134] ss:$8 sps:$4 sm:$0xff]   ;;  %v5566_v36 = vsel %vm2256_vm11, %v5502_v54, %v15498_v59 }
 0x984   : > { %5240 = vrot.lane.b32.xlu0 %v15456_v21, %s8416_s15  ;;  %5272 = vrot.lane.b32.xlu1 %v15459_v8, %s8417_s22  ;;  %v5892_v43 = vsel %vm5884_vm5, %v5827_v26, %v13191_v63  ;;  %v15499_v51 = vld [vmem:[#allocation113_spill] sm:$0xff] }
 0x985   : > { %v5957_v10 = vsel %vm5949_vm7, %v5892_v43, %v13215_v30  ;;  %v8010_v30 = vld [vmem:[%s14646_s1 + $0x30] ss:$8 sps:$4 sm:$0xff]   ;;  %v5630_v29 = vsel %vm2959_vm13, %v5566_v36, %v15499_v51 }
 0x986   : > { %v5183_v53 = vpop.permute.xlu0 %5182  ;;  %v5215_v35 = vpop.permute.xlu1 %5214  ;;  %v6022_v60 = vsel %vm6014_vm8, %v5957_v10, %v13227_v4  ;;  %v8012_v4 = vld [vmem:[%s14646_s1 + $0x34] ss:$8 sps:$4 sm:$0xff]  }
 0x987   : > { %v6184_v61 = vsel %vm6144_vm10, %v6119_v32, %v5183_v53  ;;  %v6087_v12 = vsel %vm6079_vm9, %v6022_v60, %v13271_v57  ;;  %v15501_v26 = vld [vmem:[#allocation169_spill] sm:$0xff]  ;;  %v15502_v10 = vld [vmem:[#allocation90_spill] sm:$0xff] }
 0x988   : > { %5078 = vrot.lane.b32.xlu0 %v15472_v27, %s8413_s19  ;;  %4852 = vrot.lane.b32.xlu1 %v15481_v37, %s8410_s16  ;;  %v6152_v49 = vsel %vm6144_vm10, %v6087_v12, %v13328_v58 }
 0x989   : > { %v6217_v57 = vsel %vm6209_vm12, %v6152_v49, %v5215_v35  ;;  %v15505_v49 = vld [vmem:[#allocation106_spill] sm:$0xff] }
 0x98a   : > { %v13347_v55 = vpop.permute.xlu0 %4988  ;;  %v13349_v0 = vpop.permute.xlu1 %5020 }
 0x98c   : > { %5304 = vrot.lane.b32.xlu0 %v15456_v21, %s8417_s22  ;;  %5110 = vrot.lane.b32.xlu1 %v15467_v62, %s8414_s20 }
 0x98e   : > { %v5247_v41 = vpop.permute.xlu0 %5246  ;;  %v5279_v28 = vpop.permute.xlu1 %5278 }
 0x98f   : > { %v6249_v63 = vsel %vm6209_vm12, %v6184_v61, %v5247_v41  ;;  %v6282_v58 = vsel %vm6274_vm15, %v6217_v57, %v5279_v28 }
 0x990   : > { %4884 = vrot.lane.b32.xlu0 %v15486_v19, %s8410_s16  ;;  %5336 = vrot.lane.b32.xlu1 %v15459_v8, %s8418_s23 }
 0x992   : > { %v13377_v40 = vpop.permute.xlu0 %5052  ;;  %v13379_v3 = vpop.permute.xlu1 %4858 }
 0x994   : > { %5142 = vrot.lane.b32.xlu0 %v15472_v27, %s8414_s20  ;;  %4916 = vrot.lane.b32.xlu1 %v15481_v37, %s8411_s17 }
 0x996   : > { %v5311_v34 = vpop.permute.xlu0 %5310  ;;  %v13401_v33 = vpop.permute.xlu1 %5116 }
 0x997   : > { %v6314_v53 = vsel %vm6274_vm15, %v6249_v63, %v5311_v34  ;;  %v15500_v34 = vld [vmem:[#allocation141_spill] sm:$0xff]  ;;  %v15503_v63 = vld [vmem:[#allocation88_spill] sm:$0xff] }
 0x998   : > { %5368 = vrot.lane.b32.xlu0 %v15456_v21, %s8418_s23  ;;  %5174 = vrot.lane.b32.xlu1 %v15467_v62, %s8415_s21  ;;  %v5695_v22 = vsel %vm5689_vm3, %v5630_v29, %v15500_v34  ;;  %v5456_v60 = vsel %vm3345_vm14, %v11718_v52, %v15503_v63 }
 0x999   : > { %v5760_v32 = vsel %vm5754_vm4, %v5695_v22, %v15501_v26 }
 0x99a   : > { %v5085_v45 = vpop.permute.xlu0 %5084  ;;  %v5375_v5 = vpop.permute.xlu1 %5374 }
 0x99b   : > { %v6398_v2 = vsel %vm6339_vm0, %v6314_v53, %v5375_v5  ;;  %v15504_v5 = vld [vmem:[#allocation25_spill] sm:$0xff] }
 0x99c   : > { %v6858_v24 = vmul.bf16 %v8007_v14, %v6398_v2  ;;  %v6859_v17 = vmul.bf16 %v8009_v42, %v6398_v2  ;;  %4948 = vrot.lane.b32.xlu0 %v15486_v19, %s8411_s17  ;;  %4980 = vrot.lane.b32.xlu1 %v15481_v37, %s8412_s18  ;;  %v5825_v14 = vsel %vm5819_vm6, %v5760_v32, %v13252_v46 }
 0x99d   : > { %v5890_v42 = vsel %vm5884_vm5, %v5825_v14, %v13311_v20  ;;  %v5534_v12 = vsel %vm5496_vm2, %v5456_v60, %v15504_v5  ;;  %v15509_v5 = vld [vmem:[#allocation52_spill] sm:$0xff] }
 0x99e   : > { %v5343_v41 = vpop.permute.xlu0 %5342  ;;  %6953 = vmatprep.subr.bf16.mxu1 %v6859_v17  ;;  %v13442_v6 = vpop.permute.xlu1 %4922  ;;  %v5955_v53 = vsel %vm5949_vm7, %v5890_v42, %v13337_v56  ;;  %v8013_v56 = vld [vmem:[%s14646_s1 + $0x20] ss:$8 sps:$4 sm:$0xff]  }
 0x99f   : > { %v6350_v44 = vsel %vm6339_vm0, %v6282_v58, %v5343_v41  ;;  %6954 = vmatpush1.bf16.msra.mxu1 %v6858_v24  ;;  %v6020_v46 = vsel %vm6014_vm8, %v5955_v53, %v13349_v0  ;;  %v5598_v24 = vsel %vm2256_vm11, %v5534_v12, %v15505_v49  ;;  %v8015_v0 = vld [vmem:[%s14646_s1 + $0x24] ss:$8 sps:$4 sm:$0xff]  }
 0x9a0   : > { %v6826_v16 = vmul.bf16 %v8010_v30, %v6350_v44  ;;  %v6827_v47 = vmul.bf16 %v8012_v4, %v6350_v44  ;;  %5206 = vrot.lane.b32.xlu0 %v15472_v27, %s8415_s21  ;;  %5238 = vrot.lane.b32.xlu1 %v15467_v62, %s8416_s15  ;;  %v6085_v17 = vsel %vm6079_vm9, %v6020_v46, %v5085_v45  ;;  %v15506_v30 = vld [vmem:[#allocation127_spill] sm:$0xff]  ;;  %v15510_v12 = vld [vmem:[#allocation68_spill] sm:$0xff] }
 0x9a1   : > { %v5662_v52 = vsel %vm2959_vm13, %v5598_v24, %v15506_v30  ;;  %v15507_v45 = vld [vmem:[#allocation155_spill] sm:$0xff]  ;;  %v5405_v46 = vsel %vm3345_vm14, %v11606_v9, %v15510_v12  ;;  %v15512_v30 = vld [vmem:[#allocation62_spill] sm:$0xff] }
 0x9a2   : > { %v13449_v31 = vpop.permute.xlu0 %4890  ;;  %6900 = vmatprep.subr.bf16.mxu0 %v6827_v47  ;;  %v13451_v35 = vpop.permute.xlu1 %5180  ;;  %v5727_v57 = vsel %vm5689_vm3, %v5662_v52, %v15507_v45  ;;  %v15508_v41 = vld [vmem:[#allocation183_spill] sm:$0xff]  ;;  %v15515_v45 = vld [vmem:[#allocation170_spill] sm:$0xff] }
 0x9a3   : > { %6901 = vmatpush1.bf16.msra.mxu0 %v6826_v16  ;;  %v5792_v44 = vsel %vm5754_vm4, %v5727_v57, %v15508_v41 }
 0x9a4   : > { %5012 = vrot.lane.b32.xlu0 %v15486_v19, %s8412_s18  ;;  %5044 = vrot.lane.b32.xlu1 %v15481_v37, %s8413_s19  ;;  %v5857_v15 = vsel %vm5819_vm6, %v5792_v44, %v13296_v38  ;;  %v15516_v44 = vld [vmem:[#allocation197_spill] sm:$0xff] }
 0x9a5   : > { %v5922_v7 = vsel %vm5884_vm5, %v5857_v15, %v13335_v48  ;;  %v15517_v15 = vld [vmem:[#allocation51_spill] sm:$0xff] }
 0x9a6   : > { %v5149_v28 = vpop.permute.xlu0 %5148  ;;  %v13457_v50 = vpop.permute.xlu1 %4986 }
 0x9a7   : > { %v6150_v4 = vsel %vm6144_vm10, %v6085_v17, %v5149_v28 }
 0x9a8   : > { %5270 = vrot.lane.b32.xlu0 %v15472_v27, %s8416_s15  ;;  %5302 = vrot.lane.b32.xlu1 %v15467_v62, %s8417_s22 }
 0x9aa   : > { %v13463_v11 = vpop.permute.xlu0 %4954  ;;  %v5245_v23 = vpop.permute.xlu1 %5244 }
 0x9ac   : > { %5076 = vrot.lane.b32.xlu0 %v15486_v19, %s8413_s19  ;;  %4850 = vrot.lane.b32.xlu1 %v15495_v18, %s8410_s16 }
 0x9ae   : > { %v5213_v1 = vpop.permute.xlu0 %5212  ;;  %v13474_v13 = vpop.permute.xlu1 %5050 }
 0x9af   : > { %v6215_v58 = vsel %vm6209_vm12, %v6150_v4, %v5213_v1  ;;  %v5987_v1 = vsel %vm5949_vm7, %v5922_v7, %v13347_v55  ;;  %v8016_v55 = vld [vmem:[%s14646_s1 + $0x120] ss:$8 sps:$4 sm:$0xff]   ;;  %v15513_v4 = vld [vmem:[#allocation114_spill] sm:$0xff] }
 0x9b0   : > { %5334 = vrot.lane.b32.xlu0 %v15472_v27, %s8417_s22  ;;  %5108 = vrot.lane.b32.xlu1 %v15481_v37, %s8414_s20  ;;  %v6052_v36 = vsel %vm6014_vm8, %v5987_v1, %v13377_v40  ;;  %v8018_v40 = vld [vmem:[%s14646_s1 + $0x124] ss:$8 sps:$4 sm:$0xff]  }
 0x9b1   : > { %v6117_v48 = vsel %vm6079_vm9, %v6052_v36, %v13401_v33 }
 0x9b2   : > { %v13488_v43 = vpop.permute.xlu0 %5018  ;;  %v5309_v61 = vpop.permute.xlu1 %5308  ;;  %v6182_v29 = vsel %vm6144_vm10, %v6117_v48, %v13451_v35 }
 0x9b3   : > { %v6247_v33 = vsel %vm6209_vm12, %v6182_v29, %v5245_v23  ;;  %v15520_v29 = vld [vmem:[#allocation46_spill] sm:$0xff] }
 0x9b4   : > { %4882 = vrot.lane.b32.xlu0 %v15502_v10, %s8410_s16  ;;  %5366 = vrot.lane.b32.xlu1 %v15467_v62, %s8418_s23  ;;  %v6312_v34 = vsel %vm6274_vm15, %v6247_v33, %v5309_v61  ;;  %v15521_v33 = vld [vmem:[#allocation128_spill] sm:$0xff] }
 0x9b6   : > { %v5277_v20 = vpop.permute.xlu0 %5276  ;;  %v13507_v2 = vpop.permute.xlu1 %5082 }
 0x9b7   : > { %v6280_v16 = vsel %vm6274_vm15, %v6215_v58, %v5277_v20  ;;  %v15511_v20 = vld [vmem:[#allocation70_spill] sm:$0xff] }
 0x9b8   : > { %5140 = vrot.lane.b32.xlu0 %v15486_v19, %s8414_s20  ;;  %4914 = vrot.lane.b32.xlu1 %v15495_v18, %s8411_s17  ;;  %v5500_v49 = vsel %vm5496_vm2, %v5405_v46, %v15511_v20 }
 0x9b9   : > { %v5564_v52 = vsel %vm2256_vm11, %v5500_v49, %v15512_v30 }
 0x9ba   : > { %v13531_v47 = vpop.permute.xlu0 %4856  ;;  %v5341_v28 = vpop.permute.xlu1 %5340 }
 0x9bb   : > { %v6347_v25 = vsel %vm6339_vm0, %v6280_v16, %v5341_v28 }
 0x9bc   : > { %v6824_v54 = vmul.bf16 %v8013_v56, %v6347_v25  ;;  %v6825_v59 = vmul.bf16 %v8015_v0, %v6347_v25  ;;  %5398 = vrot.lane.b32.xlu0 %v15472_v27, %s8418_s23  ;;  %5172 = vrot.lane.b32.xlu1 %v15481_v37, %s8415_s21  ;;  %v5628_v56 = vsel %vm2959_vm13, %v5564_v52, %v15513_v4  ;;  %v15514_v0 = vld [vmem:[#allocation142_spill] sm:$0xff]  ;;  %v15518_v25 = vld [vmem:[#allocation93_spill] sm:$0xff] }
 0x9bd   : > { %v5693_v9 = vsel %vm5689_vm3, %v5628_v56, %v15514_v0  ;;  %v5453_v7 = vsel %vm3345_vm14, %v11712_v39, %v15518_v25 }
 0x9be   : > { %v13546_v38 = vpop.permute.xlu0 %5114  ;;  %6902 = vmatprep.subr.bf16.mxu0 %v6825_v59  ;;  %v13548_v51 = vpop.permute.xlu1 %4888  ;;  %v5758_v57 = vsel %vm5754_vm4, %v5693_v9, %v15515_v45  ;;  %v15519_v59 = vld [vmem:[#allocation13_spill] sm:$0xff] }
 0x9bf   : > { %6903 = vmatpush1.bf16.msra.mxu0 %v6824_v54  ;;  %v5823_v16 = vsel %vm5819_vm6, %v5758_v57, %v15516_v44  ;;  %v5532_v1 = vsel %vm5496_vm2, %v5453_v7, %v15519_v59 }
 0x9c0   : > { %4946 = vrot.lane.b32.xlu0 %v15502_v10, %s8411_s17  ;;  %4978 = vrot.lane.b32.xlu1 %v15495_v18, %s8412_s18  ;;  %v5888_v28 = vsel %vm5884_vm5, %v5823_v16, %v13449_v31 }
 0x9c1   : > { %v5953_v54 = vsel %vm5949_vm7, %v5888_v28, %v13463_v11 }
 0x9c2   : > { %v5373_v22 = vpop.permute.xlu0 %5372  ;;  %v5147_v35 = vpop.permute.xlu1 %5146  ;;  %v6018_v36 = vsel %vm6014_vm8, %v5953_v54, %v13488_v43  ;;  %v8019_v43 = vld [vmem:[%s14646_s1 + $0x10] ss:$8 sps:$4 sm:$0xff]  }
 0x9c3   : > { %v6395_v26 = vsel %vm6339_vm0, %v6312_v34, %v5373_v22  ;;  %v8021_v34 = vld [vmem:[%s14646_s1 + $0x14] ss:$8 sps:$4 sm:$0xff]  }
 0x9c4   : > { %v6856_v32 = vmul.bf16 %v8016_v55, %v6395_v26  ;;  %v6857_v14 = vmul.bf16 %v8018_v40, %v6395_v26  ;;  %5204 = vrot.lane.b32.xlu0 %v15486_v19, %s8415_s21  ;;  %5236 = vrot.lane.b32.xlu1 %v15481_v37, %s8416_s15  ;;  %v5596_v55 = vsel %vm2256_vm11, %v5532_v1, %v15520_v29  ;;  %v15524_v1 = vld [vmem:[#allocation86_spill] sm:$0xff]  ;;  %v15526_v29 = vld [vmem:[#allocation76_spill] sm:$0xff] }
 0x9c5   : > { %v6083_v40 = vsel %vm6079_vm9, %v6018_v36, %v13507_v2  ;;  %v5660_v39 = vsel %vm2959_vm13, %v5596_v55, %v15521_v33  ;;  %v15522_v2 = vld [vmem:[#allocation156_spill] sm:$0xff] }
 0x9c6   : > { %v13571_v42 = vpop.permute.xlu0 %4920  ;;  %6955 = vmatprep.subr.bf16.mxu1 %v6857_v14  ;;  %v13573_v63 = vpop.permute.xlu1 %4952  ;;  %v6148_v11 = vsel %vm6144_vm10, %v6083_v40, %v5147_v35  ;;  %v5725_v22 = vsel %vm5689_vm3, %v5660_v39, %v15522_v2  ;;  %v15523_v35 = vld [vmem:[#allocation184_spill] sm:$0xff]  ;;  %v15527_v39 = vld [vmem:[#allocation26_spill] sm:$0xff]  ;;  %v15529_v2 = vld [vmem:[#allocation139_spill] sm:$0xff] }
 0x9c7   : > { %6956 = vmatpush1.bf16.msra.mxu1 %v6856_v32  ;;  %v5790_v32 = vsel %vm5754_vm4, %v5725_v22, %v15523_v35  ;;  %v15525_v36 = vld [vmem:[#allocation72_spill] sm:$0xff]  ;;  %v15530_v22 = vld [vmem:[#allocation167_spill] sm:$0xff] }
 0x9c8   : > { %5010 = vrot.lane.b32.xlu0 %v15502_v10, %s8412_s18  ;;  %5042 = vrot.lane.b32.xlu1 %v15495_v18, %s8413_s19  ;;  %v5855_v20 = vsel %vm5819_vm6, %v5790_v32, %v13379_v3 }
 0x9c9   : > { %v5920_v30 = vsel %vm5884_vm5, %v5855_v20, %v13442_v6 }
 0x9ca   : > { %v5179_v23 = vpop.permute.xlu0 %5178  ;;  %v5211_v61 = vpop.permute.xlu1 %5210 }
 0x9cb   : > { %v6213_v26 = vsel %vm6209_vm12, %v6148_v11, %v5211_v61  ;;  %v5985_v61 = vsel %vm5949_vm7, %v5920_v30, %v13457_v50  ;;  %v8022_v50 = vld [vmem:[%s14646_s1 + $0x110] ss:$8 sps:$4 sm:$0xff]   ;;  %v15533_v30 = vld [vmem:[#allocation23_spill] sm:$0xff] }
 0x9cc   : > { %5268 = vrot.lane.b32.xlu0 %v15486_v19, %s8416_s15  ;;  %5300 = vrot.lane.b32.xlu1 %v15481_v37, %s8417_s22 }
 0x9ce   : > { %v13583_v60 = vpop.permute.xlu0 %4984  ;;  %v13585_v53 = vpop.permute.xlu1 %5016 }
 0x9d0   : > { %5074 = vrot.lane.b32.xlu0 %v15502_v10, %s8413_s19  ;;  %4848 = vrot.lane.b32.xlu1 %v15509_v5, %s8410_s16 }
 0x9d2   : > { %v5243_v24 = vpop.permute.xlu0 %5242  ;;  %v5275_v17 = vpop.permute.xlu1 %5274 }
 0x9d3   : > { %v6278_v14 = vsel %vm6274_vm15, %v6213_v26, %v5275_v17  ;;  %v6050_v17 = vsel %vm6014_vm8, %v5985_v61, %v13474_v13  ;;  %v8024_v13 = vld [vmem:[%s14646_s1 + $0x114] ss:$8 sps:$4 sm:$0xff]  }
 0x9d4   : > { %5332 = vrot.lane.b32.xlu0 %v15486_v19, %s8417_s22  ;;  %5106 = vrot.lane.b32.xlu1 %v15495_v18, %s8414_s20  ;;  %v6115_v6 = vsel %vm6079_vm9, %v6050_v17, %v13546_v38  ;;  %v15534_v61 = vld [vmem:[#allocation10_spill] sm:$0xff] }
 0x9d5   : > { %v6180_v0 = vsel %vm6144_vm10, %v6115_v6, %v5179_v23 }
 0x9d6   : > { %v13608_v58 = vpop.permute.xlu0 %5048  ;;  %v13610_v41 = vpop.permute.xlu1 %4854  ;;  %v6245_v9 = vsel %vm6209_vm12, %v6180_v0, %v5243_v24 }
 0x9d8   : > { %4880 = vrot.lane.b32.xlu0 %v15517_v15, %s8410_s16  ;;  %5364 = vrot.lane.b32.xlu1 %v15481_v37, %s8418_s23 }
 0x9da   : > { %v5307_v31 = vpop.permute.xlu0 %5306  ;;  %v13629_v48 = vpop.permute.xlu1 %5080 }
 0x9db   : > { %v6310_v38 = vsel %vm6274_vm15, %v6245_v9, %v5307_v31  ;;  %v5402_v31 = vsel %vm3345_vm14, %v15459_v8, %v15525_v36 }
 0x9dc   : > { %5138 = vrot.lane.b32.xlu0 %v15502_v10, %s8414_s20  ;;  %4912 = vrot.lane.b32.xlu1 %v15509_v5, %s8411_s17  ;;  %v5498_v55 = vsel %vm5496_vm2, %v5402_v31, %v15526_v29 }
 0x9dd   : > { %v5562_v11 = vsel %vm2256_vm11, %v5498_v55, %v15527_v39 }
 0x9de   : > { %v13654_v12 = vpop.permute.xlu0 %4886  ;;  %v5339_v46 = vpop.permute.xlu1 %5338 }
 0x9df   : > { %v6344_v49 = vsel %vm6339_vm0, %v6278_v14, %v5339_v46  ;;  %v15531_v14 = vld [vmem:[#allocation195_spill] sm:$0xff] }
 0x9e0   : > { %v6822_v52 = vmul.bf16 %v8019_v43, %v6344_v49  ;;  %v6823_v4 = vmul.bf16 %v8021_v34, %v6344_v49  ;;  %5396 = vrot.lane.b32.xlu0 %v15486_v19, %s8418_s23  ;;  %5170 = vrot.lane.b32.xlu1 %v15495_v18, %s8415_s21  ;;  %v15528_v43 = vld [vmem:[#allocation111_spill] sm:$0xff]  ;;  %v15532_v49 = vld [vmem:[#allocation6_spill] sm:$0xff] }
 0x9e1   : > { %v5626_v34 = vsel %vm2959_vm13, %v5562_v11, %v15528_v43 }
 0x9e2   : > { %v13669_v3 = vpop.permute.xlu0 %5112  ;;  %6904 = vmatprep.subr.bf16.mxu0 %v6823_v4  ;;  %v13671_v56 = vpop.permute.xlu1 %4918  ;;  %v5691_v8 = vsel %vm5689_vm3, %v5626_v34, %v15529_v2 }
 0x9e3   : > { %6905 = vmatpush1.bf16.msra.mxu0 %v6822_v52  ;;  %v5756_v26 = vsel %vm5754_vm4, %v5691_v8, %v15530_v22  ;;  %v5450_v52 = vsel %vm3345_vm14, %v15456_v21, %v15533_v30 }
 0x9e4   : > { %4944 = vrot.lane.b32.xlu0 %v15517_v15, %s8411_s17  ;;  %4976 = vrot.lane.b32.xlu1 %v15509_v5, %s8412_s18  ;;  %v5821_v46 = vsel %vm5819_vm6, %v5756_v26, %v15531_v14  ;;  %v5530_v17 = vsel %vm5496_vm2, %v5450_v52, %v15534_v61 }
 0x9e5   : > { %v5886_v20 = vsel %vm5884_vm5, %v5821_v46, %v13548_v51 }
 0x9e6   : > { %v5371_v45 = vpop.permute.xlu0 %5370  ;;  %v5145_v23 = vpop.permute.xlu1 %5144  ;;  %v5951_v4 = vsel %vm5949_vm7, %v5886_v20, %v13573_v63 }
 0x9e7   : > { %v6392_v57 = vsel %vm6339_vm0, %v6310_v38, %v5371_v45  ;;  %v6016_v6 = vsel %vm6014_vm8, %v5951_v4, %v13585_v53  ;;  %v15536_v38 = vld [vmem:[#allocation125_spill] sm:$0xff]  ;;  %v8025_v53 = vld [vmem:[%s14646_s1] ss:$8 sps:$4 sm:$0xff]   ;;  %v8027_v45 = vld [vmem:[%s14646_s1 + $0x4] ss:$8 sps:$4 sm:$0xff]  }
 0x9e8   : > { %v6854_v44 = vmul.bf16 %v8022_v50, %v6392_v57  ;;  %v6855_v16 = vmul.bf16 %v8024_v13, %v6392_v57  ;;  %5202 = vrot.lane.b32.xlu0 %v15502_v10, %s8415_s21  ;;  %5234 = vrot.lane.b32.xlu1 %v15495_v18, %s8416_s15  ;;  %v15535_v50 = vld [vmem:[#allocation79_spill] sm:$0xff]  ;;  %v6081_v9 = vsel %vm6079_vm9, %v6016_v6, %v13629_v48  ;;  %v15537_v48 = vld [vmem:[#allocation153_spill] sm:$0xff] }
 0x9e9   : > { %v5594_v13 = vsel %vm2256_vm11, %v5530_v17, %v15535_v50  ;;  %v6146_v63 = vsel %vm6144_vm10, %v6081_v9, %v5145_v23  ;;  %v15538_v23 = vld [vmem:[#allocation181_spill] sm:$0xff] }
 0x9ea   : > { %v13693_v28 = vpop.permute.xlu0 %4950  ;;  %6957 = vmatprep.subr.bf16.mxu1 %v6855_v16  ;;  %v13695_v25 = vpop.permute.xlu1 %4982  ;;  %v5658_v21 = vsel %vm2959_vm13, %v5594_v13, %v15536_v38  ;;  %v15539_v6 = vld [vmem:[#allocation49_spill] sm:$0xff]  ;;  %v15541_v13 = vld [vmem:[#allocation11_spill] sm:$0xff] }
 0x9eb   : > { %6958 = vmatpush1.bf16.msra.mxu1 %v6854_v44  ;;  %v5723_v57 = vsel %vm5689_vm3, %v5658_v21, %v15537_v48 }
 0x9ec   : > { %5008 = vrot.lane.b32.xlu0 %v15517_v15, %s8412_s18  ;;  %5040 = vrot.lane.b32.xlu1 %v15509_v5, %s8413_s19  ;;  %v5788_v16 = vsel %vm5754_vm4, %v5723_v57, %v15538_v23  ;;  %v15544_v57 = vld [vmem:[#allocation154_spill] sm:$0xff] }
 0x9ed   : > { %v5853_v55 = vsel %vm5819_vm6, %v5788_v16, %v13531_v47 }
 0x9ee   : > { %v5177_v24 = vpop.permute.xlu0 %5176  ;;  %v5209_v7 = vpop.permute.xlu1 %5208  ;;  %v5918_v11 = vsel %vm5884_vm5, %v5853_v55, %v13571_v42 }
 0x9ef   : > { %v6211_v44 = vsel %vm6209_vm12, %v6146_v63, %v5209_v7  ;;  %v5983_v7 = vsel %vm5949_vm7, %v5918_v11, %v13583_v60  ;;  %v8028_v60 = vld [vmem:[%s14646_s1 + $0x100] ss:$8 sps:$4 sm:$0xff]   ;;  %v15547_v11 = vld [vmem:[#allocation57_spill] sm:$0xff] }
 0x9f0   : > { %5266 = vrot.lane.b32.xlu0 %v15502_v10, %s8416_s15  ;;  %5298 = vrot.lane.b32.xlu1 %v15495_v18, %s8417_s22  ;;  %v15542_v63 = vld [vmem:[#allocation103_spill] sm:$0xff] }
 0x9f2   : > { %v13705_v54 = vpop.permute.xlu0 %5014  ;;  %v13707_v59 = vpop.permute.xlu1 %5046 }
 0x9f4   : > { %5072 = vrot.lane.b32.xlu0 %v15517_v15, %s8413_s19  ;;  %4846 = vrot.lane.b32.xlu1 %v15524_v1, %s8410_s16 }
 0x9f6   : > { %v5241_v40 = vpop.permute.xlu0 %5240  ;;  %v5273_v33 = vpop.permute.xlu1 %5272 }
 0x9f7   : > { %v6276_v36 = vsel %vm6274_vm15, %v6211_v44, %v5273_v33  ;;  %v6048_v33 = vsel %vm6014_vm8, %v5983_v7, %v13608_v58  ;;  %v8030_v58 = vld [vmem:[%s14646_s1 + $0x104] ss:$8 sps:$4 sm:$0xff]   ;;  %v15545_v44 = vld [vmem:[#allocation182_spill] sm:$0xff] }
 0x9f8   : > { %5330 = vrot.lane.b32.xlu0 %v15502_v10, %s8417_s22  ;;  %5104 = vrot.lane.b32.xlu1 %v15509_v5, %s8414_s20  ;;  %v6113_v42 = vsel %vm6079_vm9, %v6048_v33, %v13669_v3  ;;  %v15548_v7 = vld [vmem:[#allocation102_spill] sm:$0xff] }
 0x9f9   : > { %v6178_v8 = vsel %vm6144_vm10, %v6113_v42, %v5177_v24 }
 0x9fa   : > { %v13730_v35 = vpop.permute.xlu0 %5078  ;;  %v13732_v32 = vpop.permute.xlu1 %4852  ;;  %v6243_v22 = vsel %vm6209_vm12, %v6178_v8, %v5241_v40  ;;  %v15549_v8 = vld [vmem:[#allocation112_spill] sm:$0xff] }
 0x9fc   : > { %4878 = vrot.lane.b32.xlu0 %v15532_v49, %s8410_s16  ;;  %5362 = vrot.lane.b32.xlu1 %v15495_v18, %s8418_s23 }
 0x9fe   : > { %v5305_v51 = vpop.permute.xlu0 %5304  ;;  %v13751_v0 = vpop.permute.xlu1 %5110 }
 0x9ff   : > { %v6308_v3 = vsel %vm6274_vm15, %v6243_v22, %v5305_v51  ;;  %v15540_v51 = vld [vmem:[#allocation74_spill] sm:$0xff]  ;;  %v15550_v22 = vld [vmem:[#allocation140_spill] sm:$0xff] }
 0xa00   : > { %5136 = vrot.lane.b32.xlu0 %v15517_v15, %s8414_s20  ;;  %4910 = vrot.lane.b32.xlu1 %v15524_v1, %s8411_s17  ;;  %v5447_v50 = vsel %vm3345_vm14, %v15467_v62, %v15540_v51 }
 0xa01   : > { %v5528_v9 = vsel %vm5496_vm2, %v5447_v50, %v15541_v13 }
 0xa02   : > { %v13776_v31 = vpop.permute.xlu0 %4884  ;;  %v5337_v29 = vpop.permute.xlu1 %5336 }
 0xa03   : > { %v6341_v39 = vsel %vm6339_vm0, %v6276_v36, %v5337_v29 }
 0xa04   : > { %v6820_v43 = vmul.bf16 %v8025_v53, %v6341_v39  ;;  %v6821_v34 = vmul.bf16 %v8027_v45, %v6341_v39  ;;  %5394 = vrot.lane.b32.xlu0 %v15502_v10, %s8418_s23  ;;  %5168 = vrot.lane.b32.xlu1 %v15509_v5, %s8415_s21  ;;  %v5592_v53 = vsel %vm2256_vm11, %v5528_v9, %v15542_v63  ;;  %v15543_v45 = vld [vmem:[#allocation126_spill] sm:$0xff]  ;;  %v15546_v39 = vld [vmem:[#allocation107_spill] sm:$0xff] }
 0xa05   : > { %v5656_v48 = vsel %vm2959_vm13, %v5592_v53, %v15543_v45 }
 0xa06   : > { %v13791_v47 = vpop.permute.xlu0 %5142  ;;  %6906 = vmatprep.subr.bf16.mxu0 %v6821_v34  ;;  %v13793_v2 = vpop.permute.xlu1 %4916  ;;  %v5721_v62 = vsel %vm5689_vm3, %v5656_v48, %v15544_v57 }
 0xa07   : > { %6907 = vmatpush1.bf16.msra.mxu0 %v6820_v43  ;;  %v5786_v23 = vsel %vm5754_vm4, %v5721_v62, %v15545_v44  ;;  %v5495_v43 = vsel %vm3345_vm14, %v15472_v27, %v15547_v11 }
 0xa08   : > { %4942 = vrot.lane.b32.xlu0 %v15532_v49, %s8411_s17  ;;  %4974 = vrot.lane.b32.xlu1 %v15524_v1, %s8412_s18  ;;  %v5851_v29 = vsel %vm5819_vm6, %v5786_v23, %v13610_v41  ;;  %v5560_v33 = vsel %vm5496_vm2, %v5495_v43, %v15548_v7 }
 0xa09   : > { %v5916_v55 = vsel %vm5884_vm5, %v5851_v29, %v13671_v56 }
 0xa0a   : > { %v5369_v26 = vpop.permute.xlu0 %5368  ;;  %v5175_v24 = vpop.permute.xlu1 %5174  ;;  %v5981_v34 = vsel %vm5949_vm7, %v5916_v55, %v13695_v25 }
 0xa0b   : > { %v6389_v14 = vsel %vm6339_vm0, %v6308_v3, %v5369_v26  ;;  %v6046_v41 = vsel %vm6014_vm8, %v5981_v34, %v13707_v59  ;;  %v8031_v59 = vld [vmem:[%s14646_s1 + $0xf0] ss:$8 sps:$4 sm:$0xff]   ;;  %v8033_v3 = vld [vmem:[%s14646_s1 + $0xf4] ss:$8 sps:$4 sm:$0xff]  }
 0xa0c   : > { %v6852_v46 = vmul.bf16 %v8028_v60, %v6389_v14  ;;  %v6853_v20 = vmul.bf16 %v8030_v58, %v6389_v14  ;;  %5200 = vrot.lane.b32.xlu0 %v15517_v15, %s8415_s21  ;;  %5232 = vrot.lane.b32.xlu1 %v15509_v5, %s8416_s15  ;;  %v5624_v60 = vsel %vm2256_vm11, %v5560_v33, %v15549_v8 }
 0xa0d   : > { %v6111_v58 = vsel %vm6079_vm9, %v6046_v41, %v13751_v0  ;;  %v5688_v27 = vsel %vm2959_vm13, %v5624_v60, %v15550_v22  ;;  %v15551_v0 = vld [vmem:[#allocation168_spill] sm:$0xff]  ;;  %v15555_v60 = vld [vmem:[#allocation47_spill] sm:$0xff] }
 0xa0e   : > { %v13815_v30 = vpop.permute.xlu0 %4948  ;;  %6959 = vmatprep.subr.bf16.mxu1 %v6853_v20  ;;  %v13817_v52 = vpop.permute.xlu1 %4980  ;;  %v6176_v25 = vsel %vm6144_vm10, %v6111_v58, %v5175_v24  ;;  %v5753_v26 = vsel %vm5689_vm3, %v5688_v27, %v15551_v0  ;;  %v15552_v24 = vld [vmem:[#allocation196_spill] sm:$0xff] }
 0xa0f   : > { %6960 = vmatpush1.bf16.msra.mxu1 %v6852_v46  ;;  %v5818_v46 = vsel %vm5754_vm4, %v5753_v26, %v15552_v24  ;;  %v15553_v41 = vld [vmem:[#allocation108_spill] sm:$0xff]  ;;  %v15558_v26 = vld [vmem:[#allocation151_spill] sm:$0xff] }
 0xa10   : > { %5006 = vrot.lane.b32.xlu0 %v15532_v49, %s8412_s18  ;;  %5038 = vrot.lane.b32.xlu1 %v15524_v1, %s8413_s19  ;;  %v5883_v13 = vsel %vm5819_vm6, %v5818_v46, %v13654_v12 }
 0xa11   : > { %v5948_v63 = vsel %vm5884_vm5, %v5883_v13, %v13693_v28 }
 0xa12   : > { %v5207_v40 = vpop.permute.xlu0 %5206  ;;  %v5239_v4 = vpop.permute.xlu1 %5238 }
 0xa13   : > { %v6241_v14 = vsel %vm6209_vm12, %v6176_v25, %v5239_v4  ;;  %v6013_v4 = vsel %vm5949_vm7, %v5948_v63, %v13705_v54  ;;  %v8034_v54 = vld [vmem:[%s14646_s1 + $0x1f0] ss:$8 sps:$4 sm:$0xff]  }
 0xa14   : > { %5264 = vrot.lane.b32.xlu0 %v15517_v15, %s8416_s15  ;;  %5296 = vrot.lane.b32.xlu1 %v15509_v5, %s8417_s22  ;;  %v15556_v25 = vld [vmem:[#allocation18_spill] sm:$0xff]  ;;  %v15561_v63 = vld [vmem:[#allocation97_spill] sm:$0xff] }
 0xa16   : > { %v13827_v61 = vpop.permute.xlu0 %5012  ;;  %v13829_v17 = vpop.permute.xlu1 %5044 }
 0xa18   : > { %5070 = vrot.lane.b32.xlu0 %v15532_v49, %s8413_s19  ;;  %4844 = vrot.lane.b32.xlu1 %v15539_v6, %s8410_s16 }
 0xa1a   : > { %v5271_v38 = vpop.permute.xlu0 %5270  ;;  %v5303_v21 = vpop.permute.xlu1 %5302 }
 0xa1b   : > { %v6306_v20 = vsel %vm6274_vm15, %v6241_v14, %v5303_v21  ;;  %v6078_v21 = vsel %vm6014_vm8, %v6013_v4, %v13730_v35  ;;  %v8036_v35 = vld [vmem:[%s14646_s1 + $0x1f4] ss:$8 sps:$4 sm:$0xff]   ;;  %v15559_v14 = vld [vmem:[#allocation179_spill] sm:$0xff]  ;;  %v15562_v4 = vld [vmem:[#allocation32_spill] sm:$0xff] }
 0xa1c   : > { %5328 = vrot.lane.b32.xlu0 %v15517_v15, %s8417_s22  ;;  %5102 = vrot.lane.b32.xlu1 %v15524_v1, %s8414_s20  ;;  %v6143_v28 = vsel %vm6079_vm9, %v6078_v21, %v13791_v47 }
 0xa1d   : > { %v6208_v57 = vsel %vm6144_vm10, %v6143_v28, %v5207_v40 }
 0xa1e   : > { %v13852_v16 = vpop.permute.xlu0 %5076  ;;  %v13854_v36 = vpop.permute.xlu1 %4850  ;;  %v6273_v62 = vsel %vm6209_vm12, %v6208_v57, %v5271_v38  ;;  %v15563_v57 = vld [vmem:[#allocation109_spill] sm:$0xff] }
 0xa20   : > { %4876 = vrot.lane.b32.xlu0 %v15546_v39, %s8410_s16  ;;  %5360 = vrot.lane.b32.xlu1 %v15509_v5, %s8418_s23 }
 0xa22   : > { %v5335_v56 = vpop.permute.xlu0 %5334  ;;  %v13873_v42 = vpop.permute.xlu1 %5108 }
 0xa23   : > { %v6338_v47 = vsel %vm6274_vm15, %v6273_v62, %v5335_v56  ;;  %v15554_v56 = vld [vmem:[#allocation67_spill] sm:$0xff]  ;;  %v15564_v62 = vld [vmem:[#allocation137_spill] sm:$0xff] }
 0xa24   : > { %5134 = vrot.lane.b32.xlu0 %v15532_v49, %s8414_s20  ;;  %4908 = vrot.lane.b32.xlu1 %v15539_v6, %s8411_s17  ;;  %v5444_v8 = vsel %vm3345_vm14, %v15481_v37, %v15554_v56 }
 0xa25   : > { %v5526_v58 = vsel %vm5496_vm2, %v5444_v8, %v15555_v60 }
 0xa26   : > { %v13898_v51 = vpop.permute.xlu0 %4882  ;;  %v5367_v50 = vpop.permute.xlu1 %5366 }
 0xa27   : > { %v6386_v9 = vsel %vm6339_vm0, %v6306_v20, %v5367_v50 }
 0xa28   : > { %v6850_v53 = vmul.bf16 %v8031_v59, %v6386_v9  ;;  %v6851_v45 = vmul.bf16 %v8033_v3, %v6386_v9  ;;  %5392 = vrot.lane.b32.xlu0 %v15517_v15, %s8418_s23  ;;  %5166 = vrot.lane.b32.xlu1 %v15524_v1, %s8415_s21  ;;  %v5590_v59 = vsel %vm2256_vm11, %v5526_v58, %v15556_v25  ;;  %v15557_v3 = vld [vmem:[#allocation123_spill] sm:$0xff]  ;;  %v15560_v9 = vld [vmem:[#allocation85_spill] sm:$0xff] }
 0xa29   : > { %v5654_v0 = vsel %vm2959_vm13, %v5590_v59, %v15557_v3 }
 0xa2a   : > { %v13913_v12 = vpop.permute.xlu0 %5140  ;;  %6908 = vmatprep.subr.bf16.mxu0 %v6851_v45  ;;  %v13915_v48 = vpop.permute.xlu1 %4914  ;;  %v5719_v37 = vsel %vm5689_vm3, %v5654_v0, %v15558_v26 }
 0xa2b   : > { %6909 = vmatpush2.bf16.msra.mxu0 %v6850_v53  ;;  %v5784_v24 = vsel %vm5754_vm4, %v5719_v37, %v15559_v14  ;;  %v5492_v53 = vsel %vm3345_vm14, %v15486_v19, %v15561_v63 }
 0xa2c   : > { %4940 = vrot.lane.b32.xlu0 %v15546_v39, %s8411_s17  ;;  %4972 = vrot.lane.b32.xlu1 %v15539_v6, %s8412_s18  ;;  %v5849_v50 = vsel %vm5819_vm6, %v5784_v24, %v13732_v32  ;;  %v5558_v21 = vsel %vm5496_vm2, %v5492_v53, %v15562_v4 }
 0xa2d   : > { %v5914_v13 = vsel %vm5884_vm5, %v5849_v50, %v13793_v2 }
 0xa2e   : > { %v5399_v44 = vpop.permute.xlu0 %5398  ;;  %v5173_v40 = vpop.permute.xlu1 %5172  ;;  %v5979_v45 = vsel %vm5949_vm7, %v5914_v13, %v13817_v52 }
 0xa2f   : > { %v6434_v23 = vsel %vm6339_vm0, %v6338_v47, %v5399_v44  ;;  %v6044_v32 = vsel %vm6014_vm8, %v5979_v45, %v13829_v17  ;;  %v8037_v17 = vld [vmem:[%s14646_s1 + $0xe0] ss:$8 sps:$4 sm:$0xff]   ;;  %v8039_v47 = vld [vmem:[%s14646_s1 + $0xe4] ss:$8 sps:$4 sm:$0xff]  }
 0xa30   : > { %v6882_v29 = vmul.bf16 %v8034_v54, %v6434_v23  ;;  %v6883_v55 = vmul.bf16 %v8036_v35, %v6434_v23  ;;  %5198 = vrot.lane.b32.xlu0 %v15532_v49, %s8415_s21  ;;  %5230 = vrot.lane.b32.xlu1 %v15524_v1, %s8416_s15  ;;  %v5622_v54 = vsel %vm2256_vm11, %v5558_v21, %v15563_v57 }
 0xa31   : > { %v6109_v35 = vsel %vm6079_vm9, %v6044_v32, %v13873_v42  ;;  %v5686_v19 = vsel %vm2959_vm13, %v5622_v54, %v15564_v62  ;;  %v15565_v42 = vld [vmem:[#allocation165_spill] sm:$0xff]  ;;  %v15569_v54 = vld [vmem:[#allocation78_spill] sm:$0xff] }
 0xa32   : > { %v13937_v11 = vpop.permute.xlu0 %4946  ;;  %6961 = vmatprep.subr.bf16.mxu1 %v6883_v55  ;;  %v13939_v43 = vpop.permute.xlu1 %4978  ;;  %v6174_v52 = vsel %vm6144_vm10, %v6109_v35, %v5173_v40  ;;  %v5751_v44 = vsel %vm5689_vm3, %v5686_v19, %v15565_v42  ;;  %v15566_v40 = vld [vmem:[#allocation193_spill] sm:$0xff] }
 0xa33   : > { %6962 = vmatpush2.bf16.msra.mxu1 %v6882_v29  ;;  %v5816_v29 = vsel %vm5754_vm4, %v5751_v44, %v15566_v40  ;;  %v15567_v32 = vld [vmem:[#allocation105_spill] sm:$0xff]  ;;  %v15572_v44 = vld [vmem:[#allocation152_spill] sm:$0xff] }
 0xa34   : > { %5004 = vrot.lane.b32.xlu0 %v15546_v39, %s8412_s18  ;;  %5036 = vrot.lane.b32.xlu1 %v15539_v6, %s8413_s19  ;;  %v5881_v60 = vsel %vm5819_vm6, %v5816_v29, %v13776_v31 }
 0xa35   : > { %v5946_v25 = vsel %vm5884_vm5, %v5881_v60, %v13815_v30 }
 0xa36   : > { %v5205_v38 = vpop.permute.xlu0 %5204  ;;  %v5237_v34 = vpop.permute.xlu1 %5236 }
 0xa37   : > { %v6239_v23 = vsel %vm6209_vm12, %v6174_v52, %v5237_v34  ;;  %v6011_v34 = vsel %vm5949_vm7, %v5946_v25, %v13827_v61  ;;  %v8040_v61 = vld [vmem:[%s14646_s1 + $0x1e0] ss:$8 sps:$4 sm:$0xff]   ;;  %v15570_v52 = vld [vmem:[#allocation33_spill] sm:$0xff] }
 0xa38   : > { %5262 = vrot.lane.b32.xlu0 %v15532_v49, %s8416_s15  ;;  %5294 = vrot.lane.b32.xlu1 %v15524_v1, %s8417_s22  ;;  %v15575_v25 = vld [vmem:[#allocation92_spill] sm:$0xff] }
 0xa3a   : > { %v13949_v7 = vpop.permute.xlu0 %5010  ;;  %v13951_v33 = vpop.permute.xlu1 %5042 }
 0xa3c   : > { %5068 = vrot.lane.b32.xlu0 %v15546_v39, %s8413_s19  ;;  %4842 = vrot.lane.b32.xlu1 %v15553_v41, %s8410_s16 }
 0xa3e   : > { %v5269_v22 = vpop.permute.xlu0 %5268  ;;  %v5301_v27 = vpop.permute.xlu1 %5300 }
 0xa3f   : > { %v6304_v55 = vsel %vm6274_vm15, %v6239_v23, %v5301_v27  ;;  %v6076_v27 = vsel %vm6014_vm8, %v6011_v34, %v13852_v16  ;;  %v8042_v16 = vld [vmem:[%s14646_s1 + $0x1e4] ss:$8 sps:$4 sm:$0xff]  }
 0xa40   : > { %5326 = vrot.lane.b32.xlu0 %v15532_v49, %s8417_s22  ;;  %5100 = vrot.lane.b32.xlu1 %v15539_v6, %s8414_s20  ;;  %v6141_v30 = vsel %vm6079_vm9, %v6076_v27, %v13913_v12  ;;  %v15573_v23 = vld [vmem:[#allocation180_spill] sm:$0xff]  ;;  %v15576_v34 = vld [vmem:[#allocation31_spill] sm:$0xff] }
 0xa41   : > { %v6206_v26 = vsel %vm6144_vm10, %v6141_v30, %v5205_v38 }
 0xa42   : > { %v13974_v46 = vpop.permute.xlu0 %5074  ;;  %v13976_v20 = vpop.permute.xlu1 %4848  ;;  %v6271_v37 = vsel %vm6209_vm12, %v6206_v26, %v5269_v22  ;;  %v15577_v26 = vld [vmem:[#allocation110_spill] sm:$0xff] }
 0xa44   : > { %4874 = vrot.lane.b32.xlu0 %v15560_v9, %s8410_s16  ;;  %5358 = vrot.lane.b32.xlu1 %v15524_v1, %s8418_s23 }
 0xa46   : > { %v5333_v2 = vpop.permute.xlu0 %5332  ;;  %v13995_v28 = vpop.permute.xlu1 %5106 }
 0xa47   : > { %v6336_v12 = vsel %vm6274_vm15, %v6271_v37, %v5333_v2  ;;  %v15568_v2 = vld [vmem:[#allocation69_spill] sm:$0xff]  ;;  %v15578_v37 = vld [vmem:[#allocation138_spill] sm:$0xff] }
 0xa48   : > { %5132 = vrot.lane.b32.xlu0 %v15546_v39, %s8414_s20  ;;  %4906 = vrot.lane.b32.xlu1 %v15553_v41, %s8411_s17  ;;  %v5441_v57 = vsel %vm3345_vm14, %v15495_v18, %v15568_v2 }
 0xa49   : > { %v5524_v35 = vsel %vm5496_vm2, %v5441_v57, %v15569_v54 }
 0xa4a   : > { %v14020_v56 = vpop.permute.xlu0 %4880  ;;  %v5365_v8 = vpop.permute.xlu1 %5364 }
 0xa4b   : > { %v6383_v58 = vsel %vm6339_vm0, %v6304_v55, %v5365_v8 }
 0xa4c   : > { %v6848_v59 = vmul.bf16 %v8037_v17, %v6383_v58  ;;  %v6849_v3 = vmul.bf16 %v8039_v47, %v6383_v58  ;;  %5390 = vrot.lane.b32.xlu0 %v15532_v49, %s8418_s23  ;;  %5164 = vrot.lane.b32.xlu1 %v15539_v6, %s8415_s21  ;;  %v5588_v17 = vsel %vm2256_vm11, %v5524_v35, %v15570_v52  ;;  %v15571_v47 = vld [vmem:[#allocation124_spill] sm:$0xff] }
 0xa4d   : > { %v5652_v42 = vsel %vm2959_vm13, %v5588_v17, %v15571_v47  ;;  %v15574_v58 = vld [vmem:[#allocation80_spill] sm:$0xff] }
 0xa4e   : > { %v14035_v31 = vpop.permute.xlu0 %5138  ;;  %6910 = vmatprep.subr.bf16.mxu0 %v6849_v3  ;;  %v14037_v0 = vpop.permute.xlu1 %4912  ;;  %v5717_v18 = vsel %vm5689_vm3, %v5652_v42, %v15572_v44 }
 0xa4f   : > { %6911 = vmatpush2.bf16.msra.mxu0 %v6848_v59  ;;  %v5782_v40 = vsel %vm5754_vm4, %v5717_v18, %v15573_v23  ;;  %v5489_v59 = vsel %vm3345_vm14, %v15502_v10, %v15575_v25 }
 0xa50   : > { %4938 = vrot.lane.b32.xlu0 %v15560_v9, %s8411_s17  ;;  %4970 = vrot.lane.b32.xlu1 %v15553_v41, %s8412_s18  ;;  %v5847_v8 = vsel %vm5819_vm6, %v5782_v40, %v13854_v36  ;;  %v5556_v27 = vsel %vm5496_vm2, %v5489_v59, %v15576_v34 }
 0xa51   : > { %v5912_v60 = vsel %vm5884_vm5, %v5847_v8, %v13915_v48 }
 0xa52   : > { %v5397_v14 = vpop.permute.xlu0 %5396  ;;  %v5171_v38 = vpop.permute.xlu1 %5170  ;;  %v5977_v3 = vsel %vm5949_vm7, %v5912_v60, %v13939_v43 }
 0xa53   : > { %v6431_v24 = vsel %vm6339_vm0, %v6336_v12, %v5397_v14  ;;  %v6042_v36 = vsel %vm6014_vm8, %v5977_v3, %v13951_v33  ;;  %v8043_v33 = vld [vmem:[%s14646_s1 + $0xd0] ss:$8 sps:$4 sm:$0xff]   ;;  %v8045_v12 = vld [vmem:[%s14646_s1 + $0xd4] ss:$8 sps:$4 sm:$0xff]  }
 0xa54   : > { %v6880_v50 = vmul.bf16 %v8040_v61, %v6431_v24  ;;  %v6881_v13 = vmul.bf16 %v8042_v16, %v6431_v24  ;;  %5196 = vrot.lane.b32.xlu0 %v15546_v39, %s8415_s21  ;;  %5228 = vrot.lane.b32.xlu1 %v15539_v6, %s8416_s15  ;;  %v5620_v61 = vsel %vm2256_vm11, %v5556_v27, %v15577_v26  ;;  %v15582_v26 = vld [vmem:[#allocation40_spill] sm:$0xff] }
 0xa55   : > { %v6107_v16 = vsel %vm6079_vm9, %v6042_v36, %v13995_v28  ;;  %v5684_v10 = vsel %vm2959_vm13, %v5620_v61, %v15578_v37  ;;  %v15579_v28 = vld [vmem:[#allocation166_spill] sm:$0xff]  ;;  %v15581_v36 = vld [vmem:[#allocation56_spill] sm:$0xff] }
 0xa56   : > { %v14059_v63 = vpop.permute.xlu0 %4944  ;;  %6963 = vmatprep.subr.bf16.mxu1 %v6881_v13  ;;  %v14061_v53 = vpop.permute.xlu1 %4976  ;;  %v6172_v43 = vsel %vm6144_vm10, %v6107_v16, %v5171_v38  ;;  %v5749_v14 = vsel %vm5689_vm3, %v5684_v10, %v15579_v28  ;;  %v15580_v38 = vld [vmem:[#allocation194_spill] sm:$0xff]  ;;  %v15583_v10 = vld [vmem:[#allocation64_spill] sm:$0xff]  ;;  %v15585_v28 = vld [vmem:[#allocation149_spill] sm:$0xff] }
 0xa57   : > { %6964 = vmatpush2.bf16.msra.mxu1 %v6880_v50  ;;  %v5814_v50 = vsel %vm5754_vm4, %v5749_v14, %v15580_v38  ;;  %v15586_v14 = vld [vmem:[#allocation177_spill] sm:$0xff] }
 0xa58   : > { %5002 = vrot.lane.b32.xlu0 %v15560_v9, %s8412_s18  ;;  %5034 = vrot.lane.b32.xlu1 %v15553_v41, %s8413_s19  ;;  %v5879_v54 = vsel %vm5819_vm6, %v5814_v50, %v13898_v51 }
 0xa59   : > { %v5944_v52 = vsel %vm5884_vm5, %v5879_v54, %v13937_v11  ;;  %v15587_v54 = vld [vmem:[#allocation71_spill] sm:$0xff] }
 0xa5a   : > { %v5203_v22 = vpop.permute.xlu0 %5202  ;;  %v5235_v45 = vpop.permute.xlu1 %5234 }
 0xa5b   : > { %v6237_v24 = vsel %vm6209_vm12, %v6172_v43, %v5235_v45  ;;  %v6009_v45 = vsel %vm5949_vm7, %v5944_v52, %v13949_v7  ;;  %v8046_v7 = vld [vmem:[%s14646_s1 + $0x1d0] ss:$8 sps:$4 sm:$0xff]  }
 0xa5c   : > { %5260 = vrot.lane.b32.xlu0 %v15546_v39, %s8416_s15  ;;  %5292 = vrot.lane.b32.xlu1 %v15539_v6, %s8417_s22 }
 0xa5e   : > { %v14071_v4 = vpop.permute.xlu0 %5008  ;;  %v14073_v21 = vpop.permute.xlu1 %5040 }
 0xa60   : > { %5066 = vrot.lane.b32.xlu0 %v15560_v9, %s8413_s19  ;;  %4840 = vrot.lane.b32.xlu1 %v15567_v32, %s8410_s16 }
 0xa62   : > { %v5267_v62 = vpop.permute.xlu0 %5266  ;;  %v5299_v19 = vpop.permute.xlu1 %5298 }
 0xa63   : > { %v6302_v13 = vsel %vm6274_vm15, %v6237_v24, %v5299_v19  ;;  %v6074_v19 = vsel %vm6014_vm8, %v6009_v45, %v13974_v46  ;;  %v8048_v46 = vld [vmem:[%s14646_s1 + $0x1d4] ss:$8 sps:$4 sm:$0xff]  }
 0xa64   : > { %5324 = vrot.lane.b32.xlu0 %v15546_v39, %s8417_s22  ;;  %5098 = vrot.lane.b32.xlu1 %v15553_v41, %s8414_s20  ;;  %v6139_v11 = vsel %vm6079_vm9, %v6074_v19, %v14035_v31  ;;  %v15589_v19 = vld [vmem:[#allocation20_spill] sm:$0xff] }
 0xa65   : > { %v6204_v44 = vsel %vm6144_vm10, %v6139_v11, %v5203_v22 }
 0xa66   : > { %v14096_v29 = vpop.permute.xlu0 %5072  ;;  %v14098_v55 = vpop.permute.xlu1 %4846  ;;  %v6269_v18 = vsel %vm6209_vm12, %v6204_v44, %v5267_v62 }
 0xa68   : > { %4872 = vrot.lane.b32.xlu0 %v15574_v58, %s8410_s16  ;;  %5356 = vrot.lane.b32.xlu1 %v15539_v6, %s8418_s23 }
 0xa6a   : > { %v5331_v48 = vpop.permute.xlu0 %5330  ;;  %v14117_v30 = vpop.permute.xlu1 %5104 }
 0xa6b   : > { %v6334_v31 = vsel %vm6274_vm15, %v6269_v18, %v5331_v48  ;;  %v5438_v48 = vsel %vm3345_vm14, %v15509_v5, %v15581_v36 }
 0xa6c   : > { %5130 = vrot.lane.b32.xlu0 %v15560_v9, %s8414_s20  ;;  %4904 = vrot.lane.b32.xlu1 %v15567_v32, %s8411_s17  ;;  %v5522_v61 = vsel %vm5496_vm2, %v5438_v48, %v15582_v26 }
 0xa6d   : > { %v5586_v43 = vsel %vm2256_vm11, %v5522_v61, %v15583_v10 }
 0xa6e   : > { %v14142_v2 = vpop.permute.xlu0 %4878  ;;  %v5363_v57 = vpop.permute.xlu1 %5362 }
 0xa6f   : > { %v6380_v35 = vsel %vm6339_vm0, %v6302_v13, %v5363_v57 }
 0xa70   : > { %v6846_v17 = vmul.bf16 %v8043_v33, %v6380_v35  ;;  %v6847_v47 = vmul.bf16 %v8045_v12, %v6380_v35  ;;  %5388 = vrot.lane.b32.xlu0 %v15546_v39, %s8418_s23  ;;  %5162 = vrot.lane.b32.xlu1 %v15553_v41, %s8415_s21  ;;  %v15584_v33 = vld [vmem:[#allocation121_spill] sm:$0xff]  ;;  %v5486_v35 = vsel %vm3345_vm14, %v15517_v15, %v15587_v54 }
 0xa71   : > { %v5650_v12 = vsel %vm2959_vm13, %v5586_v43, %v15584_v33 }
 0xa72   : > { %v14157_v51 = vpop.permute.xlu0 %5136  ;;  %6912 = vmatprep.subr.bf16.mxu0 %v6847_v47  ;;  %v14159_v42 = vpop.permute.xlu1 %4910  ;;  %v5715_v5 = vsel %vm5689_vm3, %v5650_v12, %v15585_v28 }
 0xa73   : > { %6913 = vmatpush2.bf16.msra.mxu0 %v6846_v17  ;;  %v5780_v24 = vsel %vm5754_vm4, %v5715_v5, %v15586_v14  ;;  %v15588_v17 = vld [vmem:[#allocation41_spill] sm:$0xff] }
 0xa74   : > { %4936 = vrot.lane.b32.xlu0 %v15574_v58, %s8411_s17  ;;  %4968 = vrot.lane.b32.xlu1 %v15567_v32, %s8412_s18  ;;  %v5845_v13 = vsel %vm5819_vm6, %v5780_v24, %v13976_v20  ;;  %v5554_v47 = vsel %vm5496_vm2, %v5486_v35, %v15588_v17 }
 0xa75   : > { %v5910_v57 = vsel %vm5884_vm5, %v5845_v13, %v14037_v0  ;;  %v5618_v11 = vsel %vm2256_vm11, %v5554_v47, %v15589_v19  ;;  %v15593_v47 = vld [vmem:[#allocation99_spill] sm:$0xff] }
 0xa76   : > { %v5395_v23 = vpop.permute.xlu0 %5394  ;;  %v5169_v22 = vpop.permute.xlu1 %5168  ;;  %v5975_v52 = vsel %vm5949_vm7, %v5910_v57, %v14061_v53 }
 0xa77   : > { %v6428_v40 = vsel %vm6339_vm0, %v6334_v31, %v5395_v23  ;;  %v6040_v20 = vsel %vm6014_vm8, %v5975_v52, %v14073_v21  ;;  %v8049_v21 = vld [vmem:[%s14646_s1 + $0xc0] ss:$8 sps:$4 sm:$0xff]  }
 0xa78   : > { %v6878_v8 = vmul.bf16 %v8046_v7, %v6428_v40  ;;  %v6879_v60 = vmul.bf16 %v8048_v46, %v6428_v40  ;;  %5194 = vrot.lane.b32.xlu0 %v15560_v9, %s8415_s21  ;;  %5226 = vrot.lane.b32.xlu1 %v15553_v41, %s8416_s15  ;;  %v6105_v44 = vsel %vm6079_vm9, %v6040_v20, %v14117_v30  ;;  %v15590_v7 = vld [vmem:[#allocation135_spill] sm:$0xff] }
 0xa79   : > { %v5682_v15 = vsel %vm2959_vm13, %v5618_v11, %v15590_v7  ;;  %v6170_v53 = vsel %vm6144_vm10, %v6105_v44, %v5169_v22  ;;  %v8051_v46 = vld [vmem:[%s14646_s1 + $0xc4] ss:$8 sps:$4 sm:$0xff]   ;;  %v5435_v20 = vsel %vm3345_vm14, %v15524_v1, %v15593_v47 }
 0xa7a   : > { %v14181_v25 = vpop.permute.xlu0 %4942  ;;  %6965 = vmatprep.subr.bf16.mxu1 %v6879_v60  ;;  %v14183_v59 = vpop.permute.xlu1 %4974  ;;  %v15591_v30 = vld [vmem:[#allocation163_spill] sm:$0xff] }
 0xa7b   : > { %6966 = vmatpush2.bf16.msra.mxu1 %v6878_v8  ;;  %v5747_v18 = vsel %vm5689_vm3, %v5682_v15, %v15591_v30  ;;  %v15592_v23 = vld [vmem:[#allocation191_spill] sm:$0xff] }
 0xa7c   : > { %5000 = vrot.lane.b32.xlu0 %v15574_v58, %s8412_s18  ;;  %5032 = vrot.lane.b32.xlu1 %v15567_v32, %s8413_s19  ;;  %v5812_v22 = vsel %vm5754_vm4, %v5747_v18, %v15592_v23  ;;  %v15595_v7 = vld [vmem:[#allocation15_spill] sm:$0xff]  ;;  %v15598_v18 = vld [vmem:[#allocation178_spill] sm:$0xff] }
 0xa7d   : > { %v5877_v36 = vsel %vm5819_vm6, %v5812_v22, %v14020_v56 }
 0xa7e   : > { %v5201_v62 = vpop.permute.xlu0 %5200  ;;  %v5233_v3 = vpop.permute.xlu1 %5232  ;;  %v5942_v26 = vsel %vm5884_vm5, %v5877_v36, %v14059_v63 }
 0xa7f   : > { %v6235_v31 = vsel %vm6209_vm12, %v6170_v53, %v5233_v3  ;;  %v6007_v3 = vsel %vm5949_vm7, %v5942_v26, %v14071_v4  ;;  %v8052_v4 = vld [vmem:[%s14646_s1 + $0x1c0] ss:$8 sps:$4 sm:$0xff]   ;;  %v15596_v53 = vld [vmem:[#allocation122_spill] sm:$0xff] }
 0xa80   : > { %5258 = vrot.lane.b32.xlu0 %v15560_v9, %s8416_s15  ;;  %5290 = vrot.lane.b32.xlu1 %v15553_v41, %s8417_s22  ;;  %v15600_v26 = vld [vmem:[#allocation59_spill] sm:$0xff] }
 0xa82   : > { %v14193_v34 = vpop.permute.xlu0 %5006  ;;  %v14195_v27 = vpop.permute.xlu1 %5038 }
 0xa84   : > { %5064 = vrot.lane.b32.xlu0 %v15574_v58, %s8413_s19  ;;  %5096 = vrot.lane.b32.xlu1 %v15567_v32, %s8414_s20 }
 0xa86   : > { %v5265_v16 = vpop.permute.xlu0 %5264  ;;  %v5297_v37 = vpop.permute.xlu1 %5296 }
 0xa87   : > { %v6300_v40 = vsel %vm6274_vm15, %v6235_v31, %v5297_v37  ;;  %v6072_v37 = vsel %vm6014_vm8, %v6007_v3, %v14096_v29  ;;  %v8054_v29 = vld [vmem:[%s14646_s1 + $0x1c4] ss:$8 sps:$4 sm:$0xff]  }
 0xa88   : > { %5322 = vrot.lane.b32.xlu0 %v15560_v9, %s8417_s22  ;;  %5354 = vrot.lane.b32.xlu1 %v15553_v41, %s8418_s23  ;;  %v6137_v63 = vsel %vm6079_vm9, %v6072_v37, %v14157_v51  ;;  %v7030_v51 = vld [vmem:[%s14654_s9] sm:$0x3f] }
 0xa89   : > { %v6202_v33 = vsel %vm6144_vm10, %v6137_v63, %v5201_v62 }
 0xa8a   : > { %v14218_v38 = vpop.permute.xlu0 %5070  ;;  %v14220_v50 = vpop.permute.xlu1 %4844  ;;  %v6267_v12 = vsel %vm6209_vm12, %v6202_v33, %v5265_v16  ;;  %v15602_v33 = vld [vmem:[#allocation136_spill] sm:$0xff] }
 0xa8c   : > { %5128 = vrot.lane.b32.xlu0 %v15574_v58, %s8414_s20  ;;  %5160 = vrot.lane.b32.xlu1 %v15567_v32, %s8415_s21 }
 0xa8e   : > { %v5329_v0 = vpop.permute.xlu0 %5328  ;;  %v14239_v45 = vpop.permute.xlu1 %5102 }
 0xa8f   : > { %v6332_v62 = vsel %vm6274_vm15, %v6267_v12, %v5329_v0  ;;  %v15594_v0 = vld [vmem:[#allocation44_spill] sm:$0xff] }
 0xa90   : > { %5386 = vrot.lane.b32.xlu0 %v15560_v9, %s8418_s23  ;;  %5224 = vrot.lane.b32.xlu1 %v15567_v32, %s8416_s15  ;;  %v5520_v19 = vsel %vm5496_vm2, %v5435_v20, %v15594_v0 }
 0xa91   : > { %v5584_v15 = vsel %vm2256_vm11, %v5520_v19, %v15595_v7 }
 0xa92   : > { %v14264_v8 = vpop.permute.xlu0 %4876  ;;  %v5361_v60 = vpop.permute.xlu1 %5360 }
 0xa93   : > { %v6377_v48 = vsel %vm6339_vm0, %v6300_v40, %v5361_v60  ;;  %v15599_v60 = vld [vmem:[#allocation73_spill] sm:$0xff] }
 0xa94   : > { %v6844_v61 = vmul.bf16 %v8049_v21, %v6377_v48  ;;  %v6845_v10 = vmul.bf16 %v8051_v46, %v6377_v48  ;;  %5192 = vrot.lane.b32.xlu0 %v15574_v58, %s8415_s21  ;;  %5288 = vrot.lane.b32.xlu1 %v15567_v32, %s8417_s22  ;;  %v5648_v21 = vsel %vm2959_vm13, %v5584_v15, %v15596_v53  ;;  %v15597_v46 = vld [vmem:[#allocation150_spill] sm:$0xff] }
 0xa95   : > { %v5713_v30 = vsel %vm5689_vm3, %v5648_v21, %v15597_v46  ;;  %v5483_v36 = vsel %vm3345_vm14, %v15532_v49, %v15599_v60 }
 0xa96   : > { %v14279_v56 = vpop.permute.xlu0 %5134  ;;  %6914 = vmatprep.subr.bf16.mxu0 %v6845_v10  ;;  %v14281_v43 = vpop.permute.xlu1 %4908  ;;  %v5778_v31 = vsel %vm5754_vm4, %v5713_v30, %v15598_v18 }
 0xa97   : > { %6915 = vmatpush2.bf16.msra.mxu0 %v6844_v61  ;;  %v5843_v22 = vsel %vm5819_vm6, %v5778_v31, %v14098_v55  ;;  %v5552_v61 = vsel %vm5496_vm2, %v5483_v36, %v15600_v26  ;;  %v15601_v55 = vld [vmem:[#allocation77_spill] sm:$0xff] }
 0xa98   : > { %5256 = vrot.lane.b32.xlu0 %v15574_v58, %s8416_s15  ;;  %5352 = vrot.lane.b32.xlu1 %v15567_v32, %s8418_s23  ;;  %v5908_v40 = vsel %vm5884_vm5, %v5843_v22, %v14159_v42  ;;  %v5616_v63 = vsel %vm2256_vm11, %v5552_v61, %v15601_v55  ;;  %v15606_v26 = vld [vmem:[#allocation37_spill] sm:$0xff] }
 0xa99   : > { %v5973_v48 = vsel %vm5949_vm7, %v5908_v40, %v14183_v59  ;;  %v5680_v49 = vsel %vm2959_vm13, %v5616_v63, %v15602_v33  ;;  %v15607_v55 = vld [vmem:[#allocation61_spill] sm:$0xff] }
 0xa9a   : > { %v5393_v28 = vpop.permute.xlu0 %5392  ;;  %v5167_v5 = vpop.permute.xlu1 %5166  ;;  %v6038_v10 = vsel %vm6014_vm8, %v5973_v48, %v14195_v27  ;;  %v8057_v27 = vld [vmem:[%s14646_s1 + $0xb4] ss:$8 sps:$4 sm:$0xff]  }
 0xa9b   : > { %v6425_v14 = vsel %vm6339_vm0, %v6332_v62, %v5393_v28  ;;  %v6103_v42 = vsel %vm6079_vm9, %v6038_v10, %v14239_v45  ;;  %v15604_v62 = vld [vmem:[#allocation192_spill] sm:$0xff] }
 0xa9c   : > { %v6876_v24 = vmul.bf16 %v8052_v4, %v6425_v14  ;;  %v6877_v13 = vmul.bf16 %v8054_v29, %v6425_v14  ;;  %5320 = vrot.lane.b32.xlu0 %v15574_v58, %s8417_s22  ;;  %7033 = vperm.xlu1 %7923, %v7030_v51   ;;  %v6168_v59 = vsel %vm6144_vm10, %v6103_v42, %v5167_v5  ;;  %v8055_v4 = vld [vmem:[%s14646_s1 + $0xb0] ss:$8 sps:$4 sm:$0xff]   ;;  %v15603_v29 = vld [vmem:[#allocation164_spill] sm:$0xff]  ;;  %v15608_v42 = vld [vmem:[#allocation119_spill] sm:$0xff] }
 0xa9d   : > { %v5745_v12 = vsel %vm5689_vm3, %v5680_v49, %v15603_v29  ;;  %v15609_v49 = vld [vmem:[#allocation147_spill] sm:$0xff] }
 0xa9e   : > { %v14304_v57 = vpop.permute.xlu0 %4940  ;;  %6967 = vmatprep.subr.bf16.mxu1 %v6877_v13  ;;  %v14306_v16 = vpop.permute.xlu1 %4972  ;;  %v5810_v45 = vsel %vm5754_vm4, %v5745_v12, %v15604_v62  ;;  %v15611_v62 = vld [vmem:[#allocation101_spill] sm:$0xff] }
 0xa9f   : > { %6968 = vmatpush2.bf16.msra.mxu1 %v6876_v24  ;;  %v5875_v24 = vsel %vm5819_vm6, %v5810_v45, %v14142_v2  ;;  %v5480_v45 = vsel %vm3345_vm14, %v15546_v39, %v15611_v62 }
 0xaa0   : > { %5384 = vrot.lane.b32.xlu0 %v15574_v58, %s8418_s23  ;;  %v5940_v47 = vsel %vm5884_vm5, %v5875_v24, %v14181_v25  ;;  %v8058_v25 = vld [vmem:[%s14646_s1 + $0x1b0] ss:$8 sps:$4 sm:$0xff]   ;;  %s507_s23 = scalar_lea.vmem %s14658_s13, %s7369_s29 }
 0xaa2   : > { %v5199_v54 = vpop.permute.xlu0 %5198  ;;  %v5231_v35 = vpop.permute.xlu1 %5230 }
 0xaa3   : > { %v6233_v51 = vsel %vm6209_vm12, %v6168_v59, %v5231_v35  ;;  %v6005_v35 = vsel %vm5949_vm7, %v5940_v47, %v14193_v34  ;;  %v8060_v34 = vld [vmem:[%s14646_s1 + $0x1b4] ss:$8 sps:$4 sm:$0xff]  }
 0xaa4   : > { %v6070_v19 = vsel %vm6014_vm8, %v6005_v35, %v14218_v38  ;;  %v15614_v35 = vld [vmem:[#allocation133_spill] sm:$0xff] }
 0xaa5   : > { %v6135_v2 = vsel %vm6079_vm9, %v6070_v19, %v14279_v56 }
 0xaa6   : > { %v14310_v52 = vpop.permute.xlu0 %5004  ;;  %v14312_v17 = vpop.permute.xlu1 %5036  ;;  %v6200_v15 = vsel %vm6144_vm10, %v6135_v2, %v5199_v54  ;;  %v15615_v2 = vld [vmem:[#allocation161_spill] sm:$0xff] }
 0xaaa   : > { %v5263_v11 = vpop.permute.xlu0 %5262  ;;  %v5295_v44 = vpop.permute.xlu1 %5294 }
 0xaab   : > { %v6298_v28 = vsel %vm6274_vm15, %v6233_v51, %v5295_v44  ;;  %v6265_v38 = vsel %vm6209_vm12, %v6200_v15, %v5263_v11  ;;  %v15605_v11 = vld [vmem:[#allocation53_spill] sm:$0xff] }
 0xaac   : > { %v5432_v48 = vsel %vm3345_vm14, %v15539_v6, %v15605_v11 }
 0xaad   : > { %v5518_v61 = vsel %vm5496_vm2, %v5432_v48, %v15606_v26 }
 0xaae   : > { %v14327_v23 = vpop.permute.xlu0 %5068  ;;  %v14329_v1 = vpop.permute.xlu1 %4842  ;;  %v5582_v63 = vsel %vm2256_vm11, %v5518_v61, %v15607_v55 }
 0xaaf   : > { %v5646_v33 = vsel %vm2959_vm13, %v5582_v63, %v15608_v42 }
 0xab0   : > { %v5711_v59 = vsel %vm5689_vm3, %v5646_v33, %v15609_v49 }
 0xab2   : > { %v5327_v3 = vpop.permute.xlu0 %5326  ;;  %v14344_v37 = vpop.permute.xlu1 %5100 }
 0xab3   : > { %v6330_v53 = vsel %vm6274_vm15, %v6265_v38, %v5327_v3 }
 0xab6   : > { %v14365_v14 = vpop.permute.xlu0 %4874  ;;  %v5359_v5 = vpop.permute.xlu1 %5358 }
 0xab7   : > { %v6374_v13 = vsel %vm6339_vm0, %v6298_v28, %v5359_v5  ;;  %v15612_v5 = vld [vmem:[#allocation45_spill] sm:$0xff] }
 0xab8   : > { %v6842_v20 = vmul.bf16 %v8055_v4, %v6374_v13  ;;  %v6843_v0 = vmul.bf16 %v8057_v27, %v6374_v13  ;;  %v15610_v4 = vld [vmem:[#allocation175_spill] sm:$0xff]  ;;  %v5550_v24 = vsel %vm5496_vm2, %v5480_v45, %v15612_v5 }
 0xab9   : > { %v5776_v27 = vsel %vm5754_vm4, %v5711_v59, %v15610_v4  ;;  %v15619_v5 = vld [vmem:[#allocation83_spill] sm:$0xff] }
 0xaba   : > { %v14376_v44 = vpop.permute.xlu0 %5132  ;;  %6916 = vmatprep.subr.bf16.mxu0 %v6843_v0  ;;  %v14378_v7 = vpop.permute.xlu1 %4906  ;;  %v5841_v12 = vsel %vm5819_vm6, %v5776_v27, %v14220_v50  ;;  %v15613_v0 = vld [vmem:[#allocation66_spill] sm:$0xff] }
 0xabb   : > { %6917 = vmatpush2.bf16.msra.mxu0 %v6842_v20  ;;  %v5906_v51 = vsel %vm5884_vm5, %v5841_v12, %v14281_v43  ;;  %v5614_v50 = vsel %vm2256_vm11, %v5550_v24, %v15613_v0  ;;  %v15617_v12 = vld [vmem:[#allocation94_spill] sm:$0xff]  ;;  %v15621_v0 = vld [vmem:[#allocation148_spill] sm:$0xff] }
 0xabc   : > { %v5971_v28 = vsel %vm5949_vm7, %v5906_v51, %v14306_v16  ;;  %v5678_v39 = vsel %vm2959_vm13, %v5614_v50, %v15614_v35  ;;  %v8061_v16 = vld [vmem:[%s14646_s1 + $0xa0] ss:$8 sps:$4 sm:$0xff]  }
 0xabd   : > { %v6036_v13 = vsel %vm6014_vm8, %v5971_v28, %v14312_v17  ;;  %v8063_v17 = vld [vmem:[%s14646_s1 + $0xa4] ss:$8 sps:$4 sm:$0xff]   ;;  %v5743_v15 = vsel %vm5689_vm3, %v5678_v39, %v15615_v2 }
 0xabe   : > { %v5391_v21 = vpop.permute.xlu0 %5390  ;;  %v5165_v46 = vpop.permute.xlu1 %5164  ;;  %v6101_v43 = vsel %vm6079_vm9, %v6036_v13, %v14344_v37  ;;  %v15618_v51 = vld [vmem:[#allocation39_spill] sm:$0xff]  ;;  %v15620_v13 = vld [vmem:[#allocation120_spill] sm:$0xff] }
 0xabf   : > { %v6422_v30 = vsel %vm6339_vm0, %v6330_v53, %v5391_v21  ;;  %v6166_v19 = vsel %vm6144_vm10, %v6101_v43, %v5165_v46  ;;  %v15622_v43 = vld [vmem:[#allocation176_spill] sm:$0xff] }
 0xac0   : > { %v6874_v56 = vmul.bf16 %v8058_v25, %v6422_v30  ;;  %v6875_v18 = vmul.bf16 %v8060_v34, %v6422_v30  ;;  %v15616_v34 = vld [vmem:[#allocation189_spill] sm:$0xff] }
 0xac1   : > { %v5808_v37 = vsel %vm5754_vm4, %v5743_v15, %v15616_v34 }
 0xac2   : > { %v14392_v31 = vpop.permute.xlu0 %4938  ;;  %6969 = vmatprep.subr.bf16.mxu1 %v6875_v18  ;;  %v14394_v54 = vpop.permute.xlu1 %4970  ;;  %v5873_v46 = vsel %vm5819_vm6, %v5808_v37, %v14264_v8 }
 0xac3   : > { %6970 = vmatpush2.bf16.msra.mxu1 %v6874_v56  ;;  %v5938_v56 = vsel %vm5884_vm5, %v5873_v46, %v14304_v57  ;;  %v8064_v57 = vld [vmem:[%s14646_s1 + $0x1a0] ss:$8 sps:$4 sm:$0xff]  }
 0xac6   : > { %v5197_v22 = vpop.permute.xlu0 %5196  ;;  %v5229_v40 = vpop.permute.xlu1 %5228 }
 0xac7   : > { %v6231_v25 = vsel %vm6209_vm12, %v6166_v19, %v5229_v40  ;;  %v6003_v40 = vsel %vm5949_vm7, %v5938_v56, %v14310_v52  ;;  %v8066_v52 = vld [vmem:[%s14646_s1 + $0x1a4] ss:$8 sps:$4 sm:$0xff]  }
 0xac8   : > { %v6068_v48 = vsel %vm6014_vm8, %v6003_v40, %v14327_v23 }
 0xac9   : > { %v6133_v8 = vsel %vm6079_vm9, %v6068_v48, %v14376_v44  ;;  %v15628_v48 = vld [vmem:[#allocation190_spill] sm:$0xff] }
 0xaca   : > { %v14396_v60 = vpop.permute.xlu0 %5002  ;;  %v14398_v36 = vpop.permute.xlu1 %5034 }
 0xace   : > { %v5261_v10 = vpop.permute.xlu0 %5260  ;;  %v5293_v3 = vpop.permute.xlu1 %5292 }
 0xacf   : > { %v6296_v38 = vsel %vm6274_vm15, %v6231_v25, %v5293_v3  ;;  %v6198_v3 = vsel %vm6144_vm10, %v6133_v8, %v5197_v22  ;;  %v15624_v25 = vld [vmem:[#allocation30_spill] sm:$0xff] }
 0xad0   : > { %v6263_v23 = vsel %vm6209_vm12, %v6198_v3, %v5261_v10  ;;  %v5429_v10 = vsel %vm3345_vm14, %v15553_v41, %v15617_v12 }
 0xad1   : > { %v5516_v62 = vsel %vm5496_vm2, %v5429_v10, %v15618_v51 }
 0xad2   : > { %v14413_v29 = vpop.permute.xlu0 %5066  ;;  %v14415_v6 = vpop.permute.xlu1 %4840  ;;  %v5580_v24 = vsel %vm2256_vm11, %v5516_v62, %v15619_v5  ;;  %v15631_v62 = vld [vmem:[#allocation43_spill] sm:$0xff] }
 0xad6   : > { %v5325_v47 = vpop.permute.xlu0 %5324  ;;  %v5099_v20 = vpop.permute.xlu1 %5098 }
 0xad7   : > { %v6328_v55 = vsel %vm6274_vm15, %v6263_v23, %v5325_v47  ;;  %v5644_v47 = vsel %vm2959_vm13, %v5580_v24, %v15620_v13  ;;  %v8070_v13 = vld [vmem:[%s14646_s1 + $0x190] ss:$8 sps:$4 sm:$0xff]  }
 0xad8   : > { %v5709_v50 = vsel %vm5689_vm3, %v5644_v47, %v15621_v0  ;;  %v15633_v47 = vld [vmem:[#allocation146_spill] sm:$0xff] }
 0xad9   : > { %v5774_v35 = vsel %vm5754_vm4, %v5709_v50, %v15622_v43 }
 0xada   : > { %v14449_v53 = vpop.permute.xlu0 %4872  ;;  %v5357_v21 = vpop.permute.xlu1 %5356  ;;  %v5839_v19 = vsel %vm5819_vm6, %v5774_v35, %v14329_v1  ;;  %v15625_v1 = vld [vmem:[#allocation17_spill] sm:$0xff] }
 0xadb   : > { %v6371_v30 = vsel %vm6339_vm0, %v6296_v38, %v5357_v21 }
 0xadc   : > { %v6840_v18 = vmul.bf16 %v8061_v16, %v6371_v30  ;;  %v6841_v11 = vmul.bf16 %v8063_v17, %v6371_v30  ;;  %v5904_v16 = vsel %vm5884_vm5, %v5839_v19, %v14378_v7  ;;  %v15623_v17 = vld [vmem:[#allocation7_spill] sm:$0xff]  ;;  %v15626_v30 = vld [vmem:[#allocation134_spill] sm:$0xff] }
 0xadd   : > { %v5477_v2 = vsel %vm3345_vm14, %v15560_v9, %v15623_v17  ;;  %v5969_v15 = vsel %vm5949_vm7, %v5904_v16, %v14394_v54  ;;  %v8067_v54 = vld [vmem:[%s14646_s1 + $0x90] ss:$8 sps:$4 sm:$0xff]  }
 0xade   : > { %v14460_v26 = vpop.permute.xlu0 %5130  ;;  %6918 = vmatprep.subr.bf16.mxu0 %v6841_v11  ;;  %v14462_v61 = vpop.permute.xlu1 %4904  ;;  %v5548_v34 = vsel %vm5496_vm2, %v5477_v2, %v15624_v25  ;;  %v6034_v37 = vsel %vm6014_vm8, %v5969_v15, %v14398_v36  ;;  %v8069_v36 = vld [vmem:[%s14646_s1 + $0x94] ss:$8 sps:$4 sm:$0xff]  }
 0xadf   : > { %6919 = vmatpush2.bf16.msra.mxu0 %v6840_v18  ;;  %v5612_v46 = vsel %vm2256_vm11, %v5548_v34, %v15625_v1  ;;  %v6099_v7 = vsel %vm6079_vm9, %v6034_v37, %v5099_v20  ;;  %v15627_v18 = vld [vmem:[#allocation162_spill] sm:$0xff] }
 0xae0   : > { %v5676_v9 = vsel %vm2959_vm13, %v5612_v46, %v15626_v30  ;;  %v15635_v25 = vld [vmem:[#allocation58_spill] sm:$0xff]  ;;  %v15637_v30 = vld [vmem:[#allocation63_spill] sm:$0xff] }
 0xae1   : > { %v5741_v11 = vsel %vm5689_vm3, %v5676_v9, %v15627_v18  ;;  %v15636_v37 = vld [vmem:[#allocation42_spill] sm:$0xff] }
 0xae2   : > { %v5389_v63 = vpop.permute.xlu0 %5388  ;;  %v5163_v42 = vpop.permute.xlu1 %5162  ;;  %v5806_v20 = vsel %vm5754_vm4, %v5741_v11, %v15628_v48 }
 0xae3   : > { %v6419_v33 = vsel %vm6339_vm0, %v6328_v55, %v5389_v63  ;;  %v6164_v56 = vsel %vm6144_vm10, %v6099_v7, %v5163_v42 }
 0xae4   : > { %v6872_v44 = vmul.bf16 %v8064_v57, %v6419_v33  ;;  %v6873_v49 = vmul.bf16 %v8066_v52, %v6419_v33  ;;  %v5871_v52 = vsel %vm5819_vm6, %v5806_v20, %v14365_v14  ;;  %v15629_v33 = vld [vmem:[#allocation5_spill] sm:$0xff] }
 0xae5   : > { %v5936_v55 = vsel %vm5884_vm5, %v5871_v52, %v14392_v31 }
 0xae6   : > { %v14476_v59 = vpop.permute.xlu0 %4936  ;;  %6971 = vmatprep.subr.bf16.mxu1 %v6873_v49  ;;  %v14478_v22 = vpop.permute.xlu1 %4968  ;;  %v6001_v49 = vsel %vm5949_vm7, %v5936_v55, %v14396_v60 }
 0xae7   : > { %6972 = vmatpush2.bf16.msra.mxu1 %v6872_v44  ;;  %v5426_v44 = vsel %vm3345_vm14, %v15567_v32, %v15629_v33  ;;  %v6066_v14 = vsel %vm6014_vm8, %v6001_v49, %v14413_v29  ;;  %v15632_v32 = vld [vmem:[#allocation118_spill] sm:$0xff]  ;;  %v8076_v49 = vld [vmem:[%s14646_s1 + $0x180] ss:$8 sps:$4 sm:$0xff]  }
 0xae8   : > { %v6131_v5 = vsel %vm6079_vm9, %v6066_v14, %v14460_v26  ;;  %v8072_v29 = vld [vmem:[%s14646_s1 + $0x194] ss:$8 sps:$4 sm:$0xff]  }
 0xae9   : > { %v15634_v26 = vld [vmem:[#allocation174_spill] sm:$0xff] }
 0xaea   : > { %v5195_v4 = vpop.permute.xlu0 %5194  ;;  %v5227_v27 = vpop.permute.xlu1 %5226 }
 0xaeb   : > { %v6229_v40 = vsel %vm6209_vm12, %v6164_v56, %v5227_v27  ;;  %v15630_v27 = vld [vmem:[#allocation35_spill] sm:$0xff]  ;;  %v6196_v60 = vsel %vm6144_vm10, %v6131_v5, %v5195_v4  ;;  %v15638_v56 = vld [vmem:[#allocation132_spill] sm:$0xff]  ;;  %v15644_v5 = vld [vmem:[#allocation14_spill] sm:$0xff] }
 0xaec   : > { %v5514_v12 = vsel %vm5496_vm2, %v5426_v44, %v15630_v27 }
 0xaed   : > { %v5578_v31 = vsel %vm2256_vm11, %v5514_v12, %v15631_v62  ;;  %v15641_v12 = vld [vmem:[#allocation38_spill] sm:$0xff] }
 0xaee   : > { %v14485_v45 = vpop.permute.xlu0 %5000  ;;  %v5033_v28 = vpop.permute.xlu1 %5032  ;;  %v5642_v24 = vsel %vm2959_vm13, %v5578_v31, %v15632_v32  ;;  %v15643_v31 = vld [vmem:[#allocation36_spill] sm:$0xff] }
 0xaef   : > { %v5707_v0 = vsel %vm5689_vm3, %v5642_v24, %v15633_v47  ;;  %v15645_v32 = vld [vmem:[#allocation60_spill] sm:$0xff]  ;;  %v15646_v24 = vmov 0  }
 0xaf0   : > { %v5772_v43 = vsel %vm5754_vm4, %v5707_v0, %v15634_v26 }
 0xaf1   : > { %v5837_v19 = vsel %vm5819_vm6, %v5772_v43, %v14415_v6 }
 0xaf2   : > { %v5259_v39 = vpop.permute.xlu0 %5258  ;;  %v5291_v41 = vpop.permute.xlu1 %5290  ;;  %v5902_v17 = vsel %vm5884_vm5, %v5837_v19, %v14462_v61 }
 0xaf3   : > { %v6294_v8 = vsel %vm6274_vm15, %v6229_v40, %v5291_v41  ;;  %v6261_v50 = vsel %vm6209_vm12, %v6196_v60, %v5259_v39  ;;  %v5474_v39 = vsel %vm3345_vm14, %v15574_v58, %v15635_v25  ;;  %v5967_v34 = vsel %vm5949_vm7, %v5902_v17, %v14478_v22  ;;  %v8073_v22 = vld [vmem:[%s14646_s1 + $0x80] ss:$8 sps:$4 sm:$0xff]  }
 0xaf4   : > { %v5546_v1 = vsel %vm5496_vm2, %v5474_v39, %v15636_v37  ;;  %v6032_v46 = vsel %vm6014_vm8, %v5967_v34, %v5033_v28  ;;  %v8075_v28 = vld [vmem:[%s14646_s1 + $0x84] ss:$8 sps:$4 sm:$0xff]  }
 0xaf5   : > { %v5610_v61 = vsel %vm2256_vm11, %v5546_v1, %v15637_v30  ;;  %v15647_v60 = vld [vmem:[#allocation12_spill] sm:$0xff] }
 0xaf6   : > { %v14508_v38 = vpop.permute.xlu0 %5064  ;;  %v5097_v21 = vpop.permute.xlu1 %5096  ;;  %v5674_v58 = vsel %vm2959_vm13, %v5610_v61, %v15638_v56 }
 0xaf7   : > { %v6097_v9 = vsel %vm6079_vm9, %v6032_v46, %v5097_v21  ;;  %v15640_v21 = vld [vmem:[#allocation188_spill] sm:$0xff] }
 0xafa   : > { %v5323_v3 = vpop.permute.xlu0 %5322  ;;  %v5355_v57 = vpop.permute.xlu1 %5354 }
 0xafb   : > { %v6368_v23 = vsel %vm6339_vm0, %v6294_v8, %v5355_v57  ;;  %v6326_v35 = vsel %vm6274_vm15, %v6261_v50, %v5323_v3 }
 0xafc   : > { %v6838_v63 = vmul.bf16 %v8067_v54, %v6368_v23  ;;  %v6839_v42 = vmul.bf16 %v8069_v36, %v6368_v23  ;;  %v15639_v36 = vld [vmem:[#allocation160_spill] sm:$0xff] }
 0xafd   : > { %v5739_v18 = vsel %vm5689_vm3, %v5674_v58, %v15639_v36 }
 0xafe   : > { %v5129_v10 = vpop.permute.xlu0 %5128  ;;  %6920 = vmatprep.subr.bf16.mxu0 %v6839_v42  ;;  %v5161_v51 = vpop.permute.xlu1 %5160  ;;  %v5804_v40 = vsel %vm5754_vm4, %v5739_v18, %v15640_v21 }
 0xaff   : > { %6921 = vmatpush2.bf16.msra.mxu0 %v6838_v63  ;;  %v6162_v54 = vsel %vm6144_vm10, %v6097_v9, %v5161_v51  ;;  %v5869_v3 = vsel %vm5819_vm6, %v5804_v40, %v14449_v53 }
 0xb00   : > { %v5934_v52 = vsel %vm5884_vm5, %v5869_v3, %v14476_v59  ;;  %v8078_v59 = vld [vmem:[%s14646_s1 + $0x184] ss:$8 sps:$4 sm:$0xff]  }
 0xb01   : > { %v5999_v63 = vsel %vm5949_vm7, %v5934_v52, %v14485_v45 }
 0xb02   : > { %v5387_v41 = vpop.permute.xlu0 %5386  ;;  %v5225_v4 = vpop.permute.xlu1 %5224  ;;  %v6064_v42 = vsel %vm6014_vm8, %v5999_v63, %v14508_v38 }
 0xb03   : > { %v6416_v16 = vsel %vm6339_vm0, %v6326_v35, %v5387_v41  ;;  %v6227_v11 = vsel %vm6209_vm12, %v6162_v54, %v5225_v4  ;;  %v6129_v44 = vsel %vm6079_vm9, %v6064_v42, %v5129_v10  ;;  %v15642_v10 = vld [vmem:[#allocation29_spill] sm:$0xff]  ;;  %v7029_v54 = vld [vmem:[%s14653_s8] sm:$0x7] }
 0xb04   : > { %v6870_v2 = vmul.bf16 %v8070_v13, %v6416_v16  ;;  %v6871_v15 = vmul.bf16 %v8072_v29, %v6416_v16 }
 0xb06   : > { %v5193_v6 = vpop.permute.xlu0 %5192  ;;  %6973 = vmatprep.subr.bf16.mxu1 %v6871_v15  ;;  %v5289_v7 = vpop.permute.xlu1 %5288 }
 0xb07   : > { %6974 = vmatpush2.bf16.msra.mxu1 %v6870_v2  ;;  %v6292_v48 = vsel %vm6274_vm15, %v6227_v11, %v5289_v7  ;;  %v6194_v53 = vsel %vm6144_vm10, %v6129_v44, %v5193_v6 }
 0xb0a   : > { %v5257_v20 = vpop.permute.xlu0 %5256  ;;  %v5353_v8 = vpop.permute.xlu1 %5352 }
 0xb0b   : > { %v6365_v57 = vsel %vm6339_vm0, %v6292_v48, %v5353_v8  ;;  %v6259_v45 = vsel %vm6209_vm12, %v6194_v53, %v5257_v20 }
 0xb0c   : > { %v6836_v23 = vmul.bf16 %v8073_v22, %v6365_v57  ;;  %v6837_v55 = vmul.bf16 %v8075_v28, %v6365_v57 }
 0xb0e   : > { %v5321_v33 = vpop.permute.xlu0 %5320  ;;  %6922 = vmatprep.subr.bf16.mxu0 %v6837_v55 }
 0xb0f   : > { %6923 = vmatpush2.bf16.msra.mxu0 %v6836_v23  ;;  %v6324_v27 = vsel %vm6274_vm15, %v6259_v45, %v5321_v33 }
 0xb12   : > { %v5385_v38 = vpop.permute.xlu0 %5384  ;;  %6925 = vmatmul.mubr.bf16.vlgmr.msra.gmra.mxu0 %v15641_v12 }
 0xb13   : > { %v6413_v14 = vsel %vm6339_vm0, %v6324_v27, %v5385_v38  ;;  %6934 = vmatprep.mubr.bf16.mxu0 %v15642_v10 }
 0xb14   : > { %v6868_v51 = vmul.bf16 %v8076_v49, %v6413_v14  ;;  %v6869_v62 = vmul.bf16 %v8078_v59, %v6413_v14 }
 0xb16   : > { %6975 = vmatprep.subr.bf16.mxu1 %v6869_v62 }
 0xb17   : > { %6976 = vmatpush2.bf16.msra.mxu1 %v6868_v51  ;;  %v7034_v22 = vpop.permute.xlu1 %7033 }
 0xb1a   : > { %6935 = vmatmul.mubr.bf16.gmra.mxu0 %v15643_v31  ;;  %6978 = vmatmul.mubr.bf16.vlgmr.msra.gmra.mxu1 %v15644_v5 }
 0xb1b   : > { %6987 = vmatprep.mubr.bf16.mxu1 %v15645_v32  ;;  %7071 = vmatprep.mubr.bf16.mxu0 %v15646_v24 }
 0xb22   : > { %6988 = vmatmul.mubr.bf16.gmra.mxu1 %v15647_v60 }
 0xbd2   : > { %v6926_v13 = vpop.f32.mrf.mxu0 }
 0xbd4   : > { %v6928_v29 = vpop.f32.mrf.mxu0 }
 0xbd6   : > { %v6930_v47 = vpop.f32.mrf.mxu0 }
 0xbd8   : > { %v6932_v0 = vpop.f32.mrf.mxu0 }
 0xbda   : > { %v6979_v50 = vpop.f32.mrf.mxu1  ;;  %v6936_v26 = vpop.f32.mrf.mxu0 }
 0xbdb   : > { %v6980_v56 = vadd.f32 %v6979_v50, %v6926_v13 }
 0xbdc   : > { %v6981_v43 = vpop.f32.mrf.mxu1  ;;  %v6938_v41 = vpop.f32.mrf.mxu0 }
 0xbdd   : > { %v6982_v6 = vadd.f32 %v6981_v43, %v6928_v29 }
 0xbde   : > { %v6983_v35 = vpop.f32.mrf.mxu1  ;;  %v6940_v16 = vpop.f32.mrf.mxu0 }
 0xbdf   : > { %v6984_v30 = vadd.f32 %v6983_v35, %v6930_v47 }
 0xbe0   : > { %v6985_v4 = vpop.f32.mrf.mxu1  ;;  %v6942_v15 = vpop.f32.mrf.mxu0 }
 0xbe1   : > { %v6986_v34 = vadd.f32 %v6985_v4, %v6932_v0  ;;  %v7025_v58 = vpack.c.bf16 %v6984_v30, %v6980_v56  ;;  %v15648_v4 = vld [vmem:[#allocation4_spill] sm:$0xff] }
 0xbe2   : > { %v6989_v19 = vpop.f32.mrf.mxu1 }
 0xbe3   : > { %v6990_v46 = vadd.f32 %v6989_v19, %v6936_v26  ;;  %v7026_v9 = vpack.c.bf16 %v6986_v34, %v6982_v6 }
 0xbe4   : > { %v6991_v17 = vpop.f32.mrf.mxu1 }
 0xbe5   : > { %v6992_v37 = vadd.f32 %v6991_v17, %v6938_v41  ;;  %v15649_v17 = vlaneseq }
 0xbe6   : > { %v6993_v2 = vpop.f32.mrf.mxu1 }
 0xbe7   : > { %v6994_v25 = vadd.f32 %v6993_v2, %v6940_v16  ;;  %vm7164_vm8 = vcmp.lt.s32.totalorder %v15649_v17, 256 }
 0xbe8   : > { %v6995_v39 = vpop.f32.mrf.mxu1 }
 0xbe9   : > { %v6996_v1 = vadd.f32 %v6995_v39, %v6942_v15  ;;  %v7027_v61 = vpack.c.bf16 %v6994_v25, %v6990_v46 }
 0xbeb   : > { %v7028_v7 = vpack.c.bf16 %v6996_v1, %v6992_v37 }
 0xbed   : > { %7051 = vmatprep.subr.bf16.mxu0 %v7028_v7 }
 0xbee   : > { %7052 = vmatpush1.bf16.msra.mxu0 %v7027_v61 }
 0xbef   : > { %7053 = vmatprep.subr.bf16.mxu0 %v7026_v9 }
 0xbf2   : > { %7054 = vmatpush1.bf16.msra.mxu0 %v7025_v58 }
 0xbf5   : > { %7560 = vmatmul.mubr.msk.bf16.vlgmr.msra.gmra.mxu0 %vm2959_vm13, %v7029_v54 }
 0xcb5   : > { %v7073_v28 = vpop.f32.mrf.mxu0 }
 0xcb6   : > { %v7074_v36 = vadd.f32 %v7073_v28, %v7034_v22 }
 0xcb7   : > { %v7075_v18 = vpop.f32.mrf.mxu0 }
 0xcb8   : > { %7080 = vst [vmem:[%s503_s24] sm:$0x3f] %v7074_v36  ;;  %v7084_v11 = vrot.slane %v7074_v36, 7  ;;  %v7076_v21 = vadd.f32 %v7075_v18, %v7034_v22 }
 0xcb9   : > { %v7077_v40 = vpop.f32.mrf.mxu0 }
 0xcba   : > { %vm7088_vm11 = vcmp.gt.f32.partialorder %v7074_v36, %v7084_v11  ;;  %7081 = vst [vmem:[%s503_s24 + $0x8] sm:$0x3f] %v7076_v21  ;;  %v7085_v48 = vrot.slane %v7076_v21, 7 }
 0xcbb   : > { %v7090_v20 = vsel %vm7088_vm11, %v7074_v36, %v7084_v11  ;;  %v7092_v8 = vsel %vm7088_vm11, 1, %v15646_v24  ;;  %v7078_v3 = vpop.f32.mrf.mxu0 }
 0xcbc   : > { %v7096_v57 = vrot.slane %v7090_v20, 7  ;;  %v7104_v52 = vrot.slane %v7092_v8, 7  ;;  %vm7089_vm13 = vcmp.gt.f32.partialorder %v7076_v21, %v7085_v48 }
 0xcbd   : > { %v7091_v23 = vsel %vm7089_vm13, %v7076_v21, %v7085_v48  ;;  %v7093_v55 = vsel %vm7089_vm13, 1, %v15646_v24 }
 0xcbe   : > { %vm7100_vm14 = vcmp.gt.f32.partialorder %v7074_v36, %v7096_v57  ;;  %v7097_v63 = vrot.slane %v7091_v23, 7  ;;  %v7105_v42 = vrot.slane %v7093_v55, 7 }
 0xcbf   : > { %v7102_v33 = vsel %vm7100_vm14, %v7074_v36, %v7096_v57  ;;  %v7106_v44 = vsel %vm7100_vm14, 2, %v7104_v52 }
 0xcc0   : > { %v7110_v53 = vrot.slane %v7102_v33, 7  ;;  %v7118_v49 = vrot.slane %v7106_v44, 7  ;;  %vm7101_vm1 = vcmp.gt.f32.partialorder %v7076_v21, %v7097_v63 }
 0xcc1   : > { %v7103_v59 = vsel %vm7101_vm1, %v7076_v21, %v7097_v63  ;;  %v7107_v45 = vsel %vm7101_vm1, 2, %v7105_v42 }
 0xcc2   : > { %vm7114_vm2 = vcmp.gt.f32.partialorder %v7074_v36, %v7110_v53  ;;  %v7111_v27 = vrot.slane %v7103_v59, 7  ;;  %v7119_v38 = vrot.slane %v7107_v45, 7 }
 0xcc3   : > { %v7116_v12 = vsel %vm7114_vm2, %v7074_v36, %v7110_v53  ;;  %v7120_v14 = vsel %vm7114_vm2, 3, %v7118_v49 }
 0xcc4   : > { %v7124_v10 = vrot.slane %v7116_v12, 7  ;;  %v7132_v51 = vrot.slane %v7120_v14, 7  ;;  %vm7115_vm3 = vcmp.gt.f32.partialorder %v7076_v21, %v7111_v27 }
 0xcc5   : > { %v7117_v62 = vsel %vm7115_vm3, %v7076_v21, %v7111_v27  ;;  %v7121_v31 = vsel %vm7115_vm3, 3, %v7119_v38 }
 0xcc6   : > { %vm7128_vm4 = vcmp.gt.f32.partialorder %v7074_v36, %v7124_v10  ;;  %v7125_v5 = vrot.slane %v7117_v62, 7  ;;  %v7133_v32 = vrot.slane %v7121_v31, 7 }
 0xcc7   : > { %v7130_v24 = vsel %vm7128_vm4, %v7074_v36, %v7124_v10  ;;  %v7134_v60 = vsel %vm7128_vm4, 4, %v7132_v51 }
 0xcc8   : > { %v7138_v13 = vrot.slane %v7130_v24, 7  ;;  %vm7129_vm5 = vcmp.gt.f32.partialorder %v7076_v21, %v7125_v5  ;;  %v7144_v29 = vrot.slane %v7134_v60, 7 }
 0xcc9   : > { %v7131_v47 = vsel %vm7129_vm5, %v7076_v21, %v7125_v5  ;;  %v7135_v0 = vsel %vm7129_vm5, 4, %v7133_v32 }
 0xcca   : > { %vm7142_vm6 = vcmp.gt.f32.partialorder %v7074_v36, %v7138_v13  ;;  %v7139_v50 = vrot.slane %v7131_v47, 7  ;;  %v7145_v26 = vrot.slane %v7135_v0, 7 }
 0xccb   : > { %v7146_v43 = vsel %vm7142_vm6, 5, %v7144_v29 }
 0xccc   : > { %vm7143_vm7 = vcmp.gt.f32.partialorder %v7076_v21, %v7139_v50 }
 0xccd   : > { %v7147_v35 = vsel %vm7143_vm7, 5, %v7145_v26 }
 0xcce   : > { %v7148_v41 = vcombine.high %v7146_v43, %v7147_v35 }
 0xcd0   : > { %v7155_v19 = vrot.slane %v7148_v41, %v15648_v4 }
 0xcd2   : > { %v7156_v16 = vcombine.high %v7155_v19, %v7155_v19 }
 0xcd4   : > { %v7163_v2 = vrot.slane %v7156_v16, %v15648_v4 }
 0xcd6   : > { %7166 = vst.msk [vmem:[%s507_s23] sm:$0x3] %vm7164_vm8, %v7163_v2 }
 0xcd7 PF: > { %s24_s27 = sadd.s32 1, %s8392_s27   ;;  %s15650_s25 = smov %s8388_s26 }
 0xcd8   : > { %p21_p5 = scmp.ge.s32.totalorder %s24_s27, 4   ;;  %s15651_s26 = smov %s15653_s28 }
 0xcda   :  { %23 = sbr.rel (!%p21_p5) target bundleno = 2 (0x2), region = 135 }

</bundles_post_ra>
